<compile_context>
chip_gen: v6e
topology: v6e:2x2x1
jax: 0.10.0
libtpu: 0.0.40
codegen_flags: <defaults>
</compile_context>

<pallas_src>
import jax
import jax.numpy as jnp
from jax import lax
from jax.experimental import pallas as pl
from jax.experimental.pallas import tpu as pltpu

_EPS = 1e-12


def _ceil_div(a, b):
  return -(-a // b)


def _round_up(a, m):
  return _ceil_div(a, m) * m


def attention_model_kernel(
    # sequence inputs (time-major), batch-tiled along axis 1
    asp_emb_ref, ctx_emb_ref, asp_mask_ref, ctx_mask_ref,
    # LSTM input projections (fused gates i|f|g|o): wih [E,4H], bias [1,4H]
    asp_wih_ref, ctx_wih_ref, asp_b_ref, ctx_b_ref,
    # block-diagonal recurrent weight: [2H, 8H] = blockdiag(Whh_asp, Whh_ctx)
    whh_cat_ref,
    # attention params: W pre-transposed so q = avg @ W.T ; bias [1,1]
    asp_attn_wt_ref, asp_attn_b_ref, ctx_attn_wt_ref, ctx_attn_b_ref,
    # final fc split: Wa [H,out], Wc [H,out], b [1,out]
    fc_wa_ref, fc_wc_ref, fc_b_ref,
    # output [Bt, out_dims]
    out_ref,
    # scratch
    op_cat_ref, asp_xw_ref, ctx_xw_ref):

  Ta, Bt, E = asp_emb_ref.shape
  Tc = ctx_emb_ref.shape[0]
  H = asp_attn_wt_ref.shape[0]
  H4 = 4 * H
  Tmin = min(Ta, Tc)

  # ---- hoisted input projection: one [T*Bt,E]@[E,4H] matmul per sequence ----
  def project(emb_ref, wih_ref, b_ref, xw_ref):
    T = emb_ref.shape[0]
    x_all = emb_ref[...].reshape(T * Bt, E)                               # bf16
    xw = jnp.dot(x_all, wih_ref[...],
                 preferred_element_type=jnp.float32) + b_ref[...]          # f32
    xw_ref[...] = xw.reshape(T, Bt, H4)

  project(asp_emb_ref, asp_wih_ref, asp_b_ref, asp_xw_ref)
  project(ctx_emb_ref, ctx_wih_ref, ctx_b_ref, ctx_xw_ref)

  whh_cat = whh_cat_ref[...]                     # [2H, 8H] bf16, block-diag

  def _sigmoid(x):
    # sigmoid via tanh: stays on the EUP, no f32 divide on the critical chain.
    return 0.5 * jnp.tanh(0.5 * x) + 0.5

  def lstm_gate(gates, c):
    # gates: [Bt, 4H], PyTorch order i|f|g|o. One lane-dense sigmoid pass and
    # one lane-dense tanh pass, then 32-lane slices off the results.
    sg = _sigmoid(gates)
    tg = jnp.tanh(gates)
    i_g = sg[:, 0 * H:1 * H]
    f_g = sg[:, 1 * H:2 * H]
    o_g = sg[:, 3 * H:4 * H]
    g_g = tg[:, 2 * H:3 * H]
    c_new = f_g * c + i_g * g_g
    h_new = o_g * jnp.tanh(c_new)
    return h_new, c_new

  # ---- joint recurrence: both LSTMs advance with ONE block-diag matmul ----
  def joint_body(t, carry):
    h_cat, c_a, c_c = carry
    g_cat = jnp.dot(h_cat.astype(jnp.bfloat16), whh_cat,
                    preferred_element_type=jnp.float32)                   # [Bt,8H]
    h_a, c_a = lstm_gate(g_cat[:, 0:H4] + asp_xw_ref[t], c_a)
    h_c, c_c = lstm_gate(g_cat[:, H4:2 * H4] + ctx_xw_ref[t], c_c)
    h_cat = jnp.concatenate([h_a, h_c], axis=1)                           # [Bt,2H]
    op_cat_ref[t] = h_cat                                                 # one 64-lane store
    return (h_cat, c_a, c_c)

  zeros_h = jnp.zeros((Bt, H), jnp.float32)
  h_cat0 = jnp.zeros((Bt, 2 * H), jnp.float32)
  h_cat, c_a, c_c = lax.fori_loop(0, Tmin, joint_body,
                                  (h_cat0, zeros_h, zeros_h), unroll=True)

  # ---- tail: only the longer sequence keeps advancing (one of these loops
  # has zero trip count; both are static Python branches). ----
  def asp_tail(t, carry):
    h_cat, c_a = carry
    g_cat = jnp.dot(h_cat.astype(jnp.bfloat16), whh_cat,
                    preferred_element_type=jnp.float32)
    h_a, c_a = lstm_gate(g_cat[:, 0:H4] + asp_xw_ref[t], c_a)
    h_cat = jnp.concatenate([h_a, h_cat[:, H:2 * H]], axis=1)
    op_cat_ref[t] = h_cat
    return (h_cat, c_a)

  def ctx_tail(t, carry):
    h_cat, c_c = carry
    g_cat = jnp.dot(h_cat.astype(jnp.bfloat16), whh_cat,
                    preferred_element_type=jnp.float32)
    h_c, c_c = lstm_gate(g_cat[:, H4:2 * H4] + ctx_xw_ref[t], c_c)
    h_cat = jnp.concatenate([h_cat[:, 0:H], h_c], axis=1)
    op_cat_ref[t] = h_cat
    return (h_cat, c_c)

  if Ta > Tmin:
    lax.fori_loop(Tmin, Ta, asp_tail, (h_cat, c_a), unroll=True)
  if Tc > Tmin:
    lax.fori_loop(Tmin, Tc, ctx_tail, (h_cat, c_c), unroll=True)

  # ---- masked LSTM outputs ----
  asp_mask = asp_mask_ref[...]                           # [Ta,Bt,1]
  ctx_mask = ctx_mask_ref[...]                           # [Tc,Bt,1]
  op_cat = op_cat_ref[...]                               # [Tmax,Bt,2H]
  asp_op = op_cat[0:Ta, :, 0:H] * asp_mask               # [Ta,Bt,H]
  ctx_op = op_cat[0:Tc, :, H:2 * H] * ctx_mask           # [Tc,Bt,H]

  def masked_avg(op, mask):
    denom = jnp.maximum(jnp.sum(mask, axis=0), _EPS)                      # [Bt,1]
    return jnp.sum(op, axis=0) * pl.reciprocal(denom, approx=True)        # [Bt,H]

  asp_avg = masked_avg(asp_op, asp_mask)
  ctx_avg = masked_avg(ctx_op, ctx_mask)

  def attention(op, mask, other_avg, wt_ref, b_ref):
    # op @ W @ avg  ==  op . (avg @ W.T); wt_ref holds W.T so q = avg @ wt.
    q = jnp.dot(other_avg, wt_ref[...],
                preferred_element_type=jnp.float32)                       # [Bt,H]
    score = jnp.tanh(jnp.sum(op * q[None, :, :], axis=-1, keepdims=True)
                     + b_ref[...])                                         # [T,Bt,1]
    # No max-subtraction needed: score = tanh(.)+b is bounded.
    e = jnp.exp(score) * mask
    denom = jnp.maximum(jnp.sum(e, axis=0, keepdims=True), _EPS)           # [1,Bt,1]
    return e * pl.reciprocal(denom, approx=True)                           # [T,Bt,1]

  asp_attn = attention(asp_op, asp_mask, ctx_avg, asp_attn_wt_ref, asp_attn_b_ref)
  ctx_attn = attention(ctx_op, ctx_mask, asp_avg, ctx_attn_wt_ref, ctx_attn_b_ref)

  # attention-weighted sum over time
  asp_feats = jnp.sum(asp_attn * asp_op, axis=0)         # [Bt,H]
  ctx_feats = jnp.sum(ctx_attn * ctx_op, axis=0)         # [Bt,H]

  # split FC: avoids a lane-concat of two 32-lane tensors.
  logits = (jnp.dot(asp_feats, fc_wa_ref[...], preferred_element_type=jnp.float32)
            + jnp.dot(ctx_feats, fc_wc_ref[...], preferred_element_type=jnp.float32)
            + fc_b_ref[...])
  out_ref[...] = jnp.tanh(logits)


def attention_model_forward(aspect_ids, context_ids, aspect_mask, context_mask,
                            params):
  """Embedding lookup + layout prep, then one batch-tiled Pallas kernel."""
  emb = params['embedding']                          # [V,E] bf16
  B, Ta = aspect_ids.shape
  Tc = context_ids.shape[1]
  E = params['asp_wih'].shape[0]
  H = params['asp_whh'].shape[0]
  out_dims = params['fc_w'].shape[1]
  Tmax = max(Ta, Tc)

  # ---- batch tiling: pad B with dummy rows so every tile is sublane-aligned
  # (16 rows for bf16 packing) and the grid has >= 2 steps (both v7x TCs).
  # Bt is capped at 64: big enough to fill the MXU M dim, small enough that the
  # unrolled recurrence (h/c/gates live state) does not spill the vreg file.
  TILE_CAP = 64
  num_tiles = max(2, _ceil_div(B, TILE_CAP))
  Bt = _round_up(_ceil_div(B, num_tiles), 16)
  B_pad = num_tiles * Bt
  pad = B_pad - B
  if pad:
    aspect_ids = jnp.pad(aspect_ids, ((0, pad), (0, 0)))     # id 0, mask 0 rows
    context_ids = jnp.pad(context_ids, ((0, pad), (0, 0)))
    aspect_mask = jnp.pad(aspect_mask, ((0, pad), (0, 0)))
    context_mask = jnp.pad(context_mask, ((0, pad), (0, 0)))

  asp_emb = jnp.take(emb, aspect_ids, axis=0)        # [Bp,Ta,E]
  ctx_emb = jnp.take(emb, context_ids, axis=0)       # [Bp,Tc,E]
  # TODO(synk): nn.Dropout(p=0.01) is stochastic in training mode; modelled as
  # identity (eval mode) here.

  asp_emb_t = jnp.transpose(asp_emb, (1, 0, 2)).astype(jnp.bfloat16)     # [Ta,Bp,E]
  ctx_emb_t = jnp.transpose(ctx_emb, (1, 0, 2)).astype(jnp.bfloat16)     # [Tc,Bp,E]
  asp_mask_t = aspect_mask.T.astype(jnp.float32)[:, :, None]             # [Ta,Bp,1]
  ctx_mask_t = context_mask.T.astype(jnp.float32)[:, :, None]            # [Tc,Bp,1]

  # Block-diagonal recurrent weight: [h_asp | h_ctx] @ whh_cat ->
  # [asp gates (4H) | ctx gates (4H)], one 256-lane MXU pass per joint step.
  whh_cat = jnp.zeros((2 * H, 8 * H), jnp.bfloat16)
  whh_cat = whh_cat.at[0:H, 0:4 * H].set(params['asp_whh'].astype(jnp.bfloat16))
  whh_cat = whh_cat.at[H:2 * H, 4 * H:8 * H].set(params['ctx_whh'].astype(jnp.bfloat16))

  fc_wa = params['fc_w'][:H]                         # [H,out]
  fc_wc = params['fc_w'][H:]                         # [H,out]

  grid = (B_pad // Bt,)
  seq_map = lambda b: (0, b, 0)     # tile over batch axis (axis 1)
  rep_map = lambda b: (0, 0)        # weights: constant block -> VMEM resident

  inputs = [
      asp_emb_t, ctx_emb_t, asp_mask_t, ctx_mask_t,
      params['asp_wih'], params['ctx_wih'], params['asp_b'], params['ctx_b'],
      whh_cat,
      params['asp_attn_w'].T, params['asp_attn_b'],   # pre-transpose: q = avg @ W.T
      params['ctx_attn_w'].T, params['ctx_attn_b'],
      fc_wa, fc_wc, params['fc_b'],
  ]
  in_specs = [
      pl.BlockSpec((Ta, Bt, E), seq_map),
      pl.BlockSpec((Tc, Bt, E), seq_map),
      pl.BlockSpec((Ta, Bt, 1), seq_map),
      pl.BlockSpec((Tc, Bt, 1), seq_map),
      pl.BlockSpec((E, 4 * H), rep_map),
      pl.BlockSpec((E, 4 * H), rep_map),
      pl.BlockSpec((1, 4 * H), rep_map),
      pl.BlockSpec((1, 4 * H), rep_map),
      pl.BlockSpec((2 * H, 8 * H), rep_map),
      pl.BlockSpec((H, H), rep_map),
      pl.BlockSpec((1, 1), rep_map),
      pl.BlockSpec((H, H), rep_map),
      pl.BlockSpec((1, 1), rep_map),
      pl.BlockSpec((H, out_dims), rep_map),
      pl.BlockSpec((H, out_dims), rep_map),
      pl.BlockSpec((1, out_dims), rep_map),
  ]

  grid_spec = pltpu.PrefetchScalarGridSpec(
      num_scalar_prefetch=0,
      grid=grid,
      in_specs=in_specs,
      out_specs=pl.BlockSpec((Bt, out_dims), lambda b: (b, 0)),
      scratch_shapes=[
          pltpu.VMEM((Tmax, Bt, 2 * H), jnp.float32),   # combined h outputs
          pltpu.VMEM((Ta, Bt, 4 * H), jnp.float32),     # aspect  x@Wih + b (all t)
          pltpu.VMEM((Tc, Bt, 4 * H), jnp.float32),     # context x@Wih + b (all t)
      ],
  )

  out = pl.pallas_call(
      attention_model_kernel,
      out_shape=jax.ShapeDtypeStruct((B_pad, out_dims), jnp.float32),
      grid_spec=grid_spec,
      compiler_params=pltpu.CompilerParams(
          dimension_semantics=("parallel",),
          vmem_limit_bytes=32 * 1024 * 1024),
  )(*inputs)
  return out[:B]


def init_params(key, vocab_size, embed_size, hidden_size, output_dims):
  ks = list(jax.random.split(key, 16))

  def nrm(k, shape, scale=0.1, dtype=jnp.float32):
    return (scale * jax.random.normal(k, shape)).astype(dtype)

  H, E = hidden_size, embed_size
  return {
      'embedding': nrm(ks[0], (vocab_size, E), 1.0, jnp.bfloat16),  # = embedding_store
      # aspect LSTM (fused gates i|f|g|o)
      'asp_wih': nrm(ks[1], (E, 4 * H), 0.1, jnp.bfloat16),
      'asp_whh': nrm(ks[2], (H, 4 * H), 0.1, jnp.bfloat16),
      'asp_b':   nrm(ks[3], (1, 4 * H)),
      # context LSTM
      'ctx_wih': nrm(ks[4], (E, 4 * H), 0.1, jnp.bfloat16),
      'ctx_whh': nrm(ks[5], (H, 4 * H), 0.1, jnp.bfloat16),
      'ctx_b':   nrm(ks[6], (1, 4 * H)),
      # attention layers
      'asp_attn_w': nrm(ks[7], (H, H)),
      'asp_attn_b': nrm(ks[8], (1, 1)),
      'ctx_attn_w': nrm(ks[9], (H, H)),
      'ctx_attn_b': nrm(ks[10], (1, 1)),
      # final fc
      'fc_w': nrm(ks[11], (2 * H, output_dims)),
      'fc_b': nrm(ks[12], (1, output_dims)),
  }


if __name__ == "__main__":
  # small deterministic config
  batch = 2
  embed_size = 32
  hidden_size = 32
  vocab_size = 50
  max_aspect_len = 8
  max_context_len = 16
  output_dims = 3

  key = jax.random.PRNGKey(0)
  k_par, k_asp, k_ctx = jax.random.split(key, 3)

  params = init_params(k_par, vocab_size, embed_size, hidden_size, output_dims)

  aspect_ids = jax.random.randint(k_asp, (batch, max_aspect_len), 0, vocab_size)
  context_ids = jax.random.randint(k_ctx, (batch, max_context_len), 0, vocab_size)

  # deterministic length masks (float, as in the PyTorch forward)
  asp_lens = jnp.array([5, 8])
  ctx_lens = jnp.array([12, 16])
  aspect_mask = (jnp.arange(max_aspect_len)[None, :] < asp_lens[:, None]
                 ).astype(jnp.float32)
  context_mask = (jnp.arange(max_context_len)[None, :] < ctx_lens[:, None]
                  ).astype(jnp.float32)

  out = attention_model_forward(aspect_ids, context_ids, aspect_mask,
                                context_mask, params)
  out = jax.block_until_ready(out)
  assert out.shape == (batch, output_dims)
  assert bool(jnp.all(jnp.isfinite(out)))
  print("KERNEL_OK")
</pallas_src>

<mosaic_0001>
module attributes {stable_mosaic.version = 11 : i64} {
  func.func @attention_model_kernel(%arg0: i32, %arg1: memref<8x16x32xbf16, #tpu.memory_space<vmem>>, %arg2: memref<16x16x32xbf16, #tpu.memory_space<vmem>>, %arg3: memref<8x16x1xf32, #tpu.memory_space<vmem>>, %arg4: memref<16x16x1xf32, #tpu.memory_space<vmem>>, %arg5: memref<32x128xbf16, #tpu.memory_space<vmem>>, %arg6: memref<32x128xbf16, #tpu.memory_space<vmem>>, %arg7: memref<1x128xf32, #tpu.memory_space<vmem>>, %arg8: memref<1x128xf32, #tpu.memory_space<vmem>>, %arg9: memref<64x256xbf16, #tpu.memory_space<vmem>>, %arg10: memref<32x32xf32, #tpu.memory_space<vmem>>, %arg11: memref<1x1xf32, #tpu.memory_space<vmem>>, %arg12: memref<32x32xf32, #tpu.memory_space<vmem>>, %arg13: memref<1x1xf32, #tpu.memory_space<vmem>>, %arg14: memref<32x3xf32, #tpu.memory_space<vmem>>, %arg15: memref<32x3xf32, #tpu.memory_space<vmem>>, %arg16: memref<1x3xf32, #tpu.memory_space<vmem>>, %arg17: memref<16x3xf32, #tpu.memory_space<vmem>>, %arg18: memref<16x16x64xf32, #tpu.memory_space<vmem>>, %arg19: memref<8x16x128xf32, #tpu.memory_space<vmem>>, %arg20: memref<16x16x128xf32, #tpu.memory_space<vmem>>) attributes {dimension_semantics = [#tpu.dimension_semantics<parallel>], iteration_bounds = array<i64: 2>, scalar_prefetch = 0 : i64, scratch_operands = 3 : i64, tpu.core_type = #tpu.core_type<tc>, window_params = [{transform_indices = @transform_0, window_bounds = array<i64: 8, 16, 32>}, {transform_indices = @transform_1, window_bounds = array<i64: 16, 16, 32>}, {transform_indices = @transform_2, window_bounds = array<i64: 8, 16, 1>}, {transform_indices = @transform_3, window_bounds = array<i64: 16, 16, 1>}, {pipeline_mode = #tpu.pipeline_mode<synchronous>, transform_indices = @transform_4, window_bounds = array<i64: 32, 128>}, {pipeline_mode = #tpu.pipeline_mode<synchronous>, transform_indices = @transform_5, window_bounds = array<i64: 32, 128>}, {pipeline_mode = #tpu.pipeline_mode<synchronous>, transform_indices = @transform_6, window_bounds = array<i64: 1, 128>}, {pipeline_mode = #tpu.pipeline_mode<synchronous>, transform_indices = @transform_7, window_bounds = array<i64: 1, 128>}, {pipeline_mode = #tpu.pipeline_mode<synchronous>, transform_indices = @transform_8, window_bounds = array<i64: 64, 256>}, {pipeline_mode = #tpu.pipeline_mode<synchronous>, transform_indices = @transform_9, window_bounds = array<i64: 32, 32>}, {pipeline_mode = #tpu.pipeline_mode<synchronous>, transform_indices = @transform_10, window_bounds = array<i64: 1, 1>}, {pipeline_mode = #tpu.pipeline_mode<synchronous>, transform_indices = @transform_11, window_bounds = array<i64: 32, 32>}, {pipeline_mode = #tpu.pipeline_mode<synchronous>, transform_indices = @transform_12, window_bounds = array<i64: 1, 1>}, {pipeline_mode = #tpu.pipeline_mode<synchronous>, transform_indices = @transform_13, window_bounds = array<i64: 32, 3>}, {pipeline_mode = #tpu.pipeline_mode<synchronous>, transform_indices = @transform_14, window_bounds = array<i64: 32, 3>}, {pipeline_mode = #tpu.pipeline_mode<synchronous>, transform_indices = @transform_15, window_bounds = array<i64: 1, 3>}, {transform_indices = @transform_16, window_bounds = array<i64: 16, 3>}]} {
    %c0 = arith.constant 0 : index
    %c0_0 = arith.constant 0 : index
    %c0_1 = arith.constant 0 : index
    %0 = vector.load %arg1[%c0, %c0_0, %c0_1] : memref<8x16x32xbf16, #tpu.memory_space<vmem>>, vector<8x16x32xbf16>
    %1 = vector.shape_cast %0 : vector<8x16x32xbf16> to vector<128x32xbf16>
    %c0_2 = arith.constant 0 : index
    %c0_3 = arith.constant 0 : index
    %2 = vector.load %arg5[%c0_2, %c0_3] : memref<32x128xbf16, #tpu.memory_space<vmem>>, vector<32x128xbf16>
    %cst = arith.constant dense<0.000000e+00> : vector<128x128xf32>
    %3 = tpu.matmul %1, %2, %cst {dimension_numbers = #tpu.dot_dimension_numbers<[1], [0], [0], [1], [0, 0, 1, 1], [], []>} : vector<128x32xbf16>, vector<32x128xbf16>, vector<128x128xf32> -> vector<128x128xf32>
    %c0_4 = arith.constant 0 : index
    %c0_5 = arith.constant 0 : index
    %4 = vector.load %arg7[%c0_4, %c0_5] : memref<1x128xf32, #tpu.memory_space<vmem>>, vector<1x128xf32>
    %5 = vector.broadcast %4 : vector<1x128xf32> to vector<128x128xf32>
    %6 = arith.addf %3, %5 : vector<128x128xf32>
    %7 = vector.shape_cast %6 : vector<128x128xf32> to vector<8x16x128xf32>
    %c0_6 = arith.constant 0 : index
    %c0_7 = arith.constant 0 : index
    %c0_8 = arith.constant 0 : index
    %8 = vector.load %arg19[%c0_6, %c0_7, %c0_8] : memref<8x16x128xf32, #tpu.memory_space<vmem>>, vector<8x16x128xf32>
    tpu.vector_store %arg19[%c0_6, %c0_7, %c0_8], %7 {strides = array<i32>} : memref<8x16x128xf32, #tpu.memory_space<vmem>>, vector<8x16x128xf32>,
    %c0_9 = arith.constant 0 : index
    %c0_10 = arith.constant 0 : index
    %c0_11 = arith.constant 0 : index
    %9 = vector.load %arg2[%c0_9, %c0_10, %c0_11] : memref<16x16x32xbf16, #tpu.memory_space<vmem>>, vector<16x16x32xbf16>
    %10 = vector.shape_cast %9 : vector<16x16x32xbf16> to vector<256x32xbf16>
    %c0_12 = arith.constant 0 : index
    %c0_13 = arith.constant 0 : index
    %11 = vector.load %arg6[%c0_12, %c0_13] : memref<32x128xbf16, #tpu.memory_space<vmem>>, vector<32x128xbf16>
    %cst_14 = arith.constant dense<0.000000e+00> : vector<256x128xf32>
    %12 = tpu.matmul %10, %11, %cst_14 {dimension_numbers = #tpu.dot_dimension_numbers<[1], [0], [0], [1], [0, 0, 1, 1], [], []>} : vector<256x32xbf16>, vector<32x128xbf16>, vector<256x128xf32> -> vector<256x128xf32>
    %c0_15 = arith.constant 0 : index
    %c0_16 = arith.constant 0 : index
    %13 = vector.load %arg8[%c0_15, %c0_16] : memref<1x128xf32, #tpu.memory_space<vmem>>, vector<1x128xf32>
    %14 = vector.broadcast %13 : vector<1x128xf32> to vector<256x128xf32>
    %15 = arith.addf %12, %14 : vector<256x128xf32>
    %16 = vector.shape_cast %15 : vector<256x128xf32> to vector<16x16x128xf32>
    %c0_17 = arith.constant 0 : index
    %c0_18 = arith.constant 0 : index
    %c0_19 = arith.constant 0 : index
    %17 = vector.load %arg20[%c0_17, %c0_18, %c0_19] : memref<16x16x128xf32, #tpu.memory_space<vmem>>, vector<16x16x128xf32>
    tpu.vector_store %arg20[%c0_17, %c0_18, %c0_19], %16 {strides = array<i32>} : memref<16x16x128xf32, #tpu.memory_space<vmem>>, vector<16x16x128xf32>,
    %c0_20 = arith.constant 0 : index
    %c0_21 = arith.constant 0 : index
    %18 = vector.load %arg9[%c0_20, %c0_21] : memref<64x256xbf16, #tpu.memory_space<vmem>>, vector<64x256xbf16>
    %cst_22 = arith.constant 0.000000e+00 : f32
    %19 = vector.broadcast %cst_22 : f32 to vector<16x32xf32>
    %cst_23 = arith.constant 0.000000e+00 : f32
    %20 = vector.broadcast %cst_23 : f32 to vector<16x64xf32>
    %c0_i32 = arith.constant 0 : i32
    %21 = arith.truncf %20 : vector<16x64xf32> to vector<16x64xbf16>
    %cst_24 = arith.constant dense<0.000000e+00> : vector<16x256xf32>
    %22 = tpu.matmul %21, %18, %cst_24 {dimension_numbers = #tpu.dot_dimension_numbers<[1], [0], [0], [1], [0, 0, 1, 1], [], []>} : vector<16x64xbf16>, vector<64x256xbf16>, vector<16x256xf32> -> vector<16x256xf32>
    %23 = vector.extract_strided_slice %22 {offsets = [0, 0], sizes = [16, 128], strides = [1, 1]} : vector<16x256xf32> to vector<16x128xf32>
    %24 = arith.index_cast %c0_i32 : i32 to index
    %c0_25 = arith.constant 0 : index
    %c0_26 = arith.constant 0 : index
    %25 = vector.load %arg19[%24, %c0_25, %c0_26] : memref<8x16x128xf32, #tpu.memory_space<vmem>>, vector<1x16x128xf32>
    %26 = vector.shape_cast %25 : vector<1x16x128xf32> to vector<16x128xf32>
    %27 = arith.addf %23, %26 : vector<16x128xf32>
    %cst_27 = arith.constant 5.000000e-01 : f32
    %28 = vector.broadcast %cst_27 : f32 to vector<16x128xf32>
    %29 = arith.mulf %28, %27 : vector<16x128xf32>
    %30 = math.tanh %29 : vector<16x128xf32>
    %cst_28 = arith.constant 5.000000e-01 : f32
    %31 = vector.broadcast %cst_28 : f32 to vector<16x128xf32>
    %32 = arith.mulf %31, %30 : vector<16x128xf32>
    %cst_29 = arith.constant 5.000000e-01 : f32
    %33 = vector.broadcast %cst_29 : f32 to vector<16x128xf32>
    %34 = arith.addf %32, %33 : vector<16x128xf32>
    %35 = math.tanh %27 : vector<16x128xf32>
    %36 = vector.extract_strided_slice %34 {offsets = [0, 0], sizes = [16, 32], strides = [1, 1]} : vector<16x128xf32> to vector<16x32xf32>
    %37 = vector.extract_strided_slice %34 {offsets = [0, 32], sizes = [16, 32], strides = [1, 1]} : vector<16x128xf32> to vector<16x32xf32>
    %38 = vector.extract_strided_slice %34 {offsets = [0, 96], sizes = [16, 32], strides = [1, 1]} : vector<16x128xf32> to vector<16x32xf32>
    %39 = vector.extract_strided_slice %35 {offsets = [0, 64], sizes = [16, 32], strides = [1, 1]} : vector<16x128xf32> to vector<16x32xf32>
    %40 = arith.mulf %37, %19 : vector<16x32xf32>
    %41 = arith.mulf %36, %39 : vector<16x32xf32>
    %42 = arith.addf %40, %41 : vector<16x32xf32>
    %43 = math.tanh %42 : vector<16x32xf32>
    %44 = arith.mulf %38, %43 : vector<16x32xf32>
    %45 = vector.extract_strided_slice %22 {offsets = [0, 128], sizes = [16, 128], strides = [1, 1]} : vector<16x256xf32> to vector<16x128xf32>
    %46 = arith.index_cast %c0_i32 : i32 to index
    %c0_30 = arith.constant 0 : index
    %c0_31 = arith.constant 0 : index
    %47 = vector.load %arg20[%46, %c0_30, %c0_31] : memref<16x16x128xf32, #tpu.memory_space<vmem>>, vector<1x16x128xf32>
    %48 = vector.shape_cast %47 : vector<1x16x128xf32> to vector<16x128xf32>
    %49 = arith.addf %45, %48 : vector<16x128xf32>
    %cst_32 = arith.constant 5.000000e-01 : f32
    %50 = vector.broadcast %cst_32 : f32 to vector<16x128xf32>
    %51 = arith.mulf %50, %49 : vector<16x128xf32>
    %52 = math.tanh %51 : vector<16x128xf32>
    %cst_33 = arith.constant 5.000000e-01 : f32
    %53 = vector.broadcast %cst_33 : f32 to vector<16x128xf32>
    %54 = arith.mulf %53, %52 : vector<16x128xf32>
    %cst_34 = arith.constant 5.000000e-01 : f32
    %55 = vector.broadcast %cst_34 : f32 to vector<16x128xf32>
    %56 = arith.addf %54, %55 : vector<16x128xf32>
    %57 = math.tanh %49 : vector<16x128xf32>
    %58 = vector.extract_strided_slice %56 {offsets = [0, 0], sizes = [16, 32], strides = [1, 1]} : vector<16x128xf32> to vector<16x32xf32>
    %59 = vector.extract_strided_slice %56 {offsets = [0, 32], sizes = [16, 32], strides = [1, 1]} : vector<16x128xf32> to vector<16x32xf32>
    %60 = vector.extract_strided_slice %56 {offsets = [0, 96], sizes = [16, 32], strides = [1, 1]} : vector<16x128xf32> to vector<16x32xf32>
    %61 = vector.extract_strided_slice %57 {offsets = [0, 64], sizes = [16, 32], strides = [1, 1]} : vector<16x128xf32> to vector<16x32xf32>
    %62 = arith.mulf %59, %19 : vector<16x32xf32>
    %63 = arith.mulf %58, %61 : vector<16x32xf32>
    %64 = arith.addf %62, %63 : vector<16x32xf32>
    %65 = math.tanh %64 : vector<16x32xf32>
    %66 = arith.mulf %60, %65 : vector<16x32xf32>
    %67 = tpu.concatenate %44, %66 in 1 : vector<16x32xf32>, vector<16x32xf32> -> vector<16x64xf32>
    %68 = arith.index_cast %c0_i32 : i32 to index
    %c0_35 = arith.constant 0 : index
    %c0_36 = arith.constant 0 : index
    %69 = vector.load %arg18[%68, %c0_35, %c0_36] : memref<16x16x64xf32, #tpu.memory_space<vmem>>, vector<1x16x64xf32>
    %70 = vector.shape_cast %69 : vector<1x16x64xf32> to vector<16x64xf32>
    %71 = vector.shape_cast %67 : vector<16x64xf32> to vector<1x16x64xf32>
    tpu.vector_store %arg18[%68, %c0_35, %c0_36], %71 {strides = array<i32>} : memref<16x16x64xf32, #tpu.memory_space<vmem>>, vector<1x16x64xf32>,
    %c1_i32 = arith.constant 1 : i32
    %72 = arith.truncf %67 : vector<16x64xf32> to vector<16x64xbf16>
    %cst_37 = arith.constant dense<0.000000e+00> : vector<16x256xf32>
    %73 = tpu.matmul %72, %18, %cst_37 {dimension_numbers = #tpu.dot_dimension_numbers<[1], [0], [0], [1], [0, 0, 1, 1], [], []>} : vector<16x64xbf16>, vector<64x256xbf16>, vector<16x256xf32> -> vector<16x256xf32>
    %74 = vector.extract_strided_slice %73 {offsets = [0, 0], sizes = [16, 128], strides = [1, 1]} : vector<16x256xf32> to vector<16x128xf32>
    %75 = arith.index_cast %c1_i32 : i32 to index
    %c0_38 = arith.constant 0 : index
    %c0_39 = arith.constant 0 : index
    %76 = vector.load %arg19[%75, %c0_38, %c0_39] : memref<8x16x128xf32, #tpu.memory_space<vmem>>, vector<1x16x128xf32>
    %77 = vector.shape_cast %76 : vector<1x16x128xf32> to vector<16x128xf32>
    %78 = arith.addf %74, %77 : vector<16x128xf32>
    %cst_40 = arith.constant 5.000000e-01 : f32
    %79 = vector.broadcast %cst_40 : f32 to vector<16x128xf32>
    %80 = arith.mulf %79, %78 : vector<16x128xf32>
    %81 = math.tanh %80 : vector<16x128xf32>
    %cst_41 = arith.constant 5.000000e-01 : f32
    %82 = vector.broadcast %cst_41 : f32 to vector<16x128xf32>
    %83 = arith.mulf %82, %81 : vector<16x128xf32>
    %cst_42 = arith.constant 5.000000e-01 : f32
    %84 = vector.broadcast %cst_42 : f32 to vector<16x128xf32>
    %85 = arith.addf %83, %84 : vector<16x128xf32>
    %86 = math.tanh %78 : vector<16x128xf32>
    %87 = vector.extract_strided_slice %85 {offsets = [0, 0], sizes = [16, 32], strides = [1, 1]} : vector<16x128xf32> to vector<16x32xf32>
    %88 = vector.extract_strided_slice %85 {offsets = [0, 32], sizes = [16, 32], strides = [1, 1]} : vector<16x128xf32> to vector<16x32xf32>
    %89 = vector.extract_strided_slice %85 {offsets = [0, 96], sizes = [16, 32], strides = [1, 1]} : vector<16x128xf32> to vector<16x32xf32>
    %90 = vector.extract_strided_slice %86 {offsets = [0, 64], sizes = [16, 32], strides = [1, 1]} : vector<16x128xf32> to vector<16x32xf32>
    %91 = arith.mulf %88, %42 : vector<16x32xf32>
    %92 = arith.mulf %87, %90 : vector<16x32xf32>
    %93 = arith.addf %91, %92 : vector<16x32xf32>
    %94 = math.tanh %93 : vector<16x32xf32>
    %95 = arith.mulf %89, %94 : vector<16x32xf32>
    %96 = vector.extract_strided_slice %73 {offsets = [0, 128], sizes = [16, 128], strides = [1, 1]} : vector<16x256xf32> to vector<16x128xf32>
    %97 = arith.index_cast %c1_i32 : i32 to index
    %c0_43 = arith.constant 0 : index
    %c0_44 = arith.constant 0 : index
    %98 = vector.load %arg20[%97, %c0_43, %c0_44] : memref<16x16x128xf32, #tpu.memory_space<vmem>>, vector<1x16x128xf32>
    %99 = vector.shape_cast %98 : vector<1x16x128xf32> to vector<16x128xf32>
    %100 = arith.addf %96, %99 : vector<16x128xf32>
    %cst_45 = arith.constant 5.000000e-01 : f32
    %101 = vector.broadcast %cst_45 : f32 to vector<16x128xf32>
    %102 = arith.mulf %101, %100 : vector<16x128xf32>
    %103 = math.tanh %102 : vector<16x128xf32>
    %cst_46 = arith.constant 5.000000e-01 : f32
    %104 = vector.broadcast %cst_46 : f32 to vector<16x128xf32>
    %105 = arith.mulf %104, %103 : vector<16x128xf32>
    %cst_47 = arith.constant 5.000000e-01 : f32
    %106 = vector.broadcast %cst_47 : f32 to vector<16x128xf32>
    %107 = arith.addf %105, %106 : vector<16x128xf32>
    %108 = math.tanh %100 : vector<16x128xf32>
    %109 = vector.extract_strided_slice %107 {offsets = [0, 0], sizes = [16, 32], strides = [1, 1]} : vector<16x128xf32> to vector<16x32xf32>
    %110 = vector.extract_strided_slice %107 {offsets = [0, 32], sizes = [16, 32], strides = [1, 1]} : vector<16x128xf32> to vector<16x32xf32>
    %111 = vector.extract_strided_slice %107 {offsets = [0, 96], sizes = [16, 32], strides = [1, 1]} : vector<16x128xf32> to vector<16x32xf32>
    %112 = vector.extract_strided_slice %108 {offsets = [0, 64], sizes = [16, 32], strides = [1, 1]} : vector<16x128xf32> to vector<16x32xf32>
    %113 = arith.mulf %110, %64 : vector<16x32xf32>
    %114 = arith.mulf %109, %112 : vector<16x32xf32>
    %115 = arith.addf %113, %114 : vector<16x32xf32>
    %116 = math.tanh %115 : vector<16x32xf32>
    %117 = arith.mulf %111, %116 : vector<16x32xf32>
    %118 = tpu.concatenate %95, %117 in 1 : vector<16x32xf32>, vector<16x32xf32> -> vector<16x64xf32>
    %119 = arith.index_cast %c1_i32 : i32 to index
    %c0_48 = arith.constant 0 : index
    %c0_49 = arith.constant 0 : index
    %120 = vector.load %arg18[%119, %c0_48, %c0_49] : memref<16x16x64xf32, #tpu.memory_space<vmem>>, vector<1x16x64xf32>
    %121 = vector.shape_cast %120 : vector<1x16x64xf32> to vector<16x64xf32>
    %122 = vector.shape_cast %118 : vector<16x64xf32> to vector<1x16x64xf32>
    tpu.vector_store %arg18[%119, %c0_48, %c0_49], %122 {strides = array<i32>} : memref<16x16x64xf32, #tpu.memory_space<vmem>>, vector<1x16x64xf32>,
    %c2_i32 = arith.constant 2 : i32
    %123 = arith.truncf %118 : vector<16x64xf32> to vector<16x64xbf16>
    %cst_50 = arith.constant dense<0.000000e+00> : vector<16x256xf32>
    %124 = tpu.matmul %123, %18, %cst_50 {dimension_numbers = #tpu.dot_dimension_numbers<[1], [0], [0], [1], [0, 0, 1, 1], [], []>} : vector<16x64xbf16>, vector<64x256xbf16>, vector<16x256xf32> -> vector<16x256xf32>
    %125 = vector.extract_strided_slice %124 {offsets = [0, 0], sizes = [16, 128], strides = [1, 1]} : vector<16x256xf32> to vector<16x128xf32>
    %126 = arith.index_cast %c2_i32 : i32 to index
    %c0_51 = arith.constant 0 : index
    %c0_52 = arith.constant 0 : index
    %127 = vector.load %arg19[%126, %c0_51, %c0_52] : memref<8x16x128xf32, #tpu.memory_space<vmem>>, vector<1x16x128xf32>
    %128 = vector.shape_cast %127 : vector<1x16x128xf32> to vector<16x128xf32>
    %129 = arith.addf %125, %128 : vector<16x128xf32>
    %cst_53 = arith.constant 5.000000e-01 : f32
    %130 = vector.broadcast %cst_53 : f32 to vector<16x128xf32>
    %131 = arith.mulf %130, %129 : vector<16x128xf32>
    %132 = math.tanh %131 : vector<16x128xf32>
    %cst_54 = arith.constant 5.000000e-01 : f32
    %133 = vector.broadcast %cst_54 : f32 to vector<16x128xf32>
    %134 = arith.mulf %133, %132 : vector<16x128xf32>
    %cst_55 = arith.constant 5.000000e-01 : f32
    %135 = vector.broadcast %cst_55 : f32 to vector<16x128xf32>
    %136 = arith.addf %134, %135 : vector<16x128xf32>
    %137 = math.tanh %129 : vector<16x128xf32>
    %138 = vector.extract_strided_slice %136 {offsets = [0, 0], sizes = [16, 32], strides = [1, 1]} : vector<16x128xf32> to vector<16x32xf32>
    %139 = vector.extract_strided_slice %136 {offsets = [0, 32], sizes = [16, 32], strides = [1, 1]} : vector<16x128xf32> to vector<16x32xf32>
    %140 = vector.extract_strided_slice %136 {offsets = [0, 96], sizes = [16, 32], strides = [1, 1]} : vector<16x128xf32> to vector<16x32xf32>
    %141 = vector.extract_strided_slice %137 {offsets = [0, 64], sizes = [16, 32], strides = [1, 1]} : vector<16x128xf32> to vector<16x32xf32>
    %142 = arith.mulf %139, %93 : vector<16x32xf32>
    %143 = arith.mulf %138, %141 : vector<16x32xf32>
    %144 = arith.addf %142, %143 : vector<16x32xf32>
    %145 = math.tanh %144 : vector<16x32xf32>
    %146 = arith.mulf %140, %145 : vector<16x32xf32>
    %147 = vector.extract_strided_slice %124 {offsets = [0, 128], sizes = [16, 128], strides = [1, 1]} : vector<16x256xf32> to vector<16x128xf32>
    %148 = arith.index_cast %c2_i32 : i32 to index
    %c0_56 = arith.constant 0 : index
    %c0_57 = arith.constant 0 : index
    %149 = vector.load %arg20[%148, %c0_56, %c0_57] : memref<16x16x128xf32, #tpu.memory_space<vmem>>, vector<1x16x128xf32>
    %150 = vector.shape_cast %149 : vector<1x16x128xf32> to vector<16x128xf32>
    %151 = arith.addf %147, %150 : vector<16x128xf32>
    %cst_58 = arith.constant 5.000000e-01 : f32
    %152 = vector.broadcast %cst_58 : f32 to vector<16x128xf32>
    %153 = arith.mulf %152, %151 : vector<16x128xf32>
    %154 = math.tanh %153 : vector<16x128xf32>
    %cst_59 = arith.constant 5.000000e-01 : f32
    %155 = vector.broadcast %cst_59 : f32 to vector<16x128xf32>
    %156 = arith.mulf %155, %154 : vector<16x128xf32>
    %cst_60 = arith.constant 5.000000e-01 : f32
    %157 = vector.broadcast %cst_60 : f32 to vector<16x128xf32>
    %158 = arith.addf %156, %157 : vector<16x128xf32>
    %159 = math.tanh %151 : vector<16x128xf32>
    %160 = vector.extract_strided_slice %158 {offsets = [0, 0], sizes = [16, 32], strides = [1, 1]} : vector<16x128xf32> to vector<16x32xf32>
    %161 = vector.extract_strided_slice %158 {offsets = [0, 32], sizes = [16, 32], strides = [1, 1]} : vector<16x128xf32> to vector<16x32xf32>
    %162 = vector.extract_strided_slice %158 {offsets = [0, 96], sizes = [16, 32], strides = [1, 1]} : vector<16x128xf32> to vector<16x32xf32>
    %163 = vector.extract_strided_slice %159 {offsets = [0, 64], sizes = [16, 32], strides = [1, 1]} : vector<16x128xf32> to vector<16x32xf32>
    %164 = arith.mulf %161, %115 : vector<16x32xf32>
    %165 = arith.mulf %160, %163 : vector<16x32xf32>
    %166 = arith.addf %164, %165 : vector<16x32xf32>
    %167 = math.tanh %166 : vector<16x32xf32>
    %168 = arith.mulf %162, %167 : vector<16x32xf32>
    %169 = tpu.concatenate %146, %168 in 1 : vector<16x32xf32>, vector<16x32xf32> -> vector<16x64xf32>
    %170 = arith.index_cast %c2_i32 : i32 to index
    %c0_61 = arith.constant 0 : index
    %c0_62 = arith.constant 0 : index
    %171 = vector.load %arg18[%170, %c0_61, %c0_62] : memref<16x16x64xf32, #tpu.memory_space<vmem>>, vector<1x16x64xf32>
    %172 = vector.shape_cast %171 : vector<1x16x64xf32> to vector<16x64xf32>
    %173 = vector.shape_cast %169 : vector<16x64xf32> to vector<1x16x64xf32>
    tpu.vector_store %arg18[%170, %c0_61, %c0_62], %173 {strides = array<i32>} : memref<16x16x64xf32, #tpu.memory_space<vmem>>, vector<1x16x64xf32>,
    %c3_i32 = arith.constant 3 : i32
    %174 = arith.truncf %169 : vector<16x64xf32> to vector<16x64xbf16>
    %cst_63 = arith.constant dense<0.000000e+00> : vector<16x256xf32>
    %175 = tpu.matmul %174, %18, %cst_63 {dimension_numbers = #tpu.dot_dimension_numbers<[1], [0], [0], [1], [0, 0, 1, 1], [], []>} : vector<16x64xbf16>, vector<64x256xbf16>, vector<16x256xf32> -> vector<16x256xf32>
    %176 = vector.extract_strided_slice %175 {offsets = [0, 0], sizes = [16, 128], strides = [1, 1]} : vector<16x256xf32> to vector<16x128xf32>
    %177 = arith.index_cast %c3_i32 : i32 to index
    %c0_64 = arith.constant 0 : index
    %c0_65 = arith.constant 0 : index
    %178 = vector.load %arg19[%177, %c0_64, %c0_65] : memref<8x16x128xf32, #tpu.memory_space<vmem>>, vector<1x16x128xf32>
    %179 = vector.shape_cast %178 : vector<1x16x128xf32> to vector<16x128xf32>
    %180 = arith.addf %176, %179 : vector<16x128xf32>
    %cst_66 = arith.constant 5.000000e-01 : f32
    %181 = vector.broadcast %cst_66 : f32 to vector<16x128xf32>
    %182 = arith.mulf %181, %180 : vector<16x128xf32>
    %183 = math.tanh %182 : vector<16x128xf32>
    %cst_67 = arith.constant 5.000000e-01 : f32
    %184 = vector.broadcast %cst_67 : f32 to vector<16x128xf32>
    %185 = arith.mulf %184, %183 : vector<16x128xf32>
    %cst_68 = arith.constant 5.000000e-01 : f32
    %186 = vector.broadcast %cst_68 : f32 to vector<16x128xf32>
    %187 = arith.addf %185, %186 : vector<16x128xf32>
    %188 = math.tanh %180 : vector<16x128xf32>
    %189 = vector.extract_strided_slice %187 {offsets = [0, 0], sizes = [16, 32], strides = [1, 1]} : vector<16x128xf32> to vector<16x32xf32>
    %190 = vector.extract_strided_slice %187 {offsets = [0, 32], sizes = [16, 32], strides = [1, 1]} : vector<16x128xf32> to vector<16x32xf32>
    %191 = vector.extract_strided_slice %187 {offsets = [0, 96], sizes = [16, 32], strides = [1, 1]} : vector<16x128xf32> to vector<16x32xf32>
    %192 = vector.extract_strided_slice %188 {offsets = [0, 64], sizes = [16, 32], strides = [1, 1]} : vector<16x128xf32> to vector<16x32xf32>
    %193 = arith.mulf %190, %144 : vector<16x32xf32>
    %194 = arith.mulf %189, %192 : vector<16x32xf32>
    %195 = arith.addf %193, %194 : vector<16x32xf32>
    %196 = math.tanh %195 : vector<16x32xf32>
    %197 = arith.mulf %191, %196 : vector<16x32xf32>
    %198 = vector.extract_strided_slice %175 {offsets = [0, 128], sizes = [16, 128], strides = [1, 1]} : vector<16x256xf32> to vector<16x128xf32>
    %199 = arith.index_cast %c3_i32 : i32 to index
    %c0_69 = arith.constant 0 : index
    %c0_70 = arith.constant 0 : index
    %200 = vector.load %arg20[%199, %c0_69, %c0_70] : memref<16x16x128xf32, #tpu.memory_space<vmem>>, vector<1x16x128xf32>
    %201 = vector.shape_cast %200 : vector<1x16x128xf32> to vector<16x128xf32>
    %202 = arith.addf %198, %201 : vector<16x128xf32>
    %cst_71 = arith.constant 5.000000e-01 : f32
    %203 = vector.broadcast %cst_71 : f32 to vector<16x128xf32>
    %204 = arith.mulf %203, %202 : vector<16x128xf32>
    %205 = math.tanh %204 : vector<16x128xf32>
    %cst_72 = arith.constant 5.000000e-01 : f32
    %206 = vector.broadcast %cst_72 : f32 to vector<16x128xf32>
    %207 = arith.mulf %206, %205 : vector<16x128xf32>
    %cst_73 = arith.constant 5.000000e-01 : f32
    %208 = vector.broadcast %cst_73 : f32 to vector<16x128xf32>
    %209 = arith.addf %207, %208 : vector<16x128xf32>
    %210 = math.tanh %202 : vector<16x128xf32>
    %211 = vector.extract_strided_slice %209 {offsets = [0, 0], sizes = [16, 32], strides = [1, 1]} : vector<16x128xf32> to vector<16x32xf32>
    %212 = vector.extract_strided_slice %209 {offsets = [0, 32], sizes = [16, 32], strides = [1, 1]} : vector<16x128xf32> to vector<16x32xf32>
    %213 = vector.extract_strided_slice %209 {offsets = [0, 96], sizes = [16, 32], strides = [1, 1]} : vector<16x128xf32> to vector<16x32xf32>
    %214 = vector.extract_strided_slice %210 {offsets = [0, 64], sizes = [16, 32], strides = [1, 1]} : vector<16x128xf32> to vector<16x32xf32>
    %215 = arith.mulf %212, %166 : vector<16x32xf32>
    %216 = arith.mulf %211, %214 : vector<16x32xf32>
    %217 = arith.addf %215, %216 : vector<16x32xf32>
    %218 = math.tanh %217 : vector<16x32xf32>
    %219 = arith.mulf %213, %218 : vector<16x32xf32>
    %220 = tpu.concatenate %197, %219 in 1 : vector<16x32xf32>, vector<16x32xf32> -> vector<16x64xf32>
    %221 = arith.index_cast %c3_i32 : i32 to index
    %c0_74 = arith.constant 0 : index
    %c0_75 = arith.constant 0 : index
    %222 = vector.load %arg18[%221, %c0_74, %c0_75] : memref<16x16x64xf32, #tpu.memory_space<vmem>>, vector<1x16x64xf32>
    %223 = vector.shape_cast %222 : vector<1x16x64xf32> to vector<16x64xf32>
    %224 = vector.shape_cast %220 : vector<16x64xf32> to vector<1x16x64xf32>
    tpu.vector_store %arg18[%221, %c0_74, %c0_75], %224 {strides = array<i32>} : memref<16x16x64xf32, #tpu.memory_space<vmem>>, vector<1x16x64xf32>,
    %c4_i32 = arith.constant 4 : i32
    %225 = arith.truncf %220 : vector<16x64xf32> to vector<16x64xbf16>
    %cst_76 = arith.constant dense<0.000000e+00> : vector<16x256xf32>
    %226 = tpu.matmul %225, %18, %cst_76 {dimension_numbers = #tpu.dot_dimension_numbers<[1], [0], [0], [1], [0, 0, 1, 1], [], []>} : vector<16x64xbf16>, vector<64x256xbf16>, vector<16x256xf32> -> vector<16x256xf32>
    %227 = vector.extract_strided_slice %226 {offsets = [0, 0], sizes = [16, 128], strides = [1, 1]} : vector<16x256xf32> to vector<16x128xf32>
    %228 = arith.index_cast %c4_i32 : i32 to index
    %c0_77 = arith.constant 0 : index
    %c0_78 = arith.constant 0 : index
    %229 = vector.load %arg19[%228, %c0_77, %c0_78] : memref<8x16x128xf32, #tpu.memory_space<vmem>>, vector<1x16x128xf32>
    %230 = vector.shape_cast %229 : vector<1x16x128xf32> to vector<16x128xf32>
    %231 = arith.addf %227, %230 : vector<16x128xf32>
    %cst_79 = arith.constant 5.000000e-01 : f32
    %232 = vector.broadcast %cst_79 : f32 to vector<16x128xf32>
    %233 = arith.mulf %232, %231 : vector<16x128xf32>
    %234 = math.tanh %233 : vector<16x128xf32>
    %cst_80 = arith.constant 5.000000e-01 : f32
    %235 = vector.broadcast %cst_80 : f32 to vector<16x128xf32>
    %236 = arith.mulf %235, %234 : vector<16x128xf32>
    %cst_81 = arith.constant 5.000000e-01 : f32
    %237 = vector.broadcast %cst_81 : f32 to vector<16x128xf32>
    %238 = arith.addf %236, %237 : vector<16x128xf32>
    %239 = math.tanh %231 : vector<16x128xf32>
    %240 = vector.extract_strided_slice %238 {offsets = [0, 0], sizes = [16, 32], strides = [1, 1]} : vector<16x128xf32> to vector<16x32xf32>
    %241 = vector.extract_strided_slice %238 {offsets = [0, 32], sizes = [16, 32], strides = [1, 1]} : vector<16x128xf32> to vector<16x32xf32>
    %242 = vector.extract_strided_slice %238 {offsets = [0, 96], sizes = [16, 32], strides = [1, 1]} : vector<16x128xf32> to vector<16x32xf32>
    %243 = vector.extract_strided_slice %239 {offsets = [0, 64], sizes = [16, 32], strides = [1, 1]} : vector<16x128xf32> to vector<16x32xf32>
    %244 = arith.mulf %241, %195 : vector<16x32xf32>
    %245 = arith.mulf %240, %243 : vector<16x32xf32>
    %246 = arith.addf %244, %245 : vector<16x32xf32>
    %247 = math.tanh %246 : vector<16x32xf32>
    %248 = arith.mulf %242, %247 : vector<16x32xf32>
    %249 = vector.extract_strided_slice %226 {offsets = [0, 128], sizes = [16, 128], strides = [1, 1]} : vector<16x256xf32> to vector<16x128xf32>
    %250 = arith.index_cast %c4_i32 : i32 to index
    %c0_82 = arith.constant 0 : index
    %c0_83 = arith.constant 0 : index
    %251 = vector.load %arg20[%250, %c0_82, %c0_83] : memref<16x16x128xf32, #tpu.memory_space<vmem>>, vector<1x16x128xf32>
    %252 = vector.shape_cast %251 : vector<1x16x128xf32> to vector<16x128xf32>
    %253 = arith.addf %249, %252 : vector<16x128xf32>
    %cst_84 = arith.constant 5.000000e-01 : f32
    %254 = vector.broadcast %cst_84 : f32 to vector<16x128xf32>
    %255 = arith.mulf %254, %253 : vector<16x128xf32>
    %256 = math.tanh %255 : vector<16x128xf32>
    %cst_85 = arith.constant 5.000000e-01 : f32
    %257 = vector.broadcast %cst_85 : f32 to vector<16x128xf32>
    %258 = arith.mulf %257, %256 : vector<16x128xf32>
    %cst_86 = arith.constant 5.000000e-01 : f32
    %259 = vector.broadcast %cst_86 : f32 to vector<16x128xf32>
    %260 = arith.addf %258, %259 : vector<16x128xf32>
    %261 = math.tanh %253 : vector<16x128xf32>
    %262 = vector.extract_strided_slice %260 {offsets = [0, 0], sizes = [16, 32], strides = [1, 1]} : vector<16x128xf32> to vector<16x32xf32>
    %263 = vector.extract_strided_slice %260 {offsets = [0, 32], sizes = [16, 32], strides = [1, 1]} : vector<16x128xf32> to vector<16x32xf32>
    %264 = vector.extract_strided_slice %260 {offsets = [0, 96], sizes = [16, 32], strides = [1, 1]} : vector<16x128xf32> to vector<16x32xf32>
    %265 = vector.extract_strided_slice %261 {offsets = [0, 64], sizes = [16, 32], strides = [1, 1]} : vector<16x128xf32> to vector<16x32xf32>
    %266 = arith.mulf %263, %217 : vector<16x32xf32>
    %267 = arith.mulf %262, %265 : vector<16x32xf32>
    %268 = arith.addf %266, %267 : vector<16x32xf32>
    %269 = math.tanh %268 : vector<16x32xf32>
    %270 = arith.mulf %264, %269 : vector<16x32xf32>
    %271 = tpu.concatenate %248, %270 in 1 : vector<16x32xf32>, vector<16x32xf32> -> vector<16x64xf32>
    %272 = arith.index_cast %c4_i32 : i32 to index
    %c0_87 = arith.constant 0 : index
    %c0_88 = arith.constant 0 : index
    %273 = vector.load %arg18[%272, %c0_87, %c0_88] : memref<16x16x64xf32, #tpu.memory_space<vmem>>, vector<1x16x64xf32>
    %274 = vector.shape_cast %273 : vector<1x16x64xf32> to vector<16x64xf32>
    %275 = vector.shape_cast %271 : vector<16x64xf32> to vector<1x16x64xf32>
    tpu.vector_store %arg18[%272, %c0_87, %c0_88], %275 {strides = array<i32>} : memref<16x16x64xf32, #tpu.memory_space<vmem>>, vector<1x16x64xf32>,
    %c5_i32 = arith.constant 5 : i32
    %276 = arith.truncf %271 : vector<16x64xf32> to vector<16x64xbf16>
    %cst_89 = arith.constant dense<0.000000e+00> : vector<16x256xf32>
    %277 = tpu.matmul %276, %18, %cst_89 {dimension_numbers = #tpu.dot_dimension_numbers<[1], [0], [0], [1], [0, 0, 1, 1], [], []>} : vector<16x64xbf16>, vector<64x256xbf16>, vector<16x256xf32> -> vector<16x256xf32>
    %278 = vector.extract_strided_slice %277 {offsets = [0, 0], sizes = [16, 128], strides = [1, 1]} : vector<16x256xf32> to vector<16x128xf32>
    %279 = arith.index_cast %c5_i32 : i32 to index
    %c0_90 = arith.constant 0 : index
    %c0_91 = arith.constant 0 : index
    %280 = vector.load %arg19[%279, %c0_90, %c0_91] : memref<8x16x128xf32, #tpu.memory_space<vmem>>, vector<1x16x128xf32>
    %281 = vector.shape_cast %280 : vector<1x16x128xf32> to vector<16x128xf32>
    %282 = arith.addf %278, %281 : vector<16x128xf32>
    %cst_92 = arith.constant 5.000000e-01 : f32
    %283 = vector.broadcast %cst_92 : f32 to vector<16x128xf32>
    %284 = arith.mulf %283, %282 : vector<16x128xf32>
    %285 = math.tanh %284 : vector<16x128xf32>
    %cst_93 = arith.constant 5.000000e-01 : f32
    %286 = vector.broadcast %cst_93 : f32 to vector<16x128xf32>
    %287 = arith.mulf %286, %285 : vector<16x128xf32>
    %cst_94 = arith.constant 5.000000e-01 : f32
    %288 = vector.broadcast %cst_94 : f32 to vector<16x128xf32>
    %289 = arith.addf %287, %288 : vector<16x128xf32>
    %290 = math.tanh %282 : vector<16x128xf32>
    %291 = vector.extract_strided_slice %289 {offsets = [0, 0], sizes = [16, 32], strides = [1, 1]} : vector<16x128xf32> to vector<16x32xf32>
    %292 = vector.extract_strided_slice %289 {offsets = [0, 32], sizes = [16, 32], strides = [1, 1]} : vector<16x128xf32> to vector<16x32xf32>
    %293 = vector.extract_strided_slice %289 {offsets = [0, 96], sizes = [16, 32], strides = [1, 1]} : vector<16x128xf32> to vector<16x32xf32>
    %294 = vector.extract_strided_slice %290 {offsets = [0, 64], sizes = [16, 32], strides = [1, 1]} : vector<16x128xf32> to vector<16x32xf32>
    %295 = arith.mulf %292, %246 : vector<16x32xf32>
    %296 = arith.mulf %291, %294 : vector<16x32xf32>
    %297 = arith.addf %295, %296 : vector<16x32xf32>
    %298 = math.tanh %297 : vector<16x32xf32>
    %299 = arith.mulf %293, %298 : vector<16x32xf32>
    %300 = vector.extract_strided_slice %277 {offsets = [0, 128], sizes = [16, 128], strides = [1, 1]} : vector<16x256xf32> to vector<16x128xf32>
    %301 = arith.index_cast %c5_i32 : i32 to index
    %c0_95 = arith.constant 0 : index
    %c0_96 = arith.constant 0 : index
    %302 = vector.load %arg20[%301, %c0_95, %c0_96] : memref<16x16x128xf32, #tpu.memory_space<vmem>>, vector<1x16x128xf32>
    %303 = vector.shape_cast %302 : vector<1x16x128xf32> to vector<16x128xf32>
    %304 = arith.addf %300, %303 : vector<16x128xf32>
    %cst_97 = arith.constant 5.000000e-01 : f32
    %305 = vector.broadcast %cst_97 : f32 to vector<16x128xf32>
    %306 = arith.mulf %305, %304 : vector<16x128xf32>
    %307 = math.tanh %306 : vector<16x128xf32>
    %cst_98 = arith.constant 5.000000e-01 : f32
    %308 = vector.broadcast %cst_98 : f32 to vector<16x128xf32>
    %309 = arith.mulf %308, %307 : vector<16x128xf32>
    %cst_99 = arith.constant 5.000000e-01 : f32
    %310 = vector.broadcast %cst_99 : f32 to vector<16x128xf32>
    %311 = arith.addf %309, %310 : vector<16x128xf32>
    %312 = math.tanh %304 : vector<16x128xf32>
    %313 = vector.extract_strided_slice %311 {offsets = [0, 0], sizes = [16, 32], strides = [1, 1]} : vector<16x128xf32> to vector<16x32xf32>
    %314 = vector.extract_strided_slice %311 {offsets = [0, 32], sizes = [16, 32], strides = [1, 1]} : vector<16x128xf32> to vector<16x32xf32>
    %315 = vector.extract_strided_slice %311 {offsets = [0, 96], sizes = [16, 32], strides = [1, 1]} : vector<16x128xf32> to vector<16x32xf32>
    %316 = vector.extract_strided_slice %312 {offsets = [0, 64], sizes = [16, 32], strides = [1, 1]} : vector<16x128xf32> to vector<16x32xf32>
    %317 = arith.mulf %314, %268 : vector<16x32xf32>
    %318 = arith.mulf %313, %316 : vector<16x32xf32>
    %319 = arith.addf %317, %318 : vector<16x32xf32>
    %320 = math.tanh %319 : vector<16x32xf32>
    %321 = arith.mulf %315, %320 : vector<16x32xf32>
    %322 = tpu.concatenate %299, %321 in 1 : vector<16x32xf32>, vector<16x32xf32> -> vector<16x64xf32>
    %323 = arith.index_cast %c5_i32 : i32 to index
    %c0_100 = arith.constant 0 : index
    %c0_101 = arith.constant 0 : index
    %324 = vector.load %arg18[%323, %c0_100, %c0_101] : memref<16x16x64xf32, #tpu.memory_space<vmem>>, vector<1x16x64xf32>
    %325 = vector.shape_cast %324 : vector<1x16x64xf32> to vector<16x64xf32>
    %326 = vector.shape_cast %322 : vector<16x64xf32> to vector<1x16x64xf32>
    tpu.vector_store %arg18[%323, %c0_100, %c0_101], %326 {strides = array<i32>} : memref<16x16x64xf32, #tpu.memory_space<vmem>>, vector<1x16x64xf32>,
    %c6_i32 = arith.constant 6 : i32
    %327 = arith.truncf %322 : vector<16x64xf32> to vector<16x64xbf16>
    %cst_102 = arith.constant dense<0.000000e+00> : vector<16x256xf32>
    %328 = tpu.matmul %327, %18, %cst_102 {dimension_numbers = #tpu.dot_dimension_numbers<[1], [0], [0], [1], [0, 0, 1, 1], [], []>} : vector<16x64xbf16>, vector<64x256xbf16>, vector<16x256xf32> -> vector<16x256xf32>
    %329 = vector.extract_strided_slice %328 {offsets = [0, 0], sizes = [16, 128], strides = [1, 1]} : vector<16x256xf32> to vector<16x128xf32>
    %330 = arith.index_cast %c6_i32 : i32 to index
    %c0_103 = arith.constant 0 : index
    %c0_104 = arith.constant 0 : index
    %331 = vector.load %arg19[%330, %c0_103, %c0_104] : memref<8x16x128xf32, #tpu.memory_space<vmem>>, vector<1x16x128xf32>
    %332 = vector.shape_cast %331 : vector<1x16x128xf32> to vector<16x128xf32>
    %333 = arith.addf %329, %332 : vector<16x128xf32>
    %cst_105 = arith.constant 5.000000e-01 : f32
    %334 = vector.broadcast %cst_105 : f32 to vector<16x128xf32>
    %335 = arith.mulf %334, %333 : vector<16x128xf32>
    %336 = math.tanh %335 : vector<16x128xf32>
    %cst_106 = arith.constant 5.000000e-01 : f32
    %337 = vector.broadcast %cst_106 : f32 to vector<16x128xf32>
    %338 = arith.mulf %337, %336 : vector<16x128xf32>
    %cst_107 = arith.constant 5.000000e-01 : f32
    %339 = vector.broadcast %cst_107 : f32 to vector<16x128xf32>
    %340 = arith.addf %338, %339 : vector<16x128xf32>
    %341 = math.tanh %333 : vector<16x128xf32>
    %342 = vector.extract_strided_slice %340 {offsets = [0, 0], sizes = [16, 32], strides = [1, 1]} : vector<16x128xf32> to vector<16x32xf32>
    %343 = vector.extract_strided_slice %340 {offsets = [0, 32], sizes = [16, 32], strides = [1, 1]} : vector<16x128xf32> to vector<16x32xf32>
    %344 = vector.extract_strided_slice %340 {offsets = [0, 96], sizes = [16, 32], strides = [1, 1]} : vector<16x128xf32> to vector<16x32xf32>
    %345 = vector.extract_strided_slice %341 {offsets = [0, 64], sizes = [16, 32], strides = [1, 1]} : vector<16x128xf32> to vector<16x32xf32>
    %346 = arith.mulf %343, %297 : vector<16x32xf32>
    %347 = arith.mulf %342, %345 : vector<16x32xf32>
    %348 = arith.addf %346, %347 : vector<16x32xf32>
    %349 = math.tanh %348 : vector<16x32xf32>
    %350 = arith.mulf %344, %349 : vector<16x32xf32>
    %351 = vector.extract_strided_slice %328 {offsets = [0, 128], sizes = [16, 128], strides = [1, 1]} : vector<16x256xf32> to vector<16x128xf32>
    %352 = arith.index_cast %c6_i32 : i32 to index
    %c0_108 = arith.constant 0 : index
    %c0_109 = arith.constant 0 : index
    %353 = vector.load %arg20[%352, %c0_108, %c0_109] : memref<16x16x128xf32, #tpu.memory_space<vmem>>, vector<1x16x128xf32>
    %354 = vector.shape_cast %353 : vector<1x16x128xf32> to vector<16x128xf32>
    %355 = arith.addf %351, %354 : vector<16x128xf32>
    %cst_110 = arith.constant 5.000000e-01 : f32
    %356 = vector.broadcast %cst_110 : f32 to vector<16x128xf32>
    %357 = arith.mulf %356, %355 : vector<16x128xf32>
    %358 = math.tanh %357 : vector<16x128xf32>
    %cst_111 = arith.constant 5.000000e-01 : f32
    %359 = vector.broadcast %cst_111 : f32 to vector<16x128xf32>
    %360 = arith.mulf %359, %358 : vector<16x128xf32>
    %cst_112 = arith.constant 5.000000e-01 : f32
    %361 = vector.broadcast %cst_112 : f32 to vector<16x128xf32>
    %362 = arith.addf %360, %361 : vector<16x128xf32>
    %363 = math.tanh %355 : vector<16x128xf32>
    %364 = vector.extract_strided_slice %362 {offsets = [0, 0], sizes = [16, 32], strides = [1, 1]} : vector<16x128xf32> to vector<16x32xf32>
    %365 = vector.extract_strided_slice %362 {offsets = [0, 32], sizes = [16, 32], strides = [1, 1]} : vector<16x128xf32> to vector<16x32xf32>
    %366 = vector.extract_strided_slice %362 {offsets = [0, 96], sizes = [16, 32], strides = [1, 1]} : vector<16x128xf32> to vector<16x32xf32>
    %367 = vector.extract_strided_slice %363 {offsets = [0, 64], sizes = [16, 32], strides = [1, 1]} : vector<16x128xf32> to vector<16x32xf32>
    %368 = arith.mulf %365, %319 : vector<16x32xf32>
    %369 = arith.mulf %364, %367 : vector<16x32xf32>
    %370 = arith.addf %368, %369 : vector<16x32xf32>
    %371 = math.tanh %370 : vector<16x32xf32>
    %372 = arith.mulf %366, %371 : vector<16x32xf32>
    %373 = tpu.concatenate %350, %372 in 1 : vector<16x32xf32>, vector<16x32xf32> -> vector<16x64xf32>
    %374 = arith.index_cast %c6_i32 : i32 to index
    %c0_113 = arith.constant 0 : index
    %c0_114 = arith.constant 0 : index
    %375 = vector.load %arg18[%374, %c0_113, %c0_114] : memref<16x16x64xf32, #tpu.memory_space<vmem>>, vector<1x16x64xf32>
    %376 = vector.shape_cast %375 : vector<1x16x64xf32> to vector<16x64xf32>
    %377 = vector.shape_cast %373 : vector<16x64xf32> to vector<1x16x64xf32>
    tpu.vector_store %arg18[%374, %c0_113, %c0_114], %377 {strides = array<i32>} : memref<16x16x64xf32, #tpu.memory_space<vmem>>, vector<1x16x64xf32>,
    %c7_i32 = arith.constant 7 : i32
    %378 = arith.truncf %373 : vector<16x64xf32> to vector<16x64xbf16>
    %cst_115 = arith.constant dense<0.000000e+00> : vector<16x256xf32>
    %379 = tpu.matmul %378, %18, %cst_115 {dimension_numbers = #tpu.dot_dimension_numbers<[1], [0], [0], [1], [0, 0, 1, 1], [], []>} : vector<16x64xbf16>, vector<64x256xbf16>, vector<16x256xf32> -> vector<16x256xf32>
    %380 = vector.extract_strided_slice %379 {offsets = [0, 0], sizes = [16, 128], strides = [1, 1]} : vector<16x256xf32> to vector<16x128xf32>
    %381 = arith.index_cast %c7_i32 : i32 to index
    %c0_116 = arith.constant 0 : index
    %c0_117 = arith.constant 0 : index
    %382 = vector.load %arg19[%381, %c0_116, %c0_117] : memref<8x16x128xf32, #tpu.memory_space<vmem>>, vector<1x16x128xf32>
    %383 = vector.shape_cast %382 : vector<1x16x128xf32> to vector<16x128xf32>
    %384 = arith.addf %380, %383 : vector<16x128xf32>
    %cst_118 = arith.constant 5.000000e-01 : f32
    %385 = vector.broadcast %cst_118 : f32 to vector<16x128xf32>
    %386 = arith.mulf %385, %384 : vector<16x128xf32>
    %387 = math.tanh %386 : vector<16x128xf32>
    %cst_119 = arith.constant 5.000000e-01 : f32
    %388 = vector.broadcast %cst_119 : f32 to vector<16x128xf32>
    %389 = arith.mulf %388, %387 : vector<16x128xf32>
    %cst_120 = arith.constant 5.000000e-01 : f32
    %390 = vector.broadcast %cst_120 : f32 to vector<16x128xf32>
    %391 = arith.addf %389, %390 : vector<16x128xf32>
    %392 = math.tanh %384 : vector<16x128xf32>
    %393 = vector.extract_strided_slice %391 {offsets = [0, 0], sizes = [16, 32], strides = [1, 1]} : vector<16x128xf32> to vector<16x32xf32>
    %394 = vector.extract_strided_slice %391 {offsets = [0, 32], sizes = [16, 32], strides = [1, 1]} : vector<16x128xf32> to vector<16x32xf32>
    %395 = vector.extract_strided_slice %391 {offsets = [0, 96], sizes = [16, 32], strides = [1, 1]} : vector<16x128xf32> to vector<16x32xf32>
    %396 = vector.extract_strided_slice %392 {offsets = [0, 64], sizes = [16, 32], strides = [1, 1]} : vector<16x128xf32> to vector<16x32xf32>
    %397 = arith.mulf %394, %348 : vector<16x32xf32>
    %398 = arith.mulf %393, %396 : vector<16x32xf32>
    %399 = arith.addf %397, %398 : vector<16x32xf32>
    %400 = math.tanh %399 : vector<16x32xf32>
    %401 = arith.mulf %395, %400 : vector<16x32xf32>
    %402 = vector.extract_strided_slice %379 {offsets = [0, 128], sizes = [16, 128], strides = [1, 1]} : vector<16x256xf32> to vector<16x128xf32>
    %403 = arith.index_cast %c7_i32 : i32 to index
    %c0_121 = arith.constant 0 : index
    %c0_122 = arith.constant 0 : index
    %404 = vector.load %arg20[%403, %c0_121, %c0_122] : memref<16x16x128xf32, #tpu.memory_space<vmem>>, vector<1x16x128xf32>
    %405 = vector.shape_cast %404 : vector<1x16x128xf32> to vector<16x128xf32>
    %406 = arith.addf %402, %405 : vector<16x128xf32>
    %cst_123 = arith.constant 5.000000e-01 : f32
    %407 = vector.broadcast %cst_123 : f32 to vector<16x128xf32>
    %408 = arith.mulf %407, %406 : vector<16x128xf32>
    %409 = math.tanh %408 : vector<16x128xf32>
    %cst_124 = arith.constant 5.000000e-01 : f32
    %410 = vector.broadcast %cst_124 : f32 to vector<16x128xf32>
    %411 = arith.mulf %410, %409 : vector<16x128xf32>
    %cst_125 = arith.constant 5.000000e-01 : f32
    %412 = vector.broadcast %cst_125 : f32 to vector<16x128xf32>
    %413 = arith.addf %411, %412 : vector<16x128xf32>
    %414 = math.tanh %406 : vector<16x128xf32>
    %415 = vector.extract_strided_slice %413 {offsets = [0, 0], sizes = [16, 32], strides = [1, 1]} : vector<16x128xf32> to vector<16x32xf32>
    %416 = vector.extract_strided_slice %413 {offsets = [0, 32], sizes = [16, 32], strides = [1, 1]} : vector<16x128xf32> to vector<16x32xf32>
    %417 = vector.extract_strided_slice %413 {offsets = [0, 96], sizes = [16, 32], strides = [1, 1]} : vector<16x128xf32> to vector<16x32xf32>
    %418 = vector.extract_strided_slice %414 {offsets = [0, 64], sizes = [16, 32], strides = [1, 1]} : vector<16x128xf32> to vector<16x32xf32>
    %419 = arith.mulf %416, %370 : vector<16x32xf32>
    %420 = arith.mulf %415, %418 : vector<16x32xf32>
    %421 = arith.addf %419, %420 : vector<16x32xf32>
    %422 = math.tanh %421 : vector<16x32xf32>
    %423 = arith.mulf %417, %422 : vector<16x32xf32>
    %424 = tpu.concatenate %401, %423 in 1 : vector<16x32xf32>, vector<16x32xf32> -> vector<16x64xf32>
    %425 = arith.index_cast %c7_i32 : i32 to index
    %c0_126 = arith.constant 0 : index
    %c0_127 = arith.constant 0 : index
    %426 = vector.load %arg18[%425, %c0_126, %c0_127] : memref<16x16x64xf32, #tpu.memory_space<vmem>>, vector<1x16x64xf32>
    %427 = vector.shape_cast %426 : vector<1x16x64xf32> to vector<16x64xf32>
    %428 = vector.shape_cast %424 : vector<16x64xf32> to vector<1x16x64xf32>
    tpu.vector_store %arg18[%425, %c0_126, %c0_127], %428 {strides = array<i32>} : memref<16x16x64xf32, #tpu.memory_space<vmem>>, vector<1x16x64xf32>,
    %c8_i32 = arith.constant 8 : i32
    %c8_i32_128 = arith.constant 8 : i32
    %429 = arith.truncf %424 : vector<16x64xf32> to vector<16x64xbf16>
    %cst_129 = arith.constant dense<0.000000e+00> : vector<16x256xf32>
    %430 = tpu.matmul %429, %18, %cst_129 {dimension_numbers = #tpu.dot_dimension_numbers<[1], [0], [0], [1], [0, 0, 1, 1], [], []>} : vector<16x64xbf16>, vector<64x256xbf16>, vector<16x256xf32> -> vector<16x256xf32>
    %431 = vector.extract_strided_slice %430 {offsets = [0, 128], sizes = [16, 128], strides = [1, 1]} : vector<16x256xf32> to vector<16x128xf32>
    %432 = arith.index_cast %c8_i32_128 : i32 to index
    %c0_130 = arith.constant 0 : index
    %c0_131 = arith.constant 0 : index
    %433 = vector.load %arg20[%432, %c0_130, %c0_131] : memref<16x16x128xf32, #tpu.memory_space<vmem>>, vector<1x16x128xf32>
    %434 = vector.shape_cast %433 : vector<1x16x128xf32> to vector<16x128xf32>
    %435 = arith.addf %431, %434 : vector<16x128xf32>
    %cst_132 = arith.constant 5.000000e-01 : f32
    %436 = vector.broadcast %cst_132 : f32 to vector<16x128xf32>
    %437 = arith.mulf %436, %435 : vector<16x128xf32>
    %438 = math.tanh %437 : vector<16x128xf32>
    %cst_133 = arith.constant 5.000000e-01 : f32
    %439 = vector.broadcast %cst_133 : f32 to vector<16x128xf32>
    %440 = arith.mulf %439, %438 : vector<16x128xf32>
    %cst_134 = arith.constant 5.000000e-01 : f32
    %441 = vector.broadcast %cst_134 : f32 to vector<16x128xf32>
    %442 = arith.addf %440, %441 : vector<16x128xf32>
    %443 = math.tanh %435 : vector<16x128xf32>
    %444 = vector.extract_strided_slice %442 {offsets = [0, 0], sizes = [16, 32], strides = [1, 1]} : vector<16x128xf32> to vector<16x32xf32>
    %445 = vector.extract_strided_slice %442 {offsets = [0, 32], sizes = [16, 32], strides = [1, 1]} : vector<16x128xf32> to vector<16x32xf32>
    %446 = vector.extract_strided_slice %442 {offsets = [0, 96], sizes = [16, 32], strides = [1, 1]} : vector<16x128xf32> to vector<16x32xf32>
    %447 = vector.extract_strided_slice %443 {offsets = [0, 64], sizes = [16, 32], strides = [1, 1]} : vector<16x128xf32> to vector<16x32xf32>
    %448 = arith.mulf %445, %421 : vector<16x32xf32>
    %449 = arith.mulf %444, %447 : vector<16x32xf32>
    %450 = arith.addf %448, %449 : vector<16x32xf32>
    %451 = math.tanh %450 : vector<16x32xf32>
    %452 = arith.mulf %446, %451 : vector<16x32xf32>
    %453 = vector.extract_strided_slice %424 {offsets = [0, 0], sizes = [16, 32], strides = [1, 1]} : vector<16x64xf32> to vector<16x32xf32>
    %454 = tpu.concatenate %453, %452 in 1 : vector<16x32xf32>, vector<16x32xf32> -> vector<16x64xf32>
    %455 = arith.index_cast %c8_i32_128 : i32 to index
    %c0_135 = arith.constant 0 : index
    %c0_136 = arith.constant 0 : index
    %456 = vector.load %arg18[%455, %c0_135, %c0_136] : memref<16x16x64xf32, #tpu.memory_space<vmem>>, vector<1x16x64xf32>
    %457 = vector.shape_cast %456 : vector<1x16x64xf32> to vector<16x64xf32>
    %458 = vector.shape_cast %454 : vector<16x64xf32> to vector<1x16x64xf32>
    tpu.vector_store %arg18[%455, %c0_135, %c0_136], %458 {strides = array<i32>} : memref<16x16x64xf32, #tpu.memory_space<vmem>>, vector<1x16x64xf32>,
    %c9_i32 = arith.constant 9 : i32
    %459 = arith.truncf %454 : vector<16x64xf32> to vector<16x64xbf16>
    %cst_137 = arith.constant dense<0.000000e+00> : vector<16x256xf32>
    %460 = tpu.matmul %459, %18, %cst_137 {dimension_numbers = #tpu.dot_dimension_numbers<[1], [0], [0], [1], [0, 0, 1, 1], [], []>} : vector<16x64xbf16>, vector<64x256xbf16>, vector<16x256xf32> -> vector<16x256xf32>
    %461 = vector.extract_strided_slice %460 {offsets = [0, 128], sizes = [16, 128], strides = [1, 1]} : vector<16x256xf32> to vector<16x128xf32>
    %462 = arith.index_cast %c9_i32 : i32 to index
    %c0_138 = arith.constant 0 : index
    %c0_139 = arith.constant 0 : index
    %463 = vector.load %arg20[%462, %c0_138, %c0_139] : memref<16x16x128xf32, #tpu.memory_space<vmem>>, vector<1x16x128xf32>
    %464 = vector.shape_cast %463 : vector<1x16x128xf32> to vector<16x128xf32>
    %465 = arith.addf %461, %464 : vector<16x128xf32>
    %cst_140 = arith.constant 5.000000e-01 : f32
    %466 = vector.broadcast %cst_140 : f32 to vector<16x128xf32>
    %467 = arith.mulf %466, %465 : vector<16x128xf32>
    %468 = math.tanh %467 : vector<16x128xf32>
    %cst_141 = arith.constant 5.000000e-01 : f32
    %469 = vector.broadcast %cst_141 : f32 to vector<16x128xf32>
    %470 = arith.mulf %469, %468 : vector<16x128xf32>
    %cst_142 = arith.constant 5.000000e-01 : f32
    %471 = vector.broadcast %cst_142 : f32 to vector<16x128xf32>
    %472 = arith.addf %470, %471 : vector<16x128xf32>
    %473 = math.tanh %465 : vector<16x128xf32>
    %474 = vector.extract_strided_slice %472 {offsets = [0, 0], sizes = [16, 32], strides = [1, 1]} : vector<16x128xf32> to vector<16x32xf32>
    %475 = vector.extract_strided_slice %472 {offsets = [0, 32], sizes = [16, 32], strides = [1, 1]} : vector<16x128xf32> to vector<16x32xf32>
    %476 = vector.extract_strided_slice %472 {offsets = [0, 96], sizes = [16, 32], strides = [1, 1]} : vector<16x128xf32> to vector<16x32xf32>
    %477 = vector.extract_strided_slice %473 {offsets = [0, 64], sizes = [16, 32], strides = [1, 1]} : vector<16x128xf32> to vector<16x32xf32>
    %478 = arith.mulf %475, %450 : vector<16x32xf32>
    %479 = arith.mulf %474, %477 : vector<16x32xf32>
    %480 = arith.addf %478, %479 : vector<16x32xf32>
    %481 = math.tanh %480 : vector<16x32xf32>
    %482 = arith.mulf %476, %481 : vector<16x32xf32>
    %483 = vector.extract_strided_slice %454 {offsets = [0, 0], sizes = [16, 32], strides = [1, 1]} : vector<16x64xf32> to vector<16x32xf32>
    %484 = tpu.concatenate %483, %482 in 1 : vector<16x32xf32>, vector<16x32xf32> -> vector<16x64xf32>
    %485 = arith.index_cast %c9_i32 : i32 to index
    %c0_143 = arith.constant 0 : index
    %c0_144 = arith.constant 0 : index
    %486 = vector.load %arg18[%485, %c0_143, %c0_144] : memref<16x16x64xf32, #tpu.memory_space<vmem>>, vector<1x16x64xf32>
    %487 = vector.shape_cast %486 : vector<1x16x64xf32> to vector<16x64xf32>
    %488 = vector.shape_cast %484 : vector<16x64xf32> to vector<1x16x64xf32>
    tpu.vector_store %arg18[%485, %c0_143, %c0_144], %488 {strides = array<i32>} : memref<16x16x64xf32, #tpu.memory_space<vmem>>, vector<1x16x64xf32>,
    %c10_i32 = arith.constant 10 : i32
    %489 = arith.truncf %484 : vector<16x64xf32> to vector<16x64xbf16>
    %cst_145 = arith.constant dense<0.000000e+00> : vector<16x256xf32>
    %490 = tpu.matmul %489, %18, %cst_145 {dimension_numbers = #tpu.dot_dimension_numbers<[1], [0], [0], [1], [0, 0, 1, 1], [], []>} : vector<16x64xbf16>, vector<64x256xbf16>, vector<16x256xf32> -> vector<16x256xf32>
    %491 = vector.extract_strided_slice %490 {offsets = [0, 128], sizes = [16, 128], strides = [1, 1]} : vector<16x256xf32> to vector<16x128xf32>
    %492 = arith.index_cast %c10_i32 : i32 to index
    %c0_146 = arith.constant 0 : index
    %c0_147 = arith.constant 0 : index
    %493 = vector.load %arg20[%492, %c0_146, %c0_147] : memref<16x16x128xf32, #tpu.memory_space<vmem>>, vector<1x16x128xf32>
    %494 = vector.shape_cast %493 : vector<1x16x128xf32> to vector<16x128xf32>
    %495 = arith.addf %491, %494 : vector<16x128xf32>
    %cst_148 = arith.constant 5.000000e-01 : f32
    %496 = vector.broadcast %cst_148 : f32 to vector<16x128xf32>
    %497 = arith.mulf %496, %495 : vector<16x128xf32>
    %498 = math.tanh %497 : vector<16x128xf32>
    %cst_149 = arith.constant 5.000000e-01 : f32
    %499 = vector.broadcast %cst_149 : f32 to vector<16x128xf32>
    %500 = arith.mulf %499, %498 : vector<16x128xf32>
    %cst_150 = arith.constant 5.000000e-01 : f32
    %501 = vector.broadcast %cst_150 : f32 to vector<16x128xf32>
    %502 = arith.addf %500, %501 : vector<16x128xf32>
    %503 = math.tanh %495 : vector<16x128xf32>
    %504 = vector.extract_strided_slice %502 {offsets = [0, 0], sizes = [16, 32], strides = [1, 1]} : vector<16x128xf32> to vector<16x32xf32>
    %505 = vector.extract_strided_slice %502 {offsets = [0, 32], sizes = [16, 32], strides = [1, 1]} : vector<16x128xf32> to vector<16x32xf32>
    %506 = vector.extract_strided_slice %502 {offsets = [0, 96], sizes = [16, 32], strides = [1, 1]} : vector<16x128xf32> to vector<16x32xf32>
    %507 = vector.extract_strided_slice %503 {offsets = [0, 64], sizes = [16, 32], strides = [1, 1]} : vector<16x128xf32> to vector<16x32xf32>
    %508 = arith.mulf %505, %480 : vector<16x32xf32>
    %509 = arith.mulf %504, %507 : vector<16x32xf32>
    %510 = arith.addf %508, %509 : vector<16x32xf32>
    %511 = math.tanh %510 : vector<16x32xf32>
    %512 = arith.mulf %506, %511 : vector<16x32xf32>
    %513 = vector.extract_strided_slice %484 {offsets = [0, 0], sizes = [16, 32], strides = [1, 1]} : vector<16x64xf32> to vector<16x32xf32>
    %514 = tpu.concatenate %513, %512 in 1 : vector<16x32xf32>, vector<16x32xf32> -> vector<16x64xf32>
    %515 = arith.index_cast %c10_i32 : i32 to index
    %c0_151 = arith.constant 0 : index
    %c0_152 = arith.constant 0 : index
    %516 = vector.load %arg18[%515, %c0_151, %c0_152] : memref<16x16x64xf32, #tpu.memory_space<vmem>>, vector<1x16x64xf32>
    %517 = vector.shape_cast %516 : vector<1x16x64xf32> to vector<16x64xf32>
    %518 = vector.shape_cast %514 : vector<16x64xf32> to vector<1x16x64xf32>
    tpu.vector_store %arg18[%515, %c0_151, %c0_152], %518 {strides = array<i32>} : memref<16x16x64xf32, #tpu.memory_space<vmem>>, vector<1x16x64xf32>,
    %c11_i32 = arith.constant 11 : i32
    %519 = arith.truncf %514 : vector<16x64xf32> to vector<16x64xbf16>
    %cst_153 = arith.constant dense<0.000000e+00> : vector<16x256xf32>
    %520 = tpu.matmul %519, %18, %cst_153 {dimension_numbers = #tpu.dot_dimension_numbers<[1], [0], [0], [1], [0, 0, 1, 1], [], []>} : vector<16x64xbf16>, vector<64x256xbf16>, vector<16x256xf32> -> vector<16x256xf32>
    %521 = vector.extract_strided_slice %520 {offsets = [0, 128], sizes = [16, 128], strides = [1, 1]} : vector<16x256xf32> to vector<16x128xf32>
    %522 = arith.index_cast %c11_i32 : i32 to index
    %c0_154 = arith.constant 0 : index
    %c0_155 = arith.constant 0 : index
    %523 = vector.load %arg20[%522, %c0_154, %c0_155] : memref<16x16x128xf32, #tpu.memory_space<vmem>>, vector<1x16x128xf32>
    %524 = vector.shape_cast %523 : vector<1x16x128xf32> to vector<16x128xf32>
    %525 = arith.addf %521, %524 : vector<16x128xf32>
    %cst_156 = arith.constant 5.000000e-01 : f32
    %526 = vector.broadcast %cst_156 : f32 to vector<16x128xf32>
    %527 = arith.mulf %526, %525 : vector<16x128xf32>
    %528 = math.tanh %527 : vector<16x128xf32>
    %cst_157 = arith.constant 5.000000e-01 : f32
    %529 = vector.broadcast %cst_157 : f32 to vector<16x128xf32>
    %530 = arith.mulf %529, %528 : vector<16x128xf32>
    %cst_158 = arith.constant 5.000000e-01 : f32
    %531 = vector.broadcast %cst_158 : f32 to vector<16x128xf32>
    %532 = arith.addf %530, %531 : vector<16x128xf32>
    %533 = math.tanh %525 : vector<16x128xf32>
    %534 = vector.extract_strided_slice %532 {offsets = [0, 0], sizes = [16, 32], strides = [1, 1]} : vector<16x128xf32> to vector<16x32xf32>
    %535 = vector.extract_strided_slice %532 {offsets = [0, 32], sizes = [16, 32], strides = [1, 1]} : vector<16x128xf32> to vector<16x32xf32>
    %536 = vector.extract_strided_slice %532 {offsets = [0, 96], sizes = [16, 32], strides = [1, 1]} : vector<16x128xf32> to vector<16x32xf32>
    %537 = vector.extract_strided_slice %533 {offsets = [0, 64], sizes = [16, 32], strides = [1, 1]} : vector<16x128xf32> to vector<16x32xf32>
    %538 = arith.mulf %535, %510 : vector<16x32xf32>
    %539 = arith.mulf %534, %537 : vector<16x32xf32>
    %540 = arith.addf %538, %539 : vector<16x32xf32>
    %541 = math.tanh %540 : vector<16x32xf32>
    %542 = arith.mulf %536, %541 : vector<16x32xf32>
    %543 = vector.extract_strided_slice %514 {offsets = [0, 0], sizes = [16, 32], strides = [1, 1]} : vector<16x64xf32> to vector<16x32xf32>
    %544 = tpu.concatenate %543, %542 in 1 : vector<16x32xf32>, vector<16x32xf32> -> vector<16x64xf32>
    %545 = arith.index_cast %c11_i32 : i32 to index
    %c0_159 = arith.constant 0 : index
    %c0_160 = arith.constant 0 : index
    %546 = vector.load %arg18[%545, %c0_159, %c0_160] : memref<16x16x64xf32, #tpu.memory_space<vmem>>, vector<1x16x64xf32>
    %547 = vector.shape_cast %546 : vector<1x16x64xf32> to vector<16x64xf32>
    %548 = vector.shape_cast %544 : vector<16x64xf32> to vector<1x16x64xf32>
    tpu.vector_store %arg18[%545, %c0_159, %c0_160], %548 {strides = array<i32>} : memref<16x16x64xf32, #tpu.memory_space<vmem>>, vector<1x16x64xf32>,
    %c12_i32 = arith.constant 12 : i32
    %549 = arith.truncf %544 : vector<16x64xf32> to vector<16x64xbf16>
    %cst_161 = arith.constant dense<0.000000e+00> : vector<16x256xf32>
    %550 = tpu.matmul %549, %18, %cst_161 {dimension_numbers = #tpu.dot_dimension_numbers<[1], [0], [0], [1], [0, 0, 1, 1], [], []>} : vector<16x64xbf16>, vector<64x256xbf16>, vector<16x256xf32> -> vector<16x256xf32>
    %551 = vector.extract_strided_slice %550 {offsets = [0, 128], sizes = [16, 128], strides = [1, 1]} : vector<16x256xf32> to vector<16x128xf32>
    %552 = arith.index_cast %c12_i32 : i32 to index
    %c0_162 = arith.constant 0 : index
    %c0_163 = arith.constant 0 : index
    %553 = vector.load %arg20[%552, %c0_162, %c0_163] : memref<16x16x128xf32, #tpu.memory_space<vmem>>, vector<1x16x128xf32>
    %554 = vector.shape_cast %553 : vector<1x16x128xf32> to vector<16x128xf32>
    %555 = arith.addf %551, %554 : vector<16x128xf32>
    %cst_164 = arith.constant 5.000000e-01 : f32
    %556 = vector.broadcast %cst_164 : f32 to vector<16x128xf32>
    %557 = arith.mulf %556, %555 : vector<16x128xf32>
    %558 = math.tanh %557 : vector<16x128xf32>
    %cst_165 = arith.constant 5.000000e-01 : f32
    %559 = vector.broadcast %cst_165 : f32 to vector<16x128xf32>
    %560 = arith.mulf %559, %558 : vector<16x128xf32>
    %cst_166 = arith.constant 5.000000e-01 : f32
    %561 = vector.broadcast %cst_166 : f32 to vector<16x128xf32>
    %562 = arith.addf %560, %561 : vector<16x128xf32>
    %563 = math.tanh %555 : vector<16x128xf32>
    %564 = vector.extract_strided_slice %562 {offsets = [0, 0], sizes = [16, 32], strides = [1, 1]} : vector<16x128xf32> to vector<16x32xf32>
    %565 = vector.extract_strided_slice %562 {offsets = [0, 32], sizes = [16, 32], strides = [1, 1]} : vector<16x128xf32> to vector<16x32xf32>
    %566 = vector.extract_strided_slice %562 {offsets = [0, 96], sizes = [16, 32], strides = [1, 1]} : vector<16x128xf32> to vector<16x32xf32>
    %567 = vector.extract_strided_slice %563 {offsets = [0, 64], sizes = [16, 32], strides = [1, 1]} : vector<16x128xf32> to vector<16x32xf32>
    %568 = arith.mulf %565, %540 : vector<16x32xf32>
    %569 = arith.mulf %564, %567 : vector<16x32xf32>
    %570 = arith.addf %568, %569 : vector<16x32xf32>
    %571 = math.tanh %570 : vector<16x32xf32>
    %572 = arith.mulf %566, %571 : vector<16x32xf32>
    %573 = vector.extract_strided_slice %544 {offsets = [0, 0], sizes = [16, 32], strides = [1, 1]} : vector<16x64xf32> to vector<16x32xf32>
    %574 = tpu.concatenate %573, %572 in 1 : vector<16x32xf32>, vector<16x32xf32> -> vector<16x64xf32>
    %575 = arith.index_cast %c12_i32 : i32 to index
    %c0_167 = arith.constant 0 : index
    %c0_168 = arith.constant 0 : index
    %576 = vector.load %arg18[%575, %c0_167, %c0_168] : memref<16x16x64xf32, #tpu.memory_space<vmem>>, vector<1x16x64xf32>
    %577 = vector.shape_cast %576 : vector<1x16x64xf32> to vector<16x64xf32>
    %578 = vector.shape_cast %574 : vector<16x64xf32> to vector<1x16x64xf32>
    tpu.vector_store %arg18[%575, %c0_167, %c0_168], %578 {strides = array<i32>} : memref<16x16x64xf32, #tpu.memory_space<vmem>>, vector<1x16x64xf32>,
    %c13_i32 = arith.constant 13 : i32
    %579 = arith.truncf %574 : vector<16x64xf32> to vector<16x64xbf16>
    %cst_169 = arith.constant dense<0.000000e+00> : vector<16x256xf32>
    %580 = tpu.matmul %579, %18, %cst_169 {dimension_numbers = #tpu.dot_dimension_numbers<[1], [0], [0], [1], [0, 0, 1, 1], [], []>} : vector<16x64xbf16>, vector<64x256xbf16>, vector<16x256xf32> -> vector<16x256xf32>
    %581 = vector.extract_strided_slice %580 {offsets = [0, 128], sizes = [16, 128], strides = [1, 1]} : vector<16x256xf32> to vector<16x128xf32>
    %582 = arith.index_cast %c13_i32 : i32 to index
    %c0_170 = arith.constant 0 : index
    %c0_171 = arith.constant 0 : index
    %583 = vector.load %arg20[%582, %c0_170, %c0_171] : memref<16x16x128xf32, #tpu.memory_space<vmem>>, vector<1x16x128xf32>
    %584 = vector.shape_cast %583 : vector<1x16x128xf32> to vector<16x128xf32>
    %585 = arith.addf %581, %584 : vector<16x128xf32>
    %cst_172 = arith.constant 5.000000e-01 : f32
    %586 = vector.broadcast %cst_172 : f32 to vector<16x128xf32>
    %587 = arith.mulf %586, %585 : vector<16x128xf32>
    %588 = math.tanh %587 : vector<16x128xf32>
    %cst_173 = arith.constant 5.000000e-01 : f32
    %589 = vector.broadcast %cst_173 : f32 to vector<16x128xf32>
    %590 = arith.mulf %589, %588 : vector<16x128xf32>
    %cst_174 = arith.constant 5.000000e-01 : f32
    %591 = vector.broadcast %cst_174 : f32 to vector<16x128xf32>
    %592 = arith.addf %590, %591 : vector<16x128xf32>
    %593 = math.tanh %585 : vector<16x128xf32>
    %594 = vector.extract_strided_slice %592 {offsets = [0, 0], sizes = [16, 32], strides = [1, 1]} : vector<16x128xf32> to vector<16x32xf32>
    %595 = vector.extract_strided_slice %592 {offsets = [0, 32], sizes = [16, 32], strides = [1, 1]} : vector<16x128xf32> to vector<16x32xf32>
    %596 = vector.extract_strided_slice %592 {offsets = [0, 96], sizes = [16, 32], strides = [1, 1]} : vector<16x128xf32> to vector<16x32xf32>
    %597 = vector.extract_strided_slice %593 {offsets = [0, 64], sizes = [16, 32], strides = [1, 1]} : vector<16x128xf32> to vector<16x32xf32>
    %598 = arith.mulf %595, %570 : vector<16x32xf32>
    %599 = arith.mulf %594, %597 : vector<16x32xf32>
    %600 = arith.addf %598, %599 : vector<16x32xf32>
    %601 = math.tanh %600 : vector<16x32xf32>
    %602 = arith.mulf %596, %601 : vector<16x32xf32>
    %603 = vector.extract_strided_slice %574 {offsets = [0, 0], sizes = [16, 32], strides = [1, 1]} : vector<16x64xf32> to vector<16x32xf32>
    %604 = tpu.concatenate %603, %602 in 1 : vector<16x32xf32>, vector<16x32xf32> -> vector<16x64xf32>
    %605 = arith.index_cast %c13_i32 : i32 to index
    %c0_175 = arith.constant 0 : index
    %c0_176 = arith.constant 0 : index
    %606 = vector.load %arg18[%605, %c0_175, %c0_176] : memref<16x16x64xf32, #tpu.memory_space<vmem>>, vector<1x16x64xf32>
    %607 = vector.shape_cast %606 : vector<1x16x64xf32> to vector<16x64xf32>
    %608 = vector.shape_cast %604 : vector<16x64xf32> to vector<1x16x64xf32>
    tpu.vector_store %arg18[%605, %c0_175, %c0_176], %608 {strides = array<i32>} : memref<16x16x64xf32, #tpu.memory_space<vmem>>, vector<1x16x64xf32>,
    %c14_i32 = arith.constant 14 : i32
    %609 = arith.truncf %604 : vector<16x64xf32> to vector<16x64xbf16>
    %cst_177 = arith.constant dense<0.000000e+00> : vector<16x256xf32>
    %610 = tpu.matmul %609, %18, %cst_177 {dimension_numbers = #tpu.dot_dimension_numbers<[1], [0], [0], [1], [0, 0, 1, 1], [], []>} : vector<16x64xbf16>, vector<64x256xbf16>, vector<16x256xf32> -> vector<16x256xf32>
    %611 = vector.extract_strided_slice %610 {offsets = [0, 128], sizes = [16, 128], strides = [1, 1]} : vector<16x256xf32> to vector<16x128xf32>
    %612 = arith.index_cast %c14_i32 : i32 to index
    %c0_178 = arith.constant 0 : index
    %c0_179 = arith.constant 0 : index
    %613 = vector.load %arg20[%612, %c0_178, %c0_179] : memref<16x16x128xf32, #tpu.memory_space<vmem>>, vector<1x16x128xf32>
    %614 = vector.shape_cast %613 : vector<1x16x128xf32> to vector<16x128xf32>
    %615 = arith.addf %611, %614 : vector<16x128xf32>
    %cst_180 = arith.constant 5.000000e-01 : f32
    %616 = vector.broadcast %cst_180 : f32 to vector<16x128xf32>
    %617 = arith.mulf %616, %615 : vector<16x128xf32>
    %618 = math.tanh %617 : vector<16x128xf32>
    %cst_181 = arith.constant 5.000000e-01 : f32
    %619 = vector.broadcast %cst_181 : f32 to vector<16x128xf32>
    %620 = arith.mulf %619, %618 : vector<16x128xf32>
    %cst_182 = arith.constant 5.000000e-01 : f32
    %621 = vector.broadcast %cst_182 : f32 to vector<16x128xf32>
    %622 = arith.addf %620, %621 : vector<16x128xf32>
    %623 = math.tanh %615 : vector<16x128xf32>
    %624 = vector.extract_strided_slice %622 {offsets = [0, 0], sizes = [16, 32], strides = [1, 1]} : vector<16x128xf32> to vector<16x32xf32>
    %625 = vector.extract_strided_slice %622 {offsets = [0, 32], sizes = [16, 32], strides = [1, 1]} : vector<16x128xf32> to vector<16x32xf32>
    %626 = vector.extract_strided_slice %622 {offsets = [0, 96], sizes = [16, 32], strides = [1, 1]} : vector<16x128xf32> to vector<16x32xf32>
    %627 = vector.extract_strided_slice %623 {offsets = [0, 64], sizes = [16, 32], strides = [1, 1]} : vector<16x128xf32> to vector<16x32xf32>
    %628 = arith.mulf %625, %600 : vector<16x32xf32>
    %629 = arith.mulf %624, %627 : vector<16x32xf32>
    %630 = arith.addf %628, %629 : vector<16x32xf32>
    %631 = math.tanh %630 : vector<16x32xf32>
    %632 = arith.mulf %626, %631 : vector<16x32xf32>
    %633 = vector.extract_strided_slice %604 {offsets = [0, 0], sizes = [16, 32], strides = [1, 1]} : vector<16x64xf32> to vector<16x32xf32>
    %634 = tpu.concatenate %633, %632 in 1 : vector<16x32xf32>, vector<16x32xf32> -> vector<16x64xf32>
    %635 = arith.index_cast %c14_i32 : i32 to index
    %c0_183 = arith.constant 0 : index
    %c0_184 = arith.constant 0 : index
    %636 = vector.load %arg18[%635, %c0_183, %c0_184] : memref<16x16x64xf32, #tpu.memory_space<vmem>>, vector<1x16x64xf32>
    %637 = vector.shape_cast %636 : vector<1x16x64xf32> to vector<16x64xf32>
    %638 = vector.shape_cast %634 : vector<16x64xf32> to vector<1x16x64xf32>
    tpu.vector_store %arg18[%635, %c0_183, %c0_184], %638 {strides = array<i32>} : memref<16x16x64xf32, #tpu.memory_space<vmem>>, vector<1x16x64xf32>,
    %c15_i32 = arith.constant 15 : i32
    %639 = arith.truncf %634 : vector<16x64xf32> to vector<16x64xbf16>
    %cst_185 = arith.constant dense<0.000000e+00> : vector<16x256xf32>
    %640 = tpu.matmul %639, %18, %cst_185 {dimension_numbers = #tpu.dot_dimension_numbers<[1], [0], [0], [1], [0, 0, 1, 1], [], []>} : vector<16x64xbf16>, vector<64x256xbf16>, vector<16x256xf32> -> vector<16x256xf32>
    %641 = vector.extract_strided_slice %640 {offsets = [0, 128], sizes = [16, 128], strides = [1, 1]} : vector<16x256xf32> to vector<16x128xf32>
    %642 = arith.index_cast %c15_i32 : i32 to index
    %c0_186 = arith.constant 0 : index
    %c0_187 = arith.constant 0 : index
    %643 = vector.load %arg20[%642, %c0_186, %c0_187] : memref<16x16x128xf32, #tpu.memory_space<vmem>>, vector<1x16x128xf32>
    %644 = vector.shape_cast %643 : vector<1x16x128xf32> to vector<16x128xf32>
    %645 = arith.addf %641, %644 : vector<16x128xf32>
    %cst_188 = arith.constant 5.000000e-01 : f32
    %646 = vector.broadcast %cst_188 : f32 to vector<16x128xf32>
    %647 = arith.mulf %646, %645 : vector<16x128xf32>
    %648 = math.tanh %647 : vector<16x128xf32>
    %cst_189 = arith.constant 5.000000e-01 : f32
    %649 = vector.broadcast %cst_189 : f32 to vector<16x128xf32>
    %650 = arith.mulf %649, %648 : vector<16x128xf32>
    %cst_190 = arith.constant 5.000000e-01 : f32
    %651 = vector.broadcast %cst_190 : f32 to vector<16x128xf32>
    %652 = arith.addf %650, %651 : vector<16x128xf32>
    %653 = math.tanh %645 : vector<16x128xf32>
    %654 = vector.extract_strided_slice %652 {offsets = [0, 0], sizes = [16, 32], strides = [1, 1]} : vector<16x128xf32> to vector<16x32xf32>
    %655 = vector.extract_strided_slice %652 {offsets = [0, 32], sizes = [16, 32], strides = [1, 1]} : vector<16x128xf32> to vector<16x32xf32>
    %656 = vector.extract_strided_slice %652 {offsets = [0, 96], sizes = [16, 32], strides = [1, 1]} : vector<16x128xf32> to vector<16x32xf32>
    %657 = vector.extract_strided_slice %653 {offsets = [0, 64], sizes = [16, 32], strides = [1, 1]} : vector<16x128xf32> to vector<16x32xf32>
    %658 = arith.mulf %655, %630 : vector<16x32xf32>
    %659 = arith.mulf %654, %657 : vector<16x32xf32>
    %660 = arith.addf %658, %659 : vector<16x32xf32>
    %661 = math.tanh %660 : vector<16x32xf32>
    %662 = arith.mulf %656, %661 : vector<16x32xf32>
    %663 = vector.extract_strided_slice %634 {offsets = [0, 0], sizes = [16, 32], strides = [1, 1]} : vector<16x64xf32> to vector<16x32xf32>
    %664 = tpu.concatenate %663, %662 in 1 : vector<16x32xf32>, vector<16x32xf32> -> vector<16x64xf32>
    %665 = arith.index_cast %c15_i32 : i32 to index
    %c0_191 = arith.constant 0 : index
    %c0_192 = arith.constant 0 : index
    %666 = vector.load %arg18[%665, %c0_191, %c0_192] : memref<16x16x64xf32, #tpu.memory_space<vmem>>, vector<1x16x64xf32>
    %667 = vector.shape_cast %666 : vector<1x16x64xf32> to vector<16x64xf32>
    %668 = vector.shape_cast %664 : vector<16x64xf32> to vector<1x16x64xf32>
    tpu.vector_store %arg18[%665, %c0_191, %c0_192], %668 {strides = array<i32>} : memref<16x16x64xf32, #tpu.memory_space<vmem>>, vector<1x16x64xf32>,
    %c8_i32_193 = arith.constant 8 : i32
    %c0_194 = arith.constant 0 : index
    %c0_195 = arith.constant 0 : index
    %c0_196 = arith.constant 0 : index
    %669 = vector.load %arg3[%c0_194, %c0_195, %c0_196] : memref<8x16x1xf32, #tpu.memory_space<vmem>>, vector<8x16x1xf32>
    %c0_197 = arith.constant 0 : index
    %c0_198 = arith.constant 0 : index
    %c0_199 = arith.constant 0 : index
    %670 = vector.load %arg4[%c0_197, %c0_198, %c0_199] : memref<16x16x1xf32, #tpu.memory_space<vmem>>, vector<16x16x1xf32>
    %c0_200 = arith.constant 0 : index
    %c0_201 = arith.constant 0 : index
    %c0_202 = arith.constant 0 : index
    %671 = vector.load %arg18[%c0_200, %c0_201, %c0_202] : memref<16x16x64xf32, #tpu.memory_space<vmem>>, vector<16x16x64xf32>
    %672 = vector.extract_strided_slice %671 {offsets = [0, 0, 0], sizes = [8, 16, 32], strides = [1, 1, 1]} : vector<16x16x64xf32> to vector<8x16x32xf32>
    %673 = vector.broadcast %669 : vector<8x16x1xf32> to vector<8x16x32xf32>
    %674 = arith.mulf %672, %673 : vector<8x16x32xf32>
    %675 = vector.extract_strided_slice %671 {offsets = [0, 0, 32], sizes = [16, 16, 32], strides = [1, 1, 1]} : vector<16x16x64xf32> to vector<16x16x32xf32>
    %676 = vector.broadcast %670 : vector<16x16x1xf32> to vector<16x16x32xf32>
    %677 = arith.mulf %675, %676 : vector<16x16x32xf32>
    %cst_203 = arith.constant dense<0.000000e+00> : vector<16x1xf32>
    %678 = vector.multi_reduction <add>, %669, %cst_203 [0] : vector<8x16x1xf32> to vector<16x1xf32>
    %cst_204 = arith.constant 9.99999996E-13 : f32
    %679 = vector.broadcast %cst_204 : f32 to vector<16x1xf32>
    %680 = arith.maximumf %678, %679 : vector<16x1xf32>
    %cst_205 = arith.constant dense<0.000000e+00> : vector<16x32xf32>
    %681 = vector.multi_reduction <add>, %674, %cst_205 [0] : vector<8x16x32xf32> to vector<16x32xf32>
    %682 = tpu.reciprocal %680 {approx = true} : vector<16x1xf32> -> vector<16x1xf32>
    %683 = vector.broadcast %682 : vector<16x1xf32> to vector<16x32xf32>
    %684 = arith.mulf %681, %683 : vector<16x32xf32>
    %cst_206 = arith.constant dense<0.000000e+00> : vector<16x1xf32>
    %685 = vector.multi_reduction <add>, %670, %cst_206 [0] : vector<16x16x1xf32> to vector<16x1xf32>
    %cst_207 = arith.constant 9.99999996E-13 : f32
    %686 = vector.broadcast %cst_207 : f32 to vector<16x1xf32>
    %687 = arith.maximumf %685, %686 : vector<16x1xf32>
    %cst_208 = arith.constant dense<0.000000e+00> : vector<16x32xf32>
    %688 = vector.multi_reduction <add>, %677, %cst_208 [0] : vector<16x16x32xf32> to vector<16x32xf32>
    %689 = tpu.reciprocal %687 {approx = true} : vector<16x1xf32> -> vector<16x1xf32>
    %690 = vector.broadcast %689 : vector<16x1xf32> to vector<16x32xf32>
    %691 = arith.mulf %688, %690 : vector<16x32xf32>
    %c0_209 = arith.constant 0 : index
    %c0_210 = arith.constant 0 : index
    %692 = vector.load %arg10[%c0_209, %c0_210] : memref<32x32xf32, #tpu.memory_space<vmem>>, vector<32x32xf32>
    %cst_211 = arith.constant dense<0.000000e+00> : vector<16x32xf32>
    %693 = tpu.matmul %691, %692, %cst_211 {dimension_numbers = #tpu.dot_dimension_numbers<[1], [0], [0], [1], [0, 0, 1, 1], [], []>} : vector<16x32xf32>, vector<32x32xf32>, vector<16x32xf32> -> vector<16x32xf32>
    %694 = vector.shape_cast %693 : vector<16x32xf32> to vector<1x16x32xf32>
    %695 = vector.broadcast %694 : vector<1x16x32xf32> to vector<8x16x32xf32>
    %696 = arith.mulf %674, %695 : vector<8x16x32xf32>
    %cst_212 = arith.constant dense<0.000000e+00> : vector<8x16xf32>
    %697 = vector.multi_reduction <add>, %696, %cst_212 [2] : vector<8x16x32xf32> to vector<8x16xf32>
    %698 = vector.shape_cast %697 : vector<8x16xf32> to vector<8x16x1xf32>
    %c0_213 = arith.constant 0 : index
    %c0_214 = arith.constant 0 : index
    %699 = vector.load %arg11[%c0_213, %c0_214] : memref<1x1xf32, #tpu.memory_space<vmem>>, vector<1x1xf32>
    %700 = vector.shape_cast %699 : vector<1x1xf32> to vector<1x1x1xf32>
    %701 = vector.broadcast %700 : vector<1x1x1xf32> to vector<8x16x1xf32>
    %702 = arith.addf %698, %701 : vector<8x16x1xf32>
    %703 = math.tanh %702 : vector<8x16x1xf32>
    %704 = math.exp %703 : vector<8x16x1xf32>
    %705 = arith.mulf %704, %669 : vector<8x16x1xf32>
    %cst_215 = arith.constant dense<0.000000e+00> : vector<16x1xf32>
    %706 = vector.multi_reduction <add>, %705, %cst_215 [0] : vector<8x16x1xf32> to vector<16x1xf32>
    %707 = vector.shape_cast %706 : vector<16x1xf32> to vector<1x16x1xf32>
    %cst_216 = arith.constant 9.99999996E-13 : f32
    %708 = vector.broadcast %cst_216 : f32 to vector<1x16x1xf32>
    %709 = arith.maximumf %707, %708 : vector<1x16x1xf32>
    %710 = tpu.reciprocal %709 {approx = true} : vector<1x16x1xf32> -> vector<1x16x1xf32>
    %711 = vector.broadcast %710 : vector<1x16x1xf32> to vector<8x16x1xf32>
    %712 = arith.mulf %705, %711 : vector<8x16x1xf32>
    %c0_217 = arith.constant 0 : index
    %c0_218 = arith.constant 0 : index
    %713 = vector.load %arg12[%c0_217, %c0_218] : memref<32x32xf32, #tpu.memory_space<vmem>>, vector<32x32xf32>
    %cst_219 = arith.constant dense<0.000000e+00> : vector<16x32xf32>
    %714 = tpu.matmul %684, %713, %cst_219 {dimension_numbers = #tpu.dot_dimension_numbers<[1], [0], [0], [1], [0, 0, 1, 1], [], []>} : vector<16x32xf32>, vector<32x32xf32>, vector<16x32xf32> -> vector<16x32xf32>
    %715 = vector.shape_cast %714 : vector<16x32xf32> to vector<1x16x32xf32>
    %716 = vector.broadcast %715 : vector<1x16x32xf32> to vector<16x16x32xf32>
    %717 = arith.mulf %677, %716 : vector<16x16x32xf32>
    %cst_220 = arith.constant dense<0.000000e+00> : vector<16x16xf32>
    %718 = vector.multi_reduction <add>, %717, %cst_220 [2] : vector<16x16x32xf32> to vector<16x16xf32>
    %719 = vector.shape_cast %718 : vector<16x16xf32> to vector<16x16x1xf32>
    %c0_221 = arith.constant 0 : index
    %c0_222 = arith.constant 0 : index
    %720 = vector.load %arg13[%c0_221, %c0_222] : memref<1x1xf32, #tpu.memory_space<vmem>>, vector<1x1xf32>
    %721 = vector.shape_cast %720 : vector<1x1xf32> to vector<1x1x1xf32>
    %722 = vector.broadcast %721 : vector<1x1x1xf32> to vector<16x16x1xf32>
    %723 = arith.addf %719, %722 : vector<16x16x1xf32>
    %724 = math.tanh %723 : vector<16x16x1xf32>
    %725 = math.exp %724 : vector<16x16x1xf32>
    %726 = arith.mulf %725, %670 : vector<16x16x1xf32>
    %cst_223 = arith.constant dense<0.000000e+00> : vector<16x1xf32>
    %727 = vector.multi_reduction <add>, %726, %cst_223 [0] : vector<16x16x1xf32> to vector<16x1xf32>
    %728 = vector.shape_cast %727 : vector<16x1xf32> to vector<1x16x1xf32>
    %cst_224 = arith.constant 9.99999996E-13 : f32
    %729 = vector.broadcast %cst_224 : f32 to vector<1x16x1xf32>
    %730 = arith.maximumf %728, %729 : vector<1x16x1xf32>
    %731 = tpu.reciprocal %730 {approx = true} : vector<1x16x1xf32> -> vector<1x16x1xf32>
    %732 = vector.broadcast %731 : vector<1x16x1xf32> to vector<16x16x1xf32>
    %733 = arith.mulf %726, %732 : vector<16x16x1xf32>
    %734 = vector.broadcast %712 : vector<8x16x1xf32> to vector<8x16x32xf32>
    %735 = arith.mulf %734, %674 : vector<8x16x32xf32>
    %cst_225 = arith.constant dense<0.000000e+00> : vector<16x32xf32>
    %736 = vector.multi_reduction <add>, %735, %cst_225 [0] : vector<8x16x32xf32> to vector<16x32xf32>
    %737 = vector.broadcast %733 : vector<16x16x1xf32> to vector<16x16x32xf32>
    %738 = arith.mulf %737, %677 : vector<16x16x32xf32>
    %cst_226 = arith.constant dense<0.000000e+00> : vector<16x32xf32>
    %739 = vector.multi_reduction <add>, %738, %cst_226 [0] : vector<16x16x32xf32> to vector<16x32xf32>
    %c0_227 = arith.constant 0 : index
    %c0_228 = arith.constant 0 : index
    %740 = vector.load %arg14[%c0_227, %c0_228] : memref<32x3xf32, #tpu.memory_space<vmem>>, vector<32x3xf32>
    %cst_229 = arith.constant dense<0.000000e+00> : vector<16x3xf32>
    %741 = tpu.matmul %736, %740, %cst_229 {dimension_numbers = #tpu.dot_dimension_numbers<[1], [0], [0], [1], [0, 0, 1, 1], [], []>} : vector<16x32xf32>, vector<32x3xf32>, vector<16x3xf32> -> vector<16x3xf32>
    %c0_230 = arith.constant 0 : index
    %c0_231 = arith.constant 0 : index
    %742 = vector.load %arg15[%c0_230, %c0_231] : memref<32x3xf32, #tpu.memory_space<vmem>>, vector<32x3xf32>
    %cst_232 = arith.constant dense<0.000000e+00> : vector<16x3xf32>
    %743 = tpu.matmul %739, %742, %cst_232 {dimension_numbers = #tpu.dot_dimension_numbers<[1], [0], [0], [1], [0, 0, 1, 1], [], []>} : vector<16x32xf32>, vector<32x3xf32>, vector<16x3xf32> -> vector<16x3xf32>
    %744 = arith.addf %741, %743 : vector<16x3xf32>
    %c0_233 = arith.constant 0 : index
    %c0_234 = arith.constant 0 : index
    %745 = vector.load %arg16[%c0_233, %c0_234] : memref<1x3xf32, #tpu.memory_space<vmem>>, vector<1x3xf32>
    %746 = vector.broadcast %745 : vector<1x3xf32> to vector<16x3xf32>
    %747 = arith.addf %744, %746 : vector<16x3xf32>
    %748 = math.tanh %747 : vector<16x3xf32>
    %c0_235 = arith.constant 0 : index
    %c0_236 = arith.constant 0 : index
    %749 = vector.load %arg17[%c0_235, %c0_236] : memref<16x3xf32, #tpu.memory_space<vmem>>, vector<16x3xf32>
    tpu.vector_store %arg17[%c0_235, %c0_236], %748 {strides = array<i32>} : memref<16x3xf32, #tpu.memory_space<vmem>>, vector<16x3xf32>,
    return
  }
  func.func @transform_0(%arg0: i32) -> (i32, i32, i32) {
    %c0_i32 = arith.constant 0 : i32
    %c0_i32_0 = arith.constant 0 : i32
    %c0_i32_1 = arith.constant 0 : i32
    return %c0_i32, %arg0, %c0_i32_0 : i32, i32, i32
  }
  func.func @transform_1(%arg0: i32) -> (i32, i32, i32) {
    %c0_i32 = arith.constant 0 : i32
    %c0_i32_0 = arith.constant 0 : i32
    %c0_i32_1 = arith.constant 0 : i32
    return %c0_i32, %arg0, %c0_i32_0 : i32, i32, i32
  }
  func.func @transform_2(%arg0: i32) -> (i32, i32, i32) {
    %c0_i32 = arith.constant 0 : i32
    %c0_i32_0 = arith.constant 0 : i32
    %c0_i32_1 = arith.constant 0 : i32
    return %c0_i32, %arg0, %c0_i32_0 : i32, i32, i32
  }
  func.func @transform_3(%arg0: i32) -> (i32, i32, i32) {
    %c0_i32 = arith.constant 0 : i32
    %c0_i32_0 = arith.constant 0 : i32
    %c0_i32_1 = arith.constant 0 : i32
    return %c0_i32, %arg0, %c0_i32_0 : i32, i32, i32
  }
  func.func @transform_4(%arg0: i32) -> (i32, i32) {
    %c0_i32 = arith.constant 0 : i32
    %c0_i32_0 = arith.constant 0 : i32
    %c0_i32_1 = arith.constant 0 : i32
    return %c0_i32, %c0_i32_0 : i32, i32
  }
  func.func @transform_5(%arg0: i32) -> (i32, i32) {
    %c0_i32 = arith.constant 0 : i32
    %c0_i32_0 = arith.constant 0 : i32
    %c0_i32_1 = arith.constant 0 : i32
    return %c0_i32, %c0_i32_0 : i32, i32
  }
  func.func @transform_6(%arg0: i32) -> (i32, i32) {
    %c0_i32 = arith.constant 0 : i32
    %c0_i32_0 = arith.constant 0 : i32
    %c0_i32_1 = arith.constant 0 : i32
    return %c0_i32, %c0_i32_0 : i32, i32
  }
  func.func @transform_7(%arg0: i32) -> (i32, i32) {
    %c0_i32 = arith.constant 0 : i32
    %c0_i32_0 = arith.constant 0 : i32
    %c0_i32_1 = arith.constant 0 : i32
    return %c0_i32, %c0_i32_0 : i32, i32
  }
  func.func @transform_8(%arg0: i32) -> (i32, i32) {
    %c0_i32 = arith.constant 0 : i32
    %c0_i32_0 = arith.constant 0 : i32
    %c0_i32_1 = arith.constant 0 : i32
    return %c0_i32, %c0_i32_0 : i32, i32
  }
  func.func @transform_9(%arg0: i32) -> (i32, i32) {
    %c0_i32 = arith.constant 0 : i32
    %c0_i32_0 = arith.constant 0 : i32
    %c0_i32_1 = arith.constant 0 : i32
    return %c0_i32, %c0_i32_0 : i32, i32
  }
  func.func @transform_10(%arg0: i32) -> (i32, i32) {
    %c0_i32 = arith.constant 0 : i32
    %c0_i32_0 = arith.constant 0 : i32
    %c0_i32_1 = arith.constant 0 : i32
    return %c0_i32, %c0_i32_0 : i32, i32
  }
  func.func @transform_11(%arg0: i32) -> (i32, i32) {
    %c0_i32 = arith.constant 0 : i32
    %c0_i32_0 = arith.constant 0 : i32
    %c0_i32_1 = arith.constant 0 : i32
    return %c0_i32, %c0_i32_0 : i32, i32
  }
  func.func @transform_12(%arg0: i32) -> (i32, i32) {
    %c0_i32 = arith.constant 0 : i32
    %c0_i32_0 = arith.constant 0 : i32
    %c0_i32_1 = arith.constant 0 : i32
    return %c0_i32, %c0_i32_0 : i32, i32
  }
  func.func @transform_13(%arg0: i32) -> (i32, i32) {
    %c0_i32 = arith.constant 0 : i32
    %c0_i32_0 = arith.constant 0 : i32
    %c0_i32_1 = arith.constant 0 : i32
    return %c0_i32, %c0_i32_0 : i32, i32
  }
  func.func @transform_14(%arg0: i32) -> (i32, i32) {
    %c0_i32 = arith.constant 0 : i32
    %c0_i32_0 = arith.constant 0 : i32
    %c0_i32_1 = arith.constant 0 : i32
    return %c0_i32, %c0_i32_0 : i32, i32
  }
  func.func @transform_15(%arg0: i32) -> (i32, i32) {
    %c0_i32 = arith.constant 0 : i32
    %c0_i32_0 = arith.constant 0 : i32
    %c0_i32_1 = arith.constant 0 : i32
    return %c0_i32, %c0_i32_0 : i32, i32
  }
  func.func @transform_16(%arg0: i32) -> (i32, i32) {
    %c0_i32 = arith.constant 0 : i32
    %c0_i32_0 = arith.constant 0 : i32
    return %arg0, %c0_i32 : i32, i32
  }
}

</mosaic_0001>

<bundles_post_ra>
// kernel: tpu_custom_call.1
= control target key start
LH: loop header
LB: loop body
LE: loop exit
PB: predicated region body
PF: predicated region fallthrough
CT: control target
= control target key end

     0   :  { %s9645_s0 = inlined_call_operand.vmem [shape: bf16[8,32,32], index: 0, kind: input, shape index: {}]   ;;  %s9646_s1 = inlined_call_operand.vmem [shape: bf16[16,32,32], index: 1, kind: input, shape index: {}]   ;;  %s9647_s2 = inlined_call_operand.vmem [shape: f32[8,32,1], index: 2, kind: input, shape index: {}]   ;;  %s9648_s3 = inlined_call_operand.vmem [shape: f32[16,32,1], index: 3, kind: input, shape index: {}]   ;;  %s9649_s4 = inlined_call_operand.vmem [shape: bf16[32,128], index: 4, kind: input, shape index: {}]   ;;  %s9650_s5 = inlined_call_operand.vmem [shape: bf16[32,128], index: 5, kind: input, shape index: {}]   ;;  %s9651_s6 = inlined_call_operand.vmem [shape: f32[1,128], index: 6, kind: input, shape index: {}]   ;;  %s9652_s7 = inlined_call_operand.vmem [shape: f32[1,128], index: 7, kind: input, shape index: {}]   ;;  %s9653_s8 = inlined_call_operand.vmem [shape: bf16[64,256], index: 8, kind: input, shape index: {}]   ;;  %s9654_s9 = inlined_call_operand.vmem [shape: f32[32,32], index: 9, kind: input, shape index: {}]   ;;  %s9655_s10 = inlined_call_operand.<no memory space> [shape: f32[1,1], index: 10, kind: input, shape index: {}]   ;;  %s9656_s11 = inlined_call_operand.vmem [shape: f32[32,32], index: 11, kind: input, shape index: {}]   ;;  %s9657_s13 = inlined_call_operand.vmem [shape: f32[32,3], index: 13, kind: input, shape index: {}]   ;;  %s9658_s14 = inlined_call_operand.vmem [shape: f32[32,3], index: 14, kind: input, shape index: {}]   ;;  %s9659_s15 = inlined_call_operand.vmem [shape: f32[1,3], index: 15, kind: input, shape index: {}]   ;;  %s9660_s16 = inlined_call_operand.vmem [shape: f32[32,3], index: 16, kind: output, shape index: {}]   ;;  %s9661_s12 = inlined_call_operand.<no memory space> [shape: f32[1,1], index: 12, kind: input, shape index: {}]  }
   0x1   :  { %9704 = sst [smem:[#allocation49_spill]] %s9645_s0  ;;  %v21_v0 = vstv %s9655_s10  ;;  %v23_v1 = vstv %s9661_s12 }
   0x2   :  { %22 = vst [vmem:[#allocation5] sm:$0x1] %v21_v0  ;;  %24 = vst [vmem:[#allocation6] sm:$0x1] %v23_v1 }
   0x3   :  { %s7140_s25 = smov 0   ;;  %s7142_s26 = smov 0  }
   0x4   :  { %s7144_s27 = smov 0  }
   0x5 LB: > { %s6116_s10 = sadd.s32 4294967295, %s7043_s27   ;;  %s7157_s12 = sadd.s32 1, %s7043_s27   ;;  %s7043_s27 = sphi %s7144_s27, %s9786_s27   ;;  %s7039_s26 = sphi %s7142_s26, %s9785_s26   ;;  %s7035_s25 = sphi %s7140_s25, %s9784_s25  }
   0x6   : > { %s34_s28 = ssub.s32 %s7043_s27, %s7157_s12  ;;  %s37_s29 = sadd.s32 1, %s7039_s26 }
   0x7   : > { %p35_p0 = scmp.eq.s32.totalorder %s34_s28, 0  ;;  %p44_p1 = scmp.ne.s32.totalorder %s7039_s26, %s7035_s25 }
   0x8   : > { %p45_p2 = scmp.eq.s32.totalorder %s7043_s27, 0  ;;  %p6119_p4 = scmp.ge.s32.totalorder %s7043_s27, 2 }
   0x9   : > { %s7166_s30 = scalar_select %p35_p0, %s7039_s26, %s37_s29  }
   0xa   : > { %p7168_p3 = por %p45_p2, %p44_p1  ;;  %462 = sbr.rel (%p6119_p4) target bundleno = 73 (0x49), region = 64 }
   0xf   : > { %465 = sbr.rel (!%p7168_p3) target bundleno = 29 (0x1d), region = 68  ;;  %s467_s17 = sand.u32 (%p7168_p3), 1, %s7039_s26  }
  0x10   : > { %s6229_s18 = sshll.u32 (%p7168_p3), %s7043_s27, 3  ;;  %s6120_s19 = sshll.u32 (%p7168_p3), %s467_s17, 6 }
  0x11   : > { %s9706_s22 = sld [smem:[#allocation49_spill]] (%p7168_p3)  ;;  %s469_s24 = scalar_lea.vmem (%p7168_p3), [#allocation7], %s6120_s19 }
  0x17   : > { %s472_s23 = scalar_lea.vmem %s9706_s22, %s6229_s18 }
  0x18   : > { %v489_v2 = vld [vmem:[%s472_s23] sm:$0xff]   ;;  %v493_v3 = vld [vmem:[%s472_s23 + $0x10] sm:$0xff]  }
  0x19   : > { %v497_v4 = vld [vmem:[%s472_s23 + $0x20] sm:$0xff]   ;;  %490 = vst [vmem:[%s469_s24] sm:$0xff] %v489_v2   ;;  %494 = vst [vmem:[%s469_s24 + $0x8] sm:$0xff] %v493_v3   ;;  %v501_v5 = vld [vmem:[%s472_s23 + $0x30] sm:$0xff]  }
  0x1a   : > { %498 = vst [vmem:[%s469_s24 + $0x10] sm:$0xff] %v497_v4   ;;  %v505_v6 = vld [vmem:[%s472_s23 + $0x40] sm:$0xff]   ;;  %v509_v7 = vld [vmem:[%s472_s23 + $0x50] sm:$0xff]   ;;  %502 = vst [vmem:[%s469_s24 + $0x18] sm:$0xff] %v501_v5  }
  0x1b   : > { %506 = vst [vmem:[%s469_s24 + $0x20] sm:$0xff] %v505_v6   ;;  %510 = vst [vmem:[%s469_s24 + $0x28] sm:$0xff] %v509_v7   ;;  %v513_v8 = vld [vmem:[%s472_s23 + $0x60] sm:$0xff]   ;;  %v517_v9 = vld [vmem:[%s472_s23 + $0x70] sm:$0xff]  }
  0x1c   : > { %514 = vst [vmem:[%s469_s24 + $0x30] sm:$0xff] %v513_v8   ;;  %518 = vst [vmem:[%s469_s24 + $0x38] sm:$0xff] %v517_v9  }
  0x1d PF: > { %576 = sbr.rel (!%p7168_p3) target bundleno = 41 (0x29), region = 109  ;;  %s578_s28 = sand.u32 (%p7168_p3), 1, %s7039_s26  }
  0x1e   : > { %s6230_s29 = sshll.u32 (%p7168_p3), %s7043_s27, 3  ;;  %s6123_s17 = sshll.u32 (%p7168_p3), %s578_s28, 7 }
  0x1f   : > { %s7187_s20 = scalar_lea.vmem (%p7168_p3), %s9646_s1, %s6230_s29  ;;  %s580_s21 = scalar_lea.vmem (%p7168_p3), [#allocation8], %s6123_s17 }
  0x20   : > { %v600_v10 = vld [vmem:[%s7187_s20] sm:$0xff] (%p7168_p3)   ;;  %v604_v11 = vld [vmem:[%s7187_s20 + $0x10] sm:$0xff] (%p7168_p3)  }
  0x21   : > { %v608_v12 = vld [vmem:[%s7187_s20 + $0x20] sm:$0xff] (%p7168_p3)   ;;  %601 = vst [vmem:[%s580_s21] sm:$0xff] (%p7168_p3), %v600_v10   ;;  %605 = vst [vmem:[%s580_s21 + $0x8] sm:$0xff] (%p7168_p3), %v604_v11   ;;  %v612_v13 = vld [vmem:[%s7187_s20 + $0x30] sm:$0xff] (%p7168_p3)  }
  0x22   : > { %609 = vst [vmem:[%s580_s21 + $0x10] sm:$0xff] %v608_v12   ;;  %v616_v14 = vld [vmem:[%s7187_s20 + $0x40] sm:$0xff]   ;;  %v620_v15 = vld [vmem:[%s7187_s20 + $0x50] sm:$0xff]   ;;  %613 = vst [vmem:[%s580_s21 + $0x18] sm:$0xff] %v612_v13  }
  0x23   : > { %617 = vst [vmem:[%s580_s21 + $0x20] sm:$0xff] %v616_v14   ;;  %621 = vst [vmem:[%s580_s21 + $0x28] sm:$0xff] %v620_v15   ;;  %v624_v16 = vld [vmem:[%s7187_s20 + $0x60] sm:$0xff]   ;;  %v628_v17 = vld [vmem:[%s7187_s20 + $0x70] sm:$0xff]  }
  0x24   : > { %v632_v18 = vld [vmem:[%s7187_s20 + $0x80] sm:$0xff]   ;;  %625 = vst [vmem:[%s580_s21 + $0x30] sm:$0xff] %v624_v16   ;;  %629 = vst [vmem:[%s580_s21 + $0x38] sm:$0xff] %v628_v17   ;;  %v636_v19 = vld [vmem:[%s7187_s20 + $0x90] sm:$0xff]  }
  0x25   : > { %633 = vst [vmem:[%s580_s21 + $0x40] sm:$0xff] %v632_v18   ;;  %v640_v20 = vld [vmem:[%s7187_s20 + $0xa0] sm:$0xff]   ;;  %v644_v21 = vld [vmem:[%s7187_s20 + $0xb0] sm:$0xff]   ;;  %637 = vst [vmem:[%s580_s21 + $0x48] sm:$0xff] %v636_v19  }
  0x26   : > { %641 = vst [vmem:[%s580_s21 + $0x50] sm:$0xff] %v640_v20   ;;  %645 = vst [vmem:[%s580_s21 + $0x58] sm:$0xff] %v644_v21   ;;  %v648_v22 = vld [vmem:[%s7187_s20 + $0xc0] sm:$0xff]   ;;  %v652_v23 = vld [vmem:[%s7187_s20 + $0xd0] sm:$0xff]  }
  0x27   : > { %v656_v24 = vld [vmem:[%s7187_s20 + $0xe0] sm:$0xff]   ;;  %649 = vst [vmem:[%s580_s21 + $0x60] sm:$0xff] %v648_v22   ;;  %653 = vst [vmem:[%s580_s21 + $0x68] sm:$0xff] %v652_v23   ;;  %v660_v25 = vld [vmem:[%s7187_s20 + $0xf0] sm:$0xff]  }
  0x28   : > { %657 = vst [vmem:[%s580_s21 + $0x70] sm:$0xff] %v656_v24   ;;  %661 = vst [vmem:[%s580_s21 + $0x78] sm:$0xff] %v660_v25  }
  0x29 PF: > { %751 = sbr.rel (!%p7168_p3) target bundleno = 53 (0x35), region = 150  ;;  %s753_s22 = sand.u32 (%p7168_p3), 1, %s7039_s26  }
  0x2a   : > { %s6231_s23 = sshll.u32 (%p7168_p3), %s7043_s27, 4  ;;  %s6126_s24 = sshll.u32 (%p7168_p3), %s753_s22, 7 }
  0x2b   : > { %s7212_s17 = scalar_lea.vmem (%p7168_p3), %s9647_s2, %s6231_s23  ;;  %s755_s18 = scalar_lea.vmem (%p7168_p3), [#allocation9], %s6126_s24 }
  0x2c   : > { %v817_v26 = vld [vmem:[%s7212_s17] sm:$0xff] (%p7168_p3)  ;;  %v819_v27 = vld [vmem:[%s7212_s17 + $0x8] sm:$0xff] (%p7168_p3) }
  0x2d   : > { %v821_v28 = vld [vmem:[%s7212_s17 + $0x20] sm:$0xff] (%p7168_p3)  ;;  %818 = vst [vmem:[%s755_s18] sm:$0xff] (%p7168_p3), %v817_v26  ;;  %820 = vst [vmem:[%s755_s18 + $0x8] sm:$0xff] (%p7168_p3), %v819_v27  ;;  %v823_v29 = vld [vmem:[%s7212_s17 + $0x28] sm:$0xff] (%p7168_p3) }
  0x2e   : > { %822 = vst [vmem:[%s755_s18 + $0x10] sm:$0xff] %v821_v28  ;;  %v825_v30 = vld [vmem:[%s7212_s17 + $0x40] sm:$0xff]  ;;  %v827_v31 = vld [vmem:[%s7212_s17 + $0x48] sm:$0xff]  ;;  %824 = vst [vmem:[%s755_s18 + $0x18] sm:$0xff] %v823_v29 }
  0x2f   : > { %826 = vst [vmem:[%s755_s18 + $0x20] sm:$0xff] %v825_v30  ;;  %828 = vst [vmem:[%s755_s18 + $0x28] sm:$0xff] %v827_v31  ;;  %v829_v32 = vld [vmem:[%s7212_s17 + $0x60] sm:$0xff]  ;;  %v831_v33 = vld [vmem:[%s7212_s17 + $0x68] sm:$0xff] }
  0x30   : > { %v833_v34 = vld [vmem:[%s7212_s17 + $0x80] sm:$0xff]  ;;  %830 = vst [vmem:[%s755_s18 + $0x30] sm:$0xff] %v829_v32  ;;  %832 = vst [vmem:[%s755_s18 + $0x38] sm:$0xff] %v831_v33  ;;  %v835_v35 = vld [vmem:[%s7212_s17 + $0x88] sm:$0xff] }
  0x31   : > { %834 = vst [vmem:[%s755_s18 + $0x40] sm:$0xff] %v833_v34  ;;  %v837_v36 = vld [vmem:[%s7212_s17 + $0xa0] sm:$0xff]  ;;  %v839_v37 = vld [vmem:[%s7212_s17 + $0xa8] sm:$0xff]  ;;  %836 = vst [vmem:[%s755_s18 + $0x48] sm:$0xff] %v835_v35 }
  0x32   : > { %838 = vst [vmem:[%s755_s18 + $0x50] sm:$0xff] %v837_v36  ;;  %840 = vst [vmem:[%s755_s18 + $0x58] sm:$0xff] %v839_v37  ;;  %v841_v38 = vld [vmem:[%s7212_s17 + $0xc0] sm:$0xff]  ;;  %v843_v39 = vld [vmem:[%s7212_s17 + $0xc8] sm:$0xff] }
  0x33   : > { %v845_v40 = vld [vmem:[%s7212_s17 + $0xe0] sm:$0xff]  ;;  %842 = vst [vmem:[%s755_s18 + $0x60] sm:$0xff] %v841_v38  ;;  %844 = vst [vmem:[%s755_s18 + $0x68] sm:$0xff] %v843_v39  ;;  %v847_v41 = vld [vmem:[%s7212_s17 + $0xe8] sm:$0xff] }
  0x34   : > { %846 = vst [vmem:[%s755_s18 + $0x70] sm:$0xff] %v845_v40  ;;  %848 = vst [vmem:[%s755_s18 + $0x78] sm:$0xff] %v847_v41 }
  0x35 PF: > { %854 = sbr.rel (!%p7168_p3) target bundleno = 73 (0x49), region = 188  ;;  %s856_s19 = sand.u32 (%p7168_p3), 1, %s7039_s26  }
  0x36   : > { %s6232_s20 = sshll.u32 (%p7168_p3), %s7043_s27, 4  ;;  %s6129_s21 = sshll.u32 (%p7168_p3), %s856_s19, 8 }
  0x37   : > { %s7237_s24 = scalar_lea.vmem (%p7168_p3), %s9648_s3, %s6232_s20  ;;  %s7242_s0 = scalar_lea.vmem (%p7168_p3), [#allocation10], %s6129_s21 }
  0x38   : > { %v952_v42 = vld [vmem:[%s7237_s24] sm:$0xff] (%p7168_p3)  ;;  %v954_v43 = vld [vmem:[%s7237_s24 + $0x8] sm:$0xff] (%p7168_p3) }
  0x39   : > { %v956_v44 = vld [vmem:[%s7237_s24 + $0x20] sm:$0xff] (%p7168_p3)  ;;  %953 = vst [vmem:[%s7242_s0] sm:$0xff] (%p7168_p3), %v952_v42  ;;  %955 = vst [vmem:[%s7242_s0 + $0x8] sm:$0xff] (%p7168_p3), %v954_v43  ;;  %v958_v45 = vld [vmem:[%s7237_s24 + $0x28] sm:$0xff] (%p7168_p3) }
  0x3a   : > { %957 = vst [vmem:[%s7242_s0 + $0x10] sm:$0xff] %v956_v44  ;;  %v960_v46 = vld [vmem:[%s7237_s24 + $0x40] sm:$0xff]  ;;  %v962_v47 = vld [vmem:[%s7237_s24 + $0x48] sm:$0xff]  ;;  %959 = vst [vmem:[%s7242_s0 + $0x18] sm:$0xff] %v958_v45 }
  0x3b   : > { %961 = vst [vmem:[%s7242_s0 + $0x20] sm:$0xff] %v960_v46  ;;  %963 = vst [vmem:[%s7242_s0 + $0x28] sm:$0xff] %v962_v47  ;;  %v964_v48 = vld [vmem:[%s7237_s24 + $0x60] sm:$0xff]  ;;  %v966_v49 = vld [vmem:[%s7237_s24 + $0x68] sm:$0xff] }
  0x3c   : > { %v968_v50 = vld [vmem:[%s7237_s24 + $0x80] sm:$0xff]  ;;  %965 = vst [vmem:[%s7242_s0 + $0x30] sm:$0xff] %v964_v48  ;;  %967 = vst [vmem:[%s7242_s0 + $0x38] sm:$0xff] %v966_v49  ;;  %v970_v51 = vld [vmem:[%s7237_s24 + $0x88] sm:$0xff] }
  0x3d   : > { %969 = vst [vmem:[%s7242_s0 + $0x40] sm:$0xff] %v968_v50  ;;  %v972_v52 = vld [vmem:[%s7237_s24 + $0xa0] sm:$0xff]  ;;  %v974_v53 = vld [vmem:[%s7237_s24 + $0xa8] sm:$0xff]  ;;  %971 = vst [vmem:[%s7242_s0 + $0x48] sm:$0xff] %v970_v51 }
  0x3e   : > { %973 = vst [vmem:[%s7242_s0 + $0x50] sm:$0xff] %v972_v52  ;;  %975 = vst [vmem:[%s7242_s0 + $0x58] sm:$0xff] %v974_v53  ;;  %v976_v54 = vld [vmem:[%s7237_s24 + $0xc0] sm:$0xff]  ;;  %v978_v55 = vld [vmem:[%s7237_s24 + $0xc8] sm:$0xff] }
  0x3f   : > { %v980_v56 = vld [vmem:[%s7237_s24 + $0xe0] sm:$0xff]  ;;  %977 = vst [vmem:[%s7242_s0 + $0x60] sm:$0xff] %v976_v54  ;;  %979 = vst [vmem:[%s7242_s0 + $0x68] sm:$0xff] %v978_v55  ;;  %v982_v57 = vld [vmem:[%s7237_s24 + $0xe8] sm:$0xff] }
  0x40   : > { %981 = vst [vmem:[%s7242_s0 + $0x70] sm:$0xff] %v980_v56  ;;  %v984_v58 = vld [vmem:[%s7237_s24 + $0x100] sm:$0xff]  ;;  %v986_v59 = vld [vmem:[%s7237_s24 + $0x108] sm:$0xff]  ;;  %983 = vst [vmem:[%s7242_s0 + $0x78] sm:$0xff] %v982_v57 }
  0x41   : > { %985 = vst [vmem:[%s7242_s0 + $0x80] sm:$0xff] %v984_v58  ;;  %987 = vst [vmem:[%s7242_s0 + $0x88] sm:$0xff] %v986_v59  ;;  %v988_v60 = vld [vmem:[%s7237_s24 + $0x120] sm:$0xff]  ;;  %v990_v61 = vld [vmem:[%s7237_s24 + $0x128] sm:$0xff] }
  0x42   : > { %v992_v62 = vld [vmem:[%s7237_s24 + $0x140] sm:$0xff]  ;;  %989 = vst [vmem:[%s7242_s0 + $0x90] sm:$0xff] %v988_v60  ;;  %991 = vst [vmem:[%s7242_s0 + $0x98] sm:$0xff] %v990_v61  ;;  %v994_v63 = vld [vmem:[%s7237_s24 + $0x148] sm:$0xff] }
  0x43   : > { %993 = vst [vmem:[%s7242_s0 + $0xa0] sm:$0xff] %v992_v62  ;;  %v996_v0 = vld [vmem:[%s7237_s24 + $0x160] sm:$0xff]  ;;  %v998_v1 = vld [vmem:[%s7237_s24 + $0x168] sm:$0xff]  ;;  %995 = vst [vmem:[%s7242_s0 + $0xa8] sm:$0xff] %v994_v63 }
  0x44   : > { %997 = vst [vmem:[%s7242_s0 + $0xb0] sm:$0xff] %v996_v0  ;;  %999 = vst [vmem:[%s7242_s0 + $0xb8] sm:$0xff] %v998_v1  ;;  %v1000_v2 = vld [vmem:[%s7237_s24 + $0x180] sm:$0xff]  ;;  %v1002_v3 = vld [vmem:[%s7237_s24 + $0x188] sm:$0xff] }
  0x45   : > { %v1004_v4 = vld [vmem:[%s7237_s24 + $0x1a0] sm:$0xff]  ;;  %1001 = vst [vmem:[%s7242_s0 + $0xc0] sm:$0xff] %v1000_v2  ;;  %1003 = vst [vmem:[%s7242_s0 + $0xc8] sm:$0xff] %v1002_v3  ;;  %v1006_v5 = vld [vmem:[%s7237_s24 + $0x1a8] sm:$0xff] }
  0x46   : > { %1005 = vst [vmem:[%s7242_s0 + $0xd0] sm:$0xff] %v1004_v4  ;;  %v1008_v6 = vld [vmem:[%s7237_s24 + $0x1c0] sm:$0xff]  ;;  %v1010_v7 = vld [vmem:[%s7237_s24 + $0x1c8] sm:$0xff]  ;;  %1007 = vst [vmem:[%s7242_s0 + $0xd8] sm:$0xff] %v1006_v5 }
  0x47   : > { %1009 = vst [vmem:[%s7242_s0 + $0xe0] sm:$0xff] %v1008_v6  ;;  %1011 = vst [vmem:[%s7242_s0 + $0xe8] sm:$0xff] %v1010_v7  ;;  %v1012_v8 = vld [vmem:[%s7237_s24 + $0x1e0] sm:$0xff]  ;;  %v1014_v9 = vld [vmem:[%s7237_s24 + $0x1e8] sm:$0xff] }
  0x48   : > { %1013 = vst [vmem:[%s7242_s0 + $0xf0] sm:$0xff] %v1012_v8  ;;  %1015 = vst [vmem:[%s7242_s0 + $0xf8] sm:$0xff] %v1014_v9 }
  0x49 PF: > { %p6132_p5 = scmp.ge.s32.totalorder %s7043_s27, 1  ;;  %p1020_p6 = scmp.lt.s32.totalorder %s7043_s27, 3 }
  0x4b   : > { %p1021_p7 = pnand %p6132_p5, %p1020_p6 }
  0x4d   : > { %1024 = sbr.rel (%p1021_p7) target bundleno = 12494 (0x30ce), region = 226 }
  0x52   : > { %v6415_v10 = vld [vmem:[%s9649_s4 + $0x8] sm:$0xff]   ;;  %s7311_s17 = sand.u32 1, %s7035_s25   ;;  %v6416_v11 = vld [vmem:[%s9649_s4] sm:$0xff]   ;;  %vm1199_vm0 = vcmask 261120   ;;  %v7324_v14 = vld [vmem:[%s9653_s8 + $0x34] ss:$8 sps:$4 sm:$0xff]  }
  0x53   : > { %s6133_s20 = sshll.u32 %s7311_s17, 6  ;;  %6285 = vmatprep.subr.bf16.mxu0 %v6415_v10  ;;  %v7330_v15 = vld [vmem:[%s9653_s8 + $0x30] ss:$8 sps:$4 sm:$0xff]   ;;  %v7045_v16 = vmov 0   ;;  %v7339_v18 = vld [vmem:[%s9653_s8 + $0x24] ss:$8 sps:$4 sm:$0xff]  }
  0x54   : > { %6286 = vmatpush3.bf16.msra.mxu0 %v6415_v10  ;;  %s7317_s21 = scalar_lea.vmem [#allocation7], %s6133_s20  ;;  %6413 = vset.pattern.permute.xlu0 %v7045_v16  ;;  %s6134_s29 = sshll.u32 %s7311_s17, 7  ;;  %v7348_v19 = vld [vmem:[%s9653_s8 + $0x20] ss:$8 sps:$4 sm:$0xff]   ;;  %v7355_v21 = vld [vmem:[%s9653_s8 + $0x14] ss:$8 sps:$4 sm:$0xff]  }
  0x55   : > { %6287 = vmatprep.subr.bf16.mxu0 %v6416_v11  ;;  %v6417_v12 = vld [vmem:[%s7317_s21] sm:$0xff]   ;;  %v6418_v13 = vld [vmem:[%s7317_s21 + $0x8] sm:$0xff]   ;;  %v6422_v17 = vld [vmem:[%s7317_s21 + $0x10] sm:$0xff]   ;;  %6414 = vset.pattern.permute.xlu1 %v7045_v16  ;;  %s7383_s23 = scalar_lea.vmem [#allocation8], %s6134_s29  ;;  %s7046_s18 = smov 64   ;;  %vm1761_vm1 = vcmask 523264  }
  0x56   : > { %6289 = vmatprep.mubr.msk.bf16.mxu0 %vm1199_vm0, %v6417_v12  ;;  %v6423_v20 = vld [vmem:[%s7317_s21 + $0x18] sm:$0xff]   ;;  %v6427_v22 = vld [vmem:[%s7317_s21 + $0x20] sm:$0xff]   ;;  %v6440_v29 = vld [vmem:[%s7383_s23 + $0x8] sm:$0xff]   ;;  %s7047_s19 = smov 32   ;;  %vm4310_vm2 = vcmask 7168   ;;  %vm4451_vm3 = vcmask 523520  }
  0x57   : > { %v6432_v23 = vld [vmem:[%s9650_s5 + $0x8] sm:$0xff]   ;;  %v7364_v24 = vld [vmem:[%s9653_s8 + $0x10] ss:$8 sps:$4 sm:$0xff]   ;;  %v6434_v25 = vld [vmem:[%s9650_s5] sm:$0xff]   ;;  %s6137_s28 = sshll.u32 %s6116_s10, 1  ;;  %vm5997_vm4 = vcmask 23552  }
  0x58   : > { %6288 = vmatpush3.bf16.msra.mxu0 %v6416_v11  ;;  %6305 = vmatprep.subr.bf16.mxu1 %v6432_v23  ;;  %v7374_v26 = vld [vmem:[%s9653_s8 + $0x4] ss:$8 sps:$4 sm:$0xff]   ;;  %v7379_v27 = vld [vmem:[%s9653_s8] ss:$8 sps:$4 sm:$0xff]   ;;  %v6433_v31 = vld [vmem:[%s7317_s21 + $0x30] sm:$0xff]   ;;  %p1114_p8 = scmp.lt.s32.totalorder %s6137_s28, 3 }
  0x59   : > { %1773 = vmatprep.subr.bf16.mxu0 %v7324_v14  ;;  %6306 = vmatpush3.bf16.msra.mxu1 %v6432_v23  ;;  %v6439_v28 = vld [vmem:[%s7383_s23] sm:$0xff]   ;;  %v6428_v30 = vld [vmem:[%s7317_s21 + $0x28] sm:$0xff]   ;;  %v6435_v32 = vld [vmem:[%s7317_s21 + $0x38] sm:$0xff]   ;;  %s8318_s21 = scalar_lea.vmem [#allocation9], %s6134_s29  ;;  %s6136_s29 = sshll.u32 %s7311_s17, 8 }
  0x5a   : > { %6307 = vmatprep.subr.bf16.mxu1 %v6434_v25  ;;  %6309 = vmatprep.mubr.msk.bf16.mxu1 %vm1199_vm0, %v6439_v28  ;;  %v6139_v33 = vld [vmem:[%s9651_s6] ss:$0 sm:$0xff]  ;;  %s8383_s24 = scalar_lea.vmem [#allocation10], %s6136_s29  ;;  %s7048_s17 = smov 96  }
  0x5b   : > { %6290 = vmatmul.mubr.msk.bf16.vlgmr.msra.gmra.mxu0 %vm1199_vm0, %v6418_v13  ;;  %v7453_v62 = vld [vmem:[%s9652_s7] ss:$0 sm:$0xff]  ;;  %s9788_s28 = smov (!%p1114_p8, %s6137_s28), 3 }
  0x5c   : > { %1774 = vmatpush1.bf16.msra.mxu0 %v7330_v15  ;;  %6293 = vmatprep.mubr.msk.bf16.mxu0 %vm1199_vm0, %v6422_v17  ;;  %s6138_s20 = sshll.u32 %s9788_s28, 3 }
  0x5d   : > { %1775 = vmatprep.subr.bf16.mxu0 %v7339_v18  ;;  %6308 = vmatpush3.bf16.msra.mxu1 %v6434_v25 }
  0x5e   : > { %2268 = vmatprep.subr.bf16.mxu1 %v7324_v14 }
  0x60   : > { %1776 = vmatpush1.bf16.msra.mxu0 %v7348_v19  ;;  %6310 = vmatmul.mubr.msk.bf16.vlgmr.msra.gmra.mxu1 %vm1199_vm0, %v6440_v29 }
  0x61   : > { %1777 = vmatprep.subr.bf16.mxu0 %v7355_v21  ;;  %2269 = vmatpush1.bf16.msra.mxu1 %v7330_v15 }
  0x62   : > { %2270 = vmatprep.subr.bf16.mxu1 %v7339_v18 }
  0x63   : > { %6294 = vmatmul.mubr.msk.bf16.gmra.mxu0 %vm1199_vm0, %v6423_v20 }
  0x64   : > { %6297 = vmatprep.mubr.msk.bf16.mxu0 %vm1199_vm0, %v6427_v22  ;;  %1778 = vmatpush1.bf16.msra.mxu0 %v7364_v24 }
  0x65   : > { %1779 = vmatprep.subr.bf16.mxu0 %v7374_v26  ;;  %2271 = vmatpush1.bf16.msra.mxu1 %v7348_v19 }
  0x66   : > { %2272 = vmatprep.subr.bf16.mxu1 %v7355_v21 }
  0x68   : > { %1780 = vmatpush1.bf16.msra.mxu0 %v7379_v27 }
  0x69   : > { %1936 = vmatprep.subr.bf16.mxu0 %v7324_v14  ;;  %2273 = vmatpush1.bf16.msra.mxu1 %v7364_v24 }
  0x6a   : > { %2274 = vmatprep.subr.bf16.mxu1 %v7374_v26 }
  0x6b   : > { %6298 = vmatmul.mubr.msk.bf16.gmra.mxu0 %vm1199_vm0, %v6428_v30 }
  0x6c   : > { %6301 = vmatprep.mubr.msk.bf16.mxu0 %vm1199_vm0, %v6433_v31 }
  0x6d   : > { %2275 = vmatpush1.bf16.msra.mxu1 %v7379_v27 }
  0x6e   : > { %2600 = vmatprep.subr.bf16.mxu1 %v7324_v14 }
  0x73   : > { %6302 = vmatmul.mubr.msk.bf16.gmra.mxu0 %vm1199_vm0, %v6435_v32 }
  0x74   : > { %1797 = vmatprep.mubr.bf16.mxu0 %v7045_v16 }
  0x7b   : > { %1798 = vmatmul.mubr.bf16.vlgmr.msra.gmra.mxu0 %v7045_v16 }
  0x7c   : > { %1937 = vmatpush1.bf16.msra.mxu0 %v7330_v15  ;;  %1960 = vmatprep.mubr.bf16.mxu0 %v7045_v16 }
  0x7d   : > { %1938 = vmatprep.subr.bf16.mxu0 %v7339_v18 }
  0x80   : > { %1939 = vmatpush1.bf16.msra.mxu0 %v7348_v19 }
  0x81   : > { %1940 = vmatprep.subr.bf16.mxu0 %v7355_v21 }
  0x84   : > { %1941 = vmatpush1.bf16.msra.mxu0 %v7364_v24 }
  0x85   : > { %1942 = vmatprep.subr.bf16.mxu0 %v7374_v26 }
  0x88   : > { %1943 = vmatpush1.bf16.msra.mxu0 %v7379_v27 }
  0x89   : > { %2102 = vmatprep.subr.bf16.mxu0 %v7324_v14 }
 0x11b   : > { %v6291_v34 = vpop.f32.mrf.mxu0 }
 0x11c   : > { %v7424_v35 = vadd.f32 %v6291_v34, %v6139_v33 }
 0x11d   : > { %v1258_v36 = vpop.f32.mrf.mxu0 }
 0x11e   : > { %v1259_v3 = vadd.f32 %v6139_v33, %v1258_v36 }
 0x11f   : > { %v6292_v37 = vpop.f32.mrf.mxu0 }
 0x120   : > { %v7426_v38 = vadd.f32 %v6292_v37, %v6139_v33  ;;  %v7442_v55 = vpop.f32.mrf.mxu1 }
 0x121   : > { %v1261_v39 = vpop.f32.mrf.mxu0 }
 0x122   : > { %v1554_v60 = vpop.f32.mrf.mxu1  ;;  %v1262_v10 = vadd.f32 %v6139_v33, %v1261_v39 }
 0x123   : > { %v6295_v40 = vpop.f32.mrf.mxu0  ;;  %v1555_v4 = vadd.f32 %v7453_v62, %v1554_v60 }
 0x124   : > { %v7428_v41 = vadd.f32 %v6295_v40, %v6139_v33  ;;  %v7457_v2 = vpop.f32.mrf.mxu1 }
 0x125   : > { %v1274_v42 = vpop.f32.mrf.mxu0 }
 0x126   : > { %v7430_v43 = vadd.f32 %v6139_v33, %v1274_v42  ;;  %v1557_v8 = vpop.f32.mrf.mxu1 }
 0x127   : > { %v6296_v44 = vpop.f32.mrf.mxu0  ;;  %v1558_v13 = vadd.f32 %v7453_v62, %v1557_v8 }
 0x128   : > { %v7432_v45 = vadd.f32 %v6296_v44, %v6139_v33 }
 0x129   : > { %v1277_v46 = vpop.f32.mrf.mxu0 }
 0x12a   : > { %v7434_v47 = vadd.f32 %v6139_v33, %v1277_v46 }
 0x12b   : > { %v6299_v48 = vpop.f32.mrf.mxu0 }
 0x12c   : > { %v7436_v49 = vadd.f32 %v6299_v48, %v6139_v33 }
 0x12d   : > { %v1290_v50 = vpop.f32.mrf.mxu0 }
 0x12e   : > { %v7438_v51 = vadd.f32 %v6139_v33, %v1290_v50 }
 0x12f   : > { %v6300_v52 = vpop.f32.mrf.mxu0 }
 0x130   : > { %v7440_v53 = vadd.f32 %v6300_v52, %v6139_v33 }
 0x131   : > { %v1293_v54 = vpop.f32.mrf.mxu0 }
 0x132   : > { %v7444_v56 = vadd.f32 %v6139_v33, %v1293_v54 }
 0x133   : > { %v6303_v57 = vpop.f32.mrf.mxu0 }
 0x134   : > { %v7446_v58 = vadd.f32 %v6303_v57, %v6139_v33 }
 0x135   : > { %v1306_v59 = vpop.f32.mrf.mxu0 }
 0x136   : > { %v7448_v61 = vadd.f32 %v6139_v33, %v1306_v59 }
 0x137   : > { %v6304_v63 = vpop.f32.mrf.mxu0 }
 0x138   : > { %v7455_v0 = vadd.f32 %v6304_v63, %v6139_v33 }
 0x139   : > { %v1309_v1 = vpop.f32.mrf.mxu0 }
 0x13a   : > { %v7460_v5 = vadd.f32 %v6139_v33, %v1309_v1 }
 0x13b   : > { %v1799_v6 = vpop.f32.mrf.mxu0 }
 0x13c   : > { %v1810_v7 = vadd.f32 %v1799_v6, %v1259_v3 }
 0x13d   : > { %v1801_v9 = vpop.f32.mrf.mxu0 }
 0x13e   : > { %6455 = vtanh.f32 %v1810_v7  ;;  %v1858_v11 = vadd.f32 %v1801_v9, %v1555_v4  ;;  %v1812_v30 = vmul.f32 0.5, %v1810_v7 }
 0x13f   : > { %v1803_v12 = vpop.f32.mrf.mxu0 }
 0x140   : > { %v1811_v17 = vadd.f32 %v1803_v12, %v1262_v10  ;;  %6457 = vtanh.f32 %v1858_v11  ;;  %v1860_v31 = vmul.f32 0.5, %v1858_v11 }
 0x141   : > { %v1805_v20 = vpop.f32.mrf.mxu0 }
 0x142   : > { %v1859_v22 = vadd.f32 %v1805_v20, %v1558_v13  ;;  %6459 = vtanh.f32 %v1811_v17  ;;  %v1813_v32 = vmul.f32 0.5, %v1811_v17 }
 0x144   : > { %6461 = vtanh.f32 %v1859_v22  ;;  %v1861_v33 = vmul.f32 0.5, %v1859_v22 }
 0x145   : > { %6463 = vtanh.f32 %v1812_v30 }
 0x146   : > { %6465 = vtanh.f32 %v1860_v31 }
 0x147   : > { %6467 = vtanh.f32 %v1813_v32 }
 0x148   : > { %6469 = vtanh.f32 %v1861_v33 }
 0x14b   : > { %v6456_v23 = vpop.eup %6455 }
 0x14c   : > { %1826 = vrot.lane.b32.xlu0 %v6456_v23, %s7046_s18 }
 0x14d   : > { %v6458_v25 = vpop.eup %6457 }
 0x14e   : > { %1874 = vrot.lane.b32.xlu1 %v6458_v25, %s7046_s18 }
 0x14f   : > { %v6460_v28 = vpop.eup %6459 }
 0x150   : > { %1828 = vrot.lane.b32.xlu0 %v6460_v28, %s7046_s18 }
 0x151   : > { %v6462_v29 = vpop.eup %6461 }
 0x152   : > { %1876 = vrot.lane.b32.xlu1 %v6462_v29, %s7046_s18  ;;  %v6464_v34 = vpop.eup %6463 }
 0x153   : > { %v1816_v36 = vmul.f32 0.5, %v6464_v34  ;;  %v6466_v37 = vpop.eup %6465 }
 0x154   : > { %v6468_v39 = vpop.eup %6467  ;;  %v1864_v40 = vmul.f32 0.5, %v6466_v37 }
 0x155   : > { %v1818_v42 = vadd.f32 0.5, %v1816_v36  ;;  %v1817_v44 = vmul.f32 0.5, %v6468_v39  ;;  %v6470_v48 = vpop.eup %6469 }
 0x156   : > { %v1866_v54 = vadd.f32 0.5, %v1864_v40  ;;  %v1865_v57 = vmul.f32 0.5, %v6470_v48 }
 0x157   : > { %v1819_v59 = vadd.f32 0.5, %v1817_v44  ;;  %v1822_v7 = vmul.f32 0.0, %v1818_v42 }
 0x158   : > { %v1867_v4 = vadd.f32 0.5, %v1865_v57  ;;  %v1870_v10 = vmul.f32 0.0, %v1866_v54 }
 0x159   : > { %v1823_v11 = vmul.f32 0.0, %v1819_v59 }
 0x15a   : > { %v1871_v22 = vmul.f32 0.0, %v1867_v4 }
 0x1be   : > { %v1827_v46 = vpop.permute.xlu0 %1826 }
 0x1bf   : > { %v1832_v50 = vmul.f32 %v1827_v46, %v1818_v42 }
 0x1c0   : > { %v1875_v52 = vpop.permute.xlu1 %1874 }
 0x1c1   : > { %1836 = vrot.lane.b32.xlu0 %v1832_v50, %s7047_s19  ;;  %v1880_v60 = vmul.f32 %v1875_v52, %v1866_v54 }
 0x1c2   : > { %v1829_v63 = vpop.permute.xlu0 %1828 }
 0x1c3   : > { %v1833_v1 = vmul.f32 %v1829_v63, %v1819_v59 }
 0x1c4   : > { %v1877_v3 = vpop.permute.xlu1 %1876 }
 0x1c5   : > { %1884 = vrot.lane.b32.xlu0 %v1880_v60, %s7047_s19  ;;  %1838 = vrot.lane.b32.xlu1 %v1833_v1, %s7047_s19  ;;  %v1881_v6 = vmul.f32 %v1877_v3, %v1867_v4  ;;  %v1563_v60 = vadd.f32 %v7442_v55, %v7453_v62 }
 0x1c9   : > { %1886 = vrot.lane.b32.xlu1 %v1881_v6, %s7047_s19 }
 0x233   : > { %v1837_v8 = vpop.permute.xlu0 %1836 }
 0x234   : > { %v7471_v9 = vadd.f32 %v1837_v8, %v1822_v7  ;;  %v1566_v7 = vadd.f32 %v7457_v2, %v7453_v62 }
 0x236   : > { %6471 = vtanh.f32 %v7471_v9 }
 0x237   : > { %v1885_v12 = vpop.permute.xlu0 %1884  ;;  %v1839_v13 = vpop.permute.xlu1 %1838 }
 0x238   : > { %v7474_v17 = vadd.f32 %v1885_v12, %v1870_v10  ;;  %v7476_v20 = vadd.f32 %v1839_v13, %v1823_v11 }
 0x23a   : > { %6473 = vtanh.f32 %v7474_v17 }
 0x23b   : > { %6475 = vtanh.f32 %v7476_v20  ;;  %v1887_v23 = vpop.permute.xlu1 %1886 }
 0x23c   : > { %v7480_v25 = vadd.f32 %v1887_v23, %v1871_v22 }
 0x23e   : > { %6477 = vtanh.f32 %v7480_v25 }
 0x243   : > { %v6472_v28 = vpop.eup %6471 }
 0x244   : > { %1848 = vrot.lane.b32.xlu0 %v6472_v28, %s7046_s18 }
 0x247   : > { %v6474_v29 = vpop.eup %6473 }
 0x248   : > { %v6476_v30 = vpop.eup %6475  ;;  %1896 = vrot.lane.b32.xlu0 %v6474_v29, %s7046_s18 }
 0x249   : > { %1850 = vrot.lane.b32.xlu1 %v6476_v30, %s7046_s18 }
 0x24b   : > { %v6478_v31 = vpop.eup %6477 }
 0x24d   : > { %1898 = vrot.lane.b32.xlu1 %v6478_v31, %s7046_s18 }
 0x2b6   : > { %v1849_v32 = vpop.permute.xlu0 %1848 }
 0x2b7   : > { %v1854_v33 = vmul.f32 %v1849_v32, %v1818_v42 }
 0x2b9   : > { %1906 = vrot.lane.b32.xlu0 %v1854_v33, %s7047_s19 }
 0x2ba   : > { %v1897_v34 = vpop.permute.xlu0 %1896 }
 0x2bb   : > { %v1851_v36 = vpop.permute.xlu1 %1850  ;;  %v1902_v37 = vmul.f32 %v1897_v34, %v1866_v54 }
 0x2bc   : > { %v1855_v39 = vmul.f32 %v1851_v36, %v1819_v59 }
 0x2bd   : > { %1914 = vrot.lane.b32.xlu0 %v1902_v37, %s7046_s18 }
 0x2be   : > { %1908 = vrot.lane.b32.xlu1 %v1855_v39, %s7047_s19 }
 0x2bf   : > { %v1899_v40 = vpop.permute.xlu1 %1898 }
 0x2c0   : > { %v1903_v44 = vmul.f32 %v1899_v40, %v1867_v4 }
 0x2c2   : > { %1916 = vrot.lane.b32.xlu1 %v1903_v44, %s7046_s18 }
 0x32b   : > { %v1907_v46 = vpop.permute.xlu0 %1906 }
 0x32f   : > { %v1915_v48 = vpop.permute.xlu0 %1914 }
 0x330   : > { %v1909_v50 = vpop.permute.xlu1 %1908  ;;  %v1920_v42 = vsel %vm1199_vm0, %v1907_v46, %v1915_v48 }
 0x331   : > { %1922 = vst.msk [vmem:[#allocation2] sm:$0xff] %vm1761_vm1, %v1920_v42 }
 0x334   : > { %v1917_v52 = vpop.permute.xlu1 %1916 }
 0x335   : > { %v1921_v54 = vsel %vm1199_vm0, %v1909_v50, %v1917_v52 }
 0x336   : > { %1923 = vst.msk [vmem:[#allocation2 + $0x8] sm:$0xff] %vm1761_vm1, %v1921_v54  ;;  %v1924_v57 = vpack.c.bf16 %v1921_v54, %v1920_v42 }
 0x338   : > { %6201 = vmatmul.mubr.msk.bf16.vlgmr.msra.gmra.mxu0 %vm1761_vm1, %v1924_v57 }
 0x339   : > { %2103 = vmatpush1.bf16.msra.mxu0 %v7330_v15  ;;  %2126 = vmatprep.mubr.bf16.mxu0 %v7045_v16 }
 0x33a   : > { %2104 = vmatprep.subr.bf16.mxu0 %v7339_v18 }
 0x33d   : > { %2105 = vmatpush1.bf16.msra.mxu0 %v7348_v19 }
 0x33e   : > { %2106 = vmatprep.subr.bf16.mxu0 %v7355_v21 }
 0x341   : > { %2107 = vmatpush1.bf16.msra.mxu0 %v7364_v24 }
 0x342   : > { %2108 = vmatprep.subr.bf16.mxu0 %v7374_v26 }
 0x345   : > { %2109 = vmatpush1.bf16.msra.mxu0 %v7379_v27 }
 0x346   : > { %2434 = vmatprep.subr.bf16.mxu0 %v7324_v14 }
 0x3f8   : > { %v1962_v59 = vpop.f32.mrf.mxu0 }
 0x3f9   : > { %v1974_v63 = vadd.f32 %v1962_v59, %v7424_v35 }
 0x3fa   : > { %v1964_v1 = vpop.f32.mrf.mxu0 }
 0x3fb   : > { %6479 = vtanh.f32 %v1974_v63  ;;  %v2023_v3 = vadd.f32 %v1964_v1, %v1563_v60 }
 0x3fc   : > { %v1966_v4 = vpop.f32.mrf.mxu0 }
 0x3fd   : > { %v1975_v6 = vadd.f32 %v1966_v4, %v7426_v38  ;;  %6481 = vtanh.f32 %v2023_v3  ;;  %v1976_v38 = vmul.f32 0.5, %v1974_v63  ;;  %v2025_v2 = vmul.f32 0.5, %v2023_v3 }
 0x3fe   : > { %v1968_v8 = vpop.f32.mrf.mxu0 }
 0x3ff   : > { %6483 = vtanh.f32 %v1975_v6  ;;  %v2024_v10 = vadd.f32 %v1968_v8, %v1566_v7  ;;  %v1977_v13 = vmul.f32 0.5, %v1975_v6 }
 0x401   : > { %6485 = vtanh.f32 %v2024_v10  ;;  %v2026_v22 = vmul.f32 0.5, %v2024_v10 }
 0x402   : > { %6487 = vtanh.f32 %v1976_v38  ;;  %v6442_v38 = vld [vmem:[%s7383_s23 + $0x18] sm:$0xff]  }
 0x403   : > { %6489 = vtanh.f32 %v2025_v2 }
 0x404   : > { %6491 = vtanh.f32 %v1977_v13 }
 0x405   : > { %6493 = vtanh.f32 %v2026_v22 }
 0x408   : > { %v6480_v11 = vpop.eup %6479 }
 0x409   : > { %1990 = vrot.lane.b32.xlu0 %v6480_v11, %s7046_s18 }
 0x40a   : > { %v6482_v55 = vpop.eup %6481 }
 0x40c   : > { %v6484_v12 = vpop.eup %6483 }
 0x40d   : > { %2039 = vrot.lane.b32.xlu0 %v6482_v55, %s7046_s18  ;;  %1992 = vrot.lane.b32.xlu1 %v6484_v12, %s7046_s18 }
 0x40e   : > { %v6486_v35 = vpop.eup %6485 }
 0x40f   : > { %v6488_v23 = vpop.eup %6487 }
 0x410   : > { %v1980_v28 = vmul.f32 0.5, %v6488_v23  ;;  %v6490_v29 = vpop.eup %6489 }
 0x411   : > { %2041 = vrot.lane.b32.xlu1 %v6486_v35, %s7046_s18  ;;  %v6492_v30 = vpop.eup %6491  ;;  %v2029_v31 = vmul.f32 0.5, %v6490_v29  ;;  %v6441_v35 = vld [vmem:[%s7383_s23 + $0x10] sm:$0xff]  }
 0x412   : > { %v1982_v32 = vadd.f32 0.5, %v1980_v28  ;;  %v1981_v33 = vmul.f32 0.5, %v6492_v30  ;;  %v6494_v36 = vpop.eup %6493  ;;  %6313 = vmatprep.mubr.msk.bf16.mxu1 %vm1199_vm0, %v6441_v35 }
 0x413   : > { %v2031_v39 = vadd.f32 0.5, %v2029_v31  ;;  %v2030_v40 = vmul.f32 0.5, %v6494_v36  ;;  %6314 = vmatmul.mubr.msk.bf16.gmra.mxu1 %vm1199_vm0, %v6442_v38 }
 0x414   : > { %v1983_v46 = vadd.f32 0.5, %v1981_v33  ;;  %v1986_v59 = vmul.f32 %v1982_v32, %v7471_v9 }
 0x415   : > { %v2032_v52 = vadd.f32 0.5, %v2030_v40  ;;  %v2035_v1 = vmul.f32 %v2031_v39, %v7474_v17 }
 0x416   : > { %v1987_v4 = vmul.f32 %v1983_v46, %v7476_v20 }
 0x417   : > { %v2036_v9 = vmul.f32 %v2032_v52, %v7480_v25 }
 0x47b   : > { %v1991_v34 = vpop.permute.xlu0 %1990 }
 0x47c   : > { %v1996_v37 = vmul.f32 %v1991_v34, %v1982_v32 }
 0x47e   : > { %2000 = vrot.lane.b32.xlu0 %v1996_v37, %s7047_s19 }
 0x47f   : > { %v2040_v44 = vpop.permute.xlu0 %2039  ;;  %v1993_v50 = vpop.permute.xlu1 %1992 }
 0x480   : > { %v2045_v48 = vmul.f32 %v2040_v44, %v2031_v39  ;;  %v1997_v42 = vmul.f32 %v1993_v50, %v1983_v46 }
 0x482   : > { %2049 = vrot.lane.b32.xlu0 %v2045_v48, %s7047_s19  ;;  %2002 = vrot.lane.b32.xlu1 %v1997_v42, %s7047_s19 }
 0x483   : > { %v2042_v54 = vpop.permute.xlu1 %2041 }
 0x484   : > { %v2046_v57 = vmul.f32 %v2042_v54, %v2032_v52 }
 0x486   : > { %2051 = vrot.lane.b32.xlu1 %v2046_v57, %s7047_s19 }
 0x4d3   : > { %v7561_v40 = vpop.f32.mrf.mxu1 }
 0x4d5   : > { %v1570_v44 = vpop.f32.mrf.mxu1 }
 0x4d7   : > { %v7564_v48 = vpop.f32.mrf.mxu1 }
 0x4d9   : > { %v1573_v54 = vpop.f32.mrf.mxu1 }
 0x4f0   : > { %v2001_v60 = vpop.permute.xlu0 %2000 }
 0x4f1   : > { %v7520_v63 = vadd.f32 %v2001_v60, %v1986_v59 }
 0x4f3   : > { %6495 = vtanh.f32 %v7520_v63 }
 0x4f4   : > { %v2050_v3 = vpop.permute.xlu0 %2049  ;;  %v2003_v7 = vpop.permute.xlu1 %2002 }
 0x4f5   : > { %v7525_v6 = vadd.f32 %v2050_v3, %v2035_v1  ;;  %v7527_v8 = vadd.f32 %v2003_v7, %v1987_v4  ;;  %v1574_v1 = vadd.f32 %v7453_v62, %v1573_v54 }
 0x4f7   : > { %6497 = vtanh.f32 %v7525_v6 }
 0x4f8   : > { %6499 = vtanh.f32 %v7527_v8  ;;  %v2052_v10 = vpop.permute.xlu1 %2051 }
 0x4f9   : > { %v7532_v11 = vadd.f32 %v2052_v10, %v2036_v9 }
 0x4fb   : > { %6501 = vtanh.f32 %v7532_v11 }
 0x500   : > { %v6496_v17 = vpop.eup %6495 }
 0x501   : > { %2012 = vrot.lane.b32.xlu0 %v6496_v17, %s7046_s18 }
 0x504   : > { %v6498_v20 = vpop.eup %6497 }
 0x505   : > { %v6500_v55 = vpop.eup %6499  ;;  %2061 = vrot.lane.b32.xlu0 %v6498_v20, %s7046_s18 }
 0x506   : > { %2014 = vrot.lane.b32.xlu1 %v6500_v55, %s7046_s18 }
 0x508   : > { %v6502_v12 = vpop.eup %6501 }
 0x50a   : > { %2063 = vrot.lane.b32.xlu1 %v6502_v12, %s7046_s18 }
 0x573   : > { %v2013_v25 = vpop.permute.xlu0 %2012 }
 0x574   : > { %v2018_v2 = vmul.f32 %v2013_v25, %v1982_v32 }
 0x576   : > { %2071 = vrot.lane.b32.xlu0 %v2018_v2, %s7047_s19 }
 0x577   : > { %v2062_v13 = vpop.permute.xlu0 %2061 }
 0x578   : > { %v2067_v22 = vmul.f32 %v2062_v13, %v2031_v39  ;;  %v2015_v23 = vpop.permute.xlu1 %2014 }
 0x579   : > { %v2019_v28 = vmul.f32 %v2015_v23, %v1983_v46  ;;  %v1571_v46 = vadd.f32 %v7453_v62, %v1570_v44 }
 0x57a   : > { %2079 = vrot.lane.b32.xlu0 %v2067_v22, %s7046_s18 }
 0x57b   : > { %2073 = vrot.lane.b32.xlu1 %v2019_v28, %s7047_s19 }
 0x57c   : > { %v2064_v29 = vpop.permute.xlu1 %2063 }
 0x57d   : > { %v2068_v30 = vmul.f32 %v2064_v29, %v2032_v52 }
 0x57f   : > { %2081 = vrot.lane.b32.xlu1 %v2068_v30, %s7046_s18 }
 0x5e8   : > { %v2072_v31 = vpop.permute.xlu0 %2071 }
 0x5ec   : > { %v2080_v33 = vpop.permute.xlu0 %2079 }
 0x5ed   : > { %v2085_v34 = vsel %vm1199_vm0, %v2072_v31, %v2080_v33  ;;  %v2074_v36 = vpop.permute.xlu1 %2073 }
 0x5ee   : > { %2088 = vst.msk [vmem:[#allocation2 + $0x10] sm:$0xff] %vm1761_vm1, %v2085_v34 }
 0x5f1   : > { %v2082_v32 = vpop.permute.xlu1 %2081 }
 0x5f2   : > { %v2086_v37 = vsel %vm1199_vm0, %v2074_v36, %v2082_v32 }
 0x5f3   : > { %2089 = vst.msk [vmem:[#allocation2 + $0x18] sm:$0xff] %vm1761_vm1, %v2086_v37  ;;  %v2090_v39 = vpack.c.bf16 %v2086_v37, %v2085_v34 }
 0x5f5   : > { %6202 = vmatmul.mubr.msk.bf16.vlgmr.msra.gmra.mxu0 %vm1761_vm1, %v2090_v39 }
 0x5f6   : > { %2435 = vmatpush1.bf16.msra.mxu0 %v7330_v15  ;;  %2458 = vmatprep.mubr.bf16.mxu0 %v7045_v16 }
 0x5f7   : > { %2436 = vmatprep.subr.bf16.mxu0 %v7339_v18 }
 0x5fa   : > { %2437 = vmatpush1.bf16.msra.mxu0 %v7348_v19 }
 0x5fb   : > { %2438 = vmatprep.subr.bf16.mxu0 %v7355_v21 }
 0x5fe   : > { %2439 = vmatpush1.bf16.msra.mxu0 %v7364_v24 }
 0x5ff   : > { %2440 = vmatprep.subr.bf16.mxu0 %v7374_v26 }
 0x602   : > { %2441 = vmatpush1.bf16.msra.mxu0 %v7379_v27 }
 0x603   : > { %2766 = vmatprep.subr.bf16.mxu0 %v7324_v14 }
 0x6b5   : > { %v2128_v50 = vpop.f32.mrf.mxu0 }
 0x6b6   : > { %v2140_v42 = vadd.f32 %v2128_v50, %v7430_v43 }
 0x6b7   : > { %v2130_v52 = vpop.f32.mrf.mxu0 }
 0x6b8   : > { %6503 = vtanh.f32 %v2140_v42  ;;  %v2189_v57 = vadd.f32 %v2130_v52, %v1571_v46 }
 0x6b9   : > { %v2132_v59 = vpop.f32.mrf.mxu0 }
 0x6ba   : > { %v2141_v60 = vadd.f32 %v2132_v59, %v7434_v47  ;;  %6505 = vtanh.f32 %v2189_v57  ;;  %v2142_v47 = vmul.f32 0.5, %v2140_v42  ;;  %v2191_v10 = vmul.f32 0.5, %v2189_v57 }
 0x6bb   : > { %v2134_v14 = vpop.f32.mrf.mxu0 }
 0x6bc   : > { %6507 = vtanh.f32 %v2141_v60  ;;  %v2190_v3 = vadd.f32 %v2134_v14, %v1574_v1  ;;  %v2143_v17 = vmul.f32 0.5, %v2141_v60 }
 0x6be   : > { %6509 = vtanh.f32 %v2190_v3  ;;  %v2192_v20 = vmul.f32 0.5, %v2190_v3  ;;  %v6444_v3 = vld [vmem:[%s7383_s23 + $0x28] sm:$0xff]  }
 0x6bf   : > { %6511 = vtanh.f32 %v2142_v47  ;;  %v6447_v47 = vld [vmem:[%s7383_s23 + $0x40] sm:$0xff]  }
 0x6c0   : > { %6513 = vtanh.f32 %v2191_v10 }
 0x6c1   : > { %6515 = vtanh.f32 %v2143_v17  ;;  %v6448_v17 = vld [vmem:[%s7383_s23 + $0x48] sm:$0xff]  }
 0x6c2   : > { %6517 = vtanh.f32 %v2192_v20  ;;  %v6449_v20 = vld [vmem:[%s7383_s23 + $0x50] sm:$0xff]  }
 0x6c5   : > { %v6504_v4 = vpop.eup %6503 }
 0x6c6   : > { %2156 = vrot.lane.b32.xlu0 %v6504_v4, %s7046_s18  ;;  %v6445_v4 = vld [vmem:[%s7383_s23 + $0x30] sm:$0xff]  }
 0x6c7   : > { %v6506_v7 = vpop.eup %6505 }
 0x6c9   : > { %v6508_v9 = vpop.eup %6507 }
 0x6ca   : > { %2205 = vrot.lane.b32.xlu0 %v6506_v7, %s7046_s18  ;;  %2158 = vrot.lane.b32.xlu1 %v6508_v9, %s7046_s18 }
 0x6cb   : > { %v6510_v43 = vpop.eup %6509 }
 0x6cc   : > { %v6512_v55 = vpop.eup %6511 }
 0x6cd   : > { %v2146_v12 = vmul.f32 0.5, %v6512_v55  ;;  %v6514_v35 = vpop.eup %6513  ;;  %v6450_v55 = vld [vmem:[%s7383_s23 + $0x58] sm:$0xff]  }
 0x6ce   : > { %2207 = vrot.lane.b32.xlu1 %v6510_v43, %s7046_s18  ;;  %v6516_v38 = vpop.eup %6515  ;;  %v2195_v25 = vmul.f32 0.5, %v6514_v35  ;;  %v6446_v43 = vld [vmem:[%s7383_s23 + $0x38] sm:$0xff]   ;;  %v6452_v35 = vld [vmem:[%s7383_s23 + $0x68] sm:$0xff]  }
 0x6cf   : > { %v7573_v2 = vadd.f32 0.5, %v2146_v12  ;;  %v2147_v13 = vmul.f32 0.5, %v6516_v38  ;;  %v6518_v23 = vpop.eup %6517  ;;  %v6451_v12 = vld [vmem:[%s7383_s23 + $0x60] sm:$0xff]   ;;  %v6453_v38 = vld [vmem:[%s7383_s23 + $0x70] sm:$0xff]  }
 0x6d0   : > { %v7577_v29 = vadd.f32 0.5, %v2195_v25  ;;  %v2196_v30 = vmul.f32 0.5, %v6518_v23  ;;  %v6454_v25 = vld [vmem:[%s7383_s23 + $0x78] sm:$0xff]  }
 0x6d1   : > { %v7579_v33 = vadd.f32 0.5, %v2147_v13  ;;  %v2152_v46 = vmul.f32 %v7573_v2, %v7520_v63 }
 0x6d2   : > { %v7585_v37 = vadd.f32 0.5, %v2196_v30  ;;  %v2201_v52 = vmul.f32 %v7577_v29, %v7525_v6 }
 0x6d3   : > { %v2153_v57 = vmul.f32 %v7579_v33, %v7527_v8  ;;  %v6443_v8 = vld [vmem:[%s7383_s23 + $0x20] sm:$0xff]   ;;  %s1117_s23 = scalar_lea.vmem %s9660_s16, %s6138_s20 }
 0x6d4   : > { %v2202_v63 = vmul.f32 %v7585_v37, %v7532_v11  ;;  %6317 = vmatprep.mubr.msk.bf16.mxu1 %vm1199_vm0, %v6443_v8 }
 0x6d5   : > { %6318 = vmatmul.mubr.msk.bf16.gmra.mxu1 %vm1199_vm0, %v6444_v3 }
 0x6d6   : > { %6321 = vmatprep.mubr.msk.bf16.mxu1 %vm1199_vm0, %v6445_v4 }
 0x6dd   : > { %6322 = vmatmul.mubr.msk.bf16.gmra.mxu1 %vm1199_vm0, %v6446_v43 }
 0x6de   : > { %6325 = vmatprep.mubr.msk.bf16.mxu1 %vm1199_vm0, %v6447_v47 }
 0x6e5   : > { %6326 = vmatmul.mubr.msk.bf16.gmra.mxu1 %vm1199_vm0, %v6448_v17 }
 0x6e6   : > { %6329 = vmatprep.mubr.msk.bf16.mxu1 %vm1199_vm0, %v6449_v20 }
 0x6ed   : > { %6330 = vmatmul.mubr.msk.bf16.gmra.mxu1 %vm1199_vm0, %v6450_v55  ;;  %v1579_v55 = vadd.f32 %v7561_v40, %v7453_v62 }
 0x6ee   : > { %6333 = vmatprep.mubr.msk.bf16.mxu1 %vm1199_vm0, %v6451_v12 }
 0x6f5   : > { %6334 = vmatmul.mubr.msk.bf16.gmra.mxu1 %vm1199_vm0, %v6452_v35 }
 0x6f6   : > { %6337 = vmatprep.mubr.msk.bf16.mxu1 %vm1199_vm0, %v6453_v38 }
 0x6fd   : > { %6338 = vmatmul.mubr.msk.bf16.gmra.mxu1 %vm1199_vm0, %v6454_v25 }
 0x6fe   : > { %2292 = vmatprep.mubr.bf16.mxu1 %v7045_v16 }
 0x738   : > { %v2157_v22 = vpop.permute.xlu0 %2156 }
 0x739   : > { %v2162_v28 = vmul.f32 %v2157_v22, %v7573_v2 }
 0x73b   : > { %2166 = vrot.lane.b32.xlu0 %v2162_v28, %s7047_s19 }
 0x73c   : > { %v2206_v31 = vpop.permute.xlu0 %2205  ;;  %v2159_v36 = vpop.permute.xlu1 %2158 }
 0x73d   : > { %v2211_v34 = vmul.f32 %v2206_v31, %v7577_v29  ;;  %v2163_v32 = vmul.f32 %v2159_v36, %v7579_v33 }
 0x73f   : > { %2215 = vrot.lane.b32.xlu0 %v2211_v34, %s7047_s19  ;;  %2168 = vrot.lane.b32.xlu1 %v2163_v32, %s7047_s19 }
 0x740   : > { %v2208_v39 = vpop.permute.xlu1 %2207 }
 0x741   : > { %v2212_v44 = vmul.f32 %v2208_v39, %v7585_v37 }
 0x743   : > { %2217 = vrot.lane.b32.xlu1 %v2212_v44, %s7047_s19 }
 0x7ad   : > { %v2167_v50 = vpop.permute.xlu0 %2166 }
 0x7ae   : > { %v7591_v42 = vadd.f32 %v2167_v50, %v2152_v46 }
 0x7b0   : > { %6519 = vtanh.f32 %v7591_v42 }
 0x7b1   : > { %v2216_v54 = vpop.permute.xlu0 %2215  ;;  %v2169_v60 = vpop.permute.xlu1 %2168 }
 0x7b2   : > { %v7598_v59 = vadd.f32 %v2216_v54, %v2201_v52  ;;  %v7600_v1 = vadd.f32 %v2169_v60, %v2153_v57 }
 0x7b4   : > { %6521 = vtanh.f32 %v7598_v59 }
 0x7b5   : > { %6523 = vtanh.f32 %v7600_v1  ;;  %v2218_v14 = vpop.permute.xlu1 %2217 }
 0x7b6   : > { %v7606_v6 = vadd.f32 %v2218_v14, %v2202_v63 }
 0x7b8   : > { %6525 = vtanh.f32 %v7606_v6 }
 0x7bd   : > { %v6520_v7 = vpop.eup %6519 }
 0x7be   : > { %2178 = vrot.lane.b32.xlu0 %v6520_v7, %s7046_s18 }
 0x7c1   : > { %v6522_v11 = vpop.eup %6521 }
 0x7c2   : > { %v6524_v9 = vpop.eup %6523  ;;  %2227 = vrot.lane.b32.xlu0 %v6522_v11, %s7046_s18 }
 0x7c3   : > { %2180 = vrot.lane.b32.xlu1 %v6524_v9, %s7046_s18 }
 0x7c5   : > { %v6526_v10 = vpop.eup %6525 }
 0x7c7   : > { %2229 = vrot.lane.b32.xlu1 %v6526_v10, %s7046_s18 }
 0x830   : > { %v2179_v13 = vpop.permute.xlu0 %2178 }
 0x831   : > { %v2184_v22 = vmul.f32 %v2179_v13, %v7573_v2 }
 0x833   : > { %2237 = vrot.lane.b32.xlu0 %v2184_v22, %s7047_s19  ;;  %v1582_v22 = vadd.f32 %v7564_v48, %v7453_v62 }
 0x834   : > { %v2228_v23 = vpop.permute.xlu0 %2227 }
 0x835   : > { %v2233_v28 = vmul.f32 %v2228_v23, %v7577_v29  ;;  %v2181_v30 = vpop.permute.xlu1 %2180 }
 0x836   : > { %v2185_v31 = vmul.f32 %v2181_v30, %v7579_v33 }
 0x837   : > { %2245 = vrot.lane.b32.xlu0 %v2233_v28, %s7046_s18 }
 0x838   : > { %2239 = vrot.lane.b32.xlu1 %v2185_v31, %s7047_s19 }
 0x839   : > { %v2230_v34 = vpop.permute.xlu1 %2229 }
 0x83a   : > { %v2234_v36 = vmul.f32 %v2230_v34, %v7585_v37  ;;  %v7662_v37 = vld [vmem:[%s9653_s8 + $0x34] ss:$8 sps:$4 sm:$0xff]  }
 0x83c   : > { %2247 = vrot.lane.b32.xlu1 %v2234_v36, %s7046_s18 }
 0x8a5   : > { %v2238_v32 = vpop.permute.xlu0 %2237 }
 0x8a9   : > { %v2246_v39 = vpop.permute.xlu0 %2245 }
 0x8aa   : > { %v2251_v2 = vsel %vm1199_vm0, %v2238_v32, %v2246_v39  ;;  %v2240_v44 = vpop.permute.xlu1 %2239 }
 0x8ab   : > { %2254 = vst.msk [vmem:[#allocation2 + $0x20] sm:$0xff] %vm1761_vm1, %v2251_v2 }
 0x8ae   : > { %v2248_v29 = vpop.permute.xlu1 %2247 }
 0x8af   : > { %v2252_v46 = vsel %vm1199_vm0, %v2240_v44, %v2248_v29 }
 0x8b0   : > { %2255 = vst.msk [vmem:[#allocation2 + $0x28] sm:$0xff] %vm1761_vm1, %v2252_v46  ;;  %v2256_v33 = vpack.c.bf16 %v2252_v46, %v2251_v2 }
 0x8b2   : > { %6203 = vmatmul.mubr.msk.bf16.vlgmr.msra.gmra.mxu1 %vm1761_vm1, %v2256_v33 }
 0x8b3   : > { %2601 = vmatpush1.bf16.msra.mxu1 %v7330_v15  ;;  %2624 = vmatprep.mubr.bf16.mxu1 %v7045_v16  ;;  %v7665_v15 = vpop.f32.mrf.mxu1 }
 0x8b4   : > { %2602 = vmatprep.subr.bf16.mxu1 %v7339_v18 }
 0x8b5   : > { %v7667_v18 = vpop.f32.mrf.mxu1 }
 0x8b7   : > { %2603 = vmatpush1.bf16.msra.mxu1 %v7348_v19  ;;  %v7669_v19 = vpop.f32.mrf.mxu1 }
 0x8b8   : > { %2604 = vmatprep.subr.bf16.mxu1 %v7355_v21 }
 0x8b9   : > { %v7671_v21 = vpop.f32.mrf.mxu1 }
 0x8bb   : > { %2605 = vmatpush1.bf16.msra.mxu1 %v7364_v24  ;;  %v7673_v24 = vpop.f32.mrf.mxu1 }
 0x8bc   : > { %2606 = vmatprep.subr.bf16.mxu1 %v7374_v26 }
 0x8bd   : > { %v7675_v26 = vpop.f32.mrf.mxu1 }
 0x8bf   : > { %2607 = vmatpush1.bf16.msra.mxu1 %v7379_v27  ;;  %v7677_v27 = vpop.f32.mrf.mxu1 }
 0x8c0   : > { %2932 = vmatprep.subr.bf16.mxu1 %v7662_v37 }
 0x8c1   : > { %v7679_v50 = vpop.f32.mrf.mxu1 }
 0x8c3   : > { %v7681_v52 = vpop.f32.mrf.mxu1 }
 0x8c5   : > { %v7683_v54 = vpop.f32.mrf.mxu1 }
 0x8c7   : > { %v7685_v57 = vpop.f32.mrf.mxu1 }
 0x8c9   : > { %v7687_v60 = vpop.f32.mrf.mxu1 }
 0x8cb   : > { %v7689_v63 = vpop.f32.mrf.mxu1 }
 0x8cd   : > { %v7691_v14 = vpop.f32.mrf.mxu1 }
 0x8cf   : > { %v7693_v8 = vpop.f32.mrf.mxu1 }
 0x8d1   : > { %v7695_v3 = vpop.f32.mrf.mxu1 }
 0x8d3   : > { %v7697_v4 = vpop.f32.mrf.mxu1 }
 0x8d5   : > { %v7699_v7 = vpop.f32.mrf.mxu1 }
 0x8d7   : > { %v7701_v11 = vpop.f32.mrf.mxu1 }
 0x8d9   : > { %v7703_v9 = vpop.f32.mrf.mxu1 }
 0x8db   : > { %v7705_v43 = vpop.f32.mrf.mxu1 }
 0x8dd   : > { %v7707_v47 = vpop.f32.mrf.mxu1 }
 0x8df   : > { %v7709_v10 = vpop.f32.mrf.mxu1 }
 0x8e1   : > { %v7711_v17 = vpop.f32.mrf.mxu1 }
 0x972   : > { %v2294_v20 = vpop.f32.mrf.mxu1 }
 0x973   : > { %v2306_v12 = vadd.f32 %v2294_v20, %v7428_v41 }
 0x974   : > { %v2296_v35 = vpop.f32.mrf.mxu1 }
 0x975   : > { %6527 = vtanh.f32 %v2306_v12  ;;  %v2355_v38 = vadd.f32 %v2296_v35, %v1579_v55 }
 0x976   : > { %v2298_v25 = vpop.f32.mrf.mxu1 }
 0x977   : > { %v2307_v13 = vadd.f32 %v2298_v25, %v7432_v45  ;;  %6529 = vtanh.f32 %v2355_v38  ;;  %v2308_v45 = vmul.f32 0.5, %v2306_v12  ;;  %v2357_v48 = vmul.f32 0.5, %v2355_v38 }
 0x978   : > { %v2300_v23 = vpop.f32.mrf.mxu1 }
 0x979   : > { %6531 = vtanh.f32 %v2307_v13  ;;  %v2356_v28 = vadd.f32 %v2300_v23, %v1582_v22  ;;  %v2309_v34 = vmul.f32 0.5, %v2307_v13 }
 0x97b   : > { %6533 = vtanh.f32 %v2356_v28  ;;  %v2358_v36 = vmul.f32 0.5, %v2356_v28 }
 0x97c   : > { %6535 = vtanh.f32 %v2308_v45 }
 0x97d   : > { %6537 = vtanh.f32 %v2357_v48 }
 0x97e   : > { %6539 = vtanh.f32 %v2309_v34 }
 0x97f   : > { %6541 = vtanh.f32 %v2358_v36 }
 0x982   : > { %v6528_v30 = vpop.eup %6527 }
 0x983   : > { %2322 = vrot.lane.b32.xlu0 %v6528_v30, %s7046_s18 }
 0x984   : > { %v6530_v40 = vpop.eup %6529 }
 0x986   : > { %v6532_v31 = vpop.eup %6531 }
 0x987   : > { %2371 = vrot.lane.b32.xlu0 %v6530_v40, %s7046_s18  ;;  %2324 = vrot.lane.b32.xlu1 %v6532_v31, %s7046_s18 }
 0x988   : > { %v6534_v41 = vpop.eup %6533 }
 0x989   : > { %v6536_v32 = vpop.eup %6535 }
 0x98a   : > { %v2312_v39 = vmul.f32 0.5, %v6536_v32  ;;  %v6538_v2 = vpop.eup %6537 }
 0x98b   : > { %2373 = vrot.lane.b32.xlu1 %v6534_v41, %s7046_s18  ;;  %v6540_v44 = vpop.eup %6539  ;;  %v2361_v29 = vmul.f32 0.5, %v6538_v2 }
 0x98c   : > { %v2314_v46 = vadd.f32 0.5, %v2312_v39  ;;  %v2313_v33 = vmul.f32 0.5, %v6540_v44  ;;  %v6542_v55 = vpop.eup %6541 }
 0x98d   : > { %v2363_v12 = vadd.f32 0.5, %v2361_v29  ;;  %v2362_v25 = vmul.f32 0.5, %v6542_v55 }
 0x98e   : > { %v2315_v13 = vadd.f32 0.5, %v2313_v33  ;;  %v2318_v41 = vmul.f32 %v2314_v46, %v7591_v42 }
 0x98f   : > { %v2364_v30 = vadd.f32 0.5, %v2362_v25  ;;  %v2367_v34 = vmul.f32 %v2363_v12, %v7598_v59 }
 0x990   : > { %v2319_v32 = vmul.f32 %v2315_v13, %v7600_v1 }
 0x991   : > { %v2368_v42 = vmul.f32 %v2364_v30, %v7606_v6 }
 0x9f5   : > { %v2323_v20 = vpop.permute.xlu0 %2322 }
 0x9f6   : > { %v2328_v35 = vmul.f32 %v2323_v20, %v2314_v46 }
 0x9f8   : > { %2332 = vrot.lane.b32.xlu0 %v2328_v35, %s7047_s19 }
 0x9f9   : > { %v2372_v38 = vpop.permute.xlu0 %2371  ;;  %v2325_v23 = vpop.permute.xlu1 %2324 }
 0x9fa   : > { %v2377_v22 = vmul.f32 %v2372_v38, %v2363_v12  ;;  %v2329_v28 = vmul.f32 %v2325_v23, %v2315_v13 }
 0x9fc   : > { %2381 = vrot.lane.b32.xlu0 %v2377_v22, %s7047_s19  ;;  %2334 = vrot.lane.b32.xlu1 %v2329_v28, %s7047_s19 }
 0x9fd   : > { %v2374_v40 = vpop.permute.xlu1 %2373 }
 0x9fe   : > { %v2378_v31 = vmul.f32 %v2374_v40, %v2364_v30 }
 0xa00   : > { %2383 = vrot.lane.b32.xlu1 %v2378_v31, %s7047_s19 }
 0xa6a   : > { %v2333_v45 = vpop.permute.xlu0 %2332 }
 0xa6b   : > { %v7728_v48 = vadd.f32 %v2333_v45, %v2318_v41 }
 0xa6d   : > { %6543 = vtanh.f32 %v7728_v48 }
 0xa6e   : > { %v2382_v36 = vpop.permute.xlu0 %2381  ;;  %v2335_v2 = vpop.permute.xlu1 %2334 }
 0xa6f   : > { %v7733_v39 = vadd.f32 %v2382_v36, %v2367_v34  ;;  %v7735_v44 = vadd.f32 %v2335_v2, %v2319_v32  ;;  %v7766_v36 = vld [vmem:[%s9653_s8 + $0x24] ss:$8 sps:$4 sm:$0xff]   ;;  %v7772_v32 = vld [vmem:[%s9653_s8 + $0x20] ss:$8 sps:$4 sm:$0xff]   ;;  %v7778_v2 = vld [vmem:[%s9653_s8 + $0x14] ss:$8 sps:$4 sm:$0xff]  }
 0xa71   : > { %6545 = vtanh.f32 %v7733_v39 }
 0xa72   : > { %6547 = vtanh.f32 %v7735_v44  ;;  %v2384_v29 = vpop.permute.xlu1 %2383 }
 0xa73   : > { %v7740_v33 = vadd.f32 %v2384_v29, %v2368_v42  ;;  %v7784_v42 = vld [vmem:[%s9653_s8 + $0x10] ss:$8 sps:$4 sm:$0xff]   ;;  %v7790_v29 = vld [vmem:[%s9653_s8 + $0x4] ss:$8 sps:$4 sm:$0xff]  }
 0xa75   : > { %6549 = vtanh.f32 %v7740_v33 }
 0xa7a   : > { %v6544_v59 = vpop.eup %6543 }
 0xa7b   : > { %2344 = vrot.lane.b32.xlu0 %v6544_v59, %s7046_s18  ;;  %v7796_v59 = vld [vmem:[%s9653_s8] ss:$8 sps:$4 sm:$0xff]  }
 0xa7e   : > { %v6546_v1 = vpop.eup %6545 }
 0xa7f   : > { %v6548_v20 = vpop.eup %6547  ;;  %2393 = vrot.lane.b32.xlu0 %v6546_v1, %s7046_s18 }
 0xa80   : > { %2346 = vrot.lane.b32.xlu1 %v6548_v20, %s7046_s18  ;;  %v1587_v20 = vadd.f32 %v7453_v62, %v7667_v18 }
 0xa82   : > { %v6550_v55 = vpop.eup %6549 }
 0xa84   : > { %2395 = vrot.lane.b32.xlu1 %v6550_v55, %s7046_s18 }
 0xaed   : > { %v2345_v35 = vpop.permute.xlu0 %2344 }
 0xaee   : > { %v2350_v25 = vmul.f32 %v2345_v35, %v2314_v46 }
 0xaf0   : > { %2403 = vrot.lane.b32.xlu0 %v2350_v25, %s7047_s19 }
 0xaf1   : > { %v2394_v6 = vpop.permute.xlu0 %2393 }
 0xaf2   : > { %v2399_v38 = vmul.f32 %v2394_v6, %v2363_v12  ;;  %v2347_v22 = vpop.permute.xlu1 %2346 }
 0xaf3   : > { %v2351_v23 = vmul.f32 %v2347_v22, %v2315_v13  ;;  %v7807_v22 = vld [vmem:[%s9652_s7] ss:$0 sm:$0xff] }
 0xaf4   : > { %2411 = vrot.lane.b32.xlu0 %v2399_v38, %s7046_s18 }
 0xaf5   : > { %2405 = vrot.lane.b32.xlu1 %v2351_v23, %s7047_s19  ;;  %v1590_v23 = vadd.f32 %v7807_v22, %v7671_v21 }
 0xaf6   : > { %v2396_v28 = vpop.permute.xlu1 %2395 }
 0xaf7   : > { %v2400_v40 = vmul.f32 %v2396_v28, %v2364_v30  ;;  %v7759_v30 = vld [vmem:[%s9653_s8 + $0x30] ss:$8 sps:$4 sm:$0xff]  }
 0xaf9   : > { %2413 = vrot.lane.b32.xlu1 %v2400_v40, %s7046_s18 }
 0xb62   : > { %v2404_v31 = vpop.permute.xlu0 %2403 }
 0xb66   : > { %v2412_v41 = vpop.permute.xlu0 %2411 }
 0xb67   : > { %v2417_v45 = vsel %vm1199_vm0, %v2404_v31, %v2412_v41  ;;  %v2406_v34 = vpop.permute.xlu1 %2405 }
 0xb68   : > { %2420 = vst.msk [vmem:[#allocation2 + $0x30] sm:$0xff] %vm1761_vm1, %v2417_v45 }
 0xb6b   : > { %v2414_v46 = vpop.permute.xlu1 %2413 }
 0xb6c   : > { %v2418_v12 = vsel %vm1199_vm0, %v2406_v34, %v2414_v46 }
 0xb6d   : > { %2421 = vst.msk [vmem:[#allocation2 + $0x38] sm:$0xff] %vm1761_vm1, %v2418_v12  ;;  %v2422_v13 = vpack.c.bf16 %v2418_v12, %v2417_v45 }
 0xb6f   : > { %6204 = vmatmul.mubr.msk.bf16.vlgmr.msra.gmra.mxu0 %vm1761_vm1, %v2422_v13 }
 0xb70   : > { %2767 = vmatpush1.bf16.msra.mxu0 %v7759_v30  ;;  %2790 = vmatprep.mubr.bf16.mxu0 %v7045_v16 }
 0xb71   : > { %2768 = vmatprep.subr.bf16.mxu0 %v7766_v36 }
 0xb74   : > { %2769 = vmatpush1.bf16.msra.mxu0 %v7772_v32 }
 0xb75   : > { %2770 = vmatprep.subr.bf16.mxu0 %v7778_v2 }
 0xb78   : > { %2771 = vmatpush1.bf16.msra.mxu0 %v7784_v42 }
 0xb79   : > { %2772 = vmatprep.subr.bf16.mxu0 %v7790_v29 }
 0xb7c   : > { %2773 = vmatpush1.bf16.msra.mxu0 %v7796_v59 }
 0xb7d   : > { %3098 = vmatprep.subr.bf16.mxu0 %v7662_v37 }
 0xc2f   : > { %v2460_v1 = vpop.f32.mrf.mxu0 }
 0xc30   : > { %v2472_v55 = vadd.f32 %v2460_v1, %v7438_v51 }
 0xc31   : > { %v2462_v35 = vpop.f32.mrf.mxu0 }
 0xc32   : > { %6551 = vtanh.f32 %v2472_v55  ;;  %v2521_v25 = vadd.f32 %v2462_v35, %v1587_v20  ;;  %v2474_v31 = vmul.f32 0.5, %v2472_v55 }
 0xc33   : > { %v2464_v6 = vpop.f32.mrf.mxu0 }
 0xc34   : > { %v2473_v38 = vadd.f32 %v2464_v6, %v7444_v56  ;;  %6553 = vtanh.f32 %v2521_v25  ;;  %v2523_v21 = vmul.f32 0.5, %v2521_v25 }
 0xc35   : > { %v2466_v28 = vpop.f32.mrf.mxu0 }
 0xc36   : > { %6555 = vtanh.f32 %v2473_v38  ;;  %v2522_v62 = vadd.f32 %v2466_v28, %v1590_v23  ;;  %v2475_v41 = vmul.f32 0.5, %v2473_v38 }
 0xc38   : > { %6557 = vtanh.f32 %v2522_v62  ;;  %v2524_v45 = vmul.f32 0.5, %v2522_v62 }
 0xc39   : > { %6559 = vtanh.f32 %v2474_v31 }
 0xc3a   : > { %6561 = vtanh.f32 %v2523_v21 }
 0xc3b   : > { %6563 = vtanh.f32 %v2475_v41 }
 0xc3c   : > { %6565 = vtanh.f32 %v2524_v45 }
 0xc3f   : > { %v6552_v51 = vpop.eup %6551 }
 0xc40   : > { %2488 = vrot.lane.b32.xlu0 %v6552_v51, %s7046_s18 }
 0xc41   : > { %v6554_v18 = vpop.eup %6553 }
 0xc43   : > { %v6556_v40 = vpop.eup %6555 }
 0xc44   : > { %2537 = vrot.lane.b32.xlu0 %v6554_v18, %s7046_s18  ;;  %2490 = vrot.lane.b32.xlu1 %v6556_v40, %s7046_s18 }
 0xc45   : > { %v6558_v56 = vpop.eup %6557 }
 0xc46   : > { %v6560_v34 = vpop.eup %6559 }
 0xc47   : > { %v2478_v46 = vmul.f32 0.5, %v6560_v34  ;;  %v6562_v12 = vpop.eup %6561 }
 0xc48   : > { %2539 = vrot.lane.b32.xlu1 %v6558_v56, %s7046_s18  ;;  %v6564_v13 = vpop.eup %6563  ;;  %v2527_v1 = vmul.f32 0.5, %v6562_v12 }
 0xc49   : > { %v2480_v20 = vadd.f32 0.5, %v2478_v46  ;;  %v2479_v35 = vmul.f32 0.5, %v6564_v13  ;;  %v6566_v23 = vpop.eup %6565 }
 0xc4a   : > { %v2529_v55 = vadd.f32 0.5, %v2527_v1  ;;  %v2528_v51 = vmul.f32 0.5, %v6566_v23 }
 0xc4b   : > { %v2481_v38 = vadd.f32 0.5, %v2479_v35  ;;  %v2484_v41 = vmul.f32 %v2480_v20, %v7728_v48 }
 0xc4c   : > { %v2530_v56 = vadd.f32 0.5, %v2528_v51  ;;  %v2533_v46 = vmul.f32 %v2529_v55, %v7733_v39 }
 0xc4d   : > { %v2485_v13 = vmul.f32 %v2481_v38, %v7735_v44 }
 0xc4e   : > { %v2534_v48 = vmul.f32 %v2530_v56, %v7740_v33 }
 0xcb2   : > { %v2489_v6 = vpop.permute.xlu0 %2488 }
 0xcb3   : > { %v2494_v28 = vmul.f32 %v2489_v6, %v2480_v20 }
 0xcb5   : > { %2498 = vrot.lane.b32.xlu0 %v2494_v28, %s7047_s19 }
 0xcb6   : > { %v2538_v25 = vpop.permute.xlu0 %2537  ;;  %v2491_v40 = vpop.permute.xlu1 %2490 }
 0xcb7   : > { %v2543_v18 = vmul.f32 %v2538_v25, %v2529_v55  ;;  %v2495_v62 = vmul.f32 %v2491_v40, %v2481_v38 }
 0xcb9   : > { %2547 = vrot.lane.b32.xlu0 %v2543_v18, %s7047_s19  ;;  %2500 = vrot.lane.b32.xlu1 %v2495_v62, %s7047_s19 }
 0xcba   : > { %v2540_v31 = vpop.permute.xlu1 %2539 }
 0xcbb   : > { %v2544_v21 = vmul.f32 %v2540_v31, %v2530_v56 }
 0xcbd   : > { %2549 = vrot.lane.b32.xlu1 %v2544_v21, %s7047_s19 }
 0xd27   : > { %v2499_v45 = vpop.permute.xlu0 %2498 }
 0xd28   : > { %v7820_v34 = vadd.f32 %v2499_v45, %v2484_v41 }
 0xd2a   : > { %6567 = vtanh.f32 %v7820_v34 }
 0xd2b   : > { %v2548_v12 = vpop.permute.xlu0 %2547  ;;  %v2501_v35 = vpop.permute.xlu1 %2500 }
 0xd2c   : > { %v7825_v1 = vadd.f32 %v2548_v12, %v2533_v46  ;;  %v7827_v6 = vadd.f32 %v2501_v35, %v2485_v13 }
 0xd2e   : > { %6569 = vtanh.f32 %v7825_v1 }
 0xd2f   : > { %6571 = vtanh.f32 %v7827_v6  ;;  %v2550_v23 = vpop.permute.xlu1 %2549 }
 0xd30   : > { %v7832_v28 = vadd.f32 %v2550_v23, %v2534_v48  ;;  %v1595_v48 = vadd.f32 %v7807_v22, %v7665_v15 }
 0xd32   : > { %6573 = vtanh.f32 %v7832_v28 }
 0xd37   : > { %v6568_v39 = vpop.eup %6567 }
 0xd38   : > { %2510 = vrot.lane.b32.xlu0 %v6568_v39, %s7046_s18 }
 0xd3b   : > { %v6570_v44 = vpop.eup %6569 }
 0xd3c   : > { %v6572_v51 = vpop.eup %6571  ;;  %2559 = vrot.lane.b32.xlu0 %v6570_v44, %s7046_s18 }
 0xd3d   : > { %2512 = vrot.lane.b32.xlu1 %v6572_v51, %s7046_s18 }
 0xd3f   : > { %v6574_v25 = vpop.eup %6573 }
 0xd41   : > { %2561 = vrot.lane.b32.xlu1 %v6574_v25, %s7046_s18 }
 0xdaa   : > { %v2511_v18 = vpop.permute.xlu0 %2510 }
 0xdab   : > { %v2516_v40 = vmul.f32 %v2511_v18, %v2480_v20  ;;  %v1598_v18 = vadd.f32 %v7807_v22, %v7669_v19 }
 0xdad   : > { %2569 = vrot.lane.b32.xlu0 %v2516_v40, %s7047_s19 }
 0xdae   : > { %v2560_v33 = vpop.permute.xlu0 %2559 }
 0xdaf   : > { %v2565_v62 = vmul.f32 %v2560_v33, %v2529_v55  ;;  %v2513_v31 = vpop.permute.xlu1 %2512 }
 0xdb0   : > { %v2517_v21 = vmul.f32 %v2513_v31, %v2481_v38 }
 0xdb1   : > { %2577 = vrot.lane.b32.xlu0 %v2565_v62, %s7046_s18 }
 0xdb2   : > { %2571 = vrot.lane.b32.xlu1 %v2517_v21, %s7047_s19 }
 0xdb3   : > { %v2562_v41 = vpop.permute.xlu1 %2561 }
 0xdb4   : > { %v2566_v45 = vmul.f32 %v2562_v41, %v2530_v56 }
 0xdb6   : > { %2579 = vrot.lane.b32.xlu1 %v2566_v45, %s7046_s18 }
 0xe1f   : > { %v2570_v46 = vpop.permute.xlu0 %2569 }
 0xe23   : > { %v2578_v12 = vpop.permute.xlu0 %2577 }
 0xe24   : > { %v2583_v13 = vsel %vm1199_vm0, %v2570_v46, %v2578_v12  ;;  %v2572_v35 = vpop.permute.xlu1 %2571 }
 0xe25   : > { %2586 = vst.msk [vmem:[#allocation2 + $0x40] sm:$0xff] %vm1761_vm1, %v2583_v13 }
 0xe28   : > { %v2580_v20 = vpop.permute.xlu1 %2579 }
 0xe29   : > { %v2584_v55 = vsel %vm1199_vm0, %v2572_v35, %v2580_v20 }
 0xe2a   : > { %2587 = vst.msk [vmem:[#allocation2 + $0x48] sm:$0xff] %vm1761_vm1, %v2584_v55  ;;  %v2588_v38 = vpack.c.bf16 %v2584_v55, %v2583_v13 }
 0xe2c   : > { %6205 = vmatmul.mubr.msk.bf16.vlgmr.msra.gmra.mxu1 %vm1761_vm1, %v2588_v38 }
 0xe2d   : > { %2933 = vmatpush1.bf16.msra.mxu1 %v7759_v30  ;;  %2956 = vmatprep.mubr.bf16.mxu1 %v7045_v16 }
 0xe2e   : > { %2934 = vmatprep.subr.bf16.mxu1 %v7766_v36 }
 0xe31   : > { %2935 = vmatpush1.bf16.msra.mxu1 %v7772_v32 }
 0xe32   : > { %2936 = vmatprep.subr.bf16.mxu1 %v7778_v2 }
 0xe35   : > { %2937 = vmatpush1.bf16.msra.mxu1 %v7784_v42 }
 0xe36   : > { %2938 = vmatprep.subr.bf16.mxu1 %v7790_v29 }
 0xe39   : > { %2939 = vmatpush1.bf16.msra.mxu1 %v7796_v59 }
 0xe3a   : > { %3205 = vmatprep.subr.bf16.mxu1 %v7662_v37 }
 0xeec   : > { %v2626_v56 = vpop.f32.mrf.mxu1 }
 0xeed   : > { %v2638_v23 = vadd.f32 %v2626_v56, %v7436_v49 }
 0xeee   : > { %v2628_v39 = vpop.f32.mrf.mxu1 }
 0xeef   : > { %6575 = vtanh.f32 %v2638_v23  ;;  %v2687_v44 = vadd.f32 %v2628_v39, %v1595_v48 }
 0xef0   : > { %v2630_v51 = vpop.f32.mrf.mxu1 }
 0xef1   : > { %v2639_v25 = vadd.f32 %v2630_v51, %v7440_v53  ;;  %6577 = vtanh.f32 %v2687_v44  ;;  %v2640_v53 = vmul.f32 0.5, %v2638_v23  ;;  %v2689_v19 = vmul.f32 0.5, %v2687_v44 }
 0xef2   : > { %v2632_v40 = vpop.f32.mrf.mxu1 }
 0xef3   : > { %6579 = vtanh.f32 %v2639_v25  ;;  %v2688_v33 = vadd.f32 %v2632_v40, %v1598_v18  ;;  %v2641_v21 = vmul.f32 0.5, %v2639_v25 }
 0xef5   : > { %6581 = vtanh.f32 %v2688_v33  ;;  %v2690_v41 = vmul.f32 0.5, %v2688_v33 }
 0xef6   : > { %6583 = vtanh.f32 %v2640_v53 }
 0xef7   : > { %6585 = vtanh.f32 %v2689_v19 }
 0xef8   : > { %6587 = vtanh.f32 %v2641_v21 }
 0xef9   : > { %6589 = vtanh.f32 %v2690_v41 }
 0xefc   : > { %v6576_v62 = vpop.eup %6575 }
 0xefd   : > { %2654 = vrot.lane.b32.xlu0 %v6576_v62, %s7046_s18 }
 0xefe   : > { %v6578_v15 = vpop.eup %6577 }
 0xf00   : > { %v6580_v31 = vpop.eup %6579 }
 0xf01   : > { %2703 = vrot.lane.b32.xlu0 %v6578_v15, %s7046_s18  ;;  %2656 = vrot.lane.b32.xlu1 %v6580_v31, %s7046_s18 }
 0xf02   : > { %v6582_v49 = vpop.eup %6581 }
 0xf03   : > { %v6584_v45 = vpop.eup %6583 }
 0xf04   : > { %v2644_v46 = vmul.f32 0.5, %v6584_v45  ;;  %v6586_v12 = vpop.eup %6585 }
 0xf05   : > { %2705 = vrot.lane.b32.xlu1 %v6582_v49, %s7046_s18  ;;  %v6588_v13 = vpop.eup %6587  ;;  %v2693_v35 = vmul.f32 0.5, %v6586_v12 }
 0xf06   : > { %v2646_v20 = vadd.f32 0.5, %v2644_v46  ;;  %v2645_v55 = vmul.f32 0.5, %v6588_v13  ;;  %v6590_v56 = vpop.eup %6589 }
 0xf07   : > { %v2695_v23 = vadd.f32 0.5, %v2693_v35  ;;  %v2694_v39 = vmul.f32 0.5, %v6590_v56 }
 0xf08   : > { %v2647_v51 = vadd.f32 0.5, %v2645_v55  ;;  %v2650_v31 = vmul.f32 %v2646_v20, %v7820_v34 }
 0xf09   : > { %v2696_v33 = vadd.f32 0.5, %v2694_v39  ;;  %v2699_v19 = vmul.f32 %v2695_v23, %v7825_v1 }
 0xf0a   : > { %v2651_v41 = vmul.f32 %v2647_v51, %v7827_v6 }
 0xf0b   : > { %v2700_v34 = vmul.f32 %v2696_v33, %v7832_v28 }
 0xf6f   : > { %v2655_v38 = vpop.permute.xlu0 %2654 }
 0xf70   : > { %v2660_v48 = vmul.f32 %v2655_v38, %v2646_v20 }
 0xf72   : > { %2664 = vrot.lane.b32.xlu0 %v2660_v48, %s7047_s19 }
 0xf73   : > { %v2704_v44 = vpop.permute.xlu0 %2703  ;;  %v2657_v18 = vpop.permute.xlu1 %2656 }
 0xf74   : > { %v2709_v25 = vmul.f32 %v2704_v44, %v2695_v23  ;;  %v2661_v40 = vmul.f32 %v2657_v18, %v2647_v51 }
 0xf76   : > { %2713 = vrot.lane.b32.xlu0 %v2709_v25, %s7047_s19  ;;  %2666 = vrot.lane.b32.xlu1 %v2661_v40, %s7047_s19 }
 0xf77   : > { %v2706_v62 = vpop.permute.xlu1 %2705 }
 0xf78   : > { %v2710_v15 = vmul.f32 %v2706_v62, %v2696_v33 }
 0xf7a   : > { %2715 = vrot.lane.b32.xlu1 %v2710_v15, %s7047_s19 }
 0xfe4   : > { %v2665_v49 = vpop.permute.xlu0 %2664 }
 0xfe5   : > { %v7872_v53 = vadd.f32 %v2665_v49, %v2650_v31 }
 0xfe7   : > { %6591 = vtanh.f32 %v7872_v53 }
 0xfe8   : > { %v2714_v21 = vpop.permute.xlu0 %2713  ;;  %v2667_v46 = vpop.permute.xlu1 %2666 }
 0xfe9   : > { %v7877_v45 = vadd.f32 %v2714_v21, %v2699_v19  ;;  %v7879_v12 = vadd.f32 %v2667_v46, %v2651_v41  ;;  %v1603_v19 = vadd.f32 %v7807_v22, %v7675_v26 }
 0xfeb   : > { %6593 = vtanh.f32 %v7877_v45 }
 0xfec   : > { %6595 = vtanh.f32 %v7879_v12  ;;  %v2716_v13 = vpop.permute.xlu1 %2715 }
 0xfed   : > { %v7884_v35 = vadd.f32 %v2716_v13, %v2700_v34 }
 0xfef   : > { %6597 = vtanh.f32 %v7884_v35 }
 0xff4   : > { %v6592_v1 = vpop.eup %6591 }
 0xff5   : > { %2676 = vrot.lane.b32.xlu0 %v6592_v1, %s7046_s18  ;;  %v1606_v1 = vadd.f32 %v7807_v22, %v7679_v50 }
 0xff8   : > { %v6594_v6 = vpop.eup %6593 }
 0xff9   : > { %v6596_v55 = vpop.eup %6595  ;;  %2725 = vrot.lane.b32.xlu0 %v6594_v6, %s7046_s18 }
 0xffa   : > { %2678 = vrot.lane.b32.xlu1 %v6596_v55, %s7046_s18 }
 0xffc   : > { %v6598_v38 = vpop.eup %6597 }
 0xffe   : > { %2727 = vrot.lane.b32.xlu1 %v6598_v38, %s7046_s18 }
0x1067   : > { %v2677_v56 = vpop.permute.xlu0 %2676 }
0x1068   : > { %v2682_v48 = vmul.f32 %v2677_v56, %v2646_v20 }
0x106a   : > { %2735 = vrot.lane.b32.xlu0 %v2682_v48, %s7047_s19 }
0x106b   : > { %v2726_v28 = vpop.permute.xlu0 %2725 }
0x106c   : > { %v2731_v39 = vmul.f32 %v2726_v28, %v2695_v23  ;;  %v2679_v44 = vpop.permute.xlu1 %2678 }
0x106d   : > { %v2683_v25 = vmul.f32 %v2679_v44, %v2647_v51 }
0x106e   : > { %2743 = vrot.lane.b32.xlu0 %v2731_v39, %s7046_s18 }
0x106f   : > { %2737 = vrot.lane.b32.xlu1 %v2683_v25, %s7047_s19 }
0x1070   : > { %v2728_v18 = vpop.permute.xlu1 %2727 }
0x1071   : > { %v2732_v40 = vmul.f32 %v2728_v18, %v2696_v33 }
0x1073   : > { %2745 = vrot.lane.b32.xlu1 %v2732_v40, %s7046_s18 }
0x10dc   : > { %v2736_v62 = vpop.permute.xlu0 %2735 }
0x10e0   : > { %v2744_v15 = vpop.permute.xlu0 %2743 }
0x10e1   : > { %v2749_v31 = vsel %vm1199_vm0, %v2736_v62, %v2744_v15  ;;  %v2738_v49 = vpop.permute.xlu1 %2737 }
0x10e2   : > { %2752 = vst.msk [vmem:[#allocation2 + $0x50] sm:$0xff] %vm1761_vm1, %v2749_v31 }
0x10e5   : > { %v2746_v20 = vpop.permute.xlu1 %2745 }
0x10e6   : > { %v2750_v23 = vsel %vm1199_vm0, %v2738_v49, %v2746_v20 }
0x10e7   : > { %2753 = vst.msk [vmem:[#allocation2 + $0x58] sm:$0xff] %vm1761_vm1, %v2750_v23  ;;  %v2754_v51 = vpack.c.bf16 %v2750_v23, %v2749_v31 }
0x10e9   : > { %6206 = vmatmul.mubr.msk.bf16.vlgmr.msra.gmra.mxu0 %vm1761_vm1, %v2754_v51 }
0x10ea   : > { %3099 = vmatpush1.bf16.msra.mxu0 %v7759_v30  ;;  %3122 = vmatprep.mubr.bf16.mxu0 %v7045_v16 }
0x10eb   : > { %3100 = vmatprep.subr.bf16.mxu0 %v7766_v36 }
0x10ee   : > { %3101 = vmatpush1.bf16.msra.mxu0 %v7772_v32 }
0x10ef   : > { %3102 = vmatprep.subr.bf16.mxu0 %v7778_v2 }
0x10f2   : > { %3103 = vmatpush1.bf16.msra.mxu0 %v7784_v42 }
0x10f3   : > { %3104 = vmatprep.subr.bf16.mxu0 %v7790_v29 }
0x10f6   : > { %3105 = vmatpush1.bf16.msra.mxu0 %v7796_v59 }
0x10f7   : > { %3312 = vmatprep.subr.bf16.mxu0 %v7662_v37 }
0x11a9   : > { %v2792_v33 = vpop.f32.mrf.mxu0 }
0x11aa   : > { %v2804_v21 = vadd.f32 %v2792_v33, %v7448_v61 }
0x11ab   : > { %v2794_v41 = vpop.f32.mrf.mxu0 }
0x11ac   : > { %6599 = vtanh.f32 %v2804_v21  ;;  %v2853_v46 = vadd.f32 %v2794_v41, %v1603_v19 }
0x11ad   : > { %v2796_v34 = vpop.f32.mrf.mxu0 }
0x11ae   : > { %v2805_v13 = vadd.f32 %v2796_v34, %v7460_v5  ;;  %6601 = vtanh.f32 %v2853_v46  ;;  %v2806_v5 = vmul.f32 0.5, %v2804_v21  ;;  %v2855_v50 = vmul.f32 0.5, %v2853_v46 }
0x11af   : > { %v2798_v6 = vpop.f32.mrf.mxu0 }
0x11b0   : > { %6603 = vtanh.f32 %v2805_v13  ;;  %v2854_v55 = vadd.f32 %v2798_v6, %v1606_v1  ;;  %v2807_v48 = vmul.f32 0.5, %v2805_v13 }
0x11b2   : > { %6605 = vtanh.f32 %v2854_v55  ;;  %v2856_v28 = vmul.f32 0.5, %v2854_v55 }
0x11b3   : > { %6607 = vtanh.f32 %v2806_v5 }
0x11b4   : > { %6609 = vtanh.f32 %v2855_v50 }
0x11b5   : > { %6611 = vtanh.f32 %v2807_v48 }
0x11b6   : > { %6613 = vtanh.f32 %v2856_v28 }
0x11b9   : > { %v6600_v38 = vpop.eup %6599 }
0x11ba   : > { %2820 = vrot.lane.b32.xlu0 %v6600_v38, %s7046_s18 }
0x11bb   : > { %v6602_v26 = vpop.eup %6601 }
0x11bd   : > { %v6604_v56 = vpop.eup %6603 }
0x11be   : > { %2869 = vrot.lane.b32.xlu0 %v6602_v26, %s7046_s18  ;;  %2822 = vrot.lane.b32.xlu1 %v6604_v56, %s7046_s18 }
0x11bf   : > { %v6606_v61 = vpop.eup %6605 }
0x11c0   : > { %v6608_v39 = vpop.eup %6607 }
0x11c1   : > { %v2810_v44 = vmul.f32 0.5, %v6608_v39  ;;  %v6610_v25 = vpop.eup %6609 }
0x11c2   : > { %2871 = vrot.lane.b32.xlu1 %v6606_v61, %s7046_s18  ;;  %v6612_v18 = vpop.eup %6611  ;;  %v2859_v40 = vmul.f32 0.5, %v6610_v25 }
0x11c3   : > { %v2812_v62 = vadd.f32 0.5, %v2810_v44  ;;  %v2811_v15 = vmul.f32 0.5, %v6612_v18  ;;  %v6614_v49 = vpop.eup %6613 }
0x11c4   : > { %v2861_v23 = vadd.f32 0.5, %v2859_v40  ;;  %v2860_v51 = vmul.f32 0.5, %v6614_v49 }
0x11c5   : > { %v2813_v19 = vadd.f32 0.5, %v2811_v15  ;;  %v2816_v6 = vmul.f32 %v2812_v62, %v7872_v53 }
0x11c6   : > { %v2862_v34 = vadd.f32 0.5, %v2860_v51  ;;  %v2865_v26 = vmul.f32 %v2861_v23, %v7877_v45 }
0x11c7   : > { %v2817_v61 = vmul.f32 %v2813_v19, %v7879_v12 }
0x11c8   : > { %v2866_v53 = vmul.f32 %v2862_v34, %v7884_v35 }
0x122c   : > { %v2821_v31 = vpop.permute.xlu0 %2820 }
0x122d   : > { %v2826_v20 = vmul.f32 %v2821_v31, %v2812_v62 }
0x122f   : > { %2830 = vrot.lane.b32.xlu0 %v2826_v20, %s7047_s19 }
0x1230   : > { %v2870_v33 = vpop.permute.xlu0 %2869  ;;  %v2823_v41 = vpop.permute.xlu1 %2822 }
0x1231   : > { %v2875_v21 = vmul.f32 %v2870_v33, %v2861_v23  ;;  %v2827_v46 = vmul.f32 %v2823_v41, %v2813_v19 }
0x1233   : > { %2879 = vrot.lane.b32.xlu0 %v2875_v21, %s7047_s19  ;;  %2832 = vrot.lane.b32.xlu1 %v2827_v46, %s7047_s19 }
0x1234   : > { %v2872_v13 = vpop.permute.xlu1 %2871 }
0x1235   : > { %v2876_v1 = vmul.f32 %v2872_v13, %v2862_v34  ;;  %v1611_v13 = vadd.f32 %v7807_v22, %v7673_v24 }
0x1237   : > { %2881 = vrot.lane.b32.xlu1 %v2876_v1, %s7047_s19 }
0x12a1   : > { %v2831_v55 = vpop.permute.xlu0 %2830 }
0x12a2   : > { %v7924_v38 = vadd.f32 %v2831_v55, %v2816_v6 }
0x12a4   : > { %6615 = vtanh.f32 %v7924_v38 }
0x12a5   : > { %v2880_v56 = vpop.permute.xlu0 %2879  ;;  %v2833_v50 = vpop.permute.xlu1 %2832 }
0x12a6   : > { %v7929_v5 = vadd.f32 %v2880_v56, %v2865_v26  ;;  %v7931_v48 = vadd.f32 %v2833_v50, %v2817_v61  ;;  %v1614_v61 = vadd.f32 %v7807_v22, %v7677_v27 }
0x12a8   : > { %6617 = vtanh.f32 %v7929_v5 }
0x12a9   : > { %6619 = vtanh.f32 %v7931_v48  ;;  %v2882_v28 = vpop.permute.xlu1 %2881 }
0x12aa   : > { %v7936_v39 = vadd.f32 %v2882_v28, %v2866_v53 }
0x12ac   : > { %6621 = vtanh.f32 %v7936_v39 }
0x12b1   : > { %v6616_v45 = vpop.eup %6615 }
0x12b2   : > { %2842 = vrot.lane.b32.xlu0 %v6616_v45, %s7046_s18 }
0x12b5   : > { %v6618_v12 = vpop.eup %6617 }
0x12b6   : > { %v6620_v44 = vpop.eup %6619  ;;  %2891 = vrot.lane.b32.xlu0 %v6618_v12, %s7046_s18 }
0x12b7   : > { %2844 = vrot.lane.b32.xlu1 %v6620_v44, %s7046_s18 }
0x12b9   : > { %v6622_v25 = vpop.eup %6621 }
0x12bb   : > { %2893 = vrot.lane.b32.xlu1 %v6622_v25, %s7046_s18 }
0x1324   : > { %v2843_v18 = vpop.permute.xlu0 %2842 }
0x1325   : > { %v2848_v40 = vmul.f32 %v2843_v18, %v2812_v62 }
0x1327   : > { %2901 = vrot.lane.b32.xlu0 %v2848_v40, %s7047_s19 }
0x1328   : > { %v2892_v35 = vpop.permute.xlu0 %2891 }
0x1329   : > { %v2897_v15 = vmul.f32 %v2892_v35, %v2861_v23  ;;  %v2845_v31 = vpop.permute.xlu1 %2844 }
0x132a   : > { %v2849_v49 = vmul.f32 %v2845_v31, %v2813_v19 }
0x132b   : > { %2909 = vrot.lane.b32.xlu0 %v2897_v15, %s7046_s18 }
0x132c   : > { %2903 = vrot.lane.b32.xlu1 %v2849_v49, %s7047_s19 }
0x132d   : > { %v2894_v20 = vpop.permute.xlu1 %2893 }
0x132e   : > { %v2898_v51 = vmul.f32 %v2894_v20, %v2862_v34 }
0x1330   : > { %2911 = vrot.lane.b32.xlu1 %v2898_v51, %s7046_s18 }
0x1399   : > { %v2902_v33 = vpop.permute.xlu0 %2901 }
0x139d   : > { %v2910_v21 = vpop.permute.xlu0 %2909 }
0x139e   : > { %v2915_v41 = vsel %vm1199_vm0, %v2902_v33, %v2910_v21  ;;  %v2904_v46 = vpop.permute.xlu1 %2903 }
0x139f   : > { %2918 = vst.msk [vmem:[#allocation2 + $0x60] sm:$0xff] %vm1761_vm1, %v2915_v41 }
0x13a2   : > { %v2912_v62 = vpop.permute.xlu1 %2911 }
0x13a3   : > { %v2916_v23 = vsel %vm1199_vm0, %v2904_v46, %v2912_v62 }
0x13a4   : > { %2919 = vst.msk [vmem:[#allocation2 + $0x68] sm:$0xff] %vm1761_vm1, %v2916_v23  ;;  %v2920_v19 = vpack.c.bf16 %v2916_v23, %v2915_v41 }
0x13a6   : > { %6207 = vmatmul.mubr.msk.bf16.vlgmr.msra.gmra.mxu1 %vm1761_vm1, %v2920_v19 }
0x13a7   : > { %3206 = vmatpush1.bf16.msra.mxu1 %v7759_v30  ;;  %3229 = vmatprep.mubr.bf16.mxu1 %v7045_v16 }
0x13a8   : > { %3207 = vmatprep.subr.bf16.mxu1 %v7766_v36 }
0x13ab   : > { %3208 = vmatpush1.bf16.msra.mxu1 %v7772_v32 }
0x13ac   : > { %3209 = vmatprep.subr.bf16.mxu1 %v7778_v2 }
0x13af   : > { %3210 = vmatpush1.bf16.msra.mxu1 %v7784_v42 }
0x13b0   : > { %3211 = vmatprep.subr.bf16.mxu1 %v7790_v29 }
0x13b3   : > { %3212 = vmatpush1.bf16.msra.mxu1 %v7796_v59 }
0x13b4   : > { %3419 = vmatprep.subr.bf16.mxu1 %v7662_v37 }
0x1466   : > { %v2958_v34 = vpop.f32.mrf.mxu1 }
0x1467   : > { %v2970_v1 = vadd.f32 %v2958_v34, %v7446_v58 }
0x1468   : > { %v2960_v6 = vpop.f32.mrf.mxu1 }
0x1469   : > { %6623 = vtanh.f32 %v2970_v1  ;;  %v3019_v55 = vadd.f32 %v2960_v6, %v1611_v13 }
0x146a   : > { %v2962_v26 = vpop.f32.mrf.mxu1 }
0x146b   : > { %v2971_v56 = vadd.f32 %v2962_v26, %v7455_v0  ;;  %6625 = vtanh.f32 %v3019_v55  ;;  %v2972_v0 = vmul.f32 0.5, %v2970_v1  ;;  %v3021_v27 = vmul.f32 0.5, %v3019_v55 }
0x146c   : > { %v2964_v50 = vpop.f32.mrf.mxu1 }
0x146d   : > { %6627 = vtanh.f32 %v2971_v56  ;;  %v3020_v53 = vadd.f32 %v2964_v50, %v1614_v61  ;;  %v2973_v45 = vmul.f32 0.5, %v2971_v56 }
0x146f   : > { %6629 = vtanh.f32 %v3020_v53  ;;  %v3022_v12 = vmul.f32 0.5, %v3020_v53 }
0x1470   : > { %6631 = vtanh.f32 %v2972_v0 }
0x1471   : > { %6633 = vtanh.f32 %v3021_v27 }
0x1472   : > { %6635 = vtanh.f32 %v2973_v45 }
0x1473   : > { %6637 = vtanh.f32 %v3022_v12 }
0x1476   : > { %v6624_v37 = vpop.eup %6623 }
0x1477   : > { %2986 = vrot.lane.b32.xlu0 %v6624_v37, %s7046_s18 }
0x1478   : > { %v6626_v24 = vpop.eup %6625 }
0x147a   : > { %v6628_v28 = vpop.eup %6627 }
0x147b   : > { %3035 = vrot.lane.b32.xlu0 %v6626_v24, %s7046_s18  ;;  %2988 = vrot.lane.b32.xlu1 %v6628_v28, %s7046_s18 }
0x147c   : > { %v6630_v58 = vpop.eup %6629 }
0x147d   : > { %v6632_v44 = vpop.eup %6631 }
0x147e   : > { %v2976_v25 = vmul.f32 0.5, %v6632_v44  ;;  %v6634_v18 = vpop.eup %6633 }
0x147f   : > { %3037 = vrot.lane.b32.xlu1 %v6630_v58, %s7046_s18  ;;  %v6636_v40 = vpop.eup %6635  ;;  %v3025_v35 = vmul.f32 0.5, %v6634_v18 }
0x1480   : > { %v2978_v15 = vadd.f32 0.5, %v2976_v25  ;;  %v2977_v31 = vmul.f32 0.5, %v6636_v40  ;;  %v6638_v20 = vpop.eup %6637 }
0x1481   : > { %v3027_v33 = vadd.f32 0.5, %v3025_v35  ;;  %v3026_v21 = vmul.f32 0.5, %v6638_v20 }
0x1482   : > { %v2979_v46 = vadd.f32 0.5, %v2977_v31  ;;  %v2982_v6 = vmul.f32 %v2978_v15, %v7924_v38 }
0x1483   : > { %v3028_v34 = vadd.f32 0.5, %v3026_v21  ;;  %v3031_v56 = vmul.f32 %v3027_v33, %v7929_v5 }
0x1484   : > { %v2983_v50 = vmul.f32 %v2979_v46, %v7931_v48 }
0x1485   : > { %v3032_v28 = vmul.f32 %v3028_v34, %v7936_v39 }
0x14e9   : > { %v2987_v49 = vpop.permute.xlu0 %2986 }
0x14ea   : > { %v2992_v51 = vmul.f32 %v2987_v49, %v2978_v15 }
0x14ec   : > { %2996 = vrot.lane.b32.xlu0 %v2992_v51, %s7047_s19 }
0x14ed   : > { %v3036_v41 = vpop.permute.xlu0 %3035  ;;  %v2989_v23 = vpop.permute.xlu1 %2988 }
0x14ee   : > { %v3041_v62 = vmul.f32 %v3036_v41, %v3027_v33  ;;  %v2993_v19 = vmul.f32 %v2989_v23, %v2979_v46  ;;  %v8017_v41 = vld [vmem:[%s9653_s8 + $0x34] ss:$8 sps:$4 sm:$0xff]  }
0x14f0   : > { %3045 = vrot.lane.b32.xlu0 %v3041_v62, %s7047_s19  ;;  %2998 = vrot.lane.b32.xlu1 %v2993_v19, %s7047_s19  ;;  %v1619_v62 = vadd.f32 %v7807_v22, %v7683_v54 }
0x14f1   : > { %v3038_v13 = vpop.permute.xlu1 %3037 }
0x14f2   : > { %v3042_v1 = vmul.f32 %v3038_v13, %v3028_v34  ;;  %v1622_v13 = vadd.f32 %v7807_v22, %v7687_v60 }
0x14f4   : > { %3047 = vrot.lane.b32.xlu1 %v3042_v1, %s7047_s19 }
0x155e   : > { %v2997_v55 = vpop.permute.xlu0 %2996 }
0x155f   : > { %v3002_v26 = vadd.f32 %v2997_v55, %v2982_v6 }
0x1561   : > { %6639 = vtanh.f32 %v3002_v26 }
0x1562   : > { %v3046_v61 = vpop.permute.xlu0 %3045  ;;  %v2999_v37 = vpop.permute.xlu1 %2998 }
0x1563   : > { %v7978_v53 = vadd.f32 %v3046_v61, %v3031_v56  ;;  %v3003_v24 = vadd.f32 %v2999_v37, %v2983_v50 }
0x1565   : > { %6641 = vtanh.f32 %v7978_v53 }
0x1566   : > { %6643 = vtanh.f32 %v3003_v24  ;;  %v3048_v58 = vpop.permute.xlu1 %3047 }
0x1567   : > { %v7982_v0 = vadd.f32 %v3048_v58, %v3032_v28 }
0x1569   : > { %6645 = vtanh.f32 %v7982_v0 }
0x156e   : > { %v6640_v38 = vpop.eup %6639 }
0x156f   : > { %3008 = vrot.lane.b32.xlu0 %v6640_v38, %s7046_s18 }
0x1572   : > { %v6642_v5 = vpop.eup %6641 }
0x1573   : > { %v6644_v27 = vpop.eup %6643  ;;  %3057 = vrot.lane.b32.xlu0 %v6642_v5, %s7046_s18 }
0x1574   : > { %3010 = vrot.lane.b32.xlu1 %v6644_v27, %s7046_s18 }
0x1576   : > { %v6646_v48 = vpop.eup %6645 }
0x1578   : > { %3059 = vrot.lane.b32.xlu1 %v6646_v48, %s7046_s18 }
0x15e1   : > { %v3009_v45 = vpop.permute.xlu0 %3008 }
0x15e2   : > { %v3014_v12 = vmul.f32 %v3009_v45, %v2978_v15 }
0x15e4   : > { %3067 = vrot.lane.b32.xlu0 %v3014_v12, %s7047_s19 }
0x15e5   : > { %v3058_v39 = vpop.permute.xlu0 %3057 }
0x15e6   : > { %v3063_v44 = vmul.f32 %v3058_v39, %v3027_v33  ;;  %v3011_v25 = vpop.permute.xlu1 %3010 }
0x15e7   : > { %v3015_v18 = vmul.f32 %v3011_v25, %v2979_v46 }
0x15e8   : > { %3075 = vrot.lane.b32.xlu0 %v3063_v44, %s7046_s18 }
0x15e9   : > { %3069 = vrot.lane.b32.xlu1 %v3015_v18, %s7047_s19 }
0x15ea   : > { %v3060_v40 = vpop.permute.xlu1 %3059 }
0x15eb   : > { %v3064_v35 = vmul.f32 %v3060_v40, %v3028_v34 }
0x15ed   : > { %3077 = vrot.lane.b32.xlu1 %v3064_v35, %s7046_s18 }
0x1656   : > { %v3068_v31 = vpop.permute.xlu0 %3067 }
0x165a   : > { %v3076_v49 = vpop.permute.xlu0 %3075 }
0x165b   : > { %v7994_v20 = vsel %vm1199_vm0, %v3068_v31, %v3076_v49  ;;  %v3070_v15 = vpop.permute.xlu1 %3069 }
0x165c   : > { %3084 = vst.msk [vmem:[#allocation2 + $0x70] sm:$0xff] %vm1761_vm1, %v7994_v20 }
0x165f   : > { %v3078_v51 = vpop.permute.xlu1 %3077 }
0x1660   : > { %v7999_v33 = vsel %vm1199_vm0, %v3070_v15, %v3078_v51 }
0x1661   : > { %3085 = vst.msk [vmem:[#allocation2 + $0x78] sm:$0xff] %vm1761_vm1, %v7999_v33  ;;  %v3086_v21 = vpack.c.bf16 %v7999_v33, %v7994_v20 }
0x1663   : > { %6208 = vmatmul.mubr.msk.bf16.vlgmr.msra.gmra.mxu0 %vm1761_vm1, %v3086_v21 }
0x1664   : > { %3313 = vmatpush1.bf16.msra.mxu0 %v7759_v30  ;;  %3336 = vmatprep.mubr.bf16.mxu0 %v7045_v16 }
0x1665   : > { %3314 = vmatprep.subr.bf16.mxu0 %v7766_v36 }
0x1668   : > { %3315 = vmatpush1.bf16.msra.mxu0 %v7772_v32 }
0x1669   : > { %3316 = vmatprep.subr.bf16.mxu0 %v7778_v2 }
0x166c   : > { %3317 = vmatpush1.bf16.msra.mxu0 %v7784_v42 }
0x166d   : > { %3318 = vmatprep.subr.bf16.mxu0 %v7790_v29 }
0x1670   : > { %3319 = vmatpush1.bf16.msra.mxu0 %v7796_v59 }
0x1671   : > { %3526 = vmatprep.subr.bf16.mxu0 %v8017_v41 }
0x1723   : > { %v3124_v46 = vpop.f32.mrf.mxu0 }
0x1725   : > { %v3125_v23 = vpop.f32.mrf.mxu0 }
0x1726   : > { %v3134_v19 = vadd.f32 %v3125_v23, %v1619_v62 }
0x1727   : > { %v3127_v34 = vpop.f32.mrf.mxu0 }
0x1728   : > { %6647 = vtanh.f32 %v3134_v19  ;;  %v3136_v56 = vmul.f32 0.5, %v3134_v19 }
0x1729   : > { %v3128_v1 = vpop.f32.mrf.mxu0 }
0x172a   : > { %v3135_v6 = vadd.f32 %v3128_v1, %v1622_v13 }
0x172c   : > { %6649 = vtanh.f32 %v3135_v6  ;;  %v3137_v61 = vmul.f32 0.5, %v3135_v6 }
0x172d   : > { %6651 = vtanh.f32 %v3136_v56 }
0x172e   : > { %6653 = vtanh.f32 %v3137_v61 }
0x1735   : > { %v6648_v55 = vpop.eup %6647 }
0x1736   : > { %3150 = vrot.lane.b32.xlu0 %v6648_v55, %s7046_s18 }
0x1739   : > { %v6650_v26 = vpop.eup %6649 }
0x173a   : > { %3152 = vrot.lane.b32.xlu1 %v6650_v26, %s7046_s18  ;;  %v6652_v54 = vpop.eup %6651 }
0x173b   : > { %v3140_v50 = vmul.f32 0.5, %v6652_v54  ;;  %v6654_v37 = vpop.eup %6653 }
0x173c   : > { %v3141_v24 = vmul.f32 0.5, %v6654_v37 }
0x173d   : > { %v3142_v28 = vadd.f32 0.5, %v3140_v50 }
0x173e   : > { %v3143_v38 = vadd.f32 0.5, %v3141_v24 }
0x173f   : > { %v3146_v48 = vmul.f32 %v3142_v28, %v7978_v53 }
0x1740   : > { %v3147_v39 = vmul.f32 %v3143_v38, %v7982_v0 }
0x17a8   : > { %v3151_v60 = vpop.permute.xlu0 %3150 }
0x17a9   : > { %v3156_v58 = vmul.f32 %v3151_v60, %v3142_v28 }
0x17ab   : > { %3160 = vrot.lane.b32.xlu0 %v3156_v58, %s7047_s19 }
0x17ac   : > { %v3153_v5 = vpop.permute.xlu1 %3152 }
0x17ad   : > { %v3157_v27 = vmul.f32 %v3153_v5, %v3143_v38 }
0x17af   : > { %3162 = vrot.lane.b32.xlu1 %v3157_v27, %s7047_s19 }
0x181d   : > { %v3161_v45 = vpop.permute.xlu0 %3160 }
0x181e   : > { %v8029_v12 = vadd.f32 %v3161_v45, %v3146_v48 }
0x1820   : > { %6655 = vtanh.f32 %v8029_v12 }
0x1821   : > { %v3163_v44 = vpop.permute.xlu1 %3162 }
0x1822   : > { %v8033_v25 = vadd.f32 %v3163_v44, %v3147_v39 }
0x1824   : > { %6657 = vtanh.f32 %v8033_v25 }
0x182d   : > { %v6656_v18 = vpop.eup %6655 }
0x182e   : > { %3172 = vrot.lane.b32.xlu0 %v6656_v18, %s7046_s18  ;;  %v8102_v18 = vld [vmem:[%s9653_s8 + $0x30] ss:$8 sps:$4 sm:$0xff]  }
0x1831   : > { %v6658_v40 = vpop.eup %6657 }
0x1832   : > { %3174 = vrot.lane.b32.xlu1 %v6658_v40, %s7046_s18  ;;  %v8109_v40 = vld [vmem:[%s9653_s8 + $0x24] ss:$8 sps:$4 sm:$0xff]  }
0x18a0   : > { %v3173_v35 = vpop.permute.xlu0 %3172 }
0x18a1   : > { %v3178_v53 = vmul.f32 %v3173_v35, %v3142_v28  ;;  %v8115_v35 = vld [vmem:[%s9653_s8 + $0x20] ss:$8 sps:$4 sm:$0xff]  }
0x18a3   : > { %3182 = vrot.lane.b32.xlu0 %v3178_v53, %s7046_s18  ;;  %v8121_v53 = vld [vmem:[%s9653_s8 + $0x14] ss:$8 sps:$4 sm:$0xff]  }
0x18a4   : > { %v3175_v31 = vpop.permute.xlu1 %3174 }
0x18a5   : > { %v3179_v49 = vmul.f32 %v3175_v31, %v3143_v38  ;;  %v8127_v31 = vld [vmem:[%s9653_s8 + $0x10] ss:$8 sps:$4 sm:$0xff]  }
0x18a7   : > { %3184 = vrot.lane.b32.xlu1 %v3179_v49, %s7046_s18  ;;  %v8133_v49 = vld [vmem:[%s9653_s8 + $0x4] ss:$8 sps:$4 sm:$0xff]  }
0x1915   : > { %v3183_v0 = vpop.permute.xlu0 %3182 }
0x1916   : > { %v8042_v15 = vsel %vm1199_vm0, %v7994_v20, %v3183_v0  ;;  %v8139_v0 = vld [vmem:[%s9653_s8] ss:$8 sps:$4 sm:$0xff]  }
0x1917   : > { %3191 = vst.msk [vmem:[#allocation2 + $0x80] sm:$0xff] %vm1761_vm1, %v8042_v15 }
0x1919   : > { %v3185_v51 = vpop.permute.xlu1 %3184 }
0x191a   : > { %v8048_v21 = vsel %vm1199_vm0, %v7999_v33, %v3185_v51  ;;  %v8146_v51 = vld [vmem:[%s9652_s7] ss:$0 sm:$0xff] }
0x191b   : > { %3192 = vst.msk [vmem:[#allocation2 + $0x88] sm:$0xff] %vm1761_vm1, %v8048_v21  ;;  %v3193_v46 = vpack.c.bf16 %v8048_v21, %v8042_v15 }
0x191d   : > { %6209 = vmatmul.mubr.msk.bf16.vlgmr.msra.gmra.mxu1 %vm1761_vm1, %v3193_v46 }
0x191e   : > { %3420 = vmatpush1.bf16.msra.mxu1 %v7759_v30  ;;  %3443 = vmatprep.mubr.bf16.mxu1 %v7045_v16  ;;  %v1627_v30 = vadd.f32 %v7807_v22, %v7681_v52 }
0x191f   : > { %3421 = vmatprep.subr.bf16.mxu1 %v7766_v36  ;;  %v1630_v36 = vadd.f32 %v7807_v22, %v7685_v57 }
0x1922   : > { %3422 = vmatpush1.bf16.msra.mxu1 %v7772_v32 }
0x1923   : > { %3423 = vmatprep.subr.bf16.mxu1 %v7778_v2 }
0x1926   : > { %3424 = vmatpush1.bf16.msra.mxu1 %v7784_v42 }
0x1927   : > { %3425 = vmatprep.subr.bf16.mxu1 %v7790_v29 }
0x192a   : > { %3426 = vmatpush1.bf16.msra.mxu1 %v7796_v59 }
0x192b   : > { %3633 = vmatprep.subr.bf16.mxu1 %v8017_v41 }
0x19dd   : > { %v3231_v20 = vpop.f32.mrf.mxu1 }
0x19df   : > { %v3232_v33 = vpop.f32.mrf.mxu1 }
0x19e0   : > { %v3241_v62 = vadd.f32 %v3232_v33, %v1627_v30  ;;  %v1638_v33 = vadd.f32 %v8146_v51, %v7695_v3 }
0x19e1   : > { %v3234_v23 = vpop.f32.mrf.mxu1 }
0x19e2   : > { %6659 = vtanh.f32 %v3241_v62  ;;  %v3243_v59 = vmul.f32 0.5, %v3241_v62 }
0x19e3   : > { %v3235_v32 = vpop.f32.mrf.mxu1 }
0x19e4   : > { %v3242_v2 = vadd.f32 %v3235_v32, %v1630_v36 }
0x19e6   : > { %6661 = vtanh.f32 %v3242_v2  ;;  %v3244_v19 = vmul.f32 0.5, %v3242_v2 }
0x19e7   : > { %6663 = vtanh.f32 %v3243_v59 }
0x19e8   : > { %6665 = vtanh.f32 %v3244_v19 }
0x19ef   : > { %v6660_v42 = vpop.eup %6659 }
0x19f0   : > { %3257 = vrot.lane.b32.xlu0 %v6660_v42, %s7046_s18 }
0x19f3   : > { %v6662_v29 = vpop.eup %6661 }
0x19f4   : > { %3259 = vrot.lane.b32.xlu1 %v6662_v29, %s7046_s18  ;;  %v6664_v52 = vpop.eup %6663 }
0x19f5   : > { %v3247_v34 = vmul.f32 0.5, %v6664_v52  ;;  %v6666_v13 = vpop.eup %6665 }
0x19f6   : > { %v3248_v1 = vmul.f32 0.5, %v6666_v13 }
0x19f7   : > { %v3249_v6 = vadd.f32 0.5, %v3247_v34 }
0x19f8   : > { %v3250_v55 = vadd.f32 0.5, %v3248_v1 }
0x19f9   : > { %v3253_v61 = vmul.f32 %v3249_v6, %v8029_v12 }
0x19fa   : > { %v3254_v37 = vmul.f32 %v3250_v55, %v8033_v25 }
0x1a62   : > { %v3258_v57 = vpop.permute.xlu0 %3257 }
0x1a63   : > { %v3263_v22 = vmul.f32 %v3258_v57, %v3249_v6 }
0x1a65   : > { %3267 = vrot.lane.b32.xlu0 %v3263_v22, %s7047_s19 }
0x1a66   : > { %v3260_v26 = vpop.permute.xlu1 %3259 }
0x1a67   : > { %v3264_v56 = vmul.f32 %v3260_v26, %v3250_v55 }
0x1a69   : > { %3269 = vrot.lane.b32.xlu1 %v3264_v56, %s7047_s19 }
0x1ad7   : > { %v3268_v54 = vpop.permute.xlu0 %3267 }
0x1ad8   : > { %v8073_v50 = vadd.f32 %v3268_v54, %v3253_v61 }
0x1ada   : > { %6667 = vtanh.f32 %v8073_v50 }
0x1adb   : > { %v3270_v24 = vpop.permute.xlu1 %3269 }
0x1adc   : > { %v8077_v28 = vadd.f32 %v3270_v24, %v3254_v37 }
0x1ade   : > { %6669 = vtanh.f32 %v8077_v28 }
0x1ae7   : > { %v6668_v60 = vpop.eup %6667 }
0x1ae8   : > { %3279 = vrot.lane.b32.xlu0 %v6668_v60, %s7046_s18 }
0x1aeb   : > { %v6670_v58 = vpop.eup %6669 }
0x1aec   : > { %3281 = vrot.lane.b32.xlu1 %v6670_v58, %s7046_s18 }
0x1b5a   : > { %v3280_v38 = vpop.permute.xlu0 %3279 }
0x1b5b   : > { %v3285_v5 = vmul.f32 %v3280_v38, %v3249_v6 }
0x1b5d   : > { %3289 = vrot.lane.b32.xlu0 %v3285_v5, %s7046_s18 }
0x1b5e   : > { %v3282_v27 = vpop.permute.xlu1 %3281 }
0x1b5f   : > { %v3286_v48 = vmul.f32 %v3282_v27, %v3250_v55 }
0x1b61   : > { %3291 = vrot.lane.b32.xlu1 %v3286_v48, %s7046_s18 }
0x1bcf   : > { %v3290_v45 = vpop.permute.xlu0 %3289 }
0x1bd0   : > { %v8086_v12 = vsel %vm1199_vm0, %v8042_v15, %v3290_v45 }
0x1bd1   : > { %3298 = vst.msk [vmem:[#allocation2 + $0x90] sm:$0xff] %vm1761_vm1, %v8086_v12 }
0x1bd3   : > { %v3292_v39 = vpop.permute.xlu1 %3291 }
0x1bd4   : > { %v8092_v44 = vsel %vm1199_vm0, %v8048_v21, %v3292_v39  ;;  %v1635_v21 = vadd.f32 %v8146_v51, %v7691_v14 }
0x1bd5   : > { %3299 = vst.msk [vmem:[#allocation2 + $0x98] sm:$0xff] %vm1761_vm1, %v8092_v44  ;;  %v3300_v25 = vpack.c.bf16 %v8092_v44, %v8086_v12 }
0x1bd7   : > { %6210 = vmatmul.mubr.msk.bf16.vlgmr.msra.gmra.mxu0 %vm1761_vm1, %v3300_v25 }
0x1bd8   : > { %3527 = vmatpush1.bf16.msra.mxu0 %v8102_v18  ;;  %3550 = vmatprep.mubr.bf16.mxu0 %v7045_v16 }
0x1bd9   : > { %3528 = vmatprep.subr.bf16.mxu0 %v8109_v40 }
0x1bdc   : > { %3529 = vmatpush1.bf16.msra.mxu0 %v8115_v35 }
0x1bdd   : > { %3530 = vmatprep.subr.bf16.mxu0 %v8121_v53 }
0x1be0   : > { %3531 = vmatpush1.bf16.msra.mxu0 %v8127_v31 }
0x1be1   : > { %3532 = vmatprep.subr.bf16.mxu0 %v8133_v49 }
0x1be4   : > { %3533 = vmatpush1.bf16.msra.mxu0 %v8139_v0 }
0x1be5   : > { %3740 = vmatprep.subr.bf16.mxu0 %v8017_v41 }
0x1c97   : > { %v3338_v15 = vpop.f32.mrf.mxu0 }
0x1c98   : > { %v1646_v15 = vadd.f32 %v8146_v51, %v7693_v8 }
0x1c99   : > { %v3339_v46 = vpop.f32.mrf.mxu0 }
0x1c9a   : > { %v3348_v20 = vadd.f32 %v3339_v46, %v1635_v21 }
0x1c9b   : > { %v3341_v30 = vpop.f32.mrf.mxu0 }
0x1c9c   : > { %6671 = vtanh.f32 %v3348_v20  ;;  %v3350_v2 = vmul.f32 0.5, %v3348_v20 }
0x1c9d   : > { %v3342_v62 = vpop.f32.mrf.mxu0 }
0x1c9e   : > { %v3349_v23 = vadd.f32 %v3342_v62, %v1638_v33 }
0x1ca0   : > { %6673 = vtanh.f32 %v3349_v23  ;;  %v3351_v42 = vmul.f32 0.5, %v3349_v23 }
0x1ca1   : > { %6675 = vtanh.f32 %v3350_v2 }
0x1ca2   : > { %6677 = vtanh.f32 %v3351_v42 }
0x1ca9   : > { %v6672_v36 = vpop.eup %6671 }
0x1caa   : > { %3364 = vrot.lane.b32.xlu0 %v6672_v36, %s7046_s18 }
0x1cad   : > { %v6674_v32 = vpop.eup %6673 }
0x1cae   : > { %3366 = vrot.lane.b32.xlu1 %v6674_v32, %s7046_s18  ;;  %v6676_v14 = vpop.eup %6675 }
0x1caf   : > { %v3354_v29 = vmul.f32 0.5, %v6676_v14  ;;  %v6678_v59 = vpop.eup %6677 }
0x1cb0   : > { %v3355_v19 = vmul.f32 0.5, %v6678_v59 }
0x1cb1   : > { %v3356_v52 = vadd.f32 0.5, %v3354_v29 }
0x1cb2   : > { %v3357_v13 = vadd.f32 0.5, %v3355_v19 }
0x1cb3   : > { %v3360_v57 = vmul.f32 %v3356_v52, %v8073_v50 }
0x1cb4   : > { %v3361_v26 = vmul.f32 %v3357_v13, %v8077_v28 }
0x1d1c   : > { %v3365_v3 = vpop.permute.xlu0 %3364 }
0x1d1d   : > { %v3370_v34 = vmul.f32 %v3365_v3, %v3356_v52 }
0x1d1f   : > { %3374 = vrot.lane.b32.xlu0 %v3370_v34, %s7047_s19 }
0x1d20   : > { %v3367_v1 = vpop.permute.xlu1 %3366 }
0x1d21   : > { %v3371_v6 = vmul.f32 %v3367_v1, %v3357_v13 }
0x1d23   : > { %3376 = vrot.lane.b32.xlu1 %v3371_v6, %s7047_s19 }
0x1d91   : > { %v3375_v22 = vpop.permute.xlu0 %3374 }
0x1d92   : > { %v8157_v55 = vadd.f32 %v3375_v22, %v3360_v57 }
0x1d94   : > { %6679 = vtanh.f32 %v8157_v55 }
0x1d95   : > { %v3377_v56 = vpop.permute.xlu1 %3376 }
0x1d96   : > { %v8161_v61 = vadd.f32 %v3377_v56, %v3361_v26 }
0x1d98   : > { %6681 = vtanh.f32 %v8161_v61 }
0x1da1   : > { %v6680_v54 = vpop.eup %6679 }
0x1da2   : > { %3386 = vrot.lane.b32.xlu0 %v6680_v54, %s7046_s18 }
0x1da5   : > { %v6682_v37 = vpop.eup %6681 }
0x1da6   : > { %3388 = vrot.lane.b32.xlu1 %v6682_v37, %s7046_s18 }
0x1e14   : > { %v3387_v24 = vpop.permute.xlu0 %3386 }
0x1e15   : > { %v3392_v50 = vmul.f32 %v3387_v24, %v3356_v52 }
0x1e17   : > { %3396 = vrot.lane.b32.xlu0 %v3392_v50, %s7046_s18 }
0x1e18   : > { %v3389_v60 = vpop.permute.xlu1 %3388 }
0x1e19   : > { %v3393_v58 = vmul.f32 %v3389_v60, %v3357_v13  ;;  %v1651_v60 = vadd.f32 %v8146_v51, %v7699_v7 }
0x1e1b   : > { %3398 = vrot.lane.b32.xlu1 %v3393_v58, %s7046_s18 }
0x1e89   : > { %v3397_v28 = vpop.permute.xlu0 %3396 }
0x1e8a   : > { %v8170_v38 = vsel %vm1199_vm0, %v8086_v12, %v3397_v28  ;;  %v1643_v12 = vadd.f32 %v8146_v51, %v7689_v63 }
0x1e8b   : > { %3405 = vst.msk [vmem:[#allocation2 + $0xa0] sm:$0xff] %vm1761_vm1, %v8170_v38 }
0x1e8d   : > { %v3399_v5 = vpop.permute.xlu1 %3398 }
0x1e8e   : > { %v8176_v27 = vsel %vm1199_vm0, %v8092_v44, %v3399_v5  ;;  %v1654_v5 = vadd.f32 %v8146_v51, %v7703_v9 }
0x1e8f   : > { %3406 = vst.msk [vmem:[#allocation2 + $0xa8] sm:$0xff] %vm1761_vm1, %v8176_v27  ;;  %v3407_v48 = vpack.c.bf16 %v8176_v27, %v8170_v38 }
0x1e91   : > { %6211 = vmatmul.mubr.msk.bf16.vlgmr.msra.gmra.mxu1 %vm1761_vm1, %v3407_v48 }
0x1e92   : > { %3634 = vmatpush1.bf16.msra.mxu1 %v8102_v18  ;;  %3657 = vmatprep.mubr.bf16.mxu1 %v7045_v16 }
0x1e93   : > { %3635 = vmatprep.subr.bf16.mxu1 %v8109_v40 }
0x1e96   : > { %3636 = vmatpush1.bf16.msra.mxu1 %v8115_v35 }
0x1e97   : > { %3637 = vmatprep.subr.bf16.mxu1 %v8121_v53 }
0x1e9a   : > { %3638 = vmatpush1.bf16.msra.mxu1 %v8127_v31 }
0x1e9b   : > { %3639 = vmatprep.subr.bf16.mxu1 %v8133_v49 }
0x1e9e   : > { %3640 = vmatpush1.bf16.msra.mxu1 %v8139_v0 }
0x1e9f   : > { %3847 = vmatprep.subr.bf16.mxu1 %v8017_v41 }
0x1f51   : > { %v3445_v45 = vpop.f32.mrf.mxu1 }
0x1f53   : > { %v3446_v39 = vpop.f32.mrf.mxu1 }
0x1f54   : > { %v3455_v44 = vadd.f32 %v3446_v39, %v1643_v12 }
0x1f55   : > { %v3448_v25 = vpop.f32.mrf.mxu1 }
0x1f56   : > { %6683 = vtanh.f32 %v3455_v44  ;;  %v3457_v41 = vmul.f32 0.5, %v3455_v44 }
0x1f57   : > { %v3449_v21 = vpop.f32.mrf.mxu1 }
0x1f58   : > { %v3456_v46 = vadd.f32 %v3449_v21, %v1646_v15 }
0x1f5a   : > { %6685 = vtanh.f32 %v3456_v46  ;;  %v3458_v33 = vmul.f32 0.5, %v3456_v46 }
0x1f5b   : > { %6687 = vtanh.f32 %v3457_v41 }
0x1f5c   : > { %6689 = vtanh.f32 %v3458_v33 }
0x1f63   : > { %v6684_v20 = vpop.eup %6683 }
0x1f64   : > { %3471 = vrot.lane.b32.xlu0 %v6684_v20, %s7046_s18 }
0x1f67   : > { %v6686_v30 = vpop.eup %6685 }
0x1f68   : > { %3473 = vrot.lane.b32.xlu1 %v6686_v30, %s7046_s18  ;;  %v6688_v63 = vpop.eup %6687 }
0x1f69   : > { %v3461_v62 = vmul.f32 0.5, %v6688_v63  ;;  %v6690_v23 = vpop.eup %6689 }
0x1f6a   : > { %v3462_v36 = vmul.f32 0.5, %v6690_v23 }
0x1f6b   : > { %v3463_v32 = vadd.f32 0.5, %v3461_v62 }
0x1f6c   : > { %v3464_v42 = vadd.f32 0.5, %v3462_v36 }
0x1f6d   : > { %v3467_v59 = vmul.f32 %v3463_v32, %v8157_v55 }
0x1f6e   : > { %v3468_v3 = vmul.f32 %v3464_v42, %v8161_v61 }
0x1fd6   : > { %v3472_v8 = vpop.permute.xlu0 %3471 }
0x1fd7   : > { %v3477_v2 = vmul.f32 %v3472_v8, %v3463_v32 }
0x1fd9   : > { %3481 = vrot.lane.b32.xlu0 %v3477_v2, %s7047_s19 }
0x1fda   : > { %v3474_v14 = vpop.permute.xlu1 %3473 }
0x1fdb   : > { %v3478_v29 = vmul.f32 %v3474_v14, %v3464_v42 }
0x1fdd   : > { %3483 = vrot.lane.b32.xlu1 %v3478_v29, %s7047_s19 }
0x204b   : > { %v3482_v19 = vpop.permute.xlu0 %3481 }
0x204c   : > { %v3487_v52 = vadd.f32 %v3482_v19, %v3467_v59 }
0x204e   : > { %6691 = vtanh.f32 %v3487_v52 }
0x204f   : > { %v3484_v34 = vpop.permute.xlu1 %3483 }
0x2050   : > { %v3488_v13 = vadd.f32 %v3484_v34, %v3468_v3 }
0x2052   : > { %6693 = vtanh.f32 %v3488_v13 }
0x205b   : > { %v6692_v1 = vpop.eup %6691 }
0x205c   : > { %3493 = vrot.lane.b32.xlu0 %v6692_v1, %s7046_s18 }
0x205f   : > { %v6694_v6 = vpop.eup %6693 }
0x2060   : > { %3495 = vrot.lane.b32.xlu1 %v6694_v6, %s7046_s18 }
0x20ce   : > { %v3494_v57 = vpop.permute.xlu0 %3493 }
0x20cf   : > { %v3499_v22 = vmul.f32 %v3494_v57, %v3463_v32  ;;  %v1659_v57 = vadd.f32 %v8146_v51, %v7697_v4 }
0x20d1   : > { %3503 = vrot.lane.b32.xlu0 %v3499_v22, %s7046_s18 }
0x20d2   : > { %v3496_v26 = vpop.permute.xlu1 %3495 }
0x20d3   : > { %v3500_v55 = vmul.f32 %v3496_v26, %v3464_v42 }
0x20d5   : > { %3505 = vrot.lane.b32.xlu1 %v3500_v55, %s7046_s18 }
0x2143   : > { %v3504_v56 = vpop.permute.xlu0 %3503 }
0x2144   : > { %v8208_v61 = vsel %vm1199_vm0, %v8170_v38, %v3504_v56 }
0x2145   : > { %3512 = vst.msk [vmem:[#allocation2 + $0xb0] sm:$0xff] %vm1761_vm1, %v8208_v61 }
0x2147   : > { %v3506_v54 = vpop.permute.xlu1 %3505 }
0x2148   : > { %v8214_v37 = vsel %vm1199_vm0, %v8176_v27, %v3506_v54 }
0x2149   : > { %3513 = vst.msk [vmem:[#allocation2 + $0xb8] sm:$0xff] %vm1761_vm1, %v8214_v37  ;;  %v3514_v24 = vpack.c.bf16 %v8214_v37, %v8208_v61 }
0x214b   : > { %6212 = vmatmul.mubr.msk.bf16.vlgmr.msra.gmra.mxu0 %vm1761_vm1, %v3514_v24 }
0x214c   : > { %3741 = vmatpush1.bf16.msra.mxu0 %v8102_v18  ;;  %3764 = vmatprep.mubr.bf16.mxu0 %v7045_v16 }
0x214d   : > { %3742 = vmatprep.subr.bf16.mxu0 %v8109_v40 }
0x2150   : > { %3743 = vmatpush1.bf16.msra.mxu0 %v8115_v35 }
0x2151   : > { %3744 = vmatprep.subr.bf16.mxu0 %v8121_v53 }
0x2154   : > { %3745 = vmatpush1.bf16.msra.mxu0 %v8127_v31 }
0x2155   : > { %3746 = vmatprep.subr.bf16.mxu0 %v8133_v49 }
0x2158   : > { %3747 = vmatpush1.bf16.msra.mxu0 %v8139_v0 }
0x220b   : > { %v3552_v50 = vpop.f32.mrf.mxu0 }
0x220d   : > { %v3553_v58 = vpop.f32.mrf.mxu0 }
0x220e   : > { %v3562_v28 = vadd.f32 %v3553_v58, %v1651_v60 }
0x220f   : > { %v3555_v38 = vpop.f32.mrf.mxu0 }
0x2210   : > { %6695 = vtanh.f32 %v3562_v28  ;;  %v3564_v39 = vmul.f32 0.5, %v3562_v28 }
0x2211   : > { %v3556_v27 = vpop.f32.mrf.mxu0 }
0x2212   : > { %v3563_v48 = vadd.f32 %v3556_v27, %v1654_v5 }
0x2214   : > { %6697 = vtanh.f32 %v3563_v48  ;;  %v3565_v44 = vmul.f32 0.5, %v3563_v48 }
0x2215   : > { %6699 = vtanh.f32 %v3564_v39 }
0x2216   : > { %6701 = vtanh.f32 %v3565_v44 }
0x221d   : > { %v6696_v45 = vpop.eup %6695 }
0x221e   : > { %3578 = vrot.lane.b32.xlu0 %v6696_v45, %s7046_s18 }
0x2221   : > { %v6698_v12 = vpop.eup %6697 }
0x2222   : > { %3580 = vrot.lane.b32.xlu1 %v6698_v12, %s7046_s18  ;;  %v6700_v7 = vpop.eup %6699 }
0x2223   : > { %v3568_v25 = vmul.f32 0.5, %v6700_v7  ;;  %v6702_v15 = vpop.eup %6701 }
0x2224   : > { %v3569_v21 = vmul.f32 0.5, %v6702_v15 }
0x2225   : > { %v3570_v46 = vadd.f32 0.5, %v3568_v25 }
0x2226   : > { %v3571_v30 = vadd.f32 0.5, %v3569_v21 }
0x2227   : > { %v3574_v63 = vmul.f32 %v3570_v46, %v3487_v52 }
0x2228   : > { %v3575_v36 = vmul.f32 %v3571_v30, %v3488_v13 }
0x2290   : > { %v3579_v9 = vpop.permute.xlu0 %3578 }
0x2291   : > { %v3584_v20 = vmul.f32 %v3579_v9, %v3570_v46 }
0x2293   : > { %3588 = vrot.lane.b32.xlu0 %v3584_v20, %s7047_s19 }
0x2294   : > { %v3581_v41 = vpop.permute.xlu1 %3580 }
0x2295   : > { %v3585_v33 = vmul.f32 %v3581_v41, %v3571_v30  ;;  %v1667_v41 = vadd.f32 %v8146_v51, %v7707_v47 }
0x2297   : > { %3590 = vrot.lane.b32.xlu1 %v3585_v33, %s7047_s19 }
0x2305   : > { %v3589_v62 = vpop.permute.xlu0 %3588 }
0x2306   : > { %v3594_v23 = vadd.f32 %v3589_v62, %v3574_v63 }
0x2308   : > { %6703 = vtanh.f32 %v3594_v23 }
0x2309   : > { %v3591_v32 = vpop.permute.xlu1 %3590 }
0x230a   : > { %v3595_v8 = vadd.f32 %v3591_v32, %v3575_v36 }
0x230c   : > { %6705 = vtanh.f32 %v3595_v8 }
0x2315   : > { %v6704_v2 = vpop.eup %6703 }
0x2316   : > { %3600 = vrot.lane.b32.xlu0 %v6704_v2, %s7046_s18 }
0x2319   : > { %v6706_v42 = vpop.eup %6705 }
0x231a   : > { %3602 = vrot.lane.b32.xlu1 %v6706_v42, %s7046_s18 }
0x2388   : > { %v3601_v14 = vpop.permute.xlu0 %3600 }
0x2389   : > { %v3606_v29 = vmul.f32 %v3601_v14, %v3570_v46 }
0x238b   : > { %3610 = vrot.lane.b32.xlu0 %v3606_v29, %s7046_s18 }
0x238c   : > { %v3603_v59 = vpop.permute.xlu1 %3602 }
0x238d   : > { %v3607_v19 = vmul.f32 %v3603_v59, %v3571_v30 }
0x238f   : > { %3612 = vrot.lane.b32.xlu1 %v3607_v19, %s7046_s18 }
0x23fd   : > { %v3611_v52 = vpop.permute.xlu0 %3610 }
0x23fe   : > { %v8243_v3 = vsel %vm1199_vm0, %v8208_v61, %v3611_v52 }
0x23ff   : > { %3619 = vst.msk [vmem:[#allocation2 + $0xc0] sm:$0xff] %vm1761_vm1, %v8243_v3 }
0x2401   : > { %v3613_v34 = vpop.permute.xlu1 %3612 }
0x2402   : > { %v8249_v13 = vsel %vm1199_vm0, %v8214_v37, %v3613_v34 }
0x2403   : > { %3620 = vst.msk [vmem:[#allocation2 + $0xc8] sm:$0xff] %vm1761_vm1, %v8249_v13  ;;  %v3621_v1 = vpack.c.bf16 %v8249_v13, %v8243_v3 }
0x2405   : > { %6213 = vmatmul.mubr.msk.bf16.vlgmr.msra.gmra.mxu1 %vm1761_vm1, %v3621_v1 }
0x2406   : > { %3848 = vmatpush1.bf16.msra.mxu1 %v8102_v18  ;;  %3871 = vmatprep.mubr.bf16.mxu1 %v7045_v16  ;;  %v1662_v16 = vadd.f32 %v8146_v51, %v7701_v11 }
0x2407   : > { %3849 = vmatprep.subr.bf16.mxu1 %v8109_v40 }
0x240a   : > { %3850 = vmatpush1.bf16.msra.mxu1 %v8115_v35 }
0x240b   : > { %3851 = vmatprep.subr.bf16.mxu1 %v8121_v53 }
0x240e   : > { %3852 = vmatpush1.bf16.msra.mxu1 %v8127_v31 }
0x240f   : > { %3853 = vmatprep.subr.bf16.mxu1 %v8133_v49 }
0x2412   : > { %3854 = vmatpush1.bf16.msra.mxu1 %v8139_v0 }
0x24c5   : > { %v3659_v6 = vpop.f32.mrf.mxu1 }
0x24c7   : > { %v3660_v22 = vpop.f32.mrf.mxu1 }
0x24c8   : > { %v3669_v18 = vadd.f32 %v3660_v22, %v1659_v57 }
0x24c9   : > { %v3662_v26 = vpop.f32.mrf.mxu1 }
0x24ca   : > { %6707 = vtanh.f32 %v3669_v18  ;;  %v3671_v49 = vmul.f32 0.5, %v3669_v18 }
0x24cb   : > { %v3663_v40 = vpop.f32.mrf.mxu1 }
0x24cc   : > { %v3670_v35 = vadd.f32 %v3663_v40, %v1662_v16 }
0x24ce   : > { %6709 = vtanh.f32 %v3670_v35  ;;  %v3672_v0 = vmul.f32 0.5, %v3670_v35 }
0x24cf   : > { %6711 = vtanh.f32 %v3671_v49 }
0x24d0   : > { %6713 = vtanh.f32 %v3672_v0 }
0x24d7   : > { %v6708_v53 = vpop.eup %6707 }
0x24d8   : > { %3685 = vrot.lane.b32.xlu0 %v6708_v53, %s7046_s18 }
0x24db   : > { %v6710_v31 = vpop.eup %6709 }
0x24dc   : > { %3687 = vrot.lane.b32.xlu1 %v6710_v31, %s7046_s18  ;;  %v6712_v4 = vpop.eup %6711 }
0x24dd   : > { %v3675_v55 = vmul.f32 0.5, %v6712_v4  ;;  %v6714_v56 = vpop.eup %6713 }
0x24de   : > { %v3676_v61 = vmul.f32 0.5, %v6714_v56 }
0x24df   : > { %v3677_v54 = vadd.f32 0.5, %v3675_v55 }
0x24e0   : > { %v3678_v24 = vadd.f32 0.5, %v3676_v61 }
0x24e1   : > { %v3681_v58 = vmul.f32 %v3677_v54, %v3594_v23  ;;  %v1670_v23 = vadd.f32 %v8146_v51, %v7711_v17 }
0x24e2   : > { %v3682_v5 = vmul.f32 %v3678_v24, %v3595_v8 }
0x254a   : > { %v3686_v11 = vpop.permute.xlu0 %3685 }
0x254b   : > { %v3691_v37 = vmul.f32 %v3686_v11, %v3677_v54 }
0x254d   : > { %3695 = vrot.lane.b32.xlu0 %v3691_v37, %s7047_s19  ;;  %v1675_v37 = vadd.f32 %v8146_v51, %v7705_v43 }
0x254e   : > { %v3688_v50 = vpop.permute.xlu1 %3687 }
0x254f   : > { %v3692_v60 = vmul.f32 %v3688_v50, %v3678_v24  ;;  %v3943_v50 = vld [vmem:[%s8318_s21 + $0x8] sm:$0xff] }
0x2550   : > { %v4326_v43 = vsel %vm4310_vm2, %v3943_v50, 0.0 }
0x2551   : > { %3697 = vrot.lane.b32.xlu1 %v3692_v60, %s7047_s19 }
0x25bf   : > { %v3696_v28 = vpop.permute.xlu0 %3695 }
0x25c0   : > { %v3701_v38 = vadd.f32 %v3696_v28, %v3681_v58 }
0x25c2   : > { %6715 = vtanh.f32 %v3701_v38 }
0x25c3   : > { %v3698_v27 = vpop.permute.xlu1 %3697 }
0x25c4   : > { %v3702_v48 = vadd.f32 %v3698_v27, %v3682_v5  ;;  %v1678_v5 = vadd.f32 %v8146_v51, %v7709_v10  ;;  %v3947_v27 = vld [vmem:[%s8318_s21 + $0x28] sm:$0xff]  ;;  %v3949_v10 = vld [vmem:[%s8318_s21 + $0x38] sm:$0xff]  ;;  %v3946_v51 = vld [vmem:[%s8318_s21 + $0x20] sm:$0xff] }
0x25c6   : > { %6717 = vtanh.f32 %v3702_v48 }
0x25cf   : > { %v6716_v45 = vpop.eup %6715 }
0x25d0   : > { %3707 = vrot.lane.b32.xlu0 %v6716_v45, %s7046_s18 }
0x25d3   : > { %v6718_v12 = vpop.eup %6717 }
0x25d4   : > { %3709 = vrot.lane.b32.xlu1 %v6718_v12, %s7046_s18  ;;  %v3942_v12 = vld [vmem:[%s8318_s21] sm:$0xff] }
0x2642   : > { %v3708_v39 = vpop.permute.xlu0 %3707 }
0x2643   : > { %v3713_v44 = vmul.f32 %v3708_v39, %v3677_v54  ;;  %v3944_v39 = vld [vmem:[%s8318_s21 + $0x10] sm:$0xff] }
0x2645   : > { %3717 = vrot.lane.b32.xlu0 %v3713_v44, %s7046_s18 }
0x2646   : > { %v3710_v7 = vpop.permute.xlu1 %3709 }
0x2647   : > { %v3714_v25 = vmul.f32 %v3710_v7, %v3678_v24  ;;  %v3945_v24 = vld [vmem:[%s8318_s21 + $0x18] sm:$0xff]  ;;  %v4311_v7 = vsel %vm4310_vm2, %v3942_v12, 0.0 }
0x2649   : > { %3719 = vrot.lane.b32.xlu1 %v3714_v25, %s7046_s18  ;;  %v4312_v25 = vsel %vm4310_vm2, %v3944_v39, 0.0 }
0x26b7   : > { %v3718_v15 = vpop.permute.xlu0 %3717 }
0x26b8   : > { %v3723_v21 = vsel %vm1199_vm0, %v8243_v3, %v3718_v15  ;;  %v4329_v15 = vsel %vm4310_vm2, %v3947_v27, 0.0 }
0x26b9   : > { %3726 = vst.msk [vmem:[#allocation2 + $0xd0] sm:$0xff] %vm1761_vm1, %v3723_v21 }
0x26bb   : > { %v3720_v46 = vpop.permute.xlu1 %3719 }
0x26bc   : > { %v3724_v9 = vsel %vm1199_vm0, %v8249_v13, %v3720_v46 }
0x26bd   : > { %3727 = vst.msk [vmem:[#allocation2 + $0xd8] sm:$0xff] %vm1761_vm1, %v3724_v9  ;;  %v3728_v20 = vpack.c.bf16 %v3724_v9, %v3723_v21 }
0x26bf   : > { %6214 = vmatmul.mubr.msk.bf16.vlgmr.msra.gmra.mxu0 %vm1761_vm1, %v3728_v20  ;;  %v4314_v20 = vsel %vm4310_vm2, %v3946_v51, 0.0 }
0x277f   : > { %v3766_v30 = vpop.f32.mrf.mxu0 }
0x2780   : > { %v3951_v30 = vld [vmem:[%s8318_s21 + $0x48] sm:$0xff] }
0x2781   : > { %v3767_v33 = vpop.f32.mrf.mxu0 }
0x2782   : > { %v3776_v63 = vadd.f32 %v3767_v33, %v1667_v41  ;;  %v3948_v41 = vld [vmem:[%s8318_s21 + $0x30] sm:$0xff] }
0x2783   : > { %v3769_v62 = vpop.f32.mrf.mxu0 }
0x2784   : > { %6719 = vtanh.f32 %v3776_v63  ;;  %v3778_v42 = vmul.f32 0.5, %v3776_v63  ;;  %v4333_v62 = vsel %vm4310_vm2, %v3951_v30, 0.0 }
0x2785   : > { %v3770_v36 = vpop.f32.mrf.mxu0 }
0x2786   : > { %v3777_v32 = vadd.f32 %v3770_v36, %v1670_v23  ;;  %v4316_v23 = vsel %vm4310_vm2, %v3948_v41, 0.0  ;;  %v3953_v36 = vld [vmem:[%s8318_s21 + $0x58] sm:$0xff] }
0x2788   : > { %6721 = vtanh.f32 %v3777_v32  ;;  %v3779_v14 = vmul.f32 0.5, %v3777_v32  ;;  %v3950_v32 = vld [vmem:[%s8318_s21 + $0x40] sm:$0xff] }
0x2789   : > { %6723 = vtanh.f32 %v3778_v42 }
0x278a   : > { %6725 = vtanh.f32 %v3779_v14  ;;  %v4335_v14 = vsel %vm4310_vm2, %v3953_v36, 0.0 }
0x2791   : > { %v6720_v8 = vpop.eup %6719 }
0x2792   : > { %3792 = vrot.lane.b32.xlu0 %v6720_v8, %s7046_s18 }
0x2795   : > { %v6722_v2 = vpop.eup %6721 }
0x2796   : > { %3794 = vrot.lane.b32.xlu1 %v6722_v2, %s7046_s18  ;;  %v6724_v47 = vpop.eup %6723 }
0x2797   : > { %v3782_v29 = vmul.f32 0.5, %v6724_v47  ;;  %v6726_v59 = vpop.eup %6725  ;;  %v4318_v47 = vsel %vm4310_vm2, %v3950_v32, 0.0 }
0x2798   : > { %v3783_v19 = vmul.f32 0.5, %v6726_v59  ;;  %v3952_v59 = vld [vmem:[%s8318_s21 + $0x50] sm:$0xff] }
0x2799   : > { %v3784_v52 = vadd.f32 0.5, %v3782_v29  ;;  %v3955_v29 = vld [vmem:[%s8318_s21 + $0x68] sm:$0xff] }
0x279a   : > { %v3785_v34 = vadd.f32 0.5, %v3783_v19 }
0x279b   : > { %v3788_v6 = vmul.f32 %v3784_v52, %v3701_v38  ;;  %v4327_v38 = vsel %vm4310_vm2, %v3945_v24, 0.0 }
0x279c   : > { %v3789_v18 = vmul.f32 %v3785_v34, %v3702_v48  ;;  %v4328_v44 = vadd.f32 %v4327_v38, %v4326_v43 }
0x279e   : > { %v4330_v46 = vadd.f32 %v4329_v15, %v4328_v44 }
0x2804   : > { %v3793_v17 = vpop.permute.xlu0 %3792 }
0x2805   : > { %v3798_v3 = vmul.f32 %v3793_v17, %v3784_v52 }
0x2807   : > { %3802 = vrot.lane.b32.xlu0 %v3798_v3, %s7047_s19  ;;  %v4337_v3 = vsel %vm4310_vm2, %v3955_v29, 0.0 }
0x2808   : > { %v3795_v13 = vpop.permute.xlu1 %3794 }
0x2809   : > { %v3799_v1 = vmul.f32 %v3795_v13, %v3785_v34  ;;  %v3957_v13 = vld [vmem:[%s8318_s21 + $0x78] sm:$0xff] }
0x280b   : > { %3804 = vrot.lane.b32.xlu1 %v3799_v1, %s7047_s19  ;;  %v3954_v1 = vld [vmem:[%s8318_s21 + $0x60] sm:$0xff] }
0x2879   : > { %v3803_v57 = vpop.permute.xlu0 %3802 }
0x287a   : > { %v8291_v22 = vadd.f32 %v3803_v57, %v3788_v6 }
0x287c   : > { %6727 = vtanh.f32 %v8291_v22 }
0x287d   : > { %v3805_v26 = vpop.permute.xlu1 %3804 }
0x287e   : > { %v8294_v16 = vadd.f32 %v3805_v26, %v3789_v18  ;;  %v4339_v18 = vsel %vm4310_vm2, %v3957_v13, 0.0  ;;  %v4322_v26 = vsel %vm4310_vm2, %v3954_v1, 0.0 }
0x2880   : > { %6729 = vtanh.f32 %v8294_v16 }
0x2889   : > { %v6728_v40 = vpop.eup %6727 }
0x288a   : > { %3814 = vrot.lane.b32.xlu0 %v6728_v40, %s7046_s18  ;;  %v3956_v40 = vld [vmem:[%s8318_s21 + $0x70] sm:$0xff] }
0x288d   : > { %v6730_v35 = vpop.eup %6729 }
0x288e   : > { %3816 = vrot.lane.b32.xlu1 %v6730_v35, %s7046_s18 }
0x28fc   : > { %v3815_v53 = vpop.permute.xlu0 %3814 }
0x28fd   : > { %v3820_v31 = vmul.f32 %v3815_v53, %v3784_v52 }
0x28ff   : > { %3824 = vrot.lane.b32.xlu0 %v3820_v31, %s7046_s18  ;;  %v4324_v31 = vsel %vm4310_vm2, %v3956_v40, 0.0 }
0x2900   : > { %v3817_v49 = vpop.permute.xlu1 %3816 }
0x2901   : > { %v3821_v0 = vmul.f32 %v3817_v49, %v3785_v34  ;;  %v4320_v34 = vsel %vm4310_vm2, %v3952_v59, 0.0 }
0x2903   : > { %3826 = vrot.lane.b32.xlu1 %v3821_v0, %s7046_s18 }
0x2971   : > { %v3825_v4 = vpop.permute.xlu0 %3824 }
0x2972   : > { %v8302_v55 = vsel %vm1199_vm0, %v3723_v21, %v3825_v4  ;;  %v4313_v21 = vadd.f32 %v4312_v25, %v4311_v7  ;;  %v8392_v25 = vld [vmem:[%s8383_s24 + $0x10] sm:$0xff] }
0x2973   : > { %3833 = vst.msk [vmem:[#allocation2 + $0xe0] sm:$0xff] %vm1761_vm1, %v8302_v55 }
0x2974   : > { %v4315_v63 = vadd.f32 %v4314_v20, %v4313_v21 }
0x2975   : > { %v3827_v56 = vpop.permute.xlu1 %3826 }
0x2976   : > { %v8307_v61 = vsel %vm1199_vm0, %v3724_v9, %v3827_v56  ;;  %v4331_v9 = vsel %vm4310_vm2, %v3949_v10, 0.0  ;;  %v4317_v42 = vadd.f32 %v4316_v23, %v4315_v63  ;;  %v4821_v56 = vld [vmem:[%s9656_s11 + $0x18] sm:$0xff] }
0x2977   : > { %3834 = vst.msk [vmem:[#allocation2 + $0xe8] sm:$0xff] %vm1761_vm1, %v8307_v61  ;;  %v3835_v54 = vpack.c.bf16 %v8307_v61, %v8302_v55  ;;  %v4332_v33 = vadd.f32 %v4331_v9, %v4330_v46  ;;  %6352 = vmatprep.subr.mxu1 %v4821_v56  ;;  %v8395_v9 = vld [vmem:[#allocation2 + $0x8] sm:$0xff] }
0x2978   : > { %v4319_v17 = vadd.f32 %v4318_v47, %v4317_v42  ;;  %v8414_v42 = vld [vmem:[#allocation2] sm:$0xff] }
0x2979   : > { %6215 = vmatmul.mubr.msk.bf16.vlgmr.msra.gmra.mxu1 %vm1761_vm1, %v3835_v54  ;;  %v4334_v2 = vadd.f32 %v4333_v62, %v4332_v33  ;;  %v8400_v33 = vld [vmem:[#allocation2 + $0x18] sm:$0xff]  ;;  %v8405_v62 = vld [vmem:[#allocation2 + $0x10] sm:$0xff] }
0x297a   : > { %v4321_v57 = vadd.f32 %v4320_v34, %v4319_v17  ;;  %6353 = vmatpush3.msra.mxu1 %v4821_v56  ;;  %v8434_v34 = vld [vmem:[#allocation2 + $0x30] sm:$0xff] }
0x297b   : > { %v4336_v52 = vadd.f32 %v4335_v14, %v4334_v2  ;;  %v8412_v2 = vld [vmem:[#allocation2 + $0x28] sm:$0xff] }
0x297c   : > { %v4323_v53 = vadd.f32 %v4322_v26, %v4321_v57  ;;  %v8438_v57 = vld [vmem:[#allocation2 + $0x48] sm:$0xff] }
0x297d   : > { %v4338_v6 = vadd.f32 %v4337_v3, %v4336_v52  ;;  %v8426_v52 = vld [vmem:[#allocation2 + $0x38] sm:$0xff] }
0x297e   : > { %v4325_v0 = vadd.f32 %v4324_v31, %v4323_v53 }
0x297f   : > { %v4340_v35 = vadd.f32 %v4339_v18, %v4338_v6 }
0x2980   : > { %v4341_v4 = vmax.f32 %v4325_v0, 1e-12  ;;  %v8454_v0 = vld [vmem:[#allocation2 + $0x58] sm:$0xff] }
0x2981   : > { %v4342_v49 = vmax.f32 %v4340_v35, 1e-12  ;;  %v8448_v35 = vld [vmem:[#allocation2 + $0x40] sm:$0xff] }
0x2a39   : > { %v3873_v11 = vpop.f32.mrf.mxu1 }
0x2a3a   : > { %v4820_v11 = vld [vmem:[%s9656_s11 + $0x10] sm:$0xff] }
0x2a3b   : > { %v3874_v60 = vpop.f32.mrf.mxu1  ;;  %6354 = vmatprep.subr.mxu1 %v4820_v11 }
0x2a3c   : > { %v8322_v58 = vadd.f32 %v3874_v60, %v1675_v37  ;;  %v4819_v37 = vld [vmem:[%s9656_s11 + $0x8] sm:$0xff]  ;;  %6355 = vmatpush3.msra.mxu1 %v4820_v11 }
0x2a3d   : > { %v3876_v28 = vpop.f32.mrf.mxu1  ;;  %6356 = vmatprep.subr.mxu1 %v4819_v37 }
0x2a3e   : > { %6731 = vtanh.f32 %v8322_v58  ;;  %6357 = vmatpush3.msra.mxu1 %v4819_v37  ;;  %v3885_v60 = vmul.f32 0.5, %v8322_v58  ;;  %v8386_v58 = vld [vmem:[%s8383_s24] sm:$0xff] }
0x2a3f   : > { %v3877_v48 = vpop.f32.mrf.mxu1 }
0x2a40   : > { %v8330_v45 = vadd.f32 %v3877_v48, %v1678_v5 }
0x2a42   : > { %6733 = vtanh.f32 %v8330_v45  ;;  %v3886_v28 = vmul.f32 0.5, %v8330_v45 }
0x2a43   : > { %6735 = vrcp.f32 %v4342_v49 }
0x2a44   : > { %6737 = vrcp.f32 %v4341_v4 }
0x2a45   : > { %6739 = vtanh.f32 %v3885_v60 }
0x2a46   : > { %6741 = vtanh.f32 %v3886_v28  ;;  %v8468_v28 = vld [vmem:[#allocation2 + $0x68] sm:$0xff] }
0x2a4b   : > { %v6732_v8 = vpop.eup %6731 }
0x2a4c   : > { %3899 = vrot.lane.b32.xlu0 %v6732_v8, %s7046_s18 }
0x2a4f   : > { %v6734_v19 = vpop.eup %6733 }
0x2a50   : > { %4024 = vperm.xlu0 %6413, %v3942_v12   ;;  %3901 = vrot.lane.b32.xlu1 %v6734_v19, %s7046_s18  ;;  %v6736_v54 = vpop.eup %6735 }
0x2a54   : > { %4039 = vperm.xlu0 %6413, %v3945_v24   ;;  %4034 = vperm.xlu1 %6414, %v3944_v39   ;;  %v6738_v24 = vpop.eup %6737 }
0x2a55   : > { %v6740_v38 = vpop.eup %6739 }
0x2a56   : > { %v3889_v43 = vmul.f32 0.5, %v6740_v38  ;;  %v6742_v5 = vpop.eup %6741 }
0x2a58   : > { %4049 = vperm.xlu0 %6413, %v3947_v27   ;;  %4029 = vperm.xlu1 %6414, %v3943_v50   ;;  %v4818_v50 = vld [vmem:[%s9656_s11] sm:$0xff]  ;;  %v3890_v27 = vmul.f32 0.5, %v6742_v5  ;;  %v8377_v48 = vadd.f32 0.5, %v3889_v43 }
0x2a59   : > { %6358 = vmatprep.subr.mxu1 %v4818_v50 }
0x2a5a   : > { %6359 = vmatpush3.msra.mxu1 %v4818_v50  ;;  %v8381_v44 = vadd.f32 0.5, %v3890_v27 }
0x2a5c   : > { %4059 = vperm.xlu0 %6413, %v3949_v10   ;;  %4044 = vperm.xlu1 %6414, %v3946_v51  }
0x2a60   : > { %4069 = vperm.xlu0 %6413, %v3951_v30   ;;  %4054 = vperm.xlu1 %6414, %v3948_v41  }
0x2a64   : > { %4079 = vperm.xlu0 %6413, %v3953_v36   ;;  %4064 = vperm.xlu1 %6414, %v3950_v32  }
0x2a68   : > { %4089 = vperm.xlu0 %6413, %v3955_v29   ;;  %4074 = vperm.xlu1 %6414, %v3952_v59   ;;  %v8421_v29 = vld [vmem:[#allocation2 + $0x20] sm:$0xff] }
0x2a6c   : > { %4099 = vperm.xlu0 %6413, %v3957_v13   ;;  %4084 = vperm.xlu1 %6414, %v3954_v1  }
0x2a70   : > { %4094 = vperm.xlu1 %6414, %v3956_v40   ;;  %4382 = vperm.xlu0 %6413, %v6736_v54  }
0x2a74   : > { %4377 = vperm.xlu1 %6414, %v6738_v24   ;;  %v8464_v24 = vld [vmem:[#allocation2 + $0x50] sm:$0xff] }
0x2abe   : > { %v3900_v12 = vpop.permute.xlu0 %3899 }
0x2abf   : > { %v3905_v39 = vmul.f32 %v3900_v12, %v8377_v48 }
0x2ac1   : > { %3909 = vrot.lane.b32.xlu1 %v3905_v39, %s7047_s19 }
0x2ac2   : > { %v3902_v7 = vpop.permute.xlu1 %3901 }
0x2ac3   : > { %v3906_v45 = vmul.f32 %v3902_v7, %v8381_v44 }
0x2ac5   : > { %4120 = vperm.xlu1 %6414, %v8386_v58   ;;  %3911 = vrot.lane.b32.xlu0 %v3906_v45, %s7047_s19 }
0x2ac9   : > { %4130 = vperm.xlu0 %6413, %v8392_v25  }
0x2acb   : > { %v4025_v15 = vpop.permute.xlu0 %4024 }
0x2acc   : > { %v8424_v59 = vmul.f32 %v4025_v15, %v8414_v42 }
0x2ace   : > { %v4343_v53 = vsel %vm1199_vm0, %v8424_v59, 0.0 }
0x2acf   : > { %v4040_v10 = vpop.permute.xlu0 %4039  ;;  %v4035_v51 = vpop.permute.xlu1 %4034 }
0x2ad0   : > { %v8403_v63 = vmul.f32 %v4040_v10, %v8400_v33  ;;  %v8410_v8 = vmul.f32 %v4035_v51, %v8405_v62  ;;  %v8482_v10 = vld [vmem:[#allocation2 + $0x78] sm:$0xff]  ;;  %v8484_v51 = vld [vmem:[#allocation2 + $0x60] sm:$0xff] }
0x2ad2   : > { %v4359_v14 = vsel %vm1199_vm0, %v8403_v63, 0.0  ;;  %v4344_v6 = vsel %vm1199_vm0, %v8410_v8, 0.0 }
0x2ad3   : > { %v4050_v21 = vpop.permute.xlu0 %4049  ;;  %v4030_v46 = vpop.permute.xlu1 %4029  ;;  %v4345_v56 = vadd.f32 %v4344_v6, %v4343_v53 }
0x2ad4   : > { %v8398_v20 = vmul.f32 %v4030_v46, %v8395_v9  ;;  %v8419_v47 = vmul.f32 %v4050_v21, %v8412_v2 }
0x2ad6   : > { %v4358_v23 = vsel %vm1199_vm0, %v8398_v20, 0.0  ;;  %v4361_v26 = vsel %vm1199_vm0, %v8419_v47, 0.0 }
0x2ad7   : > { %v4060_v30 = vpop.permute.xlu0 %4059  ;;  %v4045_v41 = vpop.permute.xlu1 %4044  ;;  %v4360_v19 = vadd.f32 %v4359_v14, %v4358_v23 }
0x2ad8   : > { %v8429_v17 = vmul.f32 %v4045_v41, %v8421_v29  ;;  %v8432_v3 = vmul.f32 %v4060_v30, %v8426_v52 }
0x2ad9   : > { %v4362_v31 = vadd.f32 %v4361_v26, %v4360_v19 }
0x2ada   : > { %v4346_v49 = vsel %vm1199_vm0, %v8429_v17, 0.0  ;;  %v4363_v54 = vsel %vm1199_vm0, %v8432_v3, 0.0 }
0x2adb   : > { %v4070_v36 = vpop.permute.xlu0 %4069  ;;  %v4055_v32 = vpop.permute.xlu1 %4054  ;;  %v4347_v43 = vadd.f32 %v4346_v49, %v4345_v56  ;;  %v4364_v12 = vadd.f32 %v4363_v54, %v4362_v31 }
0x2adc   : > { %v8441_v18 = vmul.f32 %v4055_v32, %v8434_v34  ;;  %v8446_v40 = vmul.f32 %v4070_v36, %v8438_v57 }
0x2ade   : > { %v4348_v60 = vsel %vm1199_vm0, %v8441_v18, 0.0  ;;  %v4365_v5 = vsel %vm1199_vm0, %v8446_v40, 0.0 }
0x2adf   : > { %v4080_v13 = vpop.permute.xlu0 %4079  ;;  %v4065_v1 = vpop.permute.xlu1 %4064  ;;  %v4349_v7 = vadd.f32 %v4348_v60, %v4347_v43  ;;  %v4366_v46 = vadd.f32 %v4365_v5, %v4364_v12  ;;  %v3895_v12 = vmul.f32 %v8377_v48, %v8291_v22  ;;  %v3963_v22 = vld [vmem:[%s8383_s24 + $0x28] sm:$0xff] }
0x2ae0   : > { %v8457_v4 = vmul.f32 %v4065_v1, %v8448_v35  ;;  %v8462_v11 = vmul.f32 %v4080_v13, %v8454_v0  ;;  %v8498_v1 = vld [vmem:[#allocation2 + $0x70] sm:$0xff] }
0x2ae2   : > { %9707 = vst [vmem:[#allocation11_spill] sm:$0xff] %v8457_v4  ;;  %v4350_v39 = vsel %vm1199_vm0, %v8457_v4, 0.0  ;;  %v4367_v45 = vsel %vm1199_vm0, %v8462_v11, 0.0 }
0x2ae3   : > { %v4090_v37 = vpop.permute.xlu0 %4089  ;;  %v4075_v50 = vpop.permute.xlu1 %4074  ;;  %v4351_v36 = vadd.f32 %v4350_v39, %v4349_v7  ;;  %v4368_v14 = vadd.f32 %v4367_v45, %v4366_v46  ;;  %v3896_v45 = vmul.f32 %v8381_v44, %v8294_v16  ;;  %v3959_v46 = vld [vmem:[%s8383_s24 + $0x8] sm:$0xff] }
0x2ae4   : > { %v8471_v38 = vmul.f32 %v4075_v50, %v8464_v24  ;;  %v8476_v27 = vmul.f32 %v4090_v37, %v8468_v28 }
0x2ae6   : > { %9708 = vst [vmem:[#allocation12_spill] sm:$0xff] %v8471_v38  ;;  %v4352_v30 = vsel %vm1199_vm0, %v8471_v38, 0.0  ;;  %v4369_v32 = vsel %vm1199_vm0, %v8476_v27, 0.0  ;;  %v4008_v38 = vld [vmem:[#allocation2 + $0x90] sm:$0xff] }
0x2ae7   : > { %v4100_v15 = vpop.permute.xlu0 %4099  ;;  %v4085_v21 = vpop.permute.xlu1 %4084  ;;  %v4353_v13 = vadd.f32 %v4352_v30, %v4351_v36  ;;  %v4370_v31 = vadd.f32 %v4369_v32, %v4368_v14  ;;  %v3961_v30 = vld [vmem:[%s8383_s24 + $0x18] sm:$0xff]  ;;  %v4418_v36 = vsel %vm4310_vm2, %v3959_v46, 0.0 }
0x2ae8   : > { %v8489_v41 = vmul.f32 %v4100_v15, %v8482_v10  ;;  %v8492_v23 = vmul.f32 %v4085_v21, %v8484_v51  ;;  %v4419_v32 = vsel %vm4310_vm2, %v3961_v30, 0.0 }
0x2ae9   : > { %v4420_v14 = vadd.f32 %v4419_v32, %v4418_v36  ;;  %v3975_v36 = vld [vmem:[%s8383_s24 + $0x88] sm:$0xff]  ;;  %v8545_v32 = vld [vmem:[%s8383_s24 + $0x50] sm:$0xff] }
0x2aea   : > { %9709 = vst [vmem:[#allocation13_spill] sm:$0xff] %v8489_v41  ;;  %9710 = vst [vmem:[#allocation14_spill] sm:$0xff] %v8492_v23  ;;  %v4354_v19 = vsel %vm1199_vm0, %v8492_v23, 0.0  ;;  %v4371_v26 = vsel %vm1199_vm0, %v8489_v41, 0.0 }
0x2aeb   : > { %v4095_v6 = vpop.permute.xlu1 %4094  ;;  %v4355_v49 = vadd.f32 %v4354_v19, %v4353_v13  ;;  %v4372_v56 = vadd.f32 %v4371_v26, %v4370_v31  ;;  %v4383_v37 = vpop.permute.xlu0 %4382  ;;  %v4421_v19 = vsel %vm4310_vm2, %v3963_v22, 0.0 }
0x2aec   : > { %v8503_v53 = vmul.f32 %v4095_v6, %v8498_v1  ;;  %v4422_v13 = vadd.f32 %v4421_v19, %v4420_v14  ;;  %v3965_v6 = vld [vmem:[%s8383_s24 + $0x38] sm:$0xff]  ;;  %v4433_v14 = vsel %vm4310_vm2, %v3975_v36, 0.0 }
0x2aed   : > { %v4386_v5 = vmul.f32 %v4383_v37, %v4372_v56  ;;  %v4423_v16 = vsel %vm4310_vm2, %v3965_v6, 0.0  ;;  %v3977_v19 = vld [vmem:[%s8383_s24 + $0x98] sm:$0xff] }
0x2aee   : > { %9711 = vst [vmem:[#allocation15_spill] sm:$0xff] %v8503_v53  ;;  %v4356_v54 = vsel %vm1199_vm0, %v8503_v53, 0.0  ;;  %v4424_v31 = vadd.f32 %v4423_v16, %v4422_v13  ;;  %v3970_v13 = vld [vmem:[%s8383_s24 + $0x60] sm:$0xff]  ;;  %v4435_v16 = vsel %vm4310_vm2, %v3977_v19, 0.0 }
0x2aef   : > { %v4378_v50 = vpop.permute.xlu1 %4377  ;;  %v4357_v60 = vadd.f32 %v4356_v54, %v4355_v49  ;;  %v3967_v49 = vld [vmem:[%s8383_s24 + $0x48] sm:$0xff] }
0x2af0   : > { %v4425_v56 = vsel %vm4310_vm2, %v3967_v49, 0.0 }
0x2af1   : > { %v4385_v43 = vmul.f32 %v4378_v50, %v4357_v60  ;;  %v4426_v37 = vadd.f32 %v4425_v56, %v4424_v31  ;;  %v3969_v50 = vld [vmem:[%s8383_s24 + $0x58] sm:$0xff]  ;;  %v8527_v60 = vld [vmem:[%s8383_s24 + $0x20] sm:$0xff]  ;;  %v3972_v31 = vld [vmem:[%s8383_s24 + $0x70] sm:$0xff] }
0x2af2   : > { %v4390_v53 = vsel %vm4310_vm2, %v8527_v60, 0.0 }
0x2af3   : > { %6360 = vmatprep.mubr.msk.f32.mxu1 %vm1199_vm0, %v4385_v43  ;;  %v4427_v43 = vsel %vm4310_vm2, %v3969_v50, 0.0 }
0x2af4   : > { %6361 = vmatmul.mubr.msk.f32.vlgmr.msra.gmra.mxu1 %vm1199_vm0, %v4386_v5  ;;  %v4428_v5 = vadd.f32 %v4427_v43, %v4426_v37  ;;  %v3974_v37 = vld [vmem:[%s8383_s24 + $0x80] sm:$0xff] }
0x2b33   : > { %v3910_v39 = vpop.permute.xlu1 %3909 }
0x2b34   : > { %v3915_v7 = vadd.f32 %v3910_v39, %v3895_v12  ;;  %v3971_v12 = vld [vmem:[%s8383_s24 + $0x68] sm:$0xff]  ;;  %v8533_v39 = vld [vmem:[%s8383_s24 + $0x30] sm:$0xff] }
0x2b35   : > { %v4392_v23 = vsel %vm4310_vm2, %v8533_v39, 0.0 }
0x2b36   : > { %6743 = vtanh.f32 %v3915_v7  ;;  %v4429_v7 = vsel %vm4310_vm2, %v3971_v12, 0.0 }
0x2b37   : > { %v3912_v15 = vpop.permute.xlu0 %3911 }
0x2b38   : > { %v3916_v21 = vadd.f32 %v3912_v15, %v3896_v45  ;;  %v4430_v45 = vadd.f32 %v4429_v7, %v4428_v5  ;;  %v3973_v15 = vld [vmem:[%s8383_s24 + $0x78] sm:$0xff]  ;;  %v3983_v5 = vld [vmem:[%s8383_s24 + $0xc8] sm:$0xff]  ;;  %v3976_v7 = vld [vmem:[%s8383_s24 + $0x90] sm:$0xff] }
0x2b3a   : > { %6745 = vtanh.f32 %v3916_v21  ;;  %v8539_v21 = vld [vmem:[%s8383_s24 + $0x40] sm:$0xff] }
0x2b43   : > { %v6744_v26 = vpop.eup %6743 }
0x2b44   : > { %3921 = vrot.lane.b32.xlu1 %v6744_v26, %s7046_s18  ;;  %v3979_v26 = vld [vmem:[%s8383_s24 + $0xa8] sm:$0xff] }
0x2b45   : > { %v4437_v56 = vsel %vm4310_vm2, %v3979_v26, 0.0 }
0x2b47   : > { %v6746_v54 = vpop.eup %6745 }
0x2b48   : > { %4125 = vperm.xlu1 %6414, %v3959_v46   ;;  %3923 = vrot.lane.b32.xlu0 %v6746_v54, %s7046_s18  ;;  %v4431_v46 = vsel %vm4310_vm2, %v3973_v15, 0.0  ;;  %v3981_v54 = vld [vmem:[%s8383_s24 + $0xb8] sm:$0xff] }
0x2b49   : > { %v4439_v43 = vsel %vm4310_vm2, %v3981_v54, 0.0 }
0x2b4c   : > { %4140 = vperm.xlu1 %6414, %v8527_v60   ;;  %4135 = vperm.xlu0 %6413, %v3961_v30   ;;  %v4432_v30 = vadd.f32 %v4431_v46, %v4430_v45  ;;  %v4441_v45 = vsel %vm4310_vm2, %v3983_v5, 0.0  ;;  %v3985_v46 = vld [vmem:[%s8383_s24 + $0xd8] sm:$0xff] }
0x2b50   : > { %4150 = vperm.xlu1 %6414, %v8533_v39   ;;  %4145 = vperm.xlu0 %6413, %v3963_v22   ;;  %v4434_v22 = vadd.f32 %v4433_v14, %v4432_v30  ;;  %v4443_v14 = vsel %vm4310_vm2, %v3985_v46, 0.0  ;;  %v4400_v39 = vsel %vm4310_vm2, %v3972_v31, 0.0 }
0x2b54   : > { %4160 = vperm.xlu1 %6414, %v8539_v21   ;;  %4155 = vperm.xlu0 %6413, %v3965_v6   ;;  %v4436_v6 = vadd.f32 %v4435_v16, %v4434_v22  ;;  %v3987_v22 = vld [vmem:[%s8383_s24 + $0xe8] sm:$0xff] }
0x2b58   : > { %4170 = vperm.xlu1 %6414, %v8545_v32   ;;  %4165 = vperm.xlu0 %6413, %v3967_v49   ;;  %v4438_v49 = vadd.f32 %v4437_v56, %v4436_v6  ;;  %v3980_v6 = vld [vmem:[%s8383_s24 + $0xb0] sm:$0xff]  ;;  %v3989_v56 = vld [vmem:[%s8383_s24 + $0xf8] sm:$0xff] }
0x2b5c   : > { %4180 = vperm.xlu1 %6414, %v3970_v13   ;;  %4175 = vperm.xlu0 %6413, %v3969_v50   ;;  %v4440_v50 = vadd.f32 %v4439_v43, %v4438_v49  ;;  %v3982_v43 = vld [vmem:[%s8383_s24 + $0xc0] sm:$0xff] }
0x2b5e   : > { %v4442_v30 = vadd.f32 %v4441_v45, %v4440_v50  ;;  %v4387_v50 = vsel %vm4310_vm2, %v8386_v58, 0.0  ;;  %v4388_v45 = vsel %vm4310_vm2, %v8392_v25, 0.0  ;;  %v4394_v25 = vsel %vm4310_vm2, %v8539_v21, 0.0 }
0x2b60   : > { %4190 = vperm.xlu1 %6414, %v3972_v31   ;;  %4185 = vperm.xlu0 %6413, %v3971_v12   ;;  %v3978_v12 = vld [vmem:[%s8383_s24 + $0xa0] sm:$0xff]  ;;  %v4444_v16 = vadd.f32 %v4443_v14, %v4442_v30  ;;  %v4389_v30 = vadd.f32 %v4388_v45, %v4387_v50  ;;  %v4402_v50 = vsel %vm4310_vm2, %v3974_v37, 0.0 }
0x2b61   : > { %v3986_v14 = vld [vmem:[%s8383_s24 + $0xe0] sm:$0xff] }
0x2b64   : > { %4200 = vperm.xlu1 %6414, %v3974_v37   ;;  %4195 = vperm.xlu0 %6413, %v3973_v15   ;;  %v4445_v15 = vsel %vm4310_vm2, %v3987_v22, 0.0 }
0x2b65   : > { %v4446_v49 = vadd.f32 %v4445_v15, %v4444_v16  ;;  %v4391_v16 = vadd.f32 %v4390_v53, %v4389_v30  ;;  %v3984_v15 = vld [vmem:[%s8383_s24 + $0xd0] sm:$0xff] }
0x2b66   : > { %v4412_v31 = vsel %vm4310_vm2, %v3984_v15, 0.0 }
0x2b67   : > { %v4393_v58 = vadd.f32 %v4392_v23, %v4391_v16  ;;  %v4414_v16 = vsel %vm4310_vm2, %v3986_v14, 0.0 }
0x2b68   : > { %4210 = vperm.xlu1 %6414, %v3976_v7   ;;  %4205 = vperm.xlu0 %6413, %v3975_v36   ;;  %v4447_v36 = vsel %vm4310_vm2, %v3989_v56, 0.0 }
0x2b6c   : > { %4220 = vperm.xlu1 %6414, %v3978_v12   ;;  %4215 = vperm.xlu0 %6413, %v3977_v19   ;;  %v4448_v19 = vadd.f32 %v4447_v36, %v4446_v49  ;;  %v4396_v49 = vsel %vm4310_vm2, %v8545_v32, 0.0  ;;  %v4406_v32 = vsel %vm4310_vm2, %v3978_v12, 0.0 }
0x2b70   : > { %4230 = vperm.xlu1 %6414, %v3980_v6   ;;  %4225 = vperm.xlu0 %6413, %v3979_v26   ;;  %v4450_v26 = vmax.f32 %v4448_v19, 1e-12  ;;  %v4408_v19 = vsel %vm4310_vm2, %v3980_v6, 0.0  ;;  %v4131_v6 = vpop.permute.xlu0 %4130 }
0x2b72   : > { %6747 = vrcp.f32 %v4450_v26 }
0x2b74   : > { %4240 = vperm.xlu1 %6414, %v3982_v43   ;;  %4235 = vperm.xlu0 %6413, %v3981_v54   ;;  %v4395_v54 = vadd.f32 %v4394_v25, %v4393_v58  ;;  %v3988_v58 = vld [vmem:[%s8383_s24 + $0xf0] sm:$0xff] }
0x2b75   : > { %v4416_v25 = vsel %vm4310_vm2, %v3988_v58, 0.0 }
0x2b76   : > { %v4397_v60 = vadd.f32 %v4396_v49, %v4395_v54  ;;  %v4121_v49 = vpop.permute.xlu1 %4120 }
0x2b78   : > { %4260 = vperm.xlu1 %6414, %v3986_v14   ;;  %4245 = vperm.xlu0 %6413, %v3983_v5   ;;  %v4398_v5 = vsel %vm4310_vm2, %v3970_v13, 0.0 }
0x2b79   : > { %v4399_v36 = vadd.f32 %v4398_v5, %v4397_v60 }
0x2b7b   : > { %v4401_v23 = vadd.f32 %v4400_v39, %v4399_v36 }
0x2b7c   : > { %4250 = vperm.xlu0 %6413, %v3984_v15  }
0x2b7d   : > { %v4403_v21 = vadd.f32 %v4402_v50, %v4401_v23 }
0x2b7f   : > { %v6748_v53 = vpop.eup %6747 }
0x2b80   : > { %4255 = vperm.xlu0 %6413, %v3985_v46   ;;  %v4404_v46 = vsel %vm4310_vm2, %v3976_v7, 0.0 }
0x2b81   : > { %v4405_v45 = vadd.f32 %v4404_v46, %v4403_v21 }
0x2b84   : > { %4265 = vperm.xlu0 %6413, %v3987_v22   ;;  %v4407_v22 = vadd.f32 %v4406_v32, %v4405_v45 }
0x2b86   : > { %v4409_v13 = vadd.f32 %v4408_v19, %v4407_v22 }
0x2b88   : > { %4275 = vperm.xlu0 %6413, %v3989_v56   ;;  %v4410_v56 = vsel %vm4310_vm2, %v3982_v43, 0.0 }
0x2b89   : > { %v4411_v30 = vadd.f32 %v4410_v56, %v4409_v13 }
0x2b8b   : > { %v4413_v26 = vadd.f32 %v4412_v31, %v4411_v30 }
0x2b8c   : > { %4523 = vperm.xlu0 %6413, %v6748_v53  }
0x2b8d   : > { %v4415_v37 = vadd.f32 %v4414_v16, %v4413_v26 }
0x2b8f   : > { %v4417_v7 = vadd.f32 %v4416_v25, %v4415_v37  ;;  %v8624_v25 = vmul.f32 %v4121_v49, %v8414_v42 }
0x2b91   : > { %v4449_v54 = vmax.f32 %v4417_v7, 1e-12 }
0x2b93   : > { %6749 = vrcp.f32 %v4449_v54 }
0x2ba0   : > { %v6750_v5 = vpop.eup %6749 }
0x2bb4   : > { %v6362_v12 = vpop.f32.mrf.mxu1 }
0x2bb5   : > { %4907 = vrot.lane.b32.xlu0 %v6362_v12, %s7047_s19 }
0x2bb6   : > { %v3922_v60 = vpop.permute.xlu1 %3921 }
0x2bb7   : > { %v3927_v43 = vmul.f32 %v3922_v60, %v8377_v48 }
0x2bb9   : > { %3931 = vrot.lane.b32.xlu1 %v3927_v43, %s7046_s18 }
0x2bba   : > { %v3924_v15 = vpop.permute.xlu0 %3923 }
0x2bbb   : > { %v3928_v14 = vmul.f32 %v3924_v15, %v8381_v44 }
0x2bbd   : > { %3933 = vrot.lane.b32.xlu1 %v3928_v14, %s7046_s18 }
0x2bc1   : > { %4270 = vperm.xlu1 %6414, %v3988_v58   ;;  %v8621_v58 = vmul.f32 %v4131_v6, %v8405_v62  ;;  %v4452_v62 = vsel %vm4451_vm3, %v8624_v25, 0.0 }
0x2bc3   : > { %v8600_v53 = vpop.permute.xlu1 %4125  ;;  %9712 = vst [vmem:[#allocation16_spill] sm:$0xff] %v8621_v58  ;;  %v4453_v12 = vsel %vm4451_vm3, %v8621_v58, 0.0 }
0x2bc4   : > { %v4454_v49 = vadd.f32 %v4453_v12, %v4452_v62 }
0x2bc5   : > { %4518 = vperm.xlu1 %6414, %v6750_v5  }
0x2bc7   : > { %v4141_v36 = vpop.permute.xlu1 %4140  ;;  %v8602_v39 = vpop.permute.xlu0 %4135 }
0x2bc8   : > { %v8627_v7 = vmul.f32 %v4141_v36, %v8421_v29 }
0x2bca   : > { %9713 = vst [vmem:[#allocation17_spill] sm:$0xff] %v8627_v7  ;;  %v4455_v6 = vsel %vm4451_vm3, %v8627_v7, 0.0 }
0x2bcb   : > { %v4151_v23 = vpop.permute.xlu1 %4150  ;;  %v8604_v50 = vpop.permute.xlu0 %4145  ;;  %v4456_v14 = vadd.f32 %v4455_v6, %v4454_v49 }
0x2bcc   : > { %v8634_v60 = vmul.f32 %v4151_v23, %v8434_v34 }
0x2bce   : > { %9714 = vst [vmem:[#allocation18_spill] sm:$0xff] %v8634_v60  ;;  %v4457_v43 = vsel %vm4451_vm3, %v8634_v60, 0.0 }
0x2bcf   : > { %v4161_v21 = vpop.permute.xlu1 %4160  ;;  %v8606_v48 = vpop.permute.xlu0 %4155  ;;  %v4458_v23 = vadd.f32 %v4457_v43, %v4456_v14 }
0x2bd0   : > { %v8641_v42 = vmul.f32 %v4161_v21, %v8448_v35 }
0x2bd2   : > { %9715 = vst [vmem:[#allocation19_spill] sm:$0xff] %v8641_v42  ;;  %v4459_v5 = vsel %vm4451_vm3, %v8641_v42, 0.0 }
0x2bd3   : > { %v4171_v46 = vpop.permute.xlu1 %4170  ;;  %v8608_v45 = vpop.permute.xlu0 %4165  ;;  %v4460_v62 = vadd.f32 %v4459_v5, %v4458_v23 }
0x2bd4   : > { %v8646_v15 = vmul.f32 %v4171_v46, %v8464_v24  ;;  %v4006_v24 = vld [vmem:[#allocation2 + $0x80] sm:$0xff] }
0x2bd6   : > { %9716 = vst [vmem:[#allocation20_spill] sm:$0xff] %v8646_v15  ;;  %v4461_v35 = vsel %vm4451_vm3, %v8646_v15, 0.0 }
0x2bd7   : > { %v4181_v44 = vpop.permute.xlu1 %4180  ;;  %v8610_v32 = vpop.permute.xlu0 %4175  ;;  %v4462_v49 = vadd.f32 %v4461_v35, %v4460_v62  ;;  %v4012_v35 = vld [vmem:[#allocation2 + $0xb0] sm:$0xff] }
0x2bd8   : > { %v8653_v36 = vmul.f32 %v4181_v44, %v8484_v51 }
0x2bda   : > { %9717 = vst [vmem:[#allocation21_spill] sm:$0xff] %v8653_v36  ;;  %v4463_v46 = vsel %vm4451_vm3, %v8653_v36, 0.0 }
0x2bdb   : > { %v4191_v22 = vpop.permute.xlu1 %4190  ;;  %v8612_v19 = vpop.permute.xlu0 %4185 }
0x2bdc   : > { %v8658_v21 = vmul.f32 %v4191_v22, %v8498_v1  ;;  %v4464_v1 = vadd.f32 %v4463_v46, %v4462_v49  ;;  %v4010_v22 = vld [vmem:[#allocation2 + $0xa0] sm:$0xff] }
0x2bdd   : > { %v4014_v46 = vld [vmem:[#allocation2 + $0xc0] sm:$0xff] }
0x2bde   : > { %9718 = vst [vmem:[#allocation22_spill] sm:$0xff] %v8658_v21  ;;  %v4465_v51 = vsel %vm4451_vm3, %v8658_v21, 0.0 }
0x2bdf   : > { %v4201_v13 = vpop.permute.xlu1 %4200  ;;  %v8614_v56 = vpop.permute.xlu0 %4195  ;;  %v4466_v23 = vadd.f32 %v4465_v51, %v4464_v1  ;;  %v4016_v1 = vld [vmem:[#allocation2 + $0xd0] sm:$0xff] }
0x2be0   : > { %v8662_v6 = vmul.f32 %v4201_v13, %v4006_v24 }
0x2be2   : > { %9719 = vst [vmem:[#allocation23_spill] sm:$0xff] %v8662_v6  ;;  %v4467_v5 = vsel %vm4451_vm3, %v8662_v6, 0.0 }
0x2be3   : > { %v4211_v30 = vpop.permute.xlu1 %4210  ;;  %v8616_v31 = vpop.permute.xlu0 %4205  ;;  %v4468_v24 = vadd.f32 %v4467_v5, %v4466_v23 }
0x2be4   : > { %v8668_v44 = vmul.f32 %v4211_v30, %v4008_v38 }
0x2be6   : > { %9720 = vst [vmem:[#allocation24_spill] sm:$0xff] %v8668_v44  ;;  %v4469_v62 = vsel %vm4451_vm3, %v8668_v44, 0.0 }
0x2be7   : > { %v4221_v26 = vpop.permute.xlu1 %4220  ;;  %v8618_v16 = vpop.permute.xlu0 %4215  ;;  %v4470_v51 = vadd.f32 %v4469_v62, %v4468_v24 }
0x2be8   : > { %v8674_v13 = vmul.f32 %v4221_v26, %v4010_v22 }
0x2bea   : > { %9721 = vst [vmem:[#allocation25_spill] sm:$0xff] %v8674_v13  ;;  %v4471_v26 = vsel %vm4451_vm3, %v8674_v13, 0.0 }
0x2beb   : > { %v4231_v37 = vpop.permute.xlu1 %4230  ;;  %v8629_v54 = vpop.permute.xlu0 %4225 }
0x2bec   : > { %v8679_v38 = vmul.f32 %v4231_v37, %v4012_v35 }
0x2bee   : > { %9722 = vst [vmem:[#allocation26_spill] sm:$0xff] %v8679_v38  ;;  %v4473_v37 = vsel %vm4451_vm3, %v8679_v38, 0.0 }
0x2bef   : > { %v4241_v29 = vpop.permute.xlu1 %4240  ;;  %v8648_v34 = vpop.permute.xlu0 %4235 }
0x2bf3   : > { %v4261_v12 = vpop.permute.xlu1 %4260  ;;  %v8664_v4 = vpop.permute.xlu0 %4245 }
0x2bf7   : > { %v4251_v49 = vpop.permute.xlu0 %4250 }
0x2bf8   : > { %v8690_v22 = vmul.f32 %v4251_v49, %v4016_v1 }
0x2bfa   : > { %9724 = vst [vmem:[#allocation28_spill] sm:$0xff] %v8690_v22 }
0x2c2b   : > { %v3932_v43 = vpop.permute.xlu1 %3931 }
0x2c2c   : > { %v3937_v14 = vsel %vm1199_vm0, %v8302_v55, %v3932_v43  ;;  %v8685_v43 = vmul.f32 %v4241_v29, %v4014_v46  ;;  %v4018_v29 = vld [vmem:[#allocation2 + $0xe0] sm:$0xff] }
0x2c2d   : > { %3940 = vst.msk [vmem:[#allocation2 + $0xf0] sm:$0xff] %vm1761_vm1, %v3937_v14  ;;  %v4472_v14 = vadd.f32 %v4471_v26, %v4470_v51 }
0x2c2e   : > { %9723 = vst [vmem:[#allocation27_spill] sm:$0xff] %v8685_v43  ;;  %v4475_v5 = vsel %vm4451_vm3, %v8685_v43, 0.0 }
0x2c2f   : > { %v3934_v30 = vpop.permute.xlu1 %3933  ;;  %v4474_v23 = vadd.f32 %v4473_v37, %v4472_v14 }
0x2c30   : > { %v3938_v55 = vsel %vm1199_vm0, %v8307_v61, %v3934_v30  ;;  %v4477_v61 = vsel %vm4451_vm3, %v8690_v22, 0.0  ;;  %v8696_v30 = vmul.f32 %v4261_v12, %v4018_v29  ;;  %v4894_v12 = vpop.f32.mrf.mxu1  ;;  %v8722_v29 = vmul.f32 %v8606_v48, %v8426_v52 }
0x2c31   : > { %3941 = vst.msk [vmem:[#allocation2 + $0xf8] sm:$0xff] %vm1761_vm1, %v3938_v55  ;;  %v4476_v35 = vadd.f32 %v4475_v5, %v4474_v23  ;;  %v8708_v5 = vmul.f32 %v8602_v39, %v8400_v33  ;;  %v8712_v23 = vmul.f32 %v8600_v53, %v8395_v9  ;;  %v8730_v9 = vmul.f32 %v8608_v45, %v8438_v57 }
0x2c32   : > { %9725 = vst [vmem:[#allocation29_spill] sm:$0xff] %v8696_v30  ;;  %v4479_v55 = vsel %vm4451_vm3, %v8696_v30, 0.0  ;;  %9730 = vst [vmem:[#allocation34_spill] sm:$0xff] %v8722_v29  ;;  %v8736_v39 = vmul.f32 %v8610_v32, %v8454_v0  ;;  %v8742_v48 = vmul.f32 %v8612_v19, %v8468_v28  ;;  %v8748_v45 = vmul.f32 %v8614_v56, %v8482_v10  ;;  %v4007_v0 = vld [vmem:[#allocation2 + $0x88] sm:$0xff]  ;;  %v4009_v28 = vld [vmem:[#allocation2 + $0x98] sm:$0xff] }
0x2c33   : > { %v4478_v46 = vadd.f32 %v4477_v61, %v4476_v35  ;;  %9727 = vst [vmem:[#allocation31_spill] sm:$0xff] %v8708_v5  ;;  %9728 = vst [vmem:[#allocation32_spill] sm:$0xff] %v8712_v23  ;;  %v8716_v61 = vmul.f32 %v8604_v50, %v8412_v2  ;;  %v4484_v35 = vsel %vm4451_vm3, %v8708_v5, 0.0  ;;  %v4488_v2 = vsel %vm4451_vm3, %v8722_v29, 0.0  ;;  %v4011_v10 = vld [vmem:[#allocation2 + $0xa8] sm:$0xff] }
0x2c34   : > { %v4020_v62 = vld [vmem:[#allocation2 + $0xf0] sm:$0xff]  ;;  %9731 = vst [vmem:[#allocation35_spill] sm:$0xff] %v8730_v9  ;;  %9732 = vst [vmem:[#allocation36_spill] sm:$0xff] %v8736_v39  ;;  %v4490_v50 = vsel %vm4451_vm3, %v8730_v9, 0.0  ;;  %v4492_v57 = vsel %vm4451_vm3, %v8736_v39, 0.0  ;;  %v4494_v32 = vsel %vm4451_vm3, %v8742_v48, 0.0 }
0x2c35   : > { %v4480_v26 = vadd.f32 %v4479_v55, %v4478_v46  ;;  %9729 = vst [vmem:[#allocation33_spill] sm:$0xff] %v8716_v61  ;;  %v4483_v46 = vsel %vm4451_vm3, %v8712_v23, 0.0  ;;  %v4486_v33 = vsel %vm4451_vm3, %v8716_v61, 0.0  ;;  %9733 = vst [vmem:[#allocation37_spill] sm:$0xff] %v8742_v48  ;;  %v4496_v19 = vsel %vm4451_vm3, %v8748_v45, 0.0 }
0x2c36   : > { %v4485_v53 = vadd.f32 %v4484_v35, %v4483_v46  ;;  %9734 = vst [vmem:[#allocation38_spill] sm:$0xff] %v8748_v45  ;;  %v4531_v46 = vld [vmem:[%s9654_s9 + $0x18] sm:$0xff] }
0x2c37   : > { %6341 = vmatprep.subr.mxu0 %v4531_v46 }
0x2c38   : > { %v4487_v52 = vadd.f32 %v4486_v33, %v4485_v53  ;;  %6342 = vmatpush3.msra.mxu0 %v4531_v46 }
0x2c3c   : > { %v4271_v24 = vpop.permute.xlu1 %4270 }
0x2c3d   : > { %v8700_v49 = vmul.f32 %v4271_v24, %v4020_v62  ;;  %v4256_v62 = vpop.permute.xlu0 %4255  ;;  %v4489_v24 = vadd.f32 %v4488_v2, %v4487_v52  ;;  %v4015_v2 = vld [vmem:[#allocation2 + $0xc8] sm:$0xff] }
0x2c3f   : > { %9726 = vst [vmem:[#allocation30_spill] sm:$0xff] %v8700_v49  ;;  %v4481_v51 = vsel %vm4451_vm3, %v8700_v49, 0.0  ;;  %v4491_v55 = vadd.f32 %v4490_v50, %v4489_v24  ;;  %v8779_v50 = vmul.f32 %v8664_v4, %v4015_v2  ;;  %v4528_v4 = vld [vmem:[%s9654_s9] sm:$0xff] }
0x2c40   : > { %v4519_v1 = vpop.permute.xlu1 %4518  ;;  %v4482_v37 = vadd.f32 %v4481_v51, %v4480_v26  ;;  %v8753_v26 = vmul.f32 %v8616_v31, %v4007_v0  ;;  %v4013_v31 = vld [vmem:[#allocation2 + $0xb8] sm:$0xff] }
0x2c41   : > { %v4493_v51 = vadd.f32 %v4492_v57, %v4491_v55  ;;  %9739 = vst [vmem:[#allocation43_spill] sm:$0xff] %v8779_v50  ;;  %v4017_v55 = vld [vmem:[#allocation2 + $0xd8] sm:$0xff] }
0x2c42   : > { %v4526_v14 = vmul.f32 %v4519_v1, %v4482_v37  ;;  %9735 = vst [vmem:[#allocation39_spill] sm:$0xff] %v8753_v26  ;;  %v8758_v1 = vmul.f32 %v8618_v16, %v4009_v28  ;;  %v4266_v37 = vpop.permute.xlu0 %4265  ;;  %v4498_v56 = vsel %vm4451_vm3, %v8753_v26, 0.0  ;;  %v8771_v16 = vmul.f32 %v8648_v34, %v4013_v31  ;;  %v4529_v34 = vld [vmem:[%s9654_s9 + $0x8] sm:$0xff] }
0x2c43   : > { %v4019_v28 = vld [vmem:[#allocation2 + $0xe8] sm:$0xff] }
0x2c44   : > { %4534 = vrot.lane.b32.xlu1 %v4526_v14, %s7048_s17  ;;  %9736 = vst [vmem:[#allocation40_spill] sm:$0xff] %v8758_v1  ;;  %v4495_v14 = vadd.f32 %v4494_v32, %v4493_v51  ;;  %v4500_v33 = vsel %vm4451_vm3, %v8758_v1, 0.0  ;;  %9738 = vst [vmem:[#allocation42_spill] sm:$0xff] %v8771_v16  ;;  %v4504_v0 = vsel %vm4451_vm3, %v8771_v16, 0.0  ;;  %v8786_v32 = vmul.f32 %v4256_v62, %v4017_v55 }
0x2c46   : > { %v4497_v35 = vadd.f32 %v4496_v19, %v4495_v14  ;;  %v4276_v24 = vpop.permute.xlu0 %4275  ;;  %9740 = vst [vmem:[#allocation44_spill] sm:$0xff] %v8786_v32  ;;  %v4021_v19 = vld [vmem:[#allocation2 + $0xf8] sm:$0xff]  ;;  %v4506_v14 = vsel %vm4451_vm3, %v8779_v50, 0.0  ;;  %v4508_v62 = vsel %vm4451_vm3, %v8786_v32, 0.0 }
0x2c47   : > { %v8798_v46 = vmul.f32 %v4276_v24, %v4021_v19 }
0x2c48   : > { %4905 = vrot.lane.b32.xlu1 %v4894_v12, %s7047_s19  ;;  %v8763_v12 = vmul.f32 %v8629_v54, %v4011_v10  ;;  %v4499_v53 = vadd.f32 %v4498_v56, %v4497_v35  ;;  %v4530_v54 = vld [vmem:[%s9654_s9 + $0x10] sm:$0xff]  ;;  %v8793_v10 = vmul.f32 %v4266_v37, %v4019_v28 }
0x2c49   : > { %6343 = vmatprep.subr.mxu0 %v4530_v54  ;;  %9742 = vst [vmem:[#allocation46_spill] sm:$0xff] %v8798_v46  ;;  %v4512_v55 = vsel %vm4451_vm3, %v8798_v46, 0.0 }
0x2c4a   : > { %9737 = vst [vmem:[#allocation41_spill] sm:$0xff] %v8763_v12  ;;  %v4502_v52 = vsel %vm4451_vm3, %v8763_v12, 0.0  ;;  %v4501_v57 = vadd.f32 %v4500_v33, %v4499_v53  ;;  %6344 = vmatpush3.msra.mxu0 %v4530_v54  ;;  %9741 = vst [vmem:[#allocation45_spill] sm:$0xff] %v8793_v10  ;;  %v4524_v31 = vpop.permute.xlu0 %4523  ;;  %v4510_v53 = vsel %vm4451_vm3, %v8793_v10, 0.0 }
0x2c4b   : > { %6345 = vmatprep.subr.mxu0 %v4529_v34 }
0x2c4c   : > { %v4503_v51 = vadd.f32 %v4502_v52, %v4501_v57  ;;  %6346 = vmatpush3.msra.mxu0 %v4529_v34 }
0x2c4d   : > { %6347 = vmatprep.subr.mxu0 %v4528_v4 }
0x2c4e   : > { %v4505_v35 = vadd.f32 %v4504_v0, %v4503_v51  ;;  %6348 = vmatpush3.msra.mxu0 %v4528_v4  ;;  %v8808_v57 = vpop.permute.xlu0 %4907 }
0x2c4f   : > { %v4914_v34 = vmul.f32 %v8808_v57, %v8708_v5  ;;  %v4912_v0 = vmul.f32 %v8808_v57, %v8712_v23  ;;  %v4916_v4 = vmul.f32 %v8808_v57, %v8716_v61 }
0x2c50   : > { %v4507_v33 = vadd.f32 %v4506_v14, %v4505_v35 }
0x2c52   : > { %v4509_v37 = vadd.f32 %v4508_v62, %v4507_v33  ;;  %v4920_v62 = vmul.f32 %v8808_v57, %v8730_v9  ;;  %v4922_v33 = vmul.f32 %v8808_v57, %v8736_v39  ;;  %v7000_v9 = vld [vmem:[%s8383_s24 + $0xe0] sm:$0xff] }
0x2c54   : > { %v4511_v24 = vadd.f32 %v4510_v53, %v4509_v37  ;;  %v4924_v37 = vmul.f32 %v8808_v57, %v8742_v48 }
0x2c56   : > { %v4513_v51 = vadd.f32 %v4512_v55, %v4511_v24  ;;  %v4928_v24 = vmul.f32 %v8808_v57, %v8753_v26 }
0x2c58   : > { %v4527_v28 = vmul.f32 %v4524_v31, %v4513_v51 }
0x2cb6   : > { %v4535_v56 = vpop.permute.xlu1 %4534 }
0x2cb7   : > { %6349 = vmatprep.mubr.msk.f32.mxu0 %vm1199_vm0, %v4535_v56  ;;  %v4918_v56 = vmul.f32 %v8808_v57, %v8722_v29 }
0x2cba   : > { %v8802_v2 = vpop.permute.xlu1 %4905 }
0x2cbb   : > { %v4913_v54 = vmul.f32 %v8802_v2, %v8621_v58  ;;  %v4911_v52 = vmul.f32 %v8802_v2, %v8624_v25  ;;  %v4915_v19 = vmul.f32 %v8802_v2, %v8627_v7  ;;  %v4917_v14 = vmul.f32 %v8802_v2, %v8634_v60 }
0x2cbc   : > { %v4919_v35 = vmul.f32 %v8802_v2, %v8641_v42  ;;  %v4921_v31 = vmul.f32 %v8802_v2, %v8646_v15  ;;  %v4923_v53 = vmul.f32 %v8802_v2, %v8653_v36  ;;  %v4927_v55 = vmul.f32 %v8802_v2, %v8662_v6 }
0x2cbd   : > { %4979 = vrot.lane.b32.xlu0 %v4913_v54, %s7048_s17  ;;  %4975 = vrot.lane.b32.xlu1 %v4911_v52, %s7048_s17  ;;  %v4925_v54 = vmul.f32 %v8802_v2, %v8658_v21  ;;  %v4926_v52 = vmul.f32 %v8808_v57, %v8748_v45  ;;  %v4931_v51 = vmul.f32 %v8802_v2, %v8674_v13  ;;  %v6992_v45 = vld [vmem:[%s8383_s24 + $0xa0] sm:$0xff] }
0x2cc1   : > { %4981 = vrot.lane.b32.xlu0 %v4914_v34, %s7048_s17  ;;  %4977 = vrot.lane.b32.xlu1 %v4912_v0, %s7048_s17  ;;  %v4929_v34 = vmul.f32 %v8802_v2, %v8668_v44  ;;  %v4930_v0 = vmul.f32 %v8808_v57, %v8758_v1 }
0x2cc5   : > { %4536 = vrot.lane.b32.xlu0 %v4527_v28, %s7048_s17  ;;  %4983 = vrot.lane.b32.xlu1 %v4915_v19, %s7048_s17  ;;  %v4932_v28 = vmul.f32 %v8808_v57, %v8763_v12  ;;  %v4933_v19 = vmul.f32 %v8802_v2, %v8679_v38 }
0x2cc9   : > { %4985 = vrot.lane.b32.xlu0 %v4916_v4, %s7048_s17  ;;  %4987 = vrot.lane.b32.xlu1 %v4917_v14, %s7048_s17  ;;  %v4934_v4 = vmul.f32 %v8808_v57, %v8771_v16  ;;  %v4935_v14 = vmul.f32 %v8802_v2, %v8685_v43 }
0x2ccd   : > { %4989 = vrot.lane.b32.xlu0 %v4918_v56, %s7048_s17  ;;  %4991 = vrot.lane.b32.xlu1 %v4919_v35, %s7048_s17  ;;  %v4936_v56 = vmul.f32 %v8808_v57, %v8779_v50  ;;  %v4937_v35 = vmul.f32 %v8802_v2, %v8690_v22 }
0x2cd1   : > { %4993 = vrot.lane.b32.xlu0 %v4920_v62, %s7048_s17  ;;  %4995 = vrot.lane.b32.xlu1 %v4921_v31, %s7048_s17  ;;  %v4938_v62 = vmul.f32 %v8808_v57, %v8786_v32  ;;  %v4939_v31 = vmul.f32 %v8802_v2, %v8696_v30 }
0x2cd5   : > { %4997 = vrot.lane.b32.xlu0 %v4922_v33, %s7048_s17  ;;  %4999 = vrot.lane.b32.xlu1 %v4923_v53, %s7048_s17  ;;  %v4940_v33 = vmul.f32 %v8808_v57, %v8793_v10  ;;  %v4941_v53 = vmul.f32 %v8802_v2, %v8700_v49 }
0x2cd9   : > { %5001 = vrot.lane.b32.xlu0 %v4924_v37, %s7048_s17  ;;  %5003 = vrot.lane.b32.xlu1 %v4925_v54, %s7048_s17  ;;  %v4942_v37 = vmul.f32 %v8808_v57, %v8798_v46 }
0x2cdd   : > { %5005 = vrot.lane.b32.xlu0 %v4926_v52, %s7048_s17  ;;  %5007 = vrot.lane.b32.xlu1 %v4927_v55, %s7048_s17 }
0x2ce1   : > { %5009 = vrot.lane.b32.xlu0 %v4928_v24, %s7048_s17  ;;  %5011 = vrot.lane.b32.xlu1 %v4929_v34, %s7048_s17 }
0x2ce5   : > { %5013 = vrot.lane.b32.xlu0 %v4930_v0, %s7048_s17  ;;  %5015 = vrot.lane.b32.xlu1 %v4931_v51, %s7048_s17 }
0x2ce9   : > { %5017 = vrot.lane.b32.xlu0 %v4932_v28, %s7048_s17  ;;  %5019 = vrot.lane.b32.xlu1 %v4933_v19, %s7048_s17 }
0x2ced   : > { %5021 = vrot.lane.b32.xlu0 %v4934_v4, %s7048_s17  ;;  %5023 = vrot.lane.b32.xlu1 %v4935_v14, %s7048_s17 }
0x2cf1   : > { %5025 = vrot.lane.b32.xlu0 %v4936_v56, %s7048_s17  ;;  %5027 = vrot.lane.b32.xlu1 %v4937_v35, %s7048_s17 }
0x2cf5   : > { %5029 = vrot.lane.b32.xlu0 %v4938_v62, %s7048_s17  ;;  %5031 = vrot.lane.b32.xlu1 %v4939_v31, %s7048_s17 }
0x2cf9   : > { %5033 = vrot.lane.b32.xlu0 %v4940_v33, %s7048_s17  ;;  %5035 = vrot.lane.b32.xlu1 %v4941_v53, %s7048_s17 }
0x2cfd   : > { %5037 = vrot.lane.b32.xlu0 %v4942_v37, %s7048_s17 }
0x2d2f   : > { %v4980_v54 = vpop.permute.xlu0 %4979  ;;  %v4976_v52 = vpop.permute.xlu1 %4975 }
0x2d30   : > { %v5077_v55 = vsel %vm1199_vm0, %v4980_v54, 0.0  ;;  %v5071_v24 = vsel %vm1199_vm0, %v4976_v52, 0.0 }
0x2d31   : > { %5078 = vadd.xlane.f32.xlu0 %v5077_v55  ;;  %5072 = vadd.xlane.f32.xlu1 %v5071_v24 }
0x2d33   : > { %v4982_v34 = vpop.permute.xlu0 %4981  ;;  %v4978_v0 = vpop.permute.xlu1 %4977 }
0x2d34   : > { %v5080_v2 = vsel %vm1199_vm0, %v4982_v34, 0.0  ;;  %v5074_v51 = vsel %vm1199_vm0, %v4978_v0, 0.0 }
0x2d35   : > { %5081 = vadd.xlane.f32.xlu1 %v5080_v2  ;;  %5075 = vadd.xlane.f32.xlu0 %v5074_v51 }
0x2d37   : > { %v4537_v28 = vpop.permute.xlu0 %4536  ;;  %v4984_v57 = vpop.permute.xlu1 %4983 }
0x2d38   : > { %6350 = vmatmul.mubr.msk.f32.vlgmr.msra.gmra.mxu0 %vm1199_vm0, %v4537_v28  ;;  %v5083_v19 = vsel %vm1199_vm0, %v4984_v57, 0.0 }
0x2d39   : > { %5084 = vadd.xlane.f32.xlu0 %v5083_v19 }
0x2d3b   : > { %v4986_v4 = vpop.permute.xlu0 %4985  ;;  %v4988_v14 = vpop.permute.xlu1 %4987 }
0x2d3c   : > { %v5086_v56 = vsel %vm1199_vm0, %v4986_v4, 0.0  ;;  %v5089_v35 = vsel %vm1199_vm0, %v4988_v14, 0.0 }
0x2d3d   : > { %5087 = vadd.xlane.f32.xlu1 %v5086_v56  ;;  %5090 = vadd.xlane.f32.xlu0 %v5089_v35 }
0x2d3f   : > { %v4990_v62 = vpop.permute.xlu0 %4989  ;;  %v4992_v31 = vpop.permute.xlu1 %4991 }
0x2d40   : > { %v5092_v33 = vsel %vm1199_vm0, %v4990_v62, 0.0  ;;  %v5095_v53 = vsel %vm1199_vm0, %v4992_v31, 0.0 }
0x2d41   : > { %5093 = vadd.xlane.f32.xlu1 %v5092_v33  ;;  %5096 = vadd.xlane.f32.xlu0 %v5095_v53 }
0x2d43   : > { %v4994_v37 = vpop.permute.xlu0 %4993  ;;  %v4996_v54 = vpop.permute.xlu1 %4995 }
0x2d44   : > { %v5098_v52 = vsel %vm1199_vm0, %v4994_v37, 0.0  ;;  %v5101_v55 = vsel %vm1199_vm0, %v4996_v54, 0.0 }
0x2d45   : > { %5099 = vadd.xlane.f32.xlu1 %v5098_v52  ;;  %5102 = vadd.xlane.f32.xlu0 %v5101_v55 }
0x2d47   : > { %v4998_v24 = vpop.permute.xlu0 %4997  ;;  %v5000_v34 = vpop.permute.xlu1 %4999 }
0x2d48   : > { %v5104_v0 = vsel %vm1199_vm0, %v4998_v24, 0.0  ;;  %v5107_v2 = vsel %vm1199_vm0, %v5000_v34, 0.0 }
0x2d49   : > { %5105 = vadd.xlane.f32.xlu1 %v5104_v0  ;;  %5108 = vadd.xlane.f32.xlu0 %v5107_v2 }
0x2d4b   : > { %v5002_v51 = vpop.permute.xlu0 %5001  ;;  %v5004_v28 = vpop.permute.xlu1 %5003 }
0x2d4c   : > { %v5110_v57 = vsel %vm1199_vm0, %v5002_v51, 0.0  ;;  %v5113_v19 = vsel %vm1199_vm0, %v5004_v28, 0.0 }
0x2d4d   : > { %5111 = vadd.xlane.f32.xlu1 %v5110_v57  ;;  %5114 = vadd.xlane.f32.xlu0 %v5113_v19 }
0x2d4f   : > { %v5006_v4 = vpop.permute.xlu0 %5005  ;;  %v5008_v14 = vpop.permute.xlu1 %5007 }
0x2d50   : > { %v5116_v56 = vsel %vm1199_vm0, %v5006_v4, 0.0  ;;  %v5119_v35 = vsel %vm1199_vm0, %v5008_v14, 0.0 }
0x2d51   : > { %5117 = vadd.xlane.f32.xlu1 %v5116_v56  ;;  %5120 = vadd.xlane.f32.xlu0 %v5119_v35 }
0x2d53   : > { %v5010_v62 = vpop.permute.xlu0 %5009  ;;  %v5012_v31 = vpop.permute.xlu1 %5011 }
0x2d54   : > { %v5122_v33 = vsel %vm1199_vm0, %v5010_v62, 0.0  ;;  %v5125_v53 = vsel %vm1199_vm0, %v5012_v31, 0.0 }
0x2d55   : > { %5123 = vadd.xlane.f32.xlu1 %v5122_v33  ;;  %5126 = vadd.xlane.f32.xlu0 %v5125_v53 }
0x2d57   : > { %v5014_v37 = vpop.permute.xlu0 %5013  ;;  %v5016_v54 = vpop.permute.xlu1 %5015 }
0x2d58   : > { %v5128_v52 = vsel %vm1199_vm0, %v5014_v37, 0.0  ;;  %v5131_v55 = vsel %vm1199_vm0, %v5016_v54, 0.0 }
0x2d59   : > { %5129 = vadd.xlane.f32.xlu1 %v5128_v52  ;;  %5132 = vadd.xlane.f32.xlu0 %v5131_v55 }
0x2d5b   : > { %v5018_v24 = vpop.permute.xlu0 %5017  ;;  %v5020_v34 = vpop.permute.xlu1 %5019 }
0x2d5c   : > { %v5134_v0 = vsel %vm1199_vm0, %v5018_v24, 0.0  ;;  %v5137_v2 = vsel %vm1199_vm0, %v5020_v34, 0.0 }
0x2d5d   : > { %5135 = vadd.xlane.f32.xlu1 %v5134_v0  ;;  %5138 = vadd.xlane.f32.xlu0 %v5137_v2  ;;  %v8938_v0 = vld [vmem:[#allocation6] ss:$0 sm:$0xff] }
0x2d5f   : > { %v5022_v51 = vpop.permute.xlu0 %5021  ;;  %v5024_v28 = vpop.permute.xlu1 %5023 }
0x2d60   : > { %v5140_v57 = vsel %vm1199_vm0, %v5022_v51, 0.0  ;;  %v5143_v19 = vsel %vm1199_vm0, %v5024_v28, 0.0 }
0x2d61   : > { %5141 = vadd.xlane.f32.xlu1 %v5140_v57  ;;  %5144 = vadd.xlane.f32.xlu0 %v5143_v19 }
0x2d63   : > { %v5026_v4 = vpop.permute.xlu0 %5025  ;;  %v5028_v14 = vpop.permute.xlu1 %5027 }
0x2d64   : > { %v5146_v56 = vsel %vm1199_vm0, %v5026_v4, 0.0  ;;  %v5149_v35 = vsel %vm1199_vm0, %v5028_v14, 0.0 }
0x2d65   : > { %5147 = vadd.xlane.f32.xlu1 %v5146_v56  ;;  %5150 = vadd.xlane.f32.xlu0 %v5149_v35 }
0x2d67   : > { %v5030_v62 = vpop.permute.xlu0 %5029  ;;  %v5032_v31 = vpop.permute.xlu1 %5031 }
0x2d68   : > { %v5152_v33 = vsel %vm1199_vm0, %v5030_v62, 0.0  ;;  %v5155_v53 = vsel %vm1199_vm0, %v5032_v31, 0.0 }
0x2d69   : > { %5153 = vadd.xlane.f32.xlu1 %v5152_v33  ;;  %5156 = vadd.xlane.f32.xlu0 %v5155_v53 }
0x2d6b   : > { %v5034_v37 = vpop.permute.xlu0 %5033  ;;  %v5036_v54 = vpop.permute.xlu1 %5035 }
0x2d6c   : > { %v5158_v52 = vsel %vm1199_vm0, %v5034_v37, 0.0  ;;  %v5161_v55 = vsel %vm1199_vm0, %v5036_v54, 0.0 }
0x2d6d   : > { %5159 = vadd.xlane.f32.xlu1 %v5158_v52  ;;  %5162 = vadd.xlane.f32.xlu0 %v5161_v55 }
0x2d6f   : > { %v5038_v24 = vpop.permute.xlu0 %5037 }
0x2d70   : > { %v5164_v34 = vsel %vm1199_vm0, %v5038_v24, 0.0 }
0x2d71   : > { %5165 = vadd.xlane.f32.xlu1 %v5164_v34 }
0x2dba   : > { %v5079_v2 = vpop.xlane.xlu0 %5078  ;;  %v5073_v51 = vpop.xlane.xlu1 %5072 }
0x2dbb   : > { %v5176_v28 = vadd.f32 %v8938_v0, %v5079_v2  ;;  %v5174_v57 = vadd.f32 %v8938_v0, %v5073_v51 }
0x2dbd   : > { %6751 = vtanh.f32 %v5176_v28 }
0x2dbe   : > { %6753 = vtanh.f32 %v5174_v57  ;;  %v5076_v19 = vpop.xlane.xlu0 %5075  ;;  %v5082_v4 = vpop.xlane.xlu1 %5081 }
0x2dbf   : > { %v5175_v14 = vadd.f32 %v8938_v0, %v5076_v19  ;;  %v5177_v56 = vadd.f32 %v8938_v0, %v5082_v4 }
0x2dc1   : > { %6755 = vtanh.f32 %v5175_v14 }
0x2dc2   : > { %v5085_v35 = vpop.xlane.xlu0 %5084  ;;  %6757 = vtanh.f32 %v5177_v56 }
0x2dc3   : > { %v5178_v62 = vadd.f32 %v8938_v0, %v5085_v35 }
0x2dc5   : > { %6759 = vtanh.f32 %v5178_v62 }
0x2dc6   : > { %v5091_v31 = vpop.xlane.xlu0 %5090  ;;  %v5088_v33 = vpop.xlane.xlu1 %5087 }
0x2dc7   : > { %v5180_v53 = vadd.f32 %v8938_v0, %v5091_v31  ;;  %v5179_v37 = vadd.f32 %v8938_v0, %v5088_v33 }
0x2dc9   : > { %6761 = vtanh.f32 %v5180_v53 }
0x2dca   : > { %v6752_v54 = vpop.eup %6751  ;;  %v5097_v52 = vpop.xlane.xlu0 %5096  ;;  %6763 = vtanh.f32 %v5179_v37 }
0x2dcb   : > { %v5094_v55 = vpop.xlane.xlu1 %5093  ;;  %v6754_v24 = vpop.eup %6753  ;;  %v5182_v34 = vadd.f32 %v8938_v0, %v5097_v52  ;;  %v5242_v51 = vmul.f32 1.442695, %v6752_v54 }
0x2dcc   : > { %v5181_v2 = vadd.f32 %v8938_v0, %v5094_v55  ;;  %v5238_v57 = vmul.f32 1.442695, %v6754_v24 }
0x2dcd   : > { %6765 = vtanh.f32 %v5182_v34 }
0x2dce   : > { %v6756_v28 = vpop.eup %6755  ;;  %v5103_v19 = vpop.xlane.xlu0 %5102  ;;  %6767 = vtanh.f32 %v5181_v2 }
0x2dcf   : > { %v5100_v4 = vpop.xlane.xlu1 %5099  ;;  %v5184_v14 = vadd.f32 %v8938_v0, %v5103_v19  ;;  %v6758_v35 = vpop.eup %6757  ;;  %6769 = vpow2.f32 %v5242_v51  ;;  %v5240_v62 = vmul.f32 1.442695, %v6756_v28 }
0x2dd0   : > { %v5183_v56 = vadd.f32 %v8938_v0, %v5100_v4  ;;  %6771 = vpow2.f32 %v5238_v57  ;;  %v5244_v52 = vmul.f32 1.442695, %v6758_v35 }
0x2dd1   : > { %6773 = vtanh.f32 %v5184_v14 }
0x2dd2   : > { %v6760_v31 = vpop.eup %6759  ;;  %v5109_v33 = vpop.xlane.xlu0 %5108  ;;  %6775 = vtanh.f32 %v5183_v56 }
0x2dd3   : > { %v5106_v53 = vpop.xlane.xlu1 %5105  ;;  %v5186_v37 = vadd.f32 %v8938_v0, %v5109_v33  ;;  %6777 = vpow2.f32 %v5240_v62  ;;  %v5246_v55 = vmul.f32 1.442695, %v6760_v31 }
0x2dd4   : > { %v5185_v54 = vadd.f32 %v8938_v0, %v5106_v53 }
0x2dd5   : > { %6779 = vtanh.f32 %v5186_v37 }
0x2dd6   : > { %v6762_v24 = vpop.eup %6761  ;;  %v5115_v34 = vpop.xlane.xlu0 %5114  ;;  %6781 = vtanh.f32 %v5185_v54 }
0x2dd7   : > { %v5112_v2 = vpop.xlane.xlu1 %5111  ;;  %v5250_v19 = vmul.f32 1.442695, %v6762_v24  ;;  %v5188_v51 = vadd.f32 %v8938_v0, %v5115_v34  ;;  %v6764_v28 = vpop.eup %6763  ;;  %6783 = vpow2.f32 %v5244_v52 }
0x2dd8   : > { %v5187_v57 = vadd.f32 %v8938_v0, %v5112_v2  ;;  %6785 = vpow2.f32 %v5246_v55  ;;  %v5248_v35 = vmul.f32 1.442695, %v6764_v28 }
0x2dd9   : > { %6787 = vpow2.f32 %v5250_v19 }
0x2dda   : > { %v5121_v4 = vpop.xlane.xlu0 %5120  ;;  %6789 = vtanh.f32 %v5188_v51  ;;  %v6766_v31 = vpop.eup %6765 }
0x2ddb   : > { %v5118_v14 = vpop.xlane.xlu1 %5117  ;;  %v5190_v56 = vadd.f32 %v8938_v0, %v5121_v4  ;;  %6791 = vtanh.f32 %v5187_v57  ;;  %v6768_v33 = vpop.eup %6767  ;;  %v5254_v53 = vmul.f32 1.442695, %v6766_v31 }
0x2ddc   : > { %v5189_v62 = vadd.f32 %v8938_v0, %v5118_v14  ;;  %v8957_v37 = vpop.eup %6769  ;;  %v5252_v24 = vmul.f32 1.442695, %v6768_v33 }
0x2ddd   : > { %6793 = vtanh.f32 %v5190_v56  ;;  %v8959_v55 = vpop.eup %6771 }
0x2dde   : > { %6795 = vtanh.f32 %v5189_v62  ;;  %v5127_v54 = vpop.xlane.xlu0 %5126  ;;  %v6774_v19 = vpop.eup %6773 }
0x2ddf   : > { %v5124_v52 = vpop.xlane.xlu1 %5123  ;;  %6797 = vpow2.f32 %v5248_v35  ;;  %v5192_v34 = vadd.f32 %v8938_v0, %v5127_v54  ;;  %v6776_v51 = vpop.eup %6775  ;;  %v5258_v28 = vmul.f32 1.442695, %v6774_v19 }
0x2de0   : > { %v5191_v2 = vadd.f32 %v8938_v0, %v5124_v52  ;;  %6799 = vpow2.f32 %v5254_v53  ;;  %v8963_v57 = vpop.eup %6777  ;;  %v5256_v4 = vmul.f32 1.442695, %v6776_v51 }
0x2de1   : > { %6801 = vtanh.f32 %v5192_v34 }
0x2de2   : > { %6803 = vtanh.f32 %v5191_v2  ;;  %v5133_v14 = vpop.xlane.xlu0 %5132  ;;  %v6780_v62 = vpop.eup %6779 }
0x2de3   : > { %v5130_v56 = vpop.xlane.xlu1 %5129  ;;  %6805 = vpow2.f32 %v5252_v24  ;;  %v5194_v35 = vadd.f32 %v8938_v0, %v5133_v14  ;;  %v6782_v31 = vpop.eup %6781  ;;  %v5262_v33 = vmul.f32 1.442695, %v6780_v62 }
0x2de4   : > { %6807 = vpow2.f32 %v5258_v28  ;;  %v5193_v54 = vadd.f32 %v8938_v0, %v5130_v56  ;;  %v8967_v52 = vpop.eup %6783  ;;  %v5260_v51 = vmul.f32 1.442695, %v6782_v31 }
0x2de5   : > { %6809 = vtanh.f32 %v5194_v35  ;;  %v8969_v53 = vpop.eup %6785 }
0x2de6   : > { %6811 = vpow2.f32 %v5256_v4  ;;  %v5139_v34 = vpop.xlane.xlu0 %5138  ;;  %v8971_v2 = vpop.eup %6787 }
0x2de7   : > { %v5136_v19 = vpop.xlane.xlu1 %5135  ;;  %6813 = vpow2.f32 %v5262_v33  ;;  %v5196_v24 = vadd.f32 %v8938_v0, %v5139_v34  ;;  %v6790_v28 = vpop.eup %6789 }
0x2de8   : > { %v5195_v14 = vadd.f32 %v8938_v0, %v5136_v19  ;;  %6815 = vtanh.f32 %v5193_v54  ;;  %v6792_v62 = vpop.eup %6791  ;;  %v5266_v56 = vmul.f32 1.442695, %v6790_v28 }
0x2de9   : > { %6817 = vtanh.f32 %v5196_v24  ;;  %v5264_v35 = vmul.f32 1.442695, %v6792_v62 }
0x2dea   : > { %v6794_v49 = vpop.eup %6793  ;;  %6819 = vtanh.f32 %v5195_v14  ;;  %v5145_v30 = vpop.xlane.xlu0 %5144 }
0x2deb   : > { %v5142_v4 = vpop.xlane.xlu1 %5141  ;;  %v6796_v22 = vpop.eup %6795  ;;  %6821 = vpow2.f32 %v5260_v51  ;;  %v5270_v43 = vmul.f32 1.442695, %v6794_v49  ;;  %v5198_v33 = vadd.f32 %v8938_v0, %v5145_v30 }
0x2dec   : > { %v8976_v31 = vpop.eup %6797  ;;  %6823 = vpow2.f32 %v5266_v56  ;;  %v5197_v34 = vadd.f32 %v8938_v0, %v5142_v4  ;;  %v5268_v54 = vmul.f32 1.442695, %v6796_v22 }
0x2ded   : > { %v8979_v19 = vpop.eup %6799  ;;  %6825 = vpow2.f32 %v5264_v35 }
0x2dee   : > { %v6802_v24 = vpop.eup %6801  ;;  %6827 = vpow2.f32 %v5270_v43  ;;  %v5151_v28 = vpop.xlane.xlu0 %5150 }
0x2def   : > { %v5148_v14 = vpop.xlane.xlu1 %5147  ;;  %v6804_v62 = vpop.eup %6803  ;;  %v5274_v46 = vmul.f32 1.442695, %v6802_v24  ;;  %6829 = vtanh.f32 %v5198_v33  ;;  %v5200_v49 = vadd.f32 %v8938_v0, %v5151_v28  ;;  %v6973_v24 = vld [vmem:[%s8383_s24 + $0x10] sm:$0xff] }
0x2df0   : > { %v8982_v30 = vpop.eup %6805  ;;  %6831 = vtanh.f32 %v5197_v34  ;;  %v5199_v51 = vadd.f32 %v8938_v0, %v5148_v14  ;;  %v5272_v22 = vmul.f32 1.442695, %v6804_v62  ;;  %v8992_v28 = vmul.f32 %v6973_v24, %v8957_v37  ;;  %v6974_v62 = vld [vmem:[%s8383_s24] sm:$0xff] }
0x2df1   : > { %v8985_v56 = vpop.eup %6807  ;;  %6833 = vpow2.f32 %v5268_v54 }
0x2df2   : > { %v6810_v35 = vpop.eup %6809  ;;  %6835 = vpow2.f32 %v5274_v46  ;;  %v5157_v43 = vpop.xlane.xlu0 %5156  ;;  %v8999_v46 = vmul.f32 %v6974_v62, %v8959_v55  ;;  %v5335_v55 = vsel %vm4310_vm2, %v8992_v28, 0.0 }
0x2df3   : > { %v5154_v4 = vpop.xlane.xlu1 %5153  ;;  %v8987_v38 = vpop.eup %6811  ;;  %6837 = vtanh.f32 %v5200_v49  ;;  %v5202_v33 = vadd.f32 %v8938_v0, %v5157_v43  ;;  %v5278_v14 = vmul.f32 1.442695, %v6810_v35 }
0x2df4   : > { %v8994_v34 = vpop.eup %6813  ;;  %6839 = vtanh.f32 %v5199_v51  ;;  %v5201_v54 = vadd.f32 %v8938_v0, %v5154_v4 }
0x2df5   : > { %v6816_v10 = vpop.eup %6815  ;;  %6841 = vpow2.f32 %v5272_v22 }
0x2df6   : > { %v6818_v49 = vpop.eup %6817  ;;  %v5276_v13 = vmul.f32 1.442695, %v6816_v10  ;;  %6843 = vtanh.f32 %v5202_v33  ;;  %v5163_v43 = vpop.xlane.xlu0 %5162  ;;  %v6975_v10 = vld [vmem:[%s8383_s24 + $0x20] sm:$0xff]  ;;  %v5334_v33 = vsel %vm4310_vm2, %v8999_v46, 0.0 }
0x2df7   : > { %v5160_v37 = vpop.xlane.xlu1 %5159  ;;  %v6820_v24 = vpop.eup %6819  ;;  %v5282_v32 = vmul.f32 1.442695, %v6818_v49  ;;  %6845 = vtanh.f32 %v5201_v54  ;;  %v5204_v51 = vadd.f32 %v8938_v0, %v5163_v43  ;;  %v9009_v4 = vmul.f32 %v6975_v10, %v8969_v53  ;;  %v6976_v54 = vld [vmem:[%s8383_s24 + $0x8] sm:$0xff]  ;;  %v6977_v43 = vld [vmem:[%s8383_s24 + $0x18] sm:$0xff]  ;;  %v6978_v53 = vld [vmem:[%s8383_s24 + $0x30] sm:$0xff] }
0x2df8   : > { %v9004_v35 = vpop.eup %6821  ;;  %6847 = vpow2.f32 %v5278_v14  ;;  %v5203_v22 = vadd.f32 %v8938_v0, %v5160_v37  ;;  %v9017_v49 = vmul.f32 %v6976_v54, %v8963_v57  ;;  %v9021_v14 = vmul.f32 %v6977_v43, %v8967_v52  ;;  %v6979_v52 = vld [vmem:[%s8383_s24 + $0x40] sm:$0xff] }
0x2df9   : > { %v9013_v62 = vpop.eup %6823  ;;  %6849 = vpow2.f32 %v5276_v13  ;;  %v9027_v10 = vmul.f32 %v6978_v53, %v8971_v2  ;;  %v5280_v44 = vmul.f32 1.442695, %v6820_v24  ;;  %v5336_v54 = vadd.f32 %v5335_v55, %v5334_v33  ;;  %v6980_v53 = vld [vmem:[%s8383_s24 + $0x28] sm:$0xff]  ;;  %v6981_v55 = vld [vmem:[%s8383_s24 + $0x38] sm:$0xff] }
0x2dfa   : > { %v9023_v37 = vpop.eup %6825  ;;  %6851 = vpow2.f32 %v5282_v32  ;;  %v9034_v43 = vmul.f32 %v6979_v52, %v8979_v19  ;;  %v5337_v2 = vsel %vm4310_vm2, %v9009_v4, 0.0  ;;  %v9040_v32 = vmul.f32 %v6980_v53, %v8976_v31  ;;  %v6982_v53 = vld [vmem:[%s8383_s24 + $0x50] sm:$0xff] }
0x2dfb   : > { %v5166_v50 = vpop.xlane.xlu1 %5165  ;;  %v9029_v13 = vpop.eup %6827  ;;  %6853 = vtanh.f32 %v5204_v51  ;;  %v5339_v31 = vsel %vm4310_vm2, %v9027_v10, 0.0  ;;  %v9054_v16 = vmul.f32 %v6982_v53, %v8985_v56  ;;  %v6984_v56 = vld [vmem:[%s8383_s24 + $0x60] sm:$0xff] }
0x2dfc   : > { %v5205_v57 = vadd.f32 %v8938_v0, %v5166_v50  ;;  %v6830_v6 = vpop.eup %6829  ;;  %6855 = vtanh.f32 %v5203_v22  ;;  %9743 = vst [vmem:[#allocation47_spill] sm:$0xff] %v9040_v32  ;;  %v5365_v50 = vsel %vm4310_vm2, %v9017_v49, 0.0  ;;  %v5366_v0 = vsel %vm4310_vm2, %v9021_v14, 0.0 }
0x2dfd   : > { %v6832_v24 = vpop.eup %6831  ;;  %v5286_v51 = vmul.f32 1.442695, %v6830_v6  ;;  %v9048_v22 = vmul.f32 %v6981_v55, %v8982_v30  ;;  %v5338_v6 = vadd.f32 %v5337_v2, %v5336_v54  ;;  %v5341_v21 = vsel %vm4310_vm2, %v9034_v43, 0.0 }
0x2dfe   : > { %6857 = vtanh.f32 %v5205_v57  ;;  %v6834_v19 = vpop.eup %6833  ;;  %v5284_v33 = vmul.f32 1.442695, %v6832_v24  ;;  %v6983_v24 = vld [vmem:[%s8383_s24 + $0x48] sm:$0xff]  ;;  %v5367_v2 = vadd.f32 %v5366_v0, %v5365_v50  ;;  %v5343_v50 = vsel %vm4310_vm2, %v9054_v16, 0.0  ;;  %v6985_v0 = vld [vmem:[%s8383_s24 + $0x58] sm:$0xff] }
0x2dff   : > { %9744 = vst [vmem:[#allocation48_spill] sm:$0xff] %v9048_v22  ;;  %6859 = vpow2.f32 %v5280_v44  ;;  %v6836_v52 = vpop.eup %6835  ;;  %v5368_v44 = vsel %vm4310_vm2, %v9040_v32, 0.0  ;;  %v9062_v55 = vmul.f32 %v6983_v24, %v8987_v38  ;;  %v5340_v54 = vadd.f32 %v5339_v31, %v5338_v6 }
0x2e00   : > { %6861 = vpow2.f32 %v5286_v51  ;;  %v6838_v57 = vpop.eup %6837  ;;  %v5370_v36 = vsel %vm4310_vm2, %v9048_v22, 0.0  ;;  %v5369_v26 = vadd.f32 %v5368_v44, %v5367_v2  ;;  %v9074_v31 = vmul.f32 %v6985_v0, %v9004_v35  ;;  %v6987_v35 = vld [vmem:[%s8383_s24 + $0x68] sm:$0xff] }
0x2e01   : > { %6863 = vpow2.f32 %v5284_v33  ;;  %v6840_v30 = vpop.eup %6839  ;;  %v5290_v51 = vmul.f32 1.442695, %v6838_v57  ;;  %v9066_v33 = vmul.f32 %v6984_v56, %v8994_v34  ;;  %v5342_v15 = vadd.f32 %v5341_v21, %v5340_v54  ;;  %v6986_v57 = vld [vmem:[%s8383_s24 + $0x70] sm:$0xff]  ;;  %v7003_v22 = vld [vmem:[%s8383_s24 + $0xe8] sm:$0xff] }
0x2e02   : > { %v6842_v12 = vpop.eup %6841  ;;  %v5288_v53 = vmul.f32 1.442695, %v6840_v30  ;;  %v9078_v30 = vmul.f32 %v6986_v57, %v9013_v62  ;;  %v5371_v24 = vadd.f32 %v5370_v36, %v5369_v26  ;;  %v5372_v44 = vsel %vm4310_vm2, %v9062_v55, 0.0 }
0x2e03   : > { %v6844_v1 = vpop.eup %6843  ;;  %6865 = vpow2.f32 %v5290_v51  ;;  %v5345_v54 = vsel %vm4310_vm2, %v9066_v33, 0.0  ;;  %v9086_v2 = vmul.f32 %v6987_v35, %v9023_v37  ;;  %v5344_v36 = vadd.f32 %v5343_v50, %v5342_v15 }
0x2e04   : > { %v6846_v38 = vpop.eup %6845  ;;  %6867 = vpow2.f32 %v5288_v53  ;;  %v5294_v34 = vmul.f32 1.442695, %v6844_v1  ;;  %v6988_v1 = vld [vmem:[%s8383_s24 + $0x80] sm:$0xff]  ;;  %v5374_v53 = vsel %vm4310_vm2, %v9074_v31, 0.0  ;;  %v5373_v57 = vadd.f32 %v5372_v44, %v5371_v24 }
0x2e05   : > { %v6848_v6 = vpop.eup %6847  ;;  %v5292_v21 = vmul.f32 1.442695, %v6846_v38  ;;  %v9090_v56 = vmul.f32 %v6988_v1, %v9029_v13  ;;  %v6989_v38 = vld [vmem:[%s8383_s24 + $0x78] sm:$0xff]  ;;  %v5347_v35 = vsel %vm4310_vm2, %v9078_v30, 0.0  ;;  %v6990_v13 = vld [vmem:[%s8383_s24 + $0x90] sm:$0xff]  ;;  %v5376_v50 = vsel %vm4310_vm2, %v9086_v2, 0.0 }
0x2e06   : > { %v6850_v51 = vpop.eup %6849  ;;  %6869 = vpow2.f32 %v5294_v34  ;;  %v9095_v0 = vmul.f32 %v6989_v38, %v6834_v19  ;;  %v9100_v1 = vmul.f32 %v6990_v13, %v6836_v52  ;;  %v6991_v19 = vld [vmem:[%s8383_s24 + $0x88] sm:$0xff]  ;;  %v9110_v60 = vmul.f32 %v6992_v45, %v6848_v6  ;;  %v6993_v13 = vld [vmem:[%s8383_s24 + $0x98] sm:$0xff]  ;;  %v6994_v6 = vld [vmem:[%s8383_s24 + $0xb0] sm:$0xff] }
0x2e07   : > { %v6852_v62 = vpop.eup %6851  ;;  %6871 = vpow2.f32 %v5292_v21  ;;  %v5346_v21 = vadd.f32 %v5345_v54, %v5344_v36  ;;  %v5349_v42 = vsel %vm4310_vm2, %v9090_v56, 0.0  ;;  %v9107_v38 = vmul.f32 %v6991_v19, %v6842_v12 }
0x2e08   : > { %v6854_v26 = vpop.eup %6853  ;;  %v5375_v54 = vadd.f32 %v5374_v53, %v5373_v57  ;;  %v9115_v48 = vmul.f32 %v6993_v13, %v6850_v51  ;;  %v5351_v45 = vsel %vm4310_vm2, %v9100_v1, 0.0 }
0x2e09   : > { %v6856_v37 = vpop.eup %6855  ;;  %v5298_v34 = vmul.f32 1.442695, %v6854_v26  ;;  %v5378_v26 = vsel %vm4310_vm2, %v9095_v0, 0.0  ;;  %v5348_v12 = vadd.f32 %v5347_v35, %v5346_v21  ;;  %v5380_v57 = vsel %vm4310_vm2, %v9107_v38, 0.0  ;;  %v6996_v21 = vld [vmem:[%s8383_s24 + $0xc0] sm:$0xff] }
0x2e0a   : > { %v5296_v24 = vmul.f32 1.442695, %v6856_v37  ;;  %v9120_v37 = vmul.f32 %v6994_v6, %v6852_v62  ;;  %v5377_v53 = vadd.f32 %v5376_v50, %v5375_v54  ;;  %v5353_v35 = vsel %vm4310_vm2, %v9110_v60, 0.0 }
0x2e0b   : > { %v6858_v15 = vpop.eup %6857  ;;  %6873 = vpow2.f32 %v5298_v34  ;;  %v6995_v34 = vld [vmem:[%s8383_s24 + $0xa8] sm:$0xff]  ;;  %v5350_v51 = vadd.f32 %v5349_v42, %v5348_v12  ;;  %v5382_v50 = vsel %vm4310_vm2, %v9115_v48, 0.0  ;;  %v6998_v12 = vld [vmem:[%s8383_s24 + $0xd0] sm:$0xff] }
0x2e0c   : > { %v6860_v44 = vpop.eup %6859  ;;  %v5300_v52 = vmul.f32 1.442695, %v6858_v15  ;;  %6875 = vpow2.f32 %v5296_v24  ;;  %v5379_v13 = vadd.f32 %v5378_v26, %v5377_v53  ;;  %v5355_v42 = vsel %vm4310_vm2, %v9120_v37, 0.0  ;;  %v6999_v26 = vld [vmem:[%s8383_s24 + $0xc8] sm:$0xff] }
0x2e0d   : > { %v6862_v36 = vpop.eup %6861  ;;  %v9125_v15 = vmul.f32 %v6995_v34, %v6860_v44  ;;  %v5352_v6 = vadd.f32 %v5351_v45, %v5350_v51 }
0x2e0e   : > { %v6864_v19 = vpop.eup %6863  ;;  %6877 = vpow2.f32 %v5300_v52  ;;  %v9130_v24 = vmul.f32 %v6996_v21, %v6862_v36  ;;  %v6997_v52 = vld [vmem:[%s8383_s24 + $0xb8] sm:$0xff]  ;;  %v5381_v7 = vadd.f32 %v5380_v57, %v5379_v13 }
0x2e0f   : > { %v9135_v54 = vmul.f32 %v6997_v52, %v6864_v19  ;;  %v5384_v36 = vsel %vm4310_vm2, %v9125_v15, 0.0  ;;  %v5354_v21 = vadd.f32 %v5353_v35, %v5352_v6 }
0x2e10   : > { %v6866_v62 = vpop.eup %6865  ;;  %v5357_v19 = vsel %vm4310_vm2, %v9130_v24, 0.0  ;;  %v5383_v45 = vadd.f32 %v5382_v50, %v5381_v7 }
0x2e11   : > { %v6868_v44 = vpop.eup %6867  ;;  %v5328_v34 = vmul.f32 %v6998_v12, %v6866_v62  ;;  %v5386_v52 = vsel %vm4310_vm2, %v9135_v54, 0.0  ;;  %v5356_v57 = vadd.f32 %v5355_v42, %v5354_v21  ;;  %v7001_v12 = vld [vmem:[%s8383_s24 + $0xd8] sm:$0xff] }
0x2e12   : > { %v9143_v53 = vmul.f32 %v6999_v26, %v6868_v44  ;;  %v5385_v26 = vadd.f32 %v5384_v36, %v5383_v45 }
0x2e13   : > { %v6870_v39 = vpop.eup %6869  ;;  %v5359_v13 = vsel %vm4310_vm2, %v5328_v34, 0.0  ;;  %v5358_v6 = vadd.f32 %v5357_v19, %v5356_v57 }
0x2e14   : > { %v6872_v51 = vpop.eup %6871  ;;  %v5330_v62 = vmul.f32 %v7000_v9, %v6870_v39  ;;  %v5388_v35 = vsel %vm4310_vm2, %v9143_v53, 0.0  ;;  %v5387_v50 = vadd.f32 %v5386_v52, %v5385_v26  ;;  %v7002_v39 = vld [vmem:[%s8383_s24 + $0xf0] sm:$0xff] }
0x2e15   : > { %v5329_v44 = vmul.f32 %v7001_v12, %v6872_v51  ;;  %v5360_v5 = vadd.f32 %v5359_v13, %v5358_v6  ;;  %v7004_v12 = vld [vmem:[%s8383_s24 + $0xf8] sm:$0xff] }
0x2e16   : > { %v5361_v7 = vsel %vm4310_vm2, %v5330_v62, 0.0  ;;  %v5389_v21 = vadd.f32 %v5388_v35, %v5387_v50 }
0x2e17   : > { %v5390_v61 = vsel %vm4310_vm2, %v5329_v44, 0.0  ;;  %v5362_v36 = vadd.f32 %v5361_v7, %v5360_v5 }
0x2e18   : > { %v6874_v29 = vpop.eup %6873  ;;  %v5391_v19 = vadd.f32 %v5390_v61, %v5389_v21 }
0x2e19   : > { %v6876_v9 = vpop.eup %6875  ;;  %v5332_v42 = vmul.f32 %v7002_v39, %v6874_v29  ;;  %v6351_v39 = vpop.f32.mrf.mxu0 }
0x2e1a   : > { %v5331_v51 = vmul.f32 %v7003_v22, %v6876_v9 }
0x2e1b   : > { %v6878_v23 = vpop.eup %6877  ;;  %v5363_v45 = vsel %vm4310_vm2, %v5332_v42, 0.0 }
0x2e1c   : > { %v5333_v32 = vmul.f32 %v7004_v12, %v6878_v23  ;;  %v5392_v57 = vsel %vm4310_vm2, %v5331_v51, 0.0  ;;  %v5364_v52 = vadd.f32 %v5363_v45, %v5362_v36  ;;  %v4622_v36 = vmul.f32 %v6351_v39, %v8419_v47 }
0x2e1d   : > { %v5393_v58 = vadd.f32 %v5392_v57, %v5391_v19  ;;  %v4624_v45 = vmul.f32 %v6351_v39, %v8432_v3  ;;  %v4626_v19 = vmul.f32 %v6351_v39, %v8446_v40 }
0x2e1e   : > { %v5394_v26 = vsel %vm4310_vm2, %v5333_v32, 0.0  ;;  %v5396_v13 = vmax.f32 %v5364_v52, 1e-12  ;;  %v4628_v52 = vmul.f32 %v6351_v39, %v8462_v11 }
0x2e1f   : > { %v5395_v6 = vadd.f32 %v5394_v26, %v5393_v58  ;;  %v4654_v12 = vsel %vm1199_vm0, %v4624_v45, 0.0  ;;  %v4660_v57 = vsel %vm1199_vm0, %v4626_v19, 0.0  ;;  %v9746_v45 = vld [vmem:[#allocation12_spill] sm:$0xff] }
0x2e20   : > { %6879 = vrcp.f32 %v5396_v13  ;;  %v4666_v26 = vsel %vm1199_vm0, %v4628_v52, 0.0  ;;  %v4630_v13 = vmul.f32 %v6351_v39, %v8476_v27  ;;  %v9748_v52 = vld [vmem:[#allocation15_spill] sm:$0xff] }
0x2e21   : > { %v5397_v29 = vmax.f32 %v5395_v6, 1e-12 }
0x2e22   : > { %v4672_v6 = vsel %vm1199_vm0, %v4630_v13, 0.0 }
0x2e23   : > { %6881 = vrcp.f32 %v5397_v29 }
0x2e2d   : > { %v9162_v35 = vpop.eup %6879 }
0x2e2e   : > { %v5402_v5 = vmul.f32 %v9162_v35, %v8992_v28  ;;  %v5400_v23 = vmul.f32 %v9162_v35, %v8999_v46  ;;  %v9170_v61 = vmul.f32 %v9162_v35, %v9034_v43  ;;  %v9174_v22 = vmul.f32 %v9162_v35, %v9054_v16 }
0x2e2f   : > { %v9178_v58 = vmul.f32 %v9162_v35, %v9066_v33  ;;  %v9182_v7 = vmul.f32 %v9162_v35, %v9078_v30  ;;  %v9188_v46 = vmul.f32 %v9162_v35, %v9090_v56  ;;  %v9192_v16 = vmul.f32 %v9162_v35, %v9100_v1 }
0x2e30   : > { %v9184_v28 = vpop.eup %6881  ;;  %5570 = vperm.xlu1 %6414, %v5402_v5   ;;  %5560 = vperm.xlu0 %6413, %v5400_v23   ;;  %v9196_v43 = vmul.f32 %v9162_v35, %v9110_v60  ;;  %v9200_v33 = vmul.f32 %v9162_v35, %v9120_v37  ;;  %v9204_v30 = vmul.f32 %v9162_v35, %v9130_v24 }
0x2e31   : > { %v9207_v50 = vmul.f32 %v9162_v35, %v5328_v34  ;;  %v9210_v56 = vmul.f32 %v9162_v35, %v5330_v62  ;;  %v9213_v1 = vmul.f32 %v9162_v35, %v5332_v42  ;;  %v9217_v60 = vmul.f32 %v9184_v28, %v9062_v55  ;;  %v4608_v42 = vpop.f32.mrf.mxu0 }
0x2e32   : > { %v9221_v37 = vmul.f32 %v9184_v28, %v9074_v31  ;;  %v9225_v24 = vmul.f32 %v9184_v28, %v9086_v2  ;;  %v9229_v34 = vmul.f32 %v9184_v28, %v9095_v0  ;;  %v9233_v62 = vmul.f32 %v9184_v28, %v9107_v38 }
0x2e33   : > { %v9237_v55 = vmul.f32 %v9184_v28, %v9115_v48  ;;  %v9241_v31 = vmul.f32 %v9184_v28, %v9125_v15  ;;  %v9245_v2 = vmul.f32 %v9184_v28, %v9135_v54  ;;  %v9249_v0 = vmul.f32 %v9184_v28, %v9143_v53 }
0x2e34   : > { %v9252_v9 = vmul.f32 %v9184_v28, %v5329_v44  ;;  %v9255_v38 = vmul.f32 %v9184_v28, %v5331_v51  ;;  %v9258_v48 = vmul.f32 %v9184_v28, %v5333_v32  ;;  %v4618_v15 = vmul.f32 %v6351_v39, %v8398_v20 }
0x2e35   : > { %v4617_v21 = vmul.f32 %v4608_v42, %v8424_v59  ;;  %v4620_v53 = vmul.f32 %v6351_v39, %v8403_v63  ;;  %v4648_v32 = vsel %vm1199_vm0, %v4622_v36, 0.0  ;;  %v5403_v29 = vmul.f32 %v9184_v28, %v9021_v14 }
0x2e36   : > { %v4636_v54 = vsel %vm1199_vm0, %v4618_v15, 0.0  ;;  %v4632_v5 = vmul.f32 %v6351_v39, %v8489_v41  ;;  %v4619_v15 = vmul.f32 %v4608_v42, %v8410_v8  ;;  %v4621_v14 = vmul.f32 %v4608_v42, %v8429_v17 }
0x2e37   : > { %v4633_v44 = vsel %vm1199_vm0, %v4617_v21, 0.0  ;;  %v4642_v51 = vsel %vm1199_vm0, %v4620_v53, 0.0  ;;  %v5401_v21 = vmul.f32 %v9184_v28, %v9017_v49  ;;  %v5404_v53 = vmul.f32 %v9162_v35, %v9009_v4 }
0x2e38   : > { %v4678_v23 = vsel %vm1199_vm0, %v4632_v5, 0.0  ;;  %v4645_v39 = vsel %vm1199_vm0, %v4621_v14, 0.0 }
0x2e4f   : > { %4637 = vadd.xlane.f32.xlu0 %v4636_v54  ;;  %v4639_v54 = vsel %vm1199_vm0, %v4619_v15, 0.0 }
0x2e53   : > { %4634 = vadd.xlane.f32.xlu0 %v4633_v44  ;;  %v5406_v44 = vmul.f32 %v9162_v35, %v9027_v10  ;;  %v9747_v35 = vld [vmem:[#allocation14_spill] sm:$0xff] }
0x2e54   : > { %4643 = vadd.xlane.f32.xlu1 %v4642_v51  ;;  %v4623_v51 = vmul.f32 %v4608_v42, %v8441_v18  ;;  %v4629_v19 = vmul.f32 %v4608_v42, %v9747_v35 }
0x2e56   : > { %v4651_v36 = vsel %vm1199_vm0, %v4623_v51, 0.0 }
0x2e58   : > { %4649 = vadd.xlane.f32.xlu1 %v4648_v32  ;;  %v9745_v32 = vld [vmem:[#allocation11_spill] sm:$0xff] }
0x2e59   : > { %v4625_v49 = vmul.f32 %v4608_v42, %v9745_v32 }
0x2e5b   : > { %v4657_v4 = vsel %vm1199_vm0, %v4625_v49, 0.0 }
0x2e5c   : > { %4655 = vadd.xlane.f32.xlu1 %v4654_v12  ;;  %v4627_v12 = vmul.f32 %v4608_v42, %v9746_v45 }
0x2e5e   : > { %v4663_v10 = vsel %vm1199_vm0, %v4627_v12, 0.0 }
0x2e60   : > { %4661 = vadd.xlane.f32.xlu1 %v4660_v57  ;;  %v4669_v57 = vsel %vm1199_vm0, %v4629_v19, 0.0 }
0x2e64   : > { %4667 = vadd.xlane.f32.xlu1 %v4666_v26  ;;  %v4631_v26 = vmul.f32 %v4608_v42, %v9748_v52 }
0x2e68   : > { %4673 = vadd.xlane.f32.xlu1 %v4672_v6  ;;  %v9749_v6 = vld [vmem:[#allocation16_spill] sm:$0xff] }
0x2e69   : > { %5575 = vperm.xlu0 %6413, %v5403_v29  }
0x2e6c   : > { %4679 = vadd.xlane.f32.xlu1 %v4678_v23 }
0x2e70   : > { %4640 = vadd.xlane.f32.xlu1 %v4639_v54 }
0x2e81   : > { %5565 = vperm.xlu1 %6414, %v5401_v21  }
0x2e85   : > { %5580 = vperm.xlu1 %6414, %v5404_v53  }
0x2e88   : > { %4646 = vadd.xlane.f32.xlu0 %v4645_v39 }
0x2e89   : > { %5590 = vperm.xlu1 %6414, %v5406_v44  }
0x2e8c   : > { %4652 = vadd.xlane.f32.xlu0 %v4651_v36 }
0x2e8d   : > { %5600 = vperm.xlu1 %6414, %v9170_v61   ;;  %v4675_v61 = vsel %vm1199_vm0, %v4631_v26, 0.0 }
0x2e90   : > { %4658 = vadd.xlane.f32.xlu0 %v4657_v4 }
0x2e91   : > { %5610 = vperm.xlu1 %6414, %v9174_v22  }
0x2e94   : > { %4664 = vadd.xlane.f32.xlu0 %v4663_v10 }
0x2e95   : > { %5620 = vperm.xlu1 %6414, %v9178_v58  }
0x2e98   : > { %4670 = vadd.xlane.f32.xlu0 %v4669_v57 }
0x2e99   : > { %5630 = vperm.xlu1 %6414, %v9182_v7  }
0x2e9c   : > { %4676 = vadd.xlane.f32.xlu0 %v4675_v61 }
0x2e9d   : > { %5640 = vperm.xlu1 %6414, %v9188_v46   ;;  %v9750_v46 = vld [vmem:[#allocation47_spill] sm:$0xff] }
0x2ea1   : > { %5650 = vperm.xlu1 %6414, %v9192_v16   ;;  %v5405_v16 = vmul.f32 %v9184_v28, %v9750_v46 }
0x2ea5   : > { %5660 = vperm.xlu1 %6414, %v9196_v43   ;;  %v9751_v43 = vld [vmem:[#allocation48_spill] sm:$0xff] }
0x2ea9   : > { %5670 = vperm.xlu1 %6414, %v9200_v33   ;;  %v5407_v33 = vmul.f32 %v9184_v28, %v9751_v43  ;;  %v7008_v43 = vld [vmem:[%s8318_s21 + $0x38] sm:$0xff] }
0x2eab   : > { %v5561_v22 = vpop.permute.xlu0 %5560  ;;  %v5571_v58 = vpop.permute.xlu1 %5570 }
0x2eac   : > { %v5718_v13 = vmul.f32 %v5561_v22, %v8624_v25  ;;  %v5720_v42 = vmul.f32 %v5571_v58, %v9749_v6  ;;  %v9331_v25 = vld [vmem:[#allocation5] ss:$0 sm:$0xff] }
0x2ead   : > { %5680 = vperm.xlu1 %6414, %v9204_v30   ;;  %v7005_v22 = vld [vmem:[%s8318_s21 + $0x18] sm:$0xff] }
0x2eae   : > { %v5750_v7 = vsel %vm4451_vm3, %v5718_v13, 0.0  ;;  %v5751_v29 = vsel %vm4451_vm3, %v5720_v42, 0.0  ;;  %v7006_v42 = vld [vmem:[%s8318_s21 + $0x8] sm:$0xff] }
0x2eaf   : > { %v9313_v5 = vadd.f32 %v5751_v29, %v5750_v7  ;;  %v7007_v29 = vld [vmem:[%s8318_s21 + $0x28] sm:$0xff] }
0x2eb1   : > { %5690 = vperm.xlu1 %6414, %v9207_v50  }
0x2eb2   : > { %5585 = vperm.xlu0 %6413, %v5405_v16  }
0x2eb5   : > { %5700 = vperm.xlu1 %6414, %v9210_v56  }
0x2eb6   : > { %5595 = vperm.xlu0 %6413, %v5407_v33  }
0x2eb9   : > { %5710 = vperm.xlu1 %6414, %v9213_v1  }
0x2eba   : > { %5605 = vperm.xlu0 %6413, %v9217_v60  }
0x2ebe   : > { %5615 = vperm.xlu0 %6413, %v9221_v37  }
0x2ec2   : > { %5625 = vperm.xlu0 %6413, %v9225_v24  }
0x2ec6   : > { %5635 = vperm.xlu0 %6413, %v9229_v34  }
0x2eca   : > { %5645 = vperm.xlu0 %6413, %v9233_v62  }
0x2ece   : > { %5655 = vperm.xlu0 %6413, %v9237_v55  }
0x2ed2   : > { %5665 = vperm.xlu0 %6413, %v9241_v31  }
0x2ed6   : > { %5675 = vperm.xlu0 %6413, %v9245_v2  }
0x2ed8   : > { %v4638_v28 = vpop.xlane.xlu0 %4637 }
0x2ed9   : > { %v4689_v50 = vadd.f32 %v9331_v25, %v4638_v28 }
0x2eda   : > { %5685 = vperm.xlu0 %6413, %v9249_v0  }
0x2edb   : > { %6883 = vtanh.f32 %v4689_v50 }
0x2edc   : > { %v4635_v6 = vpop.xlane.xlu0 %4634 }
0x2edd   : > { %v4644_v30 = vpop.xlane.xlu1 %4643 }
0x2ede   : > { %5695 = vperm.xlu0 %6413, %v9252_v9   ;;  %v4691_v56 = vadd.f32 %v9331_v25, %v4644_v30 }
0x2ee0   : > { %6885 = vtanh.f32 %v4691_v56  ;;  %v7009_v56 = vld [vmem:[%s8318_s21 + $0x48] sm:$0xff] }
0x2ee1   : > { %v4650_v1 = vpop.xlane.xlu1 %4649 }
0x2ee2   : > { %v4693_v60 = vadd.f32 %v9331_v25, %v4650_v1  ;;  %5705 = vperm.xlu0 %6413, %v9255_v38  }
0x2ee4   : > { %6887 = vtanh.f32 %v4693_v60  ;;  %v9358_v50 = vpop.permute.xlu0 %5575 }
0x2ee5   : > { %v4656_v37 = vpop.xlane.xlu1 %4655 }
0x2ee6   : > { %v4695_v24 = vadd.f32 %v9331_v25, %v4656_v37  ;;  %5715 = vperm.xlu0 %6413, %v9258_v48  }
0x2ee8   : > { %6889 = vtanh.f32 %v4695_v24  ;;  %v6884_v2 = vpop.eup %6883 }
0x2ee9   : > { %v4662_v34 = vpop.xlane.xlu1 %4661  ;;  %v4722_v23 = vmul.f32 1.442695, %v6884_v2 }
0x2eea   : > { %v4697_v62 = vadd.f32 %v9331_v25, %v4662_v34  ;;  %v4688_v34 = vadd.f32 %v9331_v25, %v4635_v6 }
0x2eec   : > { %6891 = vtanh.f32 %v4697_v62 }
0x2eed   : > { %v4668_v55 = vpop.xlane.xlu1 %4667  ;;  %v6886_v0 = vpop.eup %6885 }
0x2eee   : > { %v4699_v31 = vadd.f32 %v9331_v25, %v4668_v55  ;;  %v4726_v54 = vmul.f32 1.442695, %v6886_v0  ;;  %v7010_v55 = vld [vmem:[%s8318_s21 + $0x58] sm:$0xff] }
0x2ef0   : > { %6893 = vtanh.f32 %v4699_v31 }
0x2ef1   : > { %v6888_v9 = vpop.eup %6887  ;;  %v4674_v38 = vpop.xlane.xlu1 %4673 }
0x2ef2   : > { %v4701_v15 = vadd.f32 %v9331_v25, %v4674_v38  ;;  %v4730_v21 = vmul.f32 1.442695, %v6888_v9 }
0x2ef4   : > { %6895 = vtanh.f32 %v4701_v15 }
0x2ef5   : > { %v6890_v53 = vpop.eup %6889  ;;  %v4680_v48 = vpop.xlane.xlu1 %4679  ;;  %6897 = vpow2.f32 %v4722_v23 }
0x2ef6   : > { %v4703_v14 = vadd.f32 %v9331_v25, %v4680_v48  ;;  %6899 = vpow2.f32 %v4726_v54  ;;  %v4734_v39 = vmul.f32 1.442695, %v6890_v53  ;;  %v7011_v48 = vld [vmem:[%s8318_s21 + $0x68] sm:$0xff] }
0x2ef7   : > { %6901 = vpow2.f32 %v4730_v21 }
0x2ef8   : > { %6903 = vtanh.f32 %v4703_v14 }
0x2ef9   : > { %v6892_v44 = vpop.eup %6891  ;;  %6905 = vpow2.f32 %v4734_v39  ;;  %v4641_v30 = vpop.xlane.xlu1 %4640 }
0x2efa   : > { %v4738_v51 = vmul.f32 1.442695, %v6892_v44  ;;  %v4690_v2 = vadd.f32 %v9331_v25, %v4641_v30 }
0x2efc   : > { %6907 = vpow2.f32 %v4738_v51 }
0x2efd   : > { %v6894_v36 = vpop.eup %6893 }
0x2efe   : > { %v4742_v49 = vmul.f32 1.442695, %v6894_v36 }
0x2f00   : > { %6909 = vpow2.f32 %v4742_v49 }
0x2f01   : > { %v6896_v4 = vpop.eup %6895 }
0x2f02   : > { %v6898_v12 = vpop.eup %6897  ;;  %v4746_v10 = vmul.f32 1.442695, %v6896_v4 }
0x2f03   : > { %v6900_v19 = vpop.eup %6899  ;;  %v9348_v7 = vmul.f32 %v7006_v42, %v6898_v12  ;;  %v7012_v12 = vld [vmem:[%s8318_s21 + $0x78] sm:$0xff] }
0x2f04   : > { %v6902_v57 = vpop.eup %6901  ;;  %6911 = vpow2.f32 %v4746_v10  ;;  %v9345_v58 = vmul.f32 %v7005_v22, %v6900_v19 }
0x2f05   : > { %v6904_v26 = vpop.eup %6903  ;;  %v9351_v46 = vmul.f32 %v7007_v29, %v6902_v57  ;;  %v4783_v60 = vsel %vm4310_vm2, %v9348_v7, 0.0 }
0x2f06   : > { %v4750_v61 = vmul.f32 1.442695, %v6904_v26  ;;  %v6906_v13 = vpop.eup %6905  ;;  %v4784_v28 = vsel %vm4310_vm2, %v9345_v58, 0.0 }
0x2f07   : > { %v9354_v33 = vmul.f32 %v7008_v43, %v6906_v13  ;;  %v4786_v37 = vsel %vm4310_vm2, %v9351_v46, 0.0  ;;  %v4785_v62 = vadd.f32 %v4784_v28, %v4783_v60 }
0x2f08   : > { %6913 = vpow2.f32 %v4750_v61  ;;  %v9384_v61 = vpop.permute.xlu1 %5565 }
0x2f09   : > { %v6908_v16 = vpop.eup %6907  ;;  %v4788_v0 = vsel %vm4310_vm2, %v9354_v33, 0.0  ;;  %v4787_v9 = vadd.f32 %v4786_v37, %v4785_v62  ;;  %6915 = vtanh.f32 %v4688_v34 }
0x2f0a   : > { %v9361_v1 = vmul.f32 %v7009_v56, %v6908_v16  ;;  %6917 = vtanh.f32 %v4690_v2 }
0x2f0b   : > { %v4789_v21 = vadd.f32 %v4788_v0, %v4787_v9 }
0x2f0c   : > { %v4790_v23 = vsel %vm4310_vm2, %v9361_v1, 0.0  ;;  %v9388_v28 = vpop.permute.xlu1 %5580 }
0x2f0d   : > { %v6910_v24 = vpop.eup %6909  ;;  %v4791_v39 = vadd.f32 %v4790_v23, %v4789_v21 }
0x2f0e   : > { %v9369_v31 = vmul.f32 %v7010_v55, %v6910_v24 }
0x2f10   : > { %v4792_v53 = vsel %vm4310_vm2, %v9369_v31, 0.0  ;;  %v9391_v2 = vpop.permute.xlu1 %5590 }
0x2f11   : > { %v4647_v38 = vpop.xlane.xlu0 %4646  ;;  %v6912_v15 = vpop.eup %6911  ;;  %v4793_v4 = vadd.f32 %v4792_v53, %v4791_v39 }
0x2f12   : > { %v4692_v54 = vadd.f32 %v9331_v25, %v4647_v38  ;;  %v4765_v14 = vmul.f32 %v7011_v48, %v6912_v15 }
0x2f14   : > { %6919 = vtanh.f32 %v4692_v54  ;;  %v4794_v44 = vsel %vm4310_vm2, %v4765_v14, 0.0  ;;  %v9394_v54 = vpop.permute.xlu1 %5600 }
0x2f15   : > { %v4653_v51 = vpop.xlane.xlu0 %4652  ;;  %v6914_v36 = vpop.eup %6913  ;;  %v4795_v19 = vadd.f32 %v4794_v44, %v4793_v4 }
0x2f16   : > { %v4694_v49 = vadd.f32 %v9331_v25, %v4653_v51  ;;  %v4767_v10 = vmul.f32 %v7012_v12, %v6914_v36  ;;  %v6916_v16 = vpop.eup %6915 }
0x2f17   : > { %v6918_v43 = vpop.eup %6917  ;;  %v4720_v60 = vmul.f32 1.442695, %v6916_v16  ;;  %v7014_v16 = vld [vmem:[%s8318_s21] sm:$0xff] }
0x2f18   : > { %6921 = vtanh.f32 %v4694_v49  ;;  %v4796_v57 = vsel %vm4310_vm2, %v4767_v10, 0.0  ;;  %v4724_v24 = vmul.f32 1.442695, %v6918_v43  ;;  %v9413_v12 = vpop.permute.xlu1 %5610 }
0x2f19   : > { %v4659_v26 = vpop.xlane.xlu0 %4658  ;;  %v4797_v13 = vadd.f32 %v4796_v57, %v4795_v19 }
0x2f1a   : > { %v4696_v22 = vadd.f32 %v9331_v25, %v4659_v26 }
0x2f1b   : > { %v4799_v6 = vmax.f32 %v4797_v13, 1e-12 }
0x2f1c   : > { %6923 = vtanh.f32 %v4696_v22  ;;  %v7013_v22 = vld [vmem:[%s8318_s21 + $0x10] sm:$0xff] }
0x2f1d   : > { %v4665_v42 = vpop.xlane.xlu0 %4664  ;;  %6925 = vrcp.f32 %v4799_v6 }
0x2f1e   : > { %v4698_v29 = vadd.f32 %v9331_v25, %v4665_v42  ;;  %v9419_v42 = vpop.permute.xlu1 %5620 }
0x2f20   : > { %6927 = vtanh.f32 %v4698_v29 }
0x2f21   : > { %v6920_v30 = vpop.eup %6919  ;;  %v4671_v56 = vpop.xlane.xlu0 %4670 }
0x2f22   : > { %v4700_v37 = vadd.f32 %v9331_v25, %v4671_v56  ;;  %v4728_v34 = vmul.f32 1.442695, %v6920_v30 }
0x2f24   : > { %6929 = vtanh.f32 %v4700_v37 }
0x2f25   : > { %v6922_v62 = vpop.eup %6921  ;;  %v4677_v55 = vpop.xlane.xlu0 %4676  ;;  %6931 = vpow2.f32 %v4720_v60  ;;  %v7016_v60 = vld [vmem:[%s8318_s21 + $0x30] sm:$0xff] }
0x2f26   : > { %v4702_v0 = vadd.f32 %v9331_v25, %v4677_v55  ;;  %6933 = vpow2.f32 %v4724_v24  ;;  %v4732_v9 = vmul.f32 1.442695, %v6922_v62  ;;  %v7017_v62 = vld [vmem:[%s8318_s21 + $0x40] sm:$0xff] }
0x2f27   : > { %6935 = vpow2.f32 %v4728_v34 }
0x2f28   : > { %6937 = vtanh.f32 %v4702_v0 }
0x2f29   : > { %v6924_v38 = vpop.eup %6923  ;;  %6939 = vpow2.f32 %v4732_v9 }
0x2f2a   : > { %v4736_v23 = vmul.f32 1.442695, %v6924_v38  ;;  %v6926_v15 = vpop.eup %6925 }
0x2f2b   : > { %v4805_v21 = vmul.f32 %v6926_v15, %v9345_v58  ;;  %v4803_v53 = vmul.f32 %v6926_v15, %v9348_v7  ;;  %v9401_v25 = vmul.f32 %v6926_v15, %v9361_v1  ;;  %v9404_v51 = vmul.f32 %v6926_v15, %v9369_v31 }
0x2f2c   : > { %6941 = vpow2.f32 %v4736_v23  ;;  %v9406_v36 = vmul.f32 %v6926_v15, %v4765_v14  ;;  %v9408_v49 = vmul.f32 %v6926_v15, %v4767_v10  ;;  %v4807_v58 = vmul.f32 %v6926_v15, %v9351_v46  ;;  %v9439_v23 = vpop.permute.xlu1 %5630 }
0x2f2d   : > { %v6928_v48 = vpop.eup %6927  ;;  %v9398_v39 = vpop.permute.xlu0 %5585  ;;  %5449 = vperm.xlu0 %6413, %v4805_v21   ;;  %5439 = vperm.xlu1 %6414, %v4803_v53   ;;  %v4809_v31 = vmul.f32 %v6926_v15, %v9354_v33  ;;  %v7015_v33 = vld [vmem:[%s8318_s21 + $0x20] sm:$0xff]  ;;  %v7018_v21 = vld [vmem:[%s8318_s21 + $0x50] sm:$0xff] }
0x2f2e   : > { %v4740_v44 = vmul.f32 1.442695, %v6928_v48 }
0x2f30   : > { %6943 = vpow2.f32 %v4740_v44 }
0x2f31   : > { %v9411_v7 = vpop.permute.xlu0 %5595  ;;  %v6930_v4 = vpop.eup %6929  ;;  %5459 = vperm.xlu0 %6413, %v4807_v58  }
0x2f32   : > { %v6932_v1 = vpop.eup %6931  ;;  %v4744_v19 = vmul.f32 1.442695, %v6930_v4 }
0x2f33   : > { %v6934_v57 = vpop.eup %6933  ;;  %v9422_v43 = vmul.f32 %v7014_v16, %v6932_v1 }
0x2f34   : > { %v6936_v14 = vpop.eup %6935  ;;  %6945 = vpow2.f32 %v4744_v19  ;;  %v9417_v13 = vmul.f32 %v7013_v22, %v6934_v57 }
0x2f35   : > { %v5606_v10 = vpop.permute.xlu0 %5605  ;;  %v6938_v26 = vpop.eup %6937  ;;  %5469 = vperm.xlu0 %6413, %v4809_v31   ;;  %v9425_v30 = vmul.f32 %v7015_v33, %v6936_v14  ;;  %v4768_v9 = vsel %vm4310_vm2, %v9422_v43, 0.0  ;;  %v7019_v31 = vld [vmem:[%s8318_s21 + $0x60] sm:$0xff] }
0x2f36   : > { %v4748_v46 = vmul.f32 1.442695, %v6938_v26  ;;  %v6940_v6 = vpop.eup %6939  ;;  %v4769_v24 = vsel %vm4310_vm2, %v9417_v13, 0.0  ;;  %v9453_v26 = vpop.permute.xlu1 %5640 }
0x2f37   : > { %v9428_v37 = vmul.f32 %v7016_v60, %v6940_v6  ;;  %v4771_v38 = vsel %vm4310_vm2, %v9425_v30, 0.0  ;;  %v4770_v15 = vadd.f32 %v4769_v24, %v4768_v9 }
0x2f38   : > { %6947 = vpow2.f32 %v4748_v46 }
0x2f39   : > { %v5616_v29 = vpop.permute.xlu0 %5615  ;;  %v6942_v56 = vpop.eup %6941  ;;  %v4773_v48 = vsel %vm4310_vm2, %v9428_v37, 0.0  ;;  %v4772_v44 = vadd.f32 %v4771_v38, %v4770_v15 }
0x2f3a   : > { %v9433_v55 = vmul.f32 %v7017_v62, %v6942_v56  ;;  %v7020_v56 = vld [vmem:[%s8318_s21 + $0x70] sm:$0xff]  ;;  %v9462_v9 = vpop.permute.xlu1 %5650 }
0x2f3b   : > { %v4774_v19 = vadd.f32 %v4773_v48, %v4772_v44 }
0x2f3c   : > { %v4775_v4 = vsel %vm4310_vm2, %v9433_v55, 0.0 }
0x2f3d   : > { %v6944_v34 = vpop.eup %6943  ;;  %v5626_v0 = vpop.permute.xlu0 %5625  ;;  %v4776_v46 = vadd.f32 %v4775_v4, %v4774_v19  ;;  %v9753_v4 = vld [vmem:[#allocation31_spill] sm:$0xff]  ;;  %v9754_v19 = vld [vmem:[#allocation33_spill] sm:$0xff] }
0x2f3e   : > { %v9442_v53 = vmul.f32 %v7018_v21, %v6944_v34  ;;  %v9752_v21 = vld [vmem:[#allocation32_spill] sm:$0xff] }
0x2f3f   : > { %v5719_v48 = vmul.f32 %v9384_v61, %v9752_v21 }
0x2f40   : > { %v4777_v57 = vsel %vm4310_vm2, %v9442_v53, 0.0 }
0x2f41   : > { %v5636_v58 = vpop.permute.xlu0 %5635  ;;  %v6946_v1 = vpop.eup %6945  ;;  %v4778_v33 = vadd.f32 %v4777_v57, %v4776_v46  ;;  %v5723_v57 = vmul.f32 %v9398_v39, %v9754_v19  ;;  %v5781_v46 = vsel %vm4451_vm3, %v5719_v48, 0.0  ;;  %v9758_v48 = vld [vmem:[#allocation17_spill] sm:$0xff] }
0x2f42   : > { %v9451_v14 = vmul.f32 %v7019_v31, %v6946_v1  ;;  %v5721_v1 = vmul.f32 %v9358_v50, %v9753_v4  ;;  %v9470_v31 = vpop.permute.xlu1 %5660  ;;  %v5722_v52 = vmul.f32 %v9388_v28, %v9758_v48 }
0x2f43   : > { %v5784_v61 = vsel %vm4451_vm3, %v5723_v57, 0.0  ;;  %v9760_v57 = vld [vmem:[#allocation18_spill] sm:$0xff] }
0x2f44   : > { %v4779_v22 = vsel %vm4310_vm2, %v9451_v14, 0.0 }
0x2f45   : > { %v5646_v6 = vpop.permute.xlu0 %5645  ;;  %v6948_v16 = vpop.eup %6947  ;;  %v4780_v24 = vadd.f32 %v4779_v22, %v4778_v33  ;;  %v9755_v22 = vld [vmem:[#allocation34_spill] sm:$0xff] }
0x2f46   : > { %v9458_v60 = vmul.f32 %v7020_v56, %v6948_v16  ;;  %v5725_v16 = vmul.f32 %v9411_v7, %v9755_v22  ;;  %v5782_v56 = vsel %vm4451_vm3, %v5721_v1, 0.0  ;;  %v9480_v4 = vpop.permute.xlu1 %5670  ;;  %v9759_v22 = vld [vmem:[#allocation37_spill] sm:$0xff] }
0x2f47   : > { %v5731_v1 = vmul.f32 %v5626_v0, %v9759_v22  ;;  %v9763_v0 = vld [vmem:[#allocation39_spill] sm:$0xff] }
0x2f48   : > { %v4781_v34 = vsel %vm4310_vm2, %v9458_v60, 0.0  ;;  %v5786_v50 = vsel %vm4451_vm3, %v5725_v16, 0.0  ;;  %v9761_v16 = vld [vmem:[#allocation38_spill] sm:$0xff] }
0x2f49   : > { %v5656_v62 = vpop.permute.xlu0 %5655  ;;  %v4782_v38 = vadd.f32 %v4781_v34, %v4780_v24  ;;  %v9756_v24 = vld [vmem:[#allocation35_spill] sm:$0xff] }
0x2f4a   : > { %v5727_v34 = vmul.f32 %v5606_v10, %v9756_v24  ;;  %v5724_v10 = vmul.f32 %v9391_v2, %v9760_v57 }
0x2f4b   : > { %v4798_v15 = vmax.f32 %v4782_v38, 1e-12  ;;  %v5783_v38 = vadd.f32 %v5782_v56, %v5781_v46  ;;  %v5733_v56 = vmul.f32 %v5636_v58, %v9761_v16 }
0x2f4c   : > { %v5788_v7 = vsel %vm4451_vm3, %v5727_v34, 0.0  ;;  %v5792_v34 = vsel %vm4451_vm3, %v5731_v1, 0.0  ;;  %v5755_v58 = vsel %vm4451_vm3, %v5724_v10, 0.0  ;;  %v9767_v10 = vld [vmem:[#allocation41_spill] sm:$0xff] }
0x2f4d   : > { %v5666_v44 = vpop.permute.xlu0 %5665  ;;  %6949 = vrcp.f32 %v4798_v15  ;;  %v9757_v15 = vld [vmem:[#allocation36_spill] sm:$0xff]  ;;  %v5785_v19 = vadd.f32 %v5784_v61, %v5783_v38  ;;  %v5753_v61 = vsel %vm4451_vm3, %v5722_v52, 0.0  ;;  %v9762_v38 = vld [vmem:[#allocation19_spill] sm:$0xff] }
0x2f4e   : > { %v5729_v21 = vmul.f32 %v5616_v29, %v9757_v15  ;;  %v5726_v28 = vmul.f32 %v9394_v54, %v9762_v38  ;;  %v9765_v54 = vld [vmem:[#allocation40_spill] sm:$0xff]  ;;  %v5754_v1 = vadd.f32 %v5753_v61, %v9313_v5  ;;  %v5739_v16 = vmul.f32 %v5666_v44, %v9767_v10  ;;  %v9775_v10 = vld [vmem:[#allocation45_spill] sm:$0xff] }
0x2f4f   : > { %v5787_v41 = vadd.f32 %v5786_v50, %v5785_v19  ;;  %v5735_v50 = vmul.f32 %v5646_v6, %v9763_v0  ;;  %v5681_v19 = vpop.permute.xlu1 %5680  ;;  %v5737_v22 = vmul.f32 %v5656_v62, %v9765_v54  ;;  %v9772_v54 = vld [vmem:[#allocation24_spill] sm:$0xff] }
0x2f50   : > { %v5790_v46 = vsel %vm4451_vm3, %v5729_v21, 0.0  ;;  %v9764_v21 = vld [vmem:[#allocation20_spill] sm:$0xff]  ;;  %v5757_v57 = vsel %vm4451_vm3, %v5726_v28, 0.0 }
0x2f51   : > { %v5676_v33 = vpop.permute.xlu0 %5675  ;;  %v5789_v29 = vadd.f32 %v5788_v7, %v5787_v41  ;;  %v5728_v52 = vmul.f32 %v9413_v12, %v9764_v21  ;;  %v5794_v7 = vsel %vm4451_vm3, %v5733_v56, 0.0  ;;  %v9768_v56 = vld [vmem:[#allocation22_spill] sm:$0xff]  ;;  %v5798_v28 = vsel %vm4451_vm3, %v5737_v22, 0.0 }
0x2f52   : > { %v5732_v61 = vmul.f32 %v9439_v23, %v9768_v56 }
0x2f53   : > { %v5791_v48 = vadd.f32 %v5790_v46, %v5789_v29  ;;  %v5756_v29 = vadd.f32 %v5755_v58, %v5754_v1  ;;  %v5759_v5 = vsel %vm4451_vm3, %v5728_v52, 0.0  ;;  %v9771_v58 = vld [vmem:[#allocation43_spill] sm:$0xff]  ;;  %v9773_v1 = vld [vmem:[#allocation44_spill] sm:$0xff] }
0x2f55   : > { %v5686_v39 = vpop.permute.xlu0 %5685  ;;  %v5793_v6 = vadd.f32 %v5792_v34, %v5791_v48  ;;  %v9769_v34 = vld [vmem:[#allocation42_spill] sm:$0xff]  ;;  %v5691_v48 = vpop.permute.xlu1 %5690 }
0x2f56   : > { %v5741_v0 = vmul.f32 %v5676_v33, %v9769_v34  ;;  %v5743_v21 = vmul.f32 %v5686_v39, %v9771_v58 }
0x2f57   : > { %v5795_v12 = vadd.f32 %v5794_v7, %v5793_v6  ;;  %v5763_v7 = vsel %vm4451_vm3, %v5732_v61, 0.0  ;;  %v9777_v61 = vld [vmem:[#allocation46_spill] sm:$0xff] }
0x2f58   : > { %v5802_v22 = vsel %vm4451_vm3, %v5741_v0, 0.0  ;;  %v9778_v0 = vld [vmem:[#allocation27_spill] sm:$0xff] }
0x2f59   : > { %v5696_v24 = vpop.permute.xlu0 %5695 }
0x2f5a   : > { %v9490_v15 = vpop.eup %6949  ;;  %v5745_v6 = vmul.f32 %v5696_v24, %v9773_v1  ;;  %v5819_v1 = vld [vmem:[%s9658_s14 + $0x18] sm:$0xff] }
0x2f5b   : > { %v4804_v2 = vmul.f32 %v9490_v15, %v9417_v13  ;;  %v4802_v41 = vmul.f32 %v9490_v15, %v9422_v43  ;;  %v9766_v13 = vld [vmem:[#allocation21_spill] sm:$0xff]  ;;  %v5796_v43 = vsel %vm4451_vm3, %v5735_v50, 0.0  ;;  %v4806_v62 = vmul.f32 %v9490_v15, %v9425_v30  ;;  %6363 = vmatprep.subr.mxu0 %v5819_v1 }
0x2f5c   : > { %v5730_v46 = vmul.f32 %v9419_v42, %v9766_v13  ;;  %v5758_v42 = vadd.f32 %v5757_v57, %v5756_v29  ;;  %v5797_v50 = vadd.f32 %v5796_v43, %v5795_v12  ;;  %v4808_v33 = vmul.f32 %v9490_v15, %v9428_v37  ;;  %v5701_v29 = vpop.permute.xlu1 %5700  ;;  %6364 = vmatpush3.msra.mxu0 %v5819_v1 }
0x2f5d   : > { %5444 = vperm.xlu0 %6413, %v4804_v2   ;;  %5434 = vperm.xlu1 %6414, %v4802_v41   ;;  %v5706_v38 = vpop.permute.xlu0 %5705  ;;  %v9770_v2 = vld [vmem:[#allocation23_spill] sm:$0xff]  ;;  %v5800_v41 = vsel %vm4451_vm3, %v5739_v16, 0.0  ;;  %v5804_v43 = vsel %vm4451_vm3, %v5743_v21, 0.0  ;;  %v4810_v24 = vmul.f32 %v9490_v15, %v9433_v55  ;;  %v5806_v56 = vsel %vm4451_vm3, %v5745_v6, 0.0 }
0x2f5e   : > { %v5761_v44 = vsel %vm4451_vm3, %v5730_v46, 0.0  ;;  %v5734_v30 = vmul.f32 %v9453_v26, %v9770_v2  ;;  %v5760_v23 = vadd.f32 %v5759_v5, %v5758_v42  ;;  %v5799_v52 = vadd.f32 %v5798_v28, %v5797_v50  ;;  %v9774_v46 = vld [vmem:[#allocation25_spill] sm:$0xff]  ;;  %v9776_v5 = vld [vmem:[#allocation26_spill] sm:$0xff] }
0x2f5f   : > { %v5738_v37 = vmul.f32 %v9470_v31, %v9774_v46  ;;  %v5747_v16 = vmul.f32 %v5706_v38, %v9775_v10  ;;  %v5742_v42 = vmul.f32 %v5681_v19, %v9778_v0  ;;  %v5814_v46 = vld [vmem:[%s9657_s13 + $0x10] sm:$0xff] }
0x2f60   : > { %v5762_v57 = vadd.f32 %v5761_v44, %v5760_v23  ;;  %v5801_v26 = vadd.f32 %v5800_v41, %v5799_v52  ;;  %v5765_v39 = vsel %vm4451_vm3, %v5734_v30, 0.0  ;;  %v9779_v30 = vld [vmem:[#allocation28_spill] sm:$0xff]  ;;  %v9780_v52 = vld [vmem:[#allocation29_spill] sm:$0xff] }
0x2f61   : > { %5479 = vperm.xlu0 %6413, %v9401_v25   ;;  %5454 = vperm.xlu1 %6414, %v4806_v62   ;;  %v5736_v25 = vmul.f32 %v9462_v9, %v9772_v54  ;;  %v5716_v13 = vpop.permute.xlu0 %5715  ;;  %v5769_v38 = vsel %vm4451_vm3, %v5738_v37, 0.0  ;;  %v5808_v55 = vsel %vm4451_vm3, %v5747_v16, 0.0  ;;  %v5744_v41 = vmul.f32 %v5691_v48, %v9779_v30  ;;  %v9781_v48 = vld [vmem:[#allocation30_spill] sm:$0xff]  ;;  %v5817_v37 = vld [vmem:[%s9658_s14 + $0x8] sm:$0xff] }
0x2f62   : > { %v5764_v9 = vadd.f32 %v5763_v7, %v5762_v57  ;;  %v5803_v12 = vadd.f32 %v5802_v22, %v5801_v26  ;;  %v5749_v28 = vmul.f32 %v5716_v13, %v9777_v61  ;;  %v5773_v19 = vsel %vm4451_vm3, %v5742_v42, 0.0  ;;  %v5812_v16 = vld [vmem:[%s9657_s13] sm:$0xff] }
0x2f63   : > { %v5767_v62 = vsel %vm4451_vm3, %v5736_v25, 0.0  ;;  %v5775_v25 = vsel %vm4451_vm3, %v5744_v41, 0.0  ;;  %v4816_v13 = vmul.f32 %v9490_v15, %v9458_v60  ;;  %v5813_v60 = vld [vmem:[%s9657_s13 + $0x8] sm:$0xff] }
0x2f64   : > { %v5766_v31 = vadd.f32 %v5765_v39, %v5764_v9  ;;  %v5805_v34 = vadd.f32 %v5804_v43, %v5803_v12  ;;  %v5810_v58 = vsel %vm4451_vm3, %v5749_v28, 0.0 }
0x2f65   : > { %5489 = vperm.xlu0 %6413, %v9404_v51   ;;  %5464 = vperm.xlu1 %6414, %v4808_v33   ;;  %v5740_v51 = vmul.f32 %v9480_v4, %v9776_v5  ;;  %v4812_v4 = vmul.f32 %v9490_v15, %v9442_v53  ;;  %v5746_v33 = vmul.f32 %v5701_v29, %v9780_v52 }
0x2f66   : > { %v5768_v50 = vadd.f32 %v5767_v62, %v5766_v31  ;;  %v5807_v44 = vadd.f32 %v5806_v56, %v5805_v34  ;;  %v4814_v53 = vmul.f32 %v9490_v15, %v9451_v14  ;;  %v5818_v14 = vld [vmem:[%s9658_s14 + $0x10] sm:$0xff]  ;;  %v5816_v15 = vld [vmem:[%s9658_s14] sm:$0xff] }
0x2f67   : > { %v5771_v2 = vsel %vm4451_vm3, %v5740_v51, 0.0  ;;  %v5777_v57 = vsel %vm4451_vm3, %v5746_v33, 0.0  ;;  %6365 = vmatprep.subr.mxu0 %v5818_v14 }
0x2f68   : > { %v5770_v21 = vadd.f32 %v5769_v38, %v5768_v50  ;;  %v5809_v23 = vadd.f32 %v5808_v55, %v5807_v44  ;;  %6366 = vmatpush3.msra.mxu0 %v5818_v14 }
0x2f69   : > { %5499 = vperm.xlu0 %6413, %v9406_v36   ;;  %5474 = vperm.xlu1 %6414, %v4810_v24   ;;  %v5711_v36 = vpop.permute.xlu1 %5710 }
0x2f6a   : > { %v5772_v7 = vadd.f32 %v5771_v2, %v5770_v21  ;;  %v5811_v54 = vadd.f32 %v5810_v58, %v5809_v23  ;;  %v5748_v22 = vmul.f32 %v5711_v36, %v9781_v48  ;;  %6367 = vmatprep.subr.mxu0 %v5817_v37 }
0x2f6b   : > { %6368 = vmatpush3.msra.mxu0 %v5817_v37 }
0x2f6c   : > { %v5774_v6 = vadd.f32 %v5773_v19, %v5772_v7  ;;  %v5779_v39 = vsel %vm4451_vm3, %v5748_v22, 0.0  ;;  %6369 = vmatprep.subr.mxu0 %v5816_v15 }
0x2f6d   : > { %5509 = vperm.xlu0 %6413, %v9408_v49   ;;  %5484 = vperm.xlu1 %6414, %v4812_v4   ;;  %v5815_v49 = vld [vmem:[%s9657_s13 + $0x18] sm:$0xff] }
0x2f6e   : > { %6374 = vmatprep.subr.mxu1 %v5815_v49  ;;  %v5776_v26 = vadd.f32 %v5775_v25, %v5774_v6  ;;  %6370 = vmatpush3.msra.mxu0 %v5816_v15  ;;  %v9782_v6 = vld [vmem:[#allocation13_spill] sm:$0xff] }
0x2f6f   : > { %6375 = vmatpush3.msra.mxu1 %v5815_v49 }
0x2f70   : > { %v5778_v43 = vadd.f32 %v5777_v57, %v5776_v26  ;;  %6376 = vmatprep.subr.mxu1 %v5814_v46 }
0x2f71   : > { %5494 = vperm.xlu1 %6414, %v4814_v53   ;;  %5824 = vrot.lane.b32.xlu0 %v5811_v54, %s7048_s17 }
0x2f72   : > { %v5780_v10 = vadd.f32 %v5779_v39, %v5778_v43  ;;  %6377 = vmatpush3.msra.mxu1 %v5814_v46 }
0x2f73   : > { %6378 = vmatprep.subr.mxu1 %v5813_v60 }
0x2f74   : > { %6379 = vmatpush3.msra.mxu1 %v5813_v60 }
0x2f75   : > { %5504 = vperm.xlu1 %6414, %v4816_v13   ;;  %6380 = vmatprep.subr.mxu1 %v5812_v16 }
0x2f76   : > { %6381 = vmatpush3.msra.mxu1 %v5812_v16 }
0x2f79   : > { %5822 = vrot.lane.b32.xlu1 %v5780_v10, %s7048_s17 }
0x2fa8   : > { %v5450_v9 = vpop.permute.xlu0 %5449  ;;  %v5440_v12 = vpop.permute.xlu1 %5439 }
0x2fa9   : > { %v5515_v38 = vmul.f32 %v5450_v9, %v8403_v63  ;;  %v5513_v0 = vmul.f32 %v5440_v12, %v8398_v20 }
0x2fac   : > { %v5460_v29 = vpop.permute.xlu0 %5459 }
0x2fad   : > { %v5517_v55 = vmul.f32 %v5460_v29, %v8419_v47 }
0x2faf   : > { %v5546_v47 = vsel %vm1199_vm0, %v5517_v55, 0.0 }
0x2fb0   : > { %v5470_v24 = vpop.permute.xlu0 %5469 }
0x2fb1   : > { %v5519_v63 = vmul.f32 %v5470_v24, %v8432_v3 }
0x2fb3   : > { %v5548_v19 = vsel %vm1199_vm0, %v5519_v63, 0.0 }
0x2fd8   : > { %v5445_v62 = vpop.permute.xlu0 %5444  ;;  %v5435_v5 = vpop.permute.xlu1 %5434 }
0x2fd9   : > { %v5514_v31 = vmul.f32 %v5445_v62, %v8410_v8  ;;  %v5512_v34 = vmul.f32 %v5435_v5, %v8424_v59  ;;  %v5544_v8 = vsel %vm1199_vm0, %v5515_v38, 0.0  ;;  %v5543_v59 = vsel %vm1199_vm0, %v5513_v0, 0.0  ;;  %v6226_v5 = vld [vmem:[%s9659_s15] ss:$0 sm:$0xff] }
0x2fda   : > { %v5545_v36 = vadd.f32 %v5544_v8, %v5543_v59 }
0x2fdb   : > { %v5529_v44 = vsel %vm1199_vm0, %v5514_v31, 0.0  ;;  %v5528_v4 = vsel %vm1199_vm0, %v5512_v34, 0.0 }
0x2fdc   : > { %v5480_v51 = vpop.permute.xlu0 %5479  ;;  %v5455_v56 = vpop.permute.xlu1 %5454  ;;  %v5530_v41 = vadd.f32 %v5529_v44, %v5528_v4  ;;  %v5547_v33 = vadd.f32 %v5546_v47, %v5545_v36 }
0x2fdd   : > { %v5516_v42 = vmul.f32 %v5455_v56, %v8429_v17  ;;  %v5521_v58 = vmul.f32 %v5480_v51, %v8446_v40 }
0x2fde   : > { %v5549_v48 = vadd.f32 %v5548_v19, %v5547_v33 }
0x2fdf   : > { %v5531_v20 = vsel %vm1199_vm0, %v5516_v42, 0.0  ;;  %v5550_v54 = vsel %vm1199_vm0, %v5521_v58, 0.0 }
0x2fe0   : > { %v5490_v61 = vpop.permute.xlu0 %5489  ;;  %v5465_v28 = vpop.permute.xlu1 %5464  ;;  %v5532_v52 = vadd.f32 %v5531_v20, %v5530_v41  ;;  %v5551_v14 = vadd.f32 %v5550_v54, %v5549_v48 }
0x2fe1   : > { %v5518_v2 = vmul.f32 %v5465_v28, %v8441_v18  ;;  %v5523_v3 = vmul.f32 %v5490_v61, %v8462_v11 }
0x2fe3   : > { %v5533_v18 = vsel %vm1199_vm0, %v5518_v2, 0.0  ;;  %v5552_v1 = vsel %vm1199_vm0, %v5523_v3, 0.0 }
0x2fe4   : > { %v5475_v50 = vpop.permute.xlu1 %5474  ;;  %v5500_v30 = vpop.permute.xlu0 %5499  ;;  %v5534_v53 = vadd.f32 %v5533_v18, %v5532_v52  ;;  %v5553_v46 = vadd.f32 %v5552_v1, %v5551_v14 }
0x2fe5   : > { %v5520_v17 = vmul.f32 %v5475_v50, %v9745_v32  ;;  %v5525_v40 = vmul.f32 %v5500_v30, %v8476_v27  ;;  %v9783_v27 = vld [vmem:[#allocation15_spill] sm:$0xff] }
0x2fe7   : > { %v5535_v7 = vsel %vm1199_vm0, %v5520_v17, 0.0  ;;  %v5554_v26 = vsel %vm1199_vm0, %v5525_v40, 0.0 }
0x2fe8   : > { %v5485_v21 = vpop.permute.xlu1 %5484  ;;  %v5510_v32 = vpop.permute.xlu0 %5509  ;;  %v5536_v49 = vadd.f32 %v5535_v7, %v5534_v53  ;;  %v5555_v15 = vadd.f32 %v5554_v26, %v5553_v46 }
0x2fe9   : > { %v5522_v23 = vmul.f32 %v5485_v21, %v9746_v45  ;;  %v5527_v11 = vmul.f32 %v5510_v32, %v9782_v6 }
0x2feb   : > { %v5537_v22 = vsel %vm1199_vm0, %v5522_v23, 0.0  ;;  %v5556_v43 = vsel %vm1199_vm0, %v5527_v11, 0.0 }
0x2fec   : > { %v5495_v25 = vpop.permute.xlu1 %5494  ;;  %v5538_v13 = vadd.f32 %v5537_v22, %v5536_v49  ;;  %v5557_v9 = vadd.f32 %v5556_v43, %v5555_v15  ;;  %v5825_v29 = vpop.permute.xlu0 %5824 }
0x2fed   : > { %v5524_v45 = vmul.f32 %v5495_v25, %v9747_v35 }
0x2fef   : > { %v5539_v57 = vsel %vm1199_vm0, %v5524_v45, 0.0 }
0x2ff0   : > { %v5505_v39 = vpop.permute.xlu1 %5504  ;;  %v5540_v60 = vadd.f32 %v5539_v57, %v5538_v13 }
0x2ff1   : > { %v5526_v37 = vmul.f32 %v5505_v39, %v9783_v27 }
0x2ff3   : > { %v5541_v35 = vsel %vm1199_vm0, %v5526_v37, 0.0 }
0x2ff4   : > { %v5542_v10 = vadd.f32 %v5541_v35, %v5540_v60  ;;  %v5823_v16 = vpop.permute.xlu1 %5822 }
0x2ff5   : > { %6371 = vmatprep.mubr.msk.f32.mxu0 %vm1199_vm0, %v5823_v16 }
0x2ff6   : > { %6372 = vmatmul.mubr.msk.f32.vlgmr.msra.gmra.mxu0 %vm1199_vm0, %v5825_v29  ;;  %6382 = vmatprep.mubr.msk.f32.mxu1 %vm1199_vm0, %v5542_v10 }
0x2ff7   : > { %6383 = vmatmul.mubr.msk.f32.vlgmr.msra.gmra.mxu1 %vm1199_vm0, %v5557_v9 }
0x30b6   : > { %v6373_v12 = vpop.f32.mrf.mxu0 }
0x30b7   : > { %v6384_v24 = vpop.f32.mrf.mxu1 }
0x30b8   : > { %v5983_v62 = vadd.f32 %v6384_v24, %v6373_v12  ;;  %v5896_v51 = vpop.f32.mrf.mxu0 }
0x30b9   : > { %v5977_v56 = vpop.f32.mrf.mxu1 }
0x30ba   : > { %v5978_v61 = vadd.f32 %v5977_v56, %v5896_v51  ;;  %v5994_v28 = vadd.f32 %v6226_v5, %v5983_v62 }
0x30bc   : > { %v5993_v31 = vadd.f32 %v6226_v5, %v5978_v61 }
0x30be   : > { %6951 = vtanh.f32 %v5993_v31 }
0x30bf   : > { %6953 = vtanh.f32 %v5994_v28 }
0x30cb   : > { %v6952_v34 = vpop.eup %6951 }
0x30cc   : > { %v6954_v38 = vpop.eup %6953  ;;  %5998 = vst.msk [vmem:[%s1117_s23] sm:$0xff] %vm5997_vm4, %v6952_v34 }
0x30cd   : > { %5999 = vst.msk [vmem:[%s1117_s23 + $0x8] sm:$0xff] %vm5997_vm4, %v6954_v38 }
0x30ce PF: > { %p27_p9 = scmp.ge.s32.totalorder %s7157_s12, 4   ;;  %s9784_s25 = smov %s7039_s26 }
0x30cf   : > { %s9785_s26 = smov %s7166_s30  ;;  %s9786_s27 = smov %s7157_s12 }
0x30d0   :  { %29 = sbr.rel (!%p27_p9) target bundleno = 5 (0x5), region = 338 }

</bundles_post_ra>
